<compile_context>
chip_gen: v7x
topology: tpu7x:2x2x1
jax: 0.10.0
libtpu: 0.0.40
codegen_flags: <defaults>
</compile_context>

<pallas_src>
import functools

import jax
import jax.numpy as jnp
from jax.experimental import pallas as pl
from jax.experimental.pallas import tpu as pltpu

# ---- static problem sizes ---------------------------------------------------
S = 224                       # CLIP resize target (fixed by the module)
C = 3
F = C * S * S                 # 150528 flattened pixels per image
D = 128                       # synthetic CLIP feature dim
T = 8                         # number of text prompts
TK = 25088                    # K-tile of the flattened-pixel axis (150528 / 6)
NK = F // TK                  # 6
NCORES = 2                    # K-reduction split (uses both v7x TensorCores)
HK = NK // NCORES             # 3 K-chunks per core

CLIP_MEAN = (0.48145466, 0.4578275, 0.40821073)
CLIP_STD = (0.26862954, 0.26130258, 0.27577711)


# ---- kernel 1: streamed bf16 encoder matmul (partial accumulation) ----------
def _encode_kernel(img_ref, w_ref, o_ref):
    # grid = (core, k); for a fixed core the output block stays resident and
    # accumulates the K-chunk partial products (f32).
    k = pl.program_id(1)

    @pl.when(k == 0)
    def _():
        o_ref[...] = jnp.zeros_like(o_ref)

    o_ref[...] += jnp.dot(img_ref[...], w_ref[...],
                          preferred_element_type=jnp.float32)   # [3B, D] f32


# ---- kernel 2: combine partials + CLIP score epilogue ------------------------
def _epilogue_kernel(part_ref, b_ref, tn_ref, out_ref, *, batch):
    # part_ref: [2, 3B, D] per-core partial sums; b_ref: [1, D] folded bias;
    # tn_ref: [T, D] pre-normalized text features.
    feats = part_ref[0] + part_ref[1] + b_ref[...]               # [3B, D]
    inv_n = jax.lax.rsqrt(jnp.sum(feats * feats, axis=-1, keepdims=True) + 1e-12)
    fn = feats * inv_n
    logits = 100.0 * jnp.einsum('bd,td->bt', fn, tn_ref[...],
                                preferred_element_type=jnp.float32)  # [3B, T]
    m = jnp.max(logits, axis=-1, keepdims=True)
    e = jnp.exp(logits - m)
    probs = e / jnp.sum(e, axis=-1, keepdims=True)
    prob = 1.0 - probs[:, T - 1:T]                               # 1 - probs[..., -1]

    # Per-set mean score via row masks (rows [0,B) = x, [B,2B) = pos, [2B,3B) = neg).
    row = jax.lax.broadcasted_iota(jnp.int32, prob.shape, 0)
    zero = jnp.zeros_like(prob)
    k1 = jnp.sum(jnp.where(row < batch, prob, zero), axis=0, keepdims=True) / batch
    k2 = jnp.sum(jnp.where((row >= batch) & (row < 2 * batch), prob, zero),
                 axis=0, keepdims=True) / batch
    k3 = jnp.sum(jnp.where(row >= 2 * batch, prob, zero), axis=0, keepdims=True) / batch

    mse12 = (k1 - k2) ** 2                                       # MSELoss of scalars
    mse13 = (k1 - k3) ** 2
    out_ref[...] = jnp.clip(mse12 / (mse13 + 1e-5), 0.0, 1.0)


def l_clip_cr(x, positive, negative, text_features, enc_w, enc_b):
    """x/positive/negative: NCHW [B, 3, H, W] float32; text_features: [T, D]."""
    B = x.shape[0]
    M = 3 * B

    def prep(t):
        # torchvision Resize((224,224)) equivalent (bilinear), then flatten CHW.
        r = jax.image.resize(t.astype(jnp.float32), (B, C, S, S), method="bilinear")
        return r.reshape(B, F)

    imgs = jnp.concatenate([prep(x), prep(positive), prep(negative)], axis=0)  # [3B, F]

    # Fold CLIP normalization into the (synthetic) encoder weights / bias.
    mean_flat = jnp.repeat(jnp.asarray(CLIP_MEAN, jnp.float32), S * S)         # [F]
    istd_flat = jnp.repeat(1.0 / jnp.asarray(CLIP_STD, jnp.float32), S * S)    # [F]
    w_fold = (istd_flat[:, None] * enc_w).astype(jnp.bfloat16)                 # [F, D] bf16
    b_fold = enc_b - (mean_flat * istd_flat)[None, :] @ enc_w                  # [1, D] f32

    # Pre-normalize text features once in the wrapper.
    tn = text_features / jnp.linalg.norm(text_features, axis=-1, keepdims=True)

    imgs_bf = imgs.astype(jnp.bfloat16)                                        # [3B, F] bf16

    # Stage 1: stream W once, accumulate per-core partial feature sums.
    partial = pl.pallas_call(
        _encode_kernel,
        out_shape=jax.ShapeDtypeStruct((NCORES, M, D), jnp.float32),
        grid_spec=pltpu.PrefetchScalarGridSpec(
            num_scalar_prefetch=0,
            grid=(NCORES, HK),
            in_specs=[
                pl.BlockSpec((M, TK), lambda c, k: (0, c * HK + k)),   # images
                pl.BlockSpec((TK, D), lambda c, k: (c * HK + k, 0)),   # folded W (bf16)
            ],
            out_specs=pl.BlockSpec((None, M, D), lambda c, k: (c, 0, 0)),
        ),
        compiler_params=pltpu.CompilerParams(
            dimension_semantics=("parallel", "arbitrary"),
            vmem_limit_bytes=32 << 20),
    )(imgs_bf, w_fold)

    # Stage 2: tiny epilogue (combine, norm, 100*cos-sim, softmax, scores, ratio).
    loss = pl.pallas_call(
        functools.partial(_epilogue_kernel, batch=B),
        out_shape=jax.ShapeDtypeStruct((1, 1), jnp.float32),
        grid_spec=pltpu.PrefetchScalarGridSpec(
            num_scalar_prefetch=0,
            grid=(1,),
            in_specs=[
                pl.BlockSpec((NCORES, M, D), lambda i: (0, 0, 0)),     # partials
                pl.BlockSpec((1, D), lambda i: (0, 0)),                # folded bias
                pl.BlockSpec((T, D), lambda i: (0, 0)),                # normalized text
            ],
            out_specs=pl.BlockSpec((1, 1), lambda i: (0, 0)),
        ),
        compiler_params=pltpu.CompilerParams(
            dimension_semantics=("arbitrary",)),
    )(partial, b_fold, tn)
    return loss[0, 0]


if __name__ == "__main__":
    key = jax.random.PRNGKey(0)
    kx, kp, kn, kt, kw, kb = jax.random.split(key, 6)

    B, H, W = 2, 16, 16
    x = jax.random.uniform(kx, (B, C, H, W), jnp.float32)
    positive = jax.random.uniform(kp, (B, C, H, W), jnp.float32)
    negative = jax.random.uniform(kn, (B, C, H, W), jnp.float32)
    text_features = jax.random.normal(kt, (T, D), jnp.float32)

    # Deterministic synthetic stand-in for CLIP's image encoder.
    enc_w = jax.random.normal(kw, (F, D), jnp.float32) / jnp.sqrt(jnp.float32(F))
    enc_b = 0.01 * jax.random.normal(kb, (1, D), jnp.float32)

    loss = jax.jit(l_clip_cr)(x, positive, negative, text_features, enc_w, enc_b)
    loss = jax.block_until_ready(loss)
    assert bool(jnp.isfinite(loss))
    print("KERNEL_OK")
</pallas_src>

<mosaic_0001>
module attributes {stable_mosaic.version = 11 : i64} {
  func.func @_encode_kernel(%arg0: i32, %arg1: i32, %arg2: memref<6x25088xbf16, #tpu.memory_space<vmem>>, %arg3: memref<25088x128xbf16, #tpu.memory_space<vmem>>, %arg4: memref<1x6x128xf32, #tpu.memory_space<vmem>>) attributes {dimension_semantics = [#tpu.dimension_semantics<parallel>, #tpu.dimension_semantics<arbitrary>], iteration_bounds = array<i64: 2, 3>, scalar_prefetch = 0 : i64, scratch_operands = 0 : i64, tpu.core_type = #tpu.core_type<tc>, window_params = [{transform_indices = @transform_0, window_bounds = array<i64: 6, 25088>}, {transform_indices = @transform_1, window_bounds = array<i64: 25088, 128>}, {transform_indices = @transform_2, window_bounds = array<i64: 1, 6, 128>}]} {
    %c0_i32 = arith.constant 0 : i32
    %0 = arith.cmpi eq, %arg1, %c0_i32 : i32
    %1 = arith.extui %0 : i1 to i32
    %c0_i32_0 = arith.constant 0 : i32
    %2 = arith.cmpi ne, %1, %c0_i32_0 : i32
    scf.if %2 {
      %cst_10 = arith.constant 0.000000e+00 : f32
      %12 = vector.broadcast %cst_10 : f32 to vector<6x128xf32>
      %c0_11 = arith.constant 0 : index
      %c0_12 = arith.constant 0 : index
      %c0_13 = arith.constant 0 : index
      %13 = vector.load %arg4[%c0_11, %c0_12, %c0_13] : memref<1x6x128xf32, #tpu.memory_space<vmem>>, vector<1x6x128xf32>
      %14 = vector.shape_cast %13 : vector<1x6x128xf32> to vector<6x128xf32>
      %15 = vector.shape_cast %12 : vector<6x128xf32> to vector<1x6x128xf32>
      tpu.vector_store %arg4[%c0_11, %c0_12, %c0_13], %15 {strides = array<i32>} : memref<1x6x128xf32, #tpu.memory_space<vmem>>, vector<1x6x128xf32>,
    } else {
    }
    %c0 = arith.constant 0 : index
    %c0_1 = arith.constant 0 : index
    %c0_2 = arith.constant 0 : index
    %3 = vector.load %arg4[%c0, %c0_1, %c0_2] : memref<1x6x128xf32, #tpu.memory_space<vmem>>, vector<1x6x128xf32>
    %4 = vector.shape_cast %3 : vector<1x6x128xf32> to vector<6x128xf32>
    %c0_3 = arith.constant 0 : index
    %c0_4 = arith.constant 0 : index
    %5 = vector.load %arg2[%c0_3, %c0_4] : memref<6x25088xbf16, #tpu.memory_space<vmem>>, vector<6x25088xbf16>
    %c0_5 = arith.constant 0 : index
    %c0_6 = arith.constant 0 : index
    %6 = vector.load %arg3[%c0_5, %c0_6] : memref<25088x128xbf16, #tpu.memory_space<vmem>>, vector<25088x128xbf16>
    %cst = arith.constant dense<0.000000e+00> : vector<6x128xf32>
    %7 = tpu.matmul %5, %6, %cst {dimension_numbers = #tpu.dot_dimension_numbers<[1], [0], [0], [1], [0, 0, 1, 1], [], []>} : vector<6x25088xbf16>, vector<25088x128xbf16>, vector<6x128xf32> -> vector<6x128xf32>
    %8 = arith.addf %4, %7 : vector<6x128xf32>
    %c0_7 = arith.constant 0 : index
    %c0_8 = arith.constant 0 : index
    %c0_9 = arith.constant 0 : index
    %9 = vector.load %arg4[%c0_7, %c0_8, %c0_9] : memref<1x6x128xf32, #tpu.memory_space<vmem>>, vector<1x6x128xf32>
    %10 = vector.shape_cast %9 : vector<1x6x128xf32> to vector<6x128xf32>
    %11 = vector.shape_cast %8 : vector<6x128xf32> to vector<1x6x128xf32>
    tpu.vector_store %arg4[%c0_7, %c0_8, %c0_9], %11 {strides = array<i32>} : memref<1x6x128xf32, #tpu.memory_space<vmem>>, vector<1x6x128xf32>,
    return
  }
  func.func @transform_0(%arg0: i32, %arg1: i32) -> (i32, i32) {
    %c3_i32 = arith.constant 3 : i32
    %0 = arith.muli %arg0, %c3_i32 : i32
    %1 = arith.addi %0, %arg1 : i32
    %c0_i32 = arith.constant 0 : i32
    %c0_i32_0 = arith.constant 0 : i32
    return %c0_i32, %1 : i32, i32
  }
  func.func @transform_1(%arg0: i32, %arg1: i32) -> (i32, i32) {
    %c3_i32 = arith.constant 3 : i32
    %0 = arith.muli %arg0, %c3_i32 : i32
    %1 = arith.addi %0, %arg1 : i32
    %c0_i32 = arith.constant 0 : i32
    %c0_i32_0 = arith.constant 0 : i32
    return %1, %c0_i32 : i32, i32
  }
  func.func @transform_2(%arg0: i32, %arg1: i32) -> (i32, i32, i32) {
    %c0_i32 = arith.constant 0 : i32
    %c0_i32_0 = arith.constant 0 : i32
    %c0_i32_1 = arith.constant 0 : i32
    return %arg0, %c0_i32, %c0_i32_0 : i32, i32, i32
  }
}

module attributes {stable_mosaic.version = 11 : i64} {
  func.func @_epilogue_kernel(%arg0: i32, %arg1: memref<2x6x128xf32, #tpu.memory_space<vmem>>, %arg2: memref<1x128xf32, #tpu.memory_space<vmem>>, %arg3: memref<8x128xf32, #tpu.memory_space<vmem>>, %arg4: memref<1x1xf32, #tpu.memory_space<vmem>>) attributes {dimension_semantics = [#tpu.dimension_semantics<arbitrary>], iteration_bounds = array<i64: 1>, scalar_prefetch = 0 : i64, scratch_operands = 0 : i64, tpu.core_type = #tpu.core_type<tc>, window_params = [{pipeline_mode = #tpu.pipeline_mode<synchronous>, transform_indices = @transform_0, window_bounds = array<i64: 2, 6, 128>}, {pipeline_mode = #tpu.pipeline_mode<synchronous>, transform_indices = @transform_1, window_bounds = array<i64: 1, 128>}, {pipeline_mode = #tpu.pipeline_mode<synchronous>, transform_indices = @transform_2, window_bounds = array<i64: 8, 128>}, {pipeline_mode = #tpu.pipeline_mode<synchronous>, transform_indices = @transform_3, window_bounds = array<i64: 1, 1>}]} {
    %c0 = arith.constant 0 : index
    %c0_0 = arith.constant 0 : index
    %c0_1 = arith.constant 0 : index
    %0 = vector.load %arg1[%c0, %c0_0, %c0_1] : memref<2x6x128xf32, #tpu.memory_space<vmem>>, vector<1x6x128xf32>
    %1 = vector.shape_cast %0 : vector<1x6x128xf32> to vector<6x128xf32>
    %c1 = arith.constant 1 : index
    %c0_2 = arith.constant 0 : index
    %c0_3 = arith.constant 0 : index
    %2 = vector.load %arg1[%c1, %c0_2, %c0_3] : memref<2x6x128xf32, #tpu.memory_space<vmem>>, vector<1x6x128xf32>
    %3 = vector.shape_cast %2 : vector<1x6x128xf32> to vector<6x128xf32>
    %4 = arith.addf %1, %3 : vector<6x128xf32>
    %c0_4 = arith.constant 0 : index
    %c0_5 = arith.constant 0 : index
    %5 = vector.load %arg2[%c0_4, %c0_5] : memref<1x128xf32, #tpu.memory_space<vmem>>, vector<1x128xf32>
    %6 = vector.broadcast %5 : vector<1x128xf32> to vector<6x128xf32>
    %7 = arith.addf %4, %6 : vector<6x128xf32>
    %8 = arith.mulf %7, %7 : vector<6x128xf32>
    %cst = arith.constant dense<0.000000e+00> : vector<6xf32>
    %9 = vector.multi_reduction <add>, %8, %cst [1] : vector<6x128xf32> to vector<6xf32>
    %10 = vector.shape_cast %9 : vector<6xf32> to vector<6x1xf32>
    %cst_6 = arith.constant 9.99999996E-13 : f32
    %11 = vector.broadcast %cst_6 : f32 to vector<6x1xf32>
    %12 = arith.addf %10, %11 : vector<6x1xf32>
    %13 = math.rsqrt %12 : vector<6x1xf32>
    %14 = vector.broadcast %13 : vector<6x1xf32> to vector<6x128xf32>
    %15 = arith.mulf %7, %14 : vector<6x128xf32>
    %c0_7 = arith.constant 0 : index
    %c0_8 = arith.constant 0 : index
    %16 = vector.load %arg3[%c0_7, %c0_8] : memref<8x128xf32, #tpu.memory_space<vmem>>, vector<8x128xf32>
    "tpu.trace_start"() <{level = 10 : i32, message = "bd,td->bt"}> : () -> ()
    %cst_9 = arith.constant dense<0.000000e+00> : vector<6x8xf32>
    %17 = tpu.matmul %15, %16, %cst_9 {dimension_numbers = #tpu.dot_dimension_numbers<[1], [1], [0], [0], [0, 0, 1, 0], [], []>} : vector<6x128xf32>, vector<8x128xf32>, vector<6x8xf32> -> vector<6x8xf32>
    "tpu.trace_stop"() : () -> ()
    %cst_10 = arith.constant 1.000000e+02 : f32
    %18 = vector.broadcast %cst_10 : f32 to vector<6x8xf32>
    %19 = arith.mulf %18, %17 : vector<6x8xf32>
    %cst_11 = arith.constant dense<0xFF800000> : vector<6xf32>
    %20 = vector.multi_reduction <maximumf>, %19, %cst_11 [1] : vector<6x8xf32> to vector<6xf32>
    %21 = vector.shape_cast %20 : vector<6xf32> to vector<6x1xf32>
    %22 = vector.broadcast %21 : vector<6x1xf32> to vector<6x8xf32>
    %23 = arith.subf %19, %22 : vector<6x8xf32>
    %24 = math.exp %23 : vector<6x8xf32>
    %cst_12 = arith.constant dense<0.000000e+00> : vector<6xf32>
    %25 = vector.multi_reduction <add>, %24, %cst_12 [1] : vector<6x8xf32> to vector<6xf32>
    %26 = vector.shape_cast %25 : vector<6xf32> to vector<6x1xf32>
    %27 = vector.broadcast %26 : vector<6x1xf32> to vector<6x8xf32>
    %28 = arith.divf %24, %27 : vector<6x8xf32>
    %29 = vector.extract_strided_slice %28 {offsets = [0, 7], sizes = [6, 1], strides = [1, 1]} : vector<6x8xf32> to vector<6x1xf32>
    %cst_13 = arith.constant 1.000000e+00 : f32
    %30 = vector.broadcast %cst_13 : f32 to vector<6x1xf32>
    %31 = arith.subf %30, %29 : vector<6x1xf32>
    %32 = tpu.iota {dimensions = array<i32: 0>} : vector<6x1xi32>
    %cst_14 = arith.constant 0.000000e+00 : f32
    %33 = vector.broadcast %cst_14 : f32 to vector<6x1xf32>
    %c2_i32 = arith.constant 2 : i32
    %34 = vector.broadcast %c2_i32 : i32 to vector<6x1xi32>
    %35 = arith.cmpi slt, %32, %34 : vector<6x1xi32>
    %36 = arith.select %35, %31, %33 : vector<6x1xi1>, vector<6x1xf32>
    %cst_15 = arith.constant dense<0.000000e+00> : vector<1xf32>
    %37 = vector.multi_reduction <add>, %36, %cst_15 [0] : vector<6x1xf32> to vector<1xf32>
    %38 = vector.shape_cast %37 : vector<1xf32> to vector<1x1xf32>
    %cst_16 = arith.constant 2.000000e+00 : f32
    %39 = vector.broadcast %cst_16 : f32 to vector<1x1xf32>
    %40 = arith.divf %38, %39 : vector<1x1xf32>
    %c2_i32_17 = arith.constant 2 : i32
    %41 = vector.broadcast %c2_i32_17 : i32 to vector<6x1xi32>
    %42 = arith.cmpi sge, %32, %41 : vector<6x1xi32>
    %c4_i32 = arith.constant 4 : i32
    %43 = vector.broadcast %c4_i32 : i32 to vector<6x1xi32>
    %44 = arith.cmpi slt, %32, %43 : vector<6x1xi32>
    %45 = arith.andi %42, %44 : vector<6x1xi1>
    %46 = arith.select %45, %31, %33 : vector<6x1xi1>, vector<6x1xf32>
    %cst_18 = arith.constant dense<0.000000e+00> : vector<1xf32>
    %47 = vector.multi_reduction <add>, %46, %cst_18 [0] : vector<6x1xf32> to vector<1xf32>
    %48 = vector.shape_cast %47 : vector<1xf32> to vector<1x1xf32>
    %cst_19 = arith.constant 2.000000e+00 : f32
    %49 = vector.broadcast %cst_19 : f32 to vector<1x1xf32>
    %50 = arith.divf %48, %49 : vector<1x1xf32>
    %c4_i32_20 = arith.constant 4 : i32
    %51 = vector.broadcast %c4_i32_20 : i32 to vector<6x1xi32>
    %52 = arith.cmpi sge, %32, %51 : vector<6x1xi32>
    %53 = arith.select %52, %31, %33 : vector<6x1xi1>, vector<6x1xf32>
    %cst_21 = arith.constant dense<0.000000e+00> : vector<1xf32>
    %54 = vector.multi_reduction <add>, %53, %cst_21 [0] : vector<6x1xf32> to vector<1xf32>
    %55 = vector.shape_cast %54 : vector<1xf32> to vector<1x1xf32>
    %cst_22 = arith.constant 2.000000e+00 : f32
    %56 = vector.broadcast %cst_22 : f32 to vector<1x1xf32>
    %57 = arith.divf %55, %56 : vector<1x1xf32>
    %58 = arith.subf %40, %50 : vector<1x1xf32>
    %59 = arith.mulf %58, %58 : vector<1x1xf32>
    %60 = arith.subf %40, %57 : vector<1x1xf32>
    %61 = arith.mulf %60, %60 : vector<1x1xf32>
    %cst_23 = arith.constant 9.99999974E-6 : f32
    %62 = vector.broadcast %cst_23 : f32 to vector<1x1xf32>
    %63 = arith.addf %61, %62 : vector<1x1xf32>
    %64 = arith.divf %59, %63 : vector<1x1xf32>
    %cst_24 = arith.constant 0.000000e+00 : f32
    %cst_25 = arith.constant 1.000000e+00 : f32
    %65 = vector.broadcast %cst_24 : f32 to vector<1x1xf32>
    %66 = arith.maximumf %65, %64 : vector<1x1xf32>
    %67 = vector.broadcast %cst_25 : f32 to vector<1x1xf32>
    %68 = arith.minimumf %67, %66 : vector<1x1xf32>
    %c0_26 = arith.constant 0 : index
    %c0_27 = arith.constant 0 : index
    %69 = vector.load %arg4[%c0_26, %c0_27] : memref<1x1xf32, #tpu.memory_space<vmem>>, vector<1x1xf32>
    tpu.vector_store %arg4[%c0_26, %c0_27], %68 {strides = array<i32>} : memref<1x1xf32, #tpu.memory_space<vmem>>, vector<1x1xf32>,
    return
  }
  func.func @transform_0(%arg0: i32) -> (i32, i32, i32) {
    %c0_i32 = arith.constant 0 : i32
    %c0_i32_0 = arith.constant 0 : i32
    %c0_i32_1 = arith.constant 0 : i32
    %c0_i32_2 = arith.constant 0 : i32
    return %c0_i32, %c0_i32_0, %c0_i32_1 : i32, i32, i32
  }
  func.func @transform_1(%arg0: i32) -> (i32, i32) {
    %c0_i32 = arith.constant 0 : i32
    %c0_i32_0 = arith.constant 0 : i32
    %c0_i32_1 = arith.constant 0 : i32
    return %c0_i32, %c0_i32_0 : i32, i32
  }
  func.func @transform_2(%arg0: i32) -> (i32, i32) {
    %c0_i32 = arith.constant 0 : i32
    %c0_i32_0 = arith.constant 0 : i32
    %c0_i32_1 = arith.constant 0 : i32
    return %c0_i32, %c0_i32_0 : i32, i32
  }
  func.func @transform_3(%arg0: i32) -> (i32, i32) {
    %c0_i32 = arith.constant 0 : i32
    %c0_i32_0 = arith.constant 0 : i32
    %c0_i32_1 = arith.constant 0 : i32
    return %c0_i32, %c0_i32_0 : i32, i32
  }
}

</mosaic_0001>

<bundles_post_ra>
// kernel: mul.12
= control target key start
LH: loop header
LB: loop body
LE: loop exit
PB: predicated region body
PF: predicated region fallthrough
CT: control target
= control target key end

     0   :  { %s7060_s0 = inlined_call_operand.vmem [shape: f32[3,50176], index: 0, kind: input, shape index: {}]   ;;  %s7061_s1 = inlined_call_operand.vmem [shape: f32[150528], index: 1, kind: output, shape index: {}]  }
   0x1   :  { %v3916_v0 = vld [vmem:[%s7060_s0 + $0x61c] sm:$0xf]  ;;  %v3917_v1 = vld [vmem:[%s7060_s0 + $0x618] sm:$0xf]  ;;  %v3918_v2 = vld [vmem:[%s7060_s0 + $0x614] sm:$0xf] }
   0x2   :  { %8 = vst [vmem:[#allocation0 + $0xc38] sm:$0xf] %v3916_v0  ;;  %13 = vst [vmem:[#allocation0 + $0xc30] sm:$0xf] %v3917_v1  ;;  %v3919_v3 = vld [vmem:[%s7060_s0 + $0x610] sm:$0xf] }
   0x3   :  { %18 = vst [vmem:[#allocation0 + $0xc28] sm:$0xf] %v3918_v2  ;;  %v3920_v4 = vld [vmem:[%s7060_s0 + $0x60c] sm:$0xf]  ;;  %v3921_v5 = vld [vmem:[%s7060_s0 + $0x608] sm:$0xf] }
   0x4   :  { %23 = vst [vmem:[#allocation0 + $0xc20] sm:$0xf] %v3919_v3  ;;  %28 = vst [vmem:[#allocation0 + $0xc18] sm:$0xf] %v3920_v4  ;;  %v3922_v6 = vld [vmem:[%s7060_s0 + $0x604] sm:$0xf] }
   0x5   :  { %33 = vst [vmem:[#allocation0 + $0xc10] sm:$0xf] %v3921_v5  ;;  %v3923_v7 = vld [vmem:[%s7060_s0 + $0x600] sm:$0xf]  ;;  %v3924_v8 = vld [vmem:[%s7060_s0 + $0x5fc] sm:$0xf] }
   0x6   :  { %38 = vst [vmem:[#allocation0 + $0xc08] sm:$0xf] %v3922_v6  ;;  %43 = vst [vmem:[#allocation0 + $0xc00] sm:$0xf] %v3923_v7  ;;  %v3925_v9 = vld [vmem:[%s7060_s0 + $0x5f8] sm:$0xf] }
   0x7   :  { %48 = vst [vmem:[#allocation0 + $0xbf8] sm:$0xf] %v3924_v8  ;;  %v3926_v10 = vld [vmem:[%s7060_s0 + $0x5f4] sm:$0xf]  ;;  %v3927_v11 = vld [vmem:[%s7060_s0 + $0x5f0] sm:$0xf] }
   0x8   :  { %53 = vst [vmem:[#allocation0 + $0xbf0] sm:$0xf] %v3925_v9  ;;  %58 = vst [vmem:[#allocation0 + $0xbe8] sm:$0xf] %v3926_v10  ;;  %v3928_v12 = vld [vmem:[%s7060_s0 + $0x5ec] sm:$0xf] }
   0x9   :  { %63 = vst [vmem:[#allocation0 + $0xbe0] sm:$0xf] %v3927_v11  ;;  %v3929_v13 = vld [vmem:[%s7060_s0 + $0x5e8] sm:$0xf]  ;;  %v3930_v14 = vld [vmem:[%s7060_s0 + $0x5e4] sm:$0xf] }
   0xa   :  { %68 = vst [vmem:[#allocation0 + $0xbd8] sm:$0xf] %v3928_v12  ;;  %73 = vst [vmem:[#allocation0 + $0xbd0] sm:$0xf] %v3929_v13  ;;  %v3931_v15 = vld [vmem:[%s7060_s0 + $0x5e0] sm:$0xf] }
   0xb   :  { %78 = vst [vmem:[#allocation0 + $0xbc8] sm:$0xf] %v3930_v14  ;;  %v3932_v16 = vld [vmem:[%s7060_s0 + $0x5dc] sm:$0xf]  ;;  %v3933_v17 = vld [vmem:[%s7060_s0 + $0x5d8] sm:$0xf] }
   0xc   :  { %83 = vst [vmem:[#allocation0 + $0xbc0] sm:$0xf] %v3931_v15  ;;  %88 = vst [vmem:[#allocation0 + $0xbb8] sm:$0xf] %v3932_v16  ;;  %v3934_v18 = vld [vmem:[%s7060_s0 + $0x5d4] sm:$0xf] }
   0xd   :  { %93 = vst [vmem:[#allocation0 + $0xbb0] sm:$0xf] %v3933_v17  ;;  %v3935_v19 = vld [vmem:[%s7060_s0 + $0x5d0] sm:$0xf]  ;;  %v3936_v20 = vld [vmem:[%s7060_s0 + $0x5cc] sm:$0xf] }
   0xe   :  { %98 = vst [vmem:[#allocation0 + $0xba8] sm:$0xf] %v3934_v18  ;;  %103 = vst [vmem:[#allocation0 + $0xba0] sm:$0xf] %v3935_v19  ;;  %v3937_v21 = vld [vmem:[%s7060_s0 + $0x5c8] sm:$0xf] }
   0xf   :  { %108 = vst [vmem:[#allocation0 + $0xb98] sm:$0xf] %v3936_v20  ;;  %v3938_v22 = vld [vmem:[%s7060_s0 + $0x5c4] sm:$0xf]  ;;  %v3939_v23 = vld [vmem:[%s7060_s0 + $0x5c0] sm:$0xf] }
  0x10   :  { %113 = vst [vmem:[#allocation0 + $0xb90] sm:$0xf] %v3937_v21  ;;  %118 = vst [vmem:[#allocation0 + $0xb88] sm:$0xf] %v3938_v22  ;;  %v3940_v24 = vld [vmem:[%s7060_s0 + $0x5bc] sm:$0xf] }
  0x11   :  { %123 = vst [vmem:[#allocation0 + $0xb80] sm:$0xf] %v3939_v23  ;;  %v3941_v25 = vld [vmem:[%s7060_s0 + $0x5b8] sm:$0xf]  ;;  %v3942_v26 = vld [vmem:[%s7060_s0 + $0x5b4] sm:$0xf] }
  0x12   :  { %128 = vst [vmem:[#allocation0 + $0xb78] sm:$0xf] %v3940_v24  ;;  %133 = vst [vmem:[#allocation0 + $0xb70] sm:$0xf] %v3941_v25  ;;  %v3943_v27 = vld [vmem:[%s7060_s0 + $0x5b0] sm:$0xf] }
  0x13   :  { %138 = vst [vmem:[#allocation0 + $0xb68] sm:$0xf] %v3942_v26  ;;  %v3944_v28 = vld [vmem:[%s7060_s0 + $0x5ac] sm:$0xf]  ;;  %v3945_v29 = vld [vmem:[%s7060_s0 + $0x5a8] sm:$0xf] }
  0x14   :  { %143 = vst [vmem:[#allocation0 + $0xb60] sm:$0xf] %v3943_v27  ;;  %148 = vst [vmem:[#allocation0 + $0xb58] sm:$0xf] %v3944_v28  ;;  %v3946_v30 = vld [vmem:[%s7060_s0 + $0x5a4] sm:$0xf] }
  0x15   :  { %153 = vst [vmem:[#allocation0 + $0xb50] sm:$0xf] %v3945_v29  ;;  %v3947_v31 = vld [vmem:[%s7060_s0 + $0x5a0] sm:$0xf]  ;;  %v3948_v32 = vld [vmem:[%s7060_s0 + $0x59c] sm:$0xf] }
  0x16   :  { %158 = vst [vmem:[#allocation0 + $0xb48] sm:$0xf] %v3946_v30  ;;  %163 = vst [vmem:[#allocation0 + $0xb40] sm:$0xf] %v3947_v31  ;;  %v3949_v33 = vld [vmem:[%s7060_s0 + $0x598] sm:$0xf] }
  0x17   :  { %168 = vst [vmem:[#allocation0 + $0xb38] sm:$0xf] %v3948_v32  ;;  %v3950_v34 = vld [vmem:[%s7060_s0 + $0x594] sm:$0xf]  ;;  %v3951_v35 = vld [vmem:[%s7060_s0 + $0x590] sm:$0xf] }
  0x18   :  { %173 = vst [vmem:[#allocation0 + $0xb30] sm:$0xf] %v3949_v33  ;;  %178 = vst [vmem:[#allocation0 + $0xb28] sm:$0xf] %v3950_v34  ;;  %v3952_v36 = vld [vmem:[%s7060_s0 + $0x58c] sm:$0xf] }
  0x19   :  { %183 = vst [vmem:[#allocation0 + $0xb20] sm:$0xf] %v3951_v35  ;;  %v3953_v37 = vld [vmem:[%s7060_s0 + $0x588] sm:$0xf]  ;;  %v3954_v38 = vld [vmem:[%s7060_s0 + $0x584] sm:$0xf] }
  0x1a   :  { %188 = vst [vmem:[#allocation0 + $0xb18] sm:$0xf] %v3952_v36  ;;  %193 = vst [vmem:[#allocation0 + $0xb10] sm:$0xf] %v3953_v37  ;;  %v3955_v39 = vld [vmem:[%s7060_s0 + $0x580] sm:$0xf] }
  0x1b   :  { %198 = vst [vmem:[#allocation0 + $0xb08] sm:$0xf] %v3954_v38  ;;  %v3956_v40 = vld [vmem:[%s7060_s0 + $0x57c] sm:$0xf]  ;;  %v3957_v41 = vld [vmem:[%s7060_s0 + $0x578] sm:$0xf] }
  0x1c   :  { %203 = vst [vmem:[#allocation0 + $0xb00] sm:$0xf] %v3955_v39  ;;  %208 = vst [vmem:[#allocation0 + $0xaf8] sm:$0xf] %v3956_v40  ;;  %v3958_v42 = vld [vmem:[%s7060_s0 + $0x574] sm:$0xf] }
  0x1d   :  { %213 = vst [vmem:[#allocation0 + $0xaf0] sm:$0xf] %v3957_v41  ;;  %v3959_v43 = vld [vmem:[%s7060_s0 + $0x570] sm:$0xf]  ;;  %v3960_v44 = vld [vmem:[%s7060_s0 + $0x56c] sm:$0xf] }
  0x1e   :  { %218 = vst [vmem:[#allocation0 + $0xae8] sm:$0xf] %v3958_v42  ;;  %223 = vst [vmem:[#allocation0 + $0xae0] sm:$0xf] %v3959_v43  ;;  %v3961_v45 = vld [vmem:[%s7060_s0 + $0x568] sm:$0xf] }
  0x1f   :  { %228 = vst [vmem:[#allocation0 + $0xad8] sm:$0xf] %v3960_v44  ;;  %v3962_v46 = vld [vmem:[%s7060_s0 + $0x564] sm:$0xf]  ;;  %v3963_v47 = vld [vmem:[%s7060_s0 + $0x560] sm:$0xf] }
  0x20   :  { %233 = vst [vmem:[#allocation0 + $0xad0] sm:$0xf] %v3961_v45  ;;  %238 = vst [vmem:[#allocation0 + $0xac8] sm:$0xf] %v3962_v46  ;;  %v3964_v48 = vld [vmem:[%s7060_s0 + $0x55c] sm:$0xf] }
  0x21   :  { %243 = vst [vmem:[#allocation0 + $0xac0] sm:$0xf] %v3963_v47  ;;  %v3965_v49 = vld [vmem:[%s7060_s0 + $0x558] sm:$0xf]  ;;  %v3966_v50 = vld [vmem:[%s7060_s0 + $0x554] sm:$0xf] }
  0x22   :  { %248 = vst [vmem:[#allocation0 + $0xab8] sm:$0xf] %v3964_v48  ;;  %253 = vst [vmem:[#allocation0 + $0xab0] sm:$0xf] %v3965_v49  ;;  %v3967_v51 = vld [vmem:[%s7060_s0 + $0x550] sm:$0xf] }
  0x23   :  { %258 = vst [vmem:[#allocation0 + $0xaa8] sm:$0xf] %v3966_v50  ;;  %v3968_v52 = vld [vmem:[%s7060_s0 + $0x54c] sm:$0xf]  ;;  %v3969_v53 = vld [vmem:[%s7060_s0 + $0x548] sm:$0xf] }
  0x24   :  { %263 = vst [vmem:[#allocation0 + $0xaa0] sm:$0xf] %v3967_v51  ;;  %268 = vst [vmem:[#allocation0 + $0xa98] sm:$0xf] %v3968_v52  ;;  %v3970_v54 = vld [vmem:[%s7060_s0 + $0x544] sm:$0xf] }
  0x25   :  { %273 = vst [vmem:[#allocation0 + $0xa90] sm:$0xf] %v3969_v53  ;;  %v3971_v55 = vld [vmem:[%s7060_s0 + $0x540] sm:$0xf]  ;;  %v3972_v56 = vld [vmem:[%s7060_s0 + $0x53c] sm:$0xf] }
  0x26   :  { %278 = vst [vmem:[#allocation0 + $0xa88] sm:$0xf] %v3970_v54  ;;  %283 = vst [vmem:[#allocation0 + $0xa80] sm:$0xf] %v3971_v55  ;;  %v3973_v57 = vld [vmem:[%s7060_s0 + $0x538] sm:$0xf] }
  0x27   :  { %288 = vst [vmem:[#allocation0 + $0xa78] sm:$0xf] %v3972_v56  ;;  %v3974_v58 = vld [vmem:[%s7060_s0 + $0x534] sm:$0xf]  ;;  %v3975_v59 = vld [vmem:[%s7060_s0 + $0x530] sm:$0xf] }
  0x28   :  { %293 = vst [vmem:[#allocation0 + $0xa70] sm:$0xf] %v3973_v57  ;;  %298 = vst [vmem:[#allocation0 + $0xa68] sm:$0xf] %v3974_v58  ;;  %v3976_v60 = vld [vmem:[%s7060_s0 + $0x52c] sm:$0xf] }
  0x29   :  { %303 = vst [vmem:[#allocation0 + $0xa60] sm:$0xf] %v3975_v59  ;;  %v3977_v61 = vld [vmem:[%s7060_s0 + $0x528] sm:$0xf]  ;;  %v3978_v62 = vld [vmem:[%s7060_s0 + $0x524] sm:$0xf] }
  0x2a   :  { %308 = vst [vmem:[#allocation0 + $0xa58] sm:$0xf] %v3976_v60  ;;  %313 = vst [vmem:[#allocation0 + $0xa50] sm:$0xf] %v3977_v61  ;;  %v3979_v63 = vld [vmem:[%s7060_s0 + $0x520] sm:$0xf] }
  0x2b   :  { %318 = vst [vmem:[#allocation0 + $0xa48] sm:$0xf] %v3978_v62  ;;  %v3980_v0 = vld [vmem:[%s7060_s0 + $0x51c] sm:$0xf]  ;;  %v3981_v1 = vld [vmem:[%s7060_s0 + $0x518] sm:$0xf] }
  0x2c   :  { %323 = vst [vmem:[#allocation0 + $0xa40] sm:$0xf] %v3979_v63  ;;  %328 = vst [vmem:[#allocation0 + $0xa38] sm:$0xf] %v3980_v0  ;;  %v3982_v2 = vld [vmem:[%s7060_s0 + $0x514] sm:$0xf] }
  0x2d   :  { %333 = vst [vmem:[#allocation0 + $0xa30] sm:$0xf] %v3981_v1  ;;  %v3983_v3 = vld [vmem:[%s7060_s0 + $0x510] sm:$0xf]  ;;  %v3984_v4 = vld [vmem:[%s7060_s0 + $0x50c] sm:$0xf] }
  0x2e   :  { %338 = vst [vmem:[#allocation0 + $0xa28] sm:$0xf] %v3982_v2  ;;  %343 = vst [vmem:[#allocation0 + $0xa20] sm:$0xf] %v3983_v3  ;;  %v3985_v5 = vld [vmem:[%s7060_s0 + $0x508] sm:$0xf] }
  0x2f   :  { %348 = vst [vmem:[#allocation0 + $0xa18] sm:$0xf] %v3984_v4  ;;  %v3986_v6 = vld [vmem:[%s7060_s0 + $0x504] sm:$0xf]  ;;  %v3987_v7 = vld [vmem:[%s7060_s0 + $0x500] sm:$0xf] }
  0x30   :  { %353 = vst [vmem:[#allocation0 + $0xa10] sm:$0xf] %v3985_v5  ;;  %358 = vst [vmem:[#allocation0 + $0xa08] sm:$0xf] %v3986_v6  ;;  %v3988_v8 = vld [vmem:[%s7060_s0 + $0x4fc] sm:$0xf] }
  0x31   :  { %363 = vst [vmem:[#allocation0 + $0xa00] sm:$0xf] %v3987_v7  ;;  %v3989_v9 = vld [vmem:[%s7060_s0 + $0x4f8] sm:$0xf]  ;;  %v3990_v10 = vld [vmem:[%s7060_s0 + $0x4f4] sm:$0xf] }
  0x32   :  { %368 = vst [vmem:[#allocation0 + $0x9f8] sm:$0xf] %v3988_v8  ;;  %373 = vst [vmem:[#allocation0 + $0x9f0] sm:$0xf] %v3989_v9  ;;  %v3991_v11 = vld [vmem:[%s7060_s0 + $0x4f0] sm:$0xf] }
  0x33   :  { %378 = vst [vmem:[#allocation0 + $0x9e8] sm:$0xf] %v3990_v10  ;;  %v3992_v12 = vld [vmem:[%s7060_s0 + $0x4ec] sm:$0xf]  ;;  %v3993_v13 = vld [vmem:[%s7060_s0 + $0x4e8] sm:$0xf] }
  0x34   :  { %383 = vst [vmem:[#allocation0 + $0x9e0] sm:$0xf] %v3991_v11  ;;  %388 = vst [vmem:[#allocation0 + $0x9d8] sm:$0xf] %v3992_v12  ;;  %v3994_v14 = vld [vmem:[%s7060_s0 + $0x4e4] sm:$0xf] }
  0x35   :  { %393 = vst [vmem:[#allocation0 + $0x9d0] sm:$0xf] %v3993_v13  ;;  %v3995_v15 = vld [vmem:[%s7060_s0 + $0x4e0] sm:$0xf]  ;;  %v3996_v16 = vld [vmem:[%s7060_s0 + $0x4dc] sm:$0xf] }
  0x36   :  { %398 = vst [vmem:[#allocation0 + $0x9c8] sm:$0xf] %v3994_v14  ;;  %403 = vst [vmem:[#allocation0 + $0x9c0] sm:$0xf] %v3995_v15  ;;  %v3997_v17 = vld [vmem:[%s7060_s0 + $0x4d8] sm:$0xf] }
  0x37   :  { %408 = vst [vmem:[#allocation0 + $0x9b8] sm:$0xf] %v3996_v16  ;;  %v3998_v18 = vld [vmem:[%s7060_s0 + $0x4d4] sm:$0xf]  ;;  %v3999_v19 = vld [vmem:[%s7060_s0 + $0x4d0] sm:$0xf] }
  0x38   :  { %413 = vst [vmem:[#allocation0 + $0x9b0] sm:$0xf] %v3997_v17  ;;  %418 = vst [vmem:[#allocation0 + $0x9a8] sm:$0xf] %v3998_v18  ;;  %v4000_v20 = vld [vmem:[%s7060_s0 + $0x4cc] sm:$0xf] }
  0x39   :  { %423 = vst [vmem:[#allocation0 + $0x9a0] sm:$0xf] %v3999_v19  ;;  %v4001_v21 = vld [vmem:[%s7060_s0 + $0x4c8] sm:$0xf]  ;;  %v4002_v22 = vld [vmem:[%s7060_s0 + $0x4c4] sm:$0xf] }
  0x3a   :  { %428 = vst [vmem:[#allocation0 + $0x998] sm:$0xf] %v4000_v20  ;;  %433 = vst [vmem:[#allocation0 + $0x990] sm:$0xf] %v4001_v21  ;;  %v4003_v23 = vld [vmem:[%s7060_s0 + $0x4c0] sm:$0xf] }
  0x3b   :  { %438 = vst [vmem:[#allocation0 + $0x988] sm:$0xf] %v4002_v22  ;;  %v4004_v24 = vld [vmem:[%s7060_s0 + $0x4bc] sm:$0xf]  ;;  %v4005_v25 = vld [vmem:[%s7060_s0 + $0x4b8] sm:$0xf] }
  0x3c   :  { %443 = vst [vmem:[#allocation0 + $0x980] sm:$0xf] %v4003_v23  ;;  %448 = vst [vmem:[#allocation0 + $0x978] sm:$0xf] %v4004_v24  ;;  %v4006_v26 = vld [vmem:[%s7060_s0 + $0x4b4] sm:$0xf] }
  0x3d   :  { %453 = vst [vmem:[#allocation0 + $0x970] sm:$0xf] %v4005_v25  ;;  %v4007_v27 = vld [vmem:[%s7060_s0 + $0x4b0] sm:$0xf]  ;;  %v4008_v28 = vld [vmem:[%s7060_s0 + $0x4ac] sm:$0xf] }
  0x3e   :  { %458 = vst [vmem:[#allocation0 + $0x968] sm:$0xf] %v4006_v26  ;;  %463 = vst [vmem:[#allocation0 + $0x960] sm:$0xf] %v4007_v27  ;;  %v4009_v29 = vld [vmem:[%s7060_s0 + $0x4a8] sm:$0xf] }
  0x3f   :  { %468 = vst [vmem:[#allocation0 + $0x958] sm:$0xf] %v4008_v28  ;;  %v4010_v30 = vld [vmem:[%s7060_s0 + $0x4a4] sm:$0xf]  ;;  %v4011_v31 = vld [vmem:[%s7060_s0 + $0x4a0] sm:$0xf] }
  0x40   :  { %473 = vst [vmem:[#allocation0 + $0x950] sm:$0xf] %v4009_v29  ;;  %478 = vst [vmem:[#allocation0 + $0x948] sm:$0xf] %v4010_v30  ;;  %v4012_v32 = vld [vmem:[%s7060_s0 + $0x49c] sm:$0xf] }
  0x41   :  { %483 = vst [vmem:[#allocation0 + $0x940] sm:$0xf] %v4011_v31  ;;  %v4013_v33 = vld [vmem:[%s7060_s0 + $0x498] sm:$0xf]  ;;  %v4014_v34 = vld [vmem:[%s7060_s0 + $0x494] sm:$0xf] }
  0x42   :  { %488 = vst [vmem:[#allocation0 + $0x938] sm:$0xf] %v4012_v32  ;;  %493 = vst [vmem:[#allocation0 + $0x930] sm:$0xf] %v4013_v33  ;;  %v4015_v35 = vld [vmem:[%s7060_s0 + $0x490] sm:$0xf] }
  0x43   :  { %498 = vst [vmem:[#allocation0 + $0x928] sm:$0xf] %v4014_v34  ;;  %v4016_v36 = vld [vmem:[%s7060_s0 + $0x48c] sm:$0xf]  ;;  %v4017_v37 = vld [vmem:[%s7060_s0 + $0x488] sm:$0xf] }
  0x44   :  { %503 = vst [vmem:[#allocation0 + $0x920] sm:$0xf] %v4015_v35  ;;  %508 = vst [vmem:[#allocation0 + $0x918] sm:$0xf] %v4016_v36  ;;  %v4018_v38 = vld [vmem:[%s7060_s0 + $0x484] sm:$0xf] }
  0x45   :  { %513 = vst [vmem:[#allocation0 + $0x910] sm:$0xf] %v4017_v37  ;;  %v4019_v39 = vld [vmem:[%s7060_s0 + $0x480] sm:$0xf]  ;;  %v4020_v40 = vld [vmem:[%s7060_s0 + $0x47c] sm:$0xf] }
  0x46   :  { %518 = vst [vmem:[#allocation0 + $0x908] sm:$0xf] %v4018_v38  ;;  %523 = vst [vmem:[#allocation0 + $0x900] sm:$0xf] %v4019_v39  ;;  %v4021_v41 = vld [vmem:[%s7060_s0 + $0x478] sm:$0xf] }
  0x47   :  { %528 = vst [vmem:[#allocation0 + $0x8f8] sm:$0xf] %v4020_v40  ;;  %v4022_v42 = vld [vmem:[%s7060_s0 + $0x474] sm:$0xf]  ;;  %v4023_v43 = vld [vmem:[%s7060_s0 + $0x470] sm:$0xf] }
  0x48   :  { %533 = vst [vmem:[#allocation0 + $0x8f0] sm:$0xf] %v4021_v41  ;;  %538 = vst [vmem:[#allocation0 + $0x8e8] sm:$0xf] %v4022_v42  ;;  %v4024_v44 = vld [vmem:[%s7060_s0 + $0x46c] sm:$0xf] }
  0x49   :  { %543 = vst [vmem:[#allocation0 + $0x8e0] sm:$0xf] %v4023_v43  ;;  %v4025_v45 = vld [vmem:[%s7060_s0 + $0x468] sm:$0xf]  ;;  %v4026_v46 = vld [vmem:[%s7060_s0 + $0x464] sm:$0xf] }
  0x4a   :  { %548 = vst [vmem:[#allocation0 + $0x8d8] sm:$0xf] %v4024_v44  ;;  %553 = vst [vmem:[#allocation0 + $0x8d0] sm:$0xf] %v4025_v45  ;;  %v4027_v47 = vld [vmem:[%s7060_s0 + $0x460] sm:$0xf] }
  0x4b   :  { %558 = vst [vmem:[#allocation0 + $0x8c8] sm:$0xf] %v4026_v46  ;;  %v4028_v48 = vld [vmem:[%s7060_s0 + $0x45c] sm:$0xf]  ;;  %v4029_v49 = vld [vmem:[%s7060_s0 + $0x458] sm:$0xf] }
  0x4c   :  { %563 = vst [vmem:[#allocation0 + $0x8c0] sm:$0xf] %v4027_v47  ;;  %568 = vst [vmem:[#allocation0 + $0x8b8] sm:$0xf] %v4028_v48  ;;  %v4030_v50 = vld [vmem:[%s7060_s0 + $0x454] sm:$0xf] }
  0x4d   :  { %573 = vst [vmem:[#allocation0 + $0x8b0] sm:$0xf] %v4029_v49  ;;  %v4031_v51 = vld [vmem:[%s7060_s0 + $0x450] sm:$0xf]  ;;  %v4032_v52 = vld [vmem:[%s7060_s0 + $0x44c] sm:$0xf] }
  0x4e   :  { %578 = vst [vmem:[#allocation0 + $0x8a8] sm:$0xf] %v4030_v50  ;;  %583 = vst [vmem:[#allocation0 + $0x8a0] sm:$0xf] %v4031_v51  ;;  %v4033_v53 = vld [vmem:[%s7060_s0 + $0x448] sm:$0xf] }
  0x4f   :  { %588 = vst [vmem:[#allocation0 + $0x898] sm:$0xf] %v4032_v52  ;;  %v4034_v54 = vld [vmem:[%s7060_s0 + $0x444] sm:$0xf]  ;;  %v4035_v55 = vld [vmem:[%s7060_s0 + $0x440] sm:$0xf] }
  0x50   :  { %593 = vst [vmem:[#allocation0 + $0x890] sm:$0xf] %v4033_v53  ;;  %598 = vst [vmem:[#allocation0 + $0x888] sm:$0xf] %v4034_v54  ;;  %v4036_v56 = vld [vmem:[%s7060_s0 + $0x43c] sm:$0xf] }
  0x51   :  { %603 = vst [vmem:[#allocation0 + $0x880] sm:$0xf] %v4035_v55  ;;  %v4037_v57 = vld [vmem:[%s7060_s0 + $0x438] sm:$0xf]  ;;  %v4038_v58 = vld [vmem:[%s7060_s0 + $0x434] sm:$0xf] }
  0x52   :  { %608 = vst [vmem:[#allocation0 + $0x878] sm:$0xf] %v4036_v56  ;;  %613 = vst [vmem:[#allocation0 + $0x870] sm:$0xf] %v4037_v57  ;;  %v4039_v59 = vld [vmem:[%s7060_s0 + $0x430] sm:$0xf] }
  0x53   :  { %618 = vst [vmem:[#allocation0 + $0x868] sm:$0xf] %v4038_v58  ;;  %v4040_v60 = vld [vmem:[%s7060_s0 + $0x42c] sm:$0xf]  ;;  %v4041_v61 = vld [vmem:[%s7060_s0 + $0x428] sm:$0xf] }
  0x54   :  { %623 = vst [vmem:[#allocation0 + $0x860] sm:$0xf] %v4039_v59  ;;  %628 = vst [vmem:[#allocation0 + $0x858] sm:$0xf] %v4040_v60  ;;  %v4042_v62 = vld [vmem:[%s7060_s0 + $0x424] sm:$0xf] }
  0x55   :  { %633 = vst [vmem:[#allocation0 + $0x850] sm:$0xf] %v4041_v61  ;;  %v4043_v63 = vld [vmem:[%s7060_s0 + $0x420] sm:$0xf]  ;;  %v4044_v0 = vld [vmem:[%s7060_s0 + $0x41c] sm:$0xf] }
  0x56   :  { %638 = vst [vmem:[#allocation0 + $0x848] sm:$0xf] %v4042_v62  ;;  %643 = vst [vmem:[#allocation0 + $0x840] sm:$0xf] %v4043_v63  ;;  %v4045_v1 = vld [vmem:[%s7060_s0 + $0x418] sm:$0xf] }
  0x57   :  { %648 = vst [vmem:[#allocation0 + $0x838] sm:$0xf] %v4044_v0  ;;  %v4046_v2 = vld [vmem:[%s7060_s0 + $0x414] sm:$0xf]  ;;  %v4047_v3 = vld [vmem:[%s7060_s0 + $0x410] sm:$0xf] }
  0x58   :  { %653 = vst [vmem:[#allocation0 + $0x830] sm:$0xf] %v4045_v1  ;;  %658 = vst [vmem:[#allocation0 + $0x828] sm:$0xf] %v4046_v2  ;;  %v4048_v4 = vld [vmem:[%s7060_s0 + $0x40c] sm:$0xf] }
  0x59   :  { %663 = vst [vmem:[#allocation0 + $0x820] sm:$0xf] %v4047_v3  ;;  %v4049_v5 = vld [vmem:[%s7060_s0 + $0x408] sm:$0xf]  ;;  %v4050_v6 = vld [vmem:[%s7060_s0 + $0x404] sm:$0xf] }
  0x5a   :  { %668 = vst [vmem:[#allocation0 + $0x818] sm:$0xf] %v4048_v4  ;;  %673 = vst [vmem:[#allocation0 + $0x810] sm:$0xf] %v4049_v5  ;;  %v4051_v7 = vld [vmem:[%s7060_s0 + $0x400] sm:$0xf] }
  0x5b   :  { %678 = vst [vmem:[#allocation0 + $0x808] sm:$0xf] %v4050_v6  ;;  %v4052_v8 = vld [vmem:[%s7060_s0 + $0x3fc] sm:$0xf]  ;;  %v4053_v9 = vld [vmem:[%s7060_s0 + $0x3f8] sm:$0xf] }
  0x5c   :  { %683 = vst [vmem:[#allocation0 + $0x800] sm:$0xf] %v4051_v7  ;;  %688 = vst [vmem:[#allocation0 + $0x7f8] sm:$0xf] %v4052_v8  ;;  %v4054_v10 = vld [vmem:[%s7060_s0 + $0x3f4] sm:$0xf] }
  0x5d   :  { %693 = vst [vmem:[#allocation0 + $0x7f0] sm:$0xf] %v4053_v9  ;;  %v4055_v11 = vld [vmem:[%s7060_s0 + $0x3f0] sm:$0xf]  ;;  %v4056_v12 = vld [vmem:[%s7060_s0 + $0x3ec] sm:$0xf] }
  0x5e   :  { %698 = vst [vmem:[#allocation0 + $0x7e8] sm:$0xf] %v4054_v10  ;;  %703 = vst [vmem:[#allocation0 + $0x7e0] sm:$0xf] %v4055_v11  ;;  %v4057_v13 = vld [vmem:[%s7060_s0 + $0x3e8] sm:$0xf] }
  0x5f   :  { %708 = vst [vmem:[#allocation0 + $0x7d8] sm:$0xf] %v4056_v12  ;;  %v4058_v14 = vld [vmem:[%s7060_s0 + $0x3e4] sm:$0xf]  ;;  %v4059_v15 = vld [vmem:[%s7060_s0 + $0x3e0] sm:$0xf] }
  0x60   :  { %713 = vst [vmem:[#allocation0 + $0x7d0] sm:$0xf] %v4057_v13  ;;  %718 = vst [vmem:[#allocation0 + $0x7c8] sm:$0xf] %v4058_v14  ;;  %v4060_v16 = vld [vmem:[%s7060_s0 + $0x3dc] sm:$0xf] }
  0x61   :  { %723 = vst [vmem:[#allocation0 + $0x7c0] sm:$0xf] %v4059_v15  ;;  %v4061_v17 = vld [vmem:[%s7060_s0 + $0x3d8] sm:$0xf]  ;;  %v4062_v18 = vld [vmem:[%s7060_s0 + $0x3d4] sm:$0xf] }
  0x62   :  { %728 = vst [vmem:[#allocation0 + $0x7b8] sm:$0xf] %v4060_v16  ;;  %733 = vst [vmem:[#allocation0 + $0x7b0] sm:$0xf] %v4061_v17  ;;  %v4063_v19 = vld [vmem:[%s7060_s0 + $0x3d0] sm:$0xf] }
  0x63   :  { %738 = vst [vmem:[#allocation0 + $0x7a8] sm:$0xf] %v4062_v18  ;;  %v4064_v20 = vld [vmem:[%s7060_s0 + $0x3cc] sm:$0xf]  ;;  %v4065_v21 = vld [vmem:[%s7060_s0 + $0x3c8] sm:$0xf] }
  0x64   :  { %743 = vst [vmem:[#allocation0 + $0x7a0] sm:$0xf] %v4063_v19  ;;  %748 = vst [vmem:[#allocation0 + $0x798] sm:$0xf] %v4064_v20  ;;  %v4066_v22 = vld [vmem:[%s7060_s0 + $0x3c4] sm:$0xf] }
  0x65   :  { %753 = vst [vmem:[#allocation0 + $0x790] sm:$0xf] %v4065_v21  ;;  %v4067_v23 = vld [vmem:[%s7060_s0 + $0x3c0] sm:$0xf]  ;;  %v4068_v24 = vld [vmem:[%s7060_s0 + $0x3bc] sm:$0xf] }
  0x66   :  { %758 = vst [vmem:[#allocation0 + $0x788] sm:$0xf] %v4066_v22  ;;  %763 = vst [vmem:[#allocation0 + $0x780] sm:$0xf] %v4067_v23  ;;  %v4069_v25 = vld [vmem:[%s7060_s0 + $0x3b8] sm:$0xf] }
  0x67   :  { %768 = vst [vmem:[#allocation0 + $0x778] sm:$0xf] %v4068_v24  ;;  %v4070_v26 = vld [vmem:[%s7060_s0 + $0x3b4] sm:$0xf]  ;;  %v4071_v27 = vld [vmem:[%s7060_s0 + $0x3b0] sm:$0xf] }
  0x68   :  { %773 = vst [vmem:[#allocation0 + $0x770] sm:$0xf] %v4069_v25  ;;  %778 = vst [vmem:[#allocation0 + $0x768] sm:$0xf] %v4070_v26  ;;  %v4072_v28 = vld [vmem:[%s7060_s0 + $0x3ac] sm:$0xf] }
  0x69   :  { %783 = vst [vmem:[#allocation0 + $0x760] sm:$0xf] %v4071_v27  ;;  %v4073_v29 = vld [vmem:[%s7060_s0 + $0x3a8] sm:$0xf]  ;;  %v4074_v30 = vld [vmem:[%s7060_s0 + $0x3a4] sm:$0xf] }
  0x6a   :  { %788 = vst [vmem:[#allocation0 + $0x758] sm:$0xf] %v4072_v28  ;;  %793 = vst [vmem:[#allocation0 + $0x750] sm:$0xf] %v4073_v29  ;;  %v4075_v31 = vld [vmem:[%s7060_s0 + $0x3a0] sm:$0xf] }
  0x6b   :  { %798 = vst [vmem:[#allocation0 + $0x748] sm:$0xf] %v4074_v30  ;;  %v4076_v32 = vld [vmem:[%s7060_s0 + $0x39c] sm:$0xf]  ;;  %v4077_v33 = vld [vmem:[%s7060_s0 + $0x398] sm:$0xf] }
  0x6c   :  { %803 = vst [vmem:[#allocation0 + $0x740] sm:$0xf] %v4075_v31  ;;  %808 = vst [vmem:[#allocation0 + $0x738] sm:$0xf] %v4076_v32  ;;  %v4078_v34 = vld [vmem:[%s7060_s0 + $0x394] sm:$0xf] }
  0x6d   :  { %813 = vst [vmem:[#allocation0 + $0x730] sm:$0xf] %v4077_v33  ;;  %v4079_v35 = vld [vmem:[%s7060_s0 + $0x390] sm:$0xf]  ;;  %v4080_v36 = vld [vmem:[%s7060_s0 + $0x38c] sm:$0xf] }
  0x6e   :  { %818 = vst [vmem:[#allocation0 + $0x728] sm:$0xf] %v4078_v34  ;;  %823 = vst [vmem:[#allocation0 + $0x720] sm:$0xf] %v4079_v35  ;;  %v4081_v37 = vld [vmem:[%s7060_s0 + $0x388] sm:$0xf] }
  0x6f   :  { %828 = vst [vmem:[#allocation0 + $0x718] sm:$0xf] %v4080_v36  ;;  %v4082_v38 = vld [vmem:[%s7060_s0 + $0x384] sm:$0xf]  ;;  %v4083_v39 = vld [vmem:[%s7060_s0 + $0x380] sm:$0xf] }
  0x70   :  { %833 = vst [vmem:[#allocation0 + $0x710] sm:$0xf] %v4081_v37  ;;  %838 = vst [vmem:[#allocation0 + $0x708] sm:$0xf] %v4082_v38  ;;  %v4084_v40 = vld [vmem:[%s7060_s0 + $0x37c] sm:$0xf] }
  0x71   :  { %843 = vst [vmem:[#allocation0 + $0x700] sm:$0xf] %v4083_v39  ;;  %v4085_v41 = vld [vmem:[%s7060_s0 + $0x378] sm:$0xf]  ;;  %v4086_v42 = vld [vmem:[%s7060_s0 + $0x374] sm:$0xf] }
  0x72   :  { %848 = vst [vmem:[#allocation0 + $0x6f8] sm:$0xf] %v4084_v40  ;;  %853 = vst [vmem:[#allocation0 + $0x6f0] sm:$0xf] %v4085_v41  ;;  %v4087_v43 = vld [vmem:[%s7060_s0 + $0x370] sm:$0xf] }
  0x73   :  { %858 = vst [vmem:[#allocation0 + $0x6e8] sm:$0xf] %v4086_v42  ;;  %v4088_v44 = vld [vmem:[%s7060_s0 + $0x36c] sm:$0xf]  ;;  %v4089_v45 = vld [vmem:[%s7060_s0 + $0x368] sm:$0xf] }
  0x74   :  { %863 = vst [vmem:[#allocation0 + $0x6e0] sm:$0xf] %v4087_v43  ;;  %868 = vst [vmem:[#allocation0 + $0x6d8] sm:$0xf] %v4088_v44  ;;  %v4090_v46 = vld [vmem:[%s7060_s0 + $0x364] sm:$0xf] }
  0x75   :  { %873 = vst [vmem:[#allocation0 + $0x6d0] sm:$0xf] %v4089_v45  ;;  %v4091_v47 = vld [vmem:[%s7060_s0 + $0x360] sm:$0xf]  ;;  %v4092_v48 = vld [vmem:[%s7060_s0 + $0x35c] sm:$0xf] }
  0x76   :  { %878 = vst [vmem:[#allocation0 + $0x6c8] sm:$0xf] %v4090_v46  ;;  %883 = vst [vmem:[#allocation0 + $0x6c0] sm:$0xf] %v4091_v47  ;;  %v4093_v49 = vld [vmem:[%s7060_s0 + $0x358] sm:$0xf] }
  0x77   :  { %888 = vst [vmem:[#allocation0 + $0x6b8] sm:$0xf] %v4092_v48  ;;  %v4094_v50 = vld [vmem:[%s7060_s0 + $0x354] sm:$0xf]  ;;  %v4095_v51 = vld [vmem:[%s7060_s0 + $0x350] sm:$0xf] }
  0x78   :  { %893 = vst [vmem:[#allocation0 + $0x6b0] sm:$0xf] %v4093_v49  ;;  %898 = vst [vmem:[#allocation0 + $0x6a8] sm:$0xf] %v4094_v50  ;;  %v4096_v52 = vld [vmem:[%s7060_s0 + $0x34c] sm:$0xf] }
  0x79   :  { %903 = vst [vmem:[#allocation0 + $0x6a0] sm:$0xf] %v4095_v51  ;;  %v4097_v53 = vld [vmem:[%s7060_s0 + $0x348] sm:$0xf]  ;;  %v4098_v54 = vld [vmem:[%s7060_s0 + $0x344] sm:$0xf] }
  0x7a   :  { %908 = vst [vmem:[#allocation0 + $0x698] sm:$0xf] %v4096_v52  ;;  %913 = vst [vmem:[#allocation0 + $0x690] sm:$0xf] %v4097_v53  ;;  %v4099_v55 = vld [vmem:[%s7060_s0 + $0x340] sm:$0xf] }
  0x7b   :  { %918 = vst [vmem:[#allocation0 + $0x688] sm:$0xf] %v4098_v54  ;;  %v4100_v56 = vld [vmem:[%s7060_s0 + $0x33c] sm:$0xf]  ;;  %v4101_v57 = vld [vmem:[%s7060_s0 + $0x338] sm:$0xf] }
  0x7c   :  { %923 = vst [vmem:[#allocation0 + $0x680] sm:$0xf] %v4099_v55  ;;  %928 = vst [vmem:[#allocation0 + $0x678] sm:$0xf] %v4100_v56  ;;  %v4102_v58 = vld [vmem:[%s7060_s0 + $0x334] sm:$0xf] }
  0x7d   :  { %933 = vst [vmem:[#allocation0 + $0x670] sm:$0xf] %v4101_v57  ;;  %v4103_v59 = vld [vmem:[%s7060_s0 + $0x330] sm:$0xf]  ;;  %v4104_v60 = vld [vmem:[%s7060_s0 + $0x32c] sm:$0xf] }
  0x7e   :  { %938 = vst [vmem:[#allocation0 + $0x668] sm:$0xf] %v4102_v58  ;;  %943 = vst [vmem:[#allocation0 + $0x660] sm:$0xf] %v4103_v59  ;;  %v4105_v61 = vld [vmem:[%s7060_s0 + $0x328] sm:$0xf] }
  0x7f   :  { %948 = vst [vmem:[#allocation0 + $0x658] sm:$0xf] %v4104_v60  ;;  %v4106_v62 = vld [vmem:[%s7060_s0 + $0x324] sm:$0xf]  ;;  %v4107_v63 = vld [vmem:[%s7060_s0 + $0x320] sm:$0xf] }
  0x80   :  { %953 = vst [vmem:[#allocation0 + $0x650] sm:$0xf] %v4105_v61  ;;  %958 = vst [vmem:[#allocation0 + $0x648] sm:$0xf] %v4106_v62  ;;  %v4108_v0 = vld [vmem:[%s7060_s0 + $0x31c] sm:$0xf] }
  0x81   :  { %963 = vst [vmem:[#allocation0 + $0x640] sm:$0xf] %v4107_v63  ;;  %v4109_v1 = vld [vmem:[%s7060_s0 + $0x318] sm:$0xf]  ;;  %v4110_v2 = vld [vmem:[%s7060_s0 + $0x314] sm:$0xf] }
  0x82   :  { %968 = vst [vmem:[#allocation0 + $0x638] sm:$0xf] %v4108_v0  ;;  %973 = vst [vmem:[#allocation0 + $0x630] sm:$0xf] %v4109_v1  ;;  %v4111_v3 = vld [vmem:[%s7060_s0 + $0x310] sm:$0xf] }
  0x83   :  { %978 = vst [vmem:[#allocation0 + $0x628] sm:$0xf] %v4110_v2  ;;  %v4112_v4 = vld [vmem:[%s7060_s0 + $0x30c] sm:$0xf]  ;;  %v4113_v5 = vld [vmem:[%s7060_s0 + $0x308] sm:$0xf] }
  0x84   :  { %983 = vst [vmem:[#allocation0 + $0x620] sm:$0xf] %v4111_v3  ;;  %988 = vst [vmem:[#allocation0 + $0x618] sm:$0xf] %v4112_v4  ;;  %v4114_v6 = vld [vmem:[%s7060_s0 + $0x304] sm:$0xf] }
  0x85   :  { %993 = vst [vmem:[#allocation0 + $0x610] sm:$0xf] %v4113_v5  ;;  %v4115_v7 = vld [vmem:[%s7060_s0 + $0x300] sm:$0xf]  ;;  %v4116_v8 = vld [vmem:[%s7060_s0 + $0x2fc] sm:$0xf] }
  0x86   :  { %998 = vst [vmem:[#allocation0 + $0x608] sm:$0xf] %v4114_v6  ;;  %1003 = vst [vmem:[#allocation0 + $0x600] sm:$0xf] %v4115_v7  ;;  %v4117_v9 = vld [vmem:[%s7060_s0 + $0x2f8] sm:$0xf] }
  0x87   :  { %1008 = vst [vmem:[#allocation0 + $0x5f8] sm:$0xf] %v4116_v8  ;;  %v4118_v10 = vld [vmem:[%s7060_s0 + $0x2f4] sm:$0xf]  ;;  %v4119_v11 = vld [vmem:[%s7060_s0 + $0x2f0] sm:$0xf] }
  0x88   :  { %1013 = vst [vmem:[#allocation0 + $0x5f0] sm:$0xf] %v4117_v9  ;;  %1018 = vst [vmem:[#allocation0 + $0x5e8] sm:$0xf] %v4118_v10  ;;  %v4120_v12 = vld [vmem:[%s7060_s0 + $0x2ec] sm:$0xf] }
  0x89   :  { %1023 = vst [vmem:[#allocation0 + $0x5e0] sm:$0xf] %v4119_v11  ;;  %v4121_v13 = vld [vmem:[%s7060_s0 + $0x2e8] sm:$0xf]  ;;  %v4122_v14 = vld [vmem:[%s7060_s0 + $0x2e4] sm:$0xf] }
  0x8a   :  { %1028 = vst [vmem:[#allocation0 + $0x5d8] sm:$0xf] %v4120_v12  ;;  %1033 = vst [vmem:[#allocation0 + $0x5d0] sm:$0xf] %v4121_v13  ;;  %v4123_v15 = vld [vmem:[%s7060_s0 + $0x2e0] sm:$0xf] }
  0x8b   :  { %1038 = vst [vmem:[#allocation0 + $0x5c8] sm:$0xf] %v4122_v14  ;;  %v4124_v16 = vld [vmem:[%s7060_s0 + $0x2dc] sm:$0xf]  ;;  %v4125_v17 = vld [vmem:[%s7060_s0 + $0x2d8] sm:$0xf] }
  0x8c   :  { %1043 = vst [vmem:[#allocation0 + $0x5c0] sm:$0xf] %v4123_v15  ;;  %1048 = vst [vmem:[#allocation0 + $0x5b8] sm:$0xf] %v4124_v16  ;;  %v4126_v18 = vld [vmem:[%s7060_s0 + $0x2d4] sm:$0xf] }
  0x8d   :  { %1053 = vst [vmem:[#allocation0 + $0x5b0] sm:$0xf] %v4125_v17  ;;  %v4127_v19 = vld [vmem:[%s7060_s0 + $0x2d0] sm:$0xf]  ;;  %v4128_v20 = vld [vmem:[%s7060_s0 + $0x2cc] sm:$0xf] }
  0x8e   :  { %1058 = vst [vmem:[#allocation0 + $0x5a8] sm:$0xf] %v4126_v18  ;;  %1063 = vst [vmem:[#allocation0 + $0x5a0] sm:$0xf] %v4127_v19  ;;  %v4129_v21 = vld [vmem:[%s7060_s0 + $0x2c8] sm:$0xf] }
  0x8f   :  { %1068 = vst [vmem:[#allocation0 + $0x598] sm:$0xf] %v4128_v20  ;;  %v4130_v22 = vld [vmem:[%s7060_s0 + $0x2c4] sm:$0xf]  ;;  %v4131_v23 = vld [vmem:[%s7060_s0 + $0x2c0] sm:$0xf] }
  0x90   :  { %1073 = vst [vmem:[#allocation0 + $0x590] sm:$0xf] %v4129_v21  ;;  %1078 = vst [vmem:[#allocation0 + $0x588] sm:$0xf] %v4130_v22  ;;  %v4132_v24 = vld [vmem:[%s7060_s0 + $0x2bc] sm:$0xf] }
  0x91   :  { %1083 = vst [vmem:[#allocation0 + $0x580] sm:$0xf] %v4131_v23  ;;  %v4133_v25 = vld [vmem:[%s7060_s0 + $0x2b8] sm:$0xf]  ;;  %v4134_v26 = vld [vmem:[%s7060_s0 + $0x2b4] sm:$0xf] }
  0x92   :  { %1088 = vst [vmem:[#allocation0 + $0x578] sm:$0xf] %v4132_v24  ;;  %1093 = vst [vmem:[#allocation0 + $0x570] sm:$0xf] %v4133_v25  ;;  %v4135_v27 = vld [vmem:[%s7060_s0 + $0x2b0] sm:$0xf] }
  0x93   :  { %1098 = vst [vmem:[#allocation0 + $0x568] sm:$0xf] %v4134_v26  ;;  %v4136_v28 = vld [vmem:[%s7060_s0 + $0x2ac] sm:$0xf]  ;;  %v4137_v29 = vld [vmem:[%s7060_s0 + $0x2a8] sm:$0xf] }
  0x94   :  { %1103 = vst [vmem:[#allocation0 + $0x560] sm:$0xf] %v4135_v27  ;;  %1108 = vst [vmem:[#allocation0 + $0x558] sm:$0xf] %v4136_v28  ;;  %v4138_v30 = vld [vmem:[%s7060_s0 + $0x2a4] sm:$0xf] }
  0x95   :  { %1113 = vst [vmem:[#allocation0 + $0x550] sm:$0xf] %v4137_v29  ;;  %v4139_v31 = vld [vmem:[%s7060_s0 + $0x2a0] sm:$0xf]  ;;  %v4140_v32 = vld [vmem:[%s7060_s0 + $0x29c] sm:$0xf] }
  0x96   :  { %1118 = vst [vmem:[#allocation0 + $0x548] sm:$0xf] %v4138_v30  ;;  %1123 = vst [vmem:[#allocation0 + $0x540] sm:$0xf] %v4139_v31  ;;  %v4141_v33 = vld [vmem:[%s7060_s0 + $0x298] sm:$0xf] }
  0x97   :  { %1128 = vst [vmem:[#allocation0 + $0x538] sm:$0xf] %v4140_v32  ;;  %v4142_v34 = vld [vmem:[%s7060_s0 + $0x294] sm:$0xf]  ;;  %v4143_v35 = vld [vmem:[%s7060_s0 + $0x290] sm:$0xf] }
  0x98   :  { %1133 = vst [vmem:[#allocation0 + $0x530] sm:$0xf] %v4141_v33  ;;  %1138 = vst [vmem:[#allocation0 + $0x528] sm:$0xf] %v4142_v34  ;;  %v4144_v36 = vld [vmem:[%s7060_s0 + $0x28c] sm:$0xf] }
  0x99   :  { %1143 = vst [vmem:[#allocation0 + $0x520] sm:$0xf] %v4143_v35  ;;  %v4145_v37 = vld [vmem:[%s7060_s0 + $0x288] sm:$0xf]  ;;  %v4146_v38 = vld [vmem:[%s7060_s0 + $0x284] sm:$0xf] }
  0x9a   :  { %1148 = vst [vmem:[#allocation0 + $0x518] sm:$0xf] %v4144_v36  ;;  %1153 = vst [vmem:[#allocation0 + $0x510] sm:$0xf] %v4145_v37  ;;  %v4147_v39 = vld [vmem:[%s7060_s0 + $0x280] sm:$0xf] }
  0x9b   :  { %1158 = vst [vmem:[#allocation0 + $0x508] sm:$0xf] %v4146_v38  ;;  %v4148_v40 = vld [vmem:[%s7060_s0 + $0x27c] sm:$0xf]  ;;  %v4149_v41 = vld [vmem:[%s7060_s0 + $0x278] sm:$0xf] }
  0x9c   :  { %1163 = vst [vmem:[#allocation0 + $0x500] sm:$0xf] %v4147_v39  ;;  %1168 = vst [vmem:[#allocation0 + $0x4f8] sm:$0xf] %v4148_v40  ;;  %v4150_v42 = vld [vmem:[%s7060_s0 + $0x274] sm:$0xf] }
  0x9d   :  { %1173 = vst [vmem:[#allocation0 + $0x4f0] sm:$0xf] %v4149_v41  ;;  %v4151_v43 = vld [vmem:[%s7060_s0 + $0x270] sm:$0xf]  ;;  %v4152_v44 = vld [vmem:[%s7060_s0 + $0x26c] sm:$0xf] }
  0x9e   :  { %1178 = vst [vmem:[#allocation0 + $0x4e8] sm:$0xf] %v4150_v42  ;;  %1183 = vst [vmem:[#allocation0 + $0x4e0] sm:$0xf] %v4151_v43  ;;  %v4153_v45 = vld [vmem:[%s7060_s0 + $0x268] sm:$0xf] }
  0x9f   :  { %1188 = vst [vmem:[#allocation0 + $0x4d8] sm:$0xf] %v4152_v44  ;;  %v4154_v46 = vld [vmem:[%s7060_s0 + $0x264] sm:$0xf]  ;;  %v4155_v47 = vld [vmem:[%s7060_s0 + $0x260] sm:$0xf] }
  0xa0   :  { %1193 = vst [vmem:[#allocation0 + $0x4d0] sm:$0xf] %v4153_v45  ;;  %1198 = vst [vmem:[#allocation0 + $0x4c8] sm:$0xf] %v4154_v46  ;;  %v4156_v48 = vld [vmem:[%s7060_s0 + $0x25c] sm:$0xf] }
  0xa1   :  { %1203 = vst [vmem:[#allocation0 + $0x4c0] sm:$0xf] %v4155_v47  ;;  %v4157_v49 = vld [vmem:[%s7060_s0 + $0x258] sm:$0xf]  ;;  %v4158_v50 = vld [vmem:[%s7060_s0 + $0x254] sm:$0xf] }
  0xa2   :  { %1208 = vst [vmem:[#allocation0 + $0x4b8] sm:$0xf] %v4156_v48  ;;  %1213 = vst [vmem:[#allocation0 + $0x4b0] sm:$0xf] %v4157_v49  ;;  %v4159_v51 = vld [vmem:[%s7060_s0 + $0x250] sm:$0xf] }
  0xa3   :  { %1218 = vst [vmem:[#allocation0 + $0x4a8] sm:$0xf] %v4158_v50  ;;  %v4160_v52 = vld [vmem:[%s7060_s0 + $0x24c] sm:$0xf]  ;;  %v4161_v53 = vld [vmem:[%s7060_s0 + $0x248] sm:$0xf] }
  0xa4   :  { %1223 = vst [vmem:[#allocation0 + $0x4a0] sm:$0xf] %v4159_v51  ;;  %1228 = vst [vmem:[#allocation0 + $0x498] sm:$0xf] %v4160_v52  ;;  %v4162_v54 = vld [vmem:[%s7060_s0 + $0x244] sm:$0xf] }
  0xa5   :  { %1233 = vst [vmem:[#allocation0 + $0x490] sm:$0xf] %v4161_v53  ;;  %v4163_v55 = vld [vmem:[%s7060_s0 + $0x240] sm:$0xf]  ;;  %v4164_v56 = vld [vmem:[%s7060_s0 + $0x23c] sm:$0xf] }
  0xa6   :  { %1238 = vst [vmem:[#allocation0 + $0x488] sm:$0xf] %v4162_v54  ;;  %1243 = vst [vmem:[#allocation0 + $0x480] sm:$0xf] %v4163_v55  ;;  %v4165_v57 = vld [vmem:[%s7060_s0 + $0x238] sm:$0xf] }
  0xa7   :  { %1248 = vst [vmem:[#allocation0 + $0x478] sm:$0xf] %v4164_v56  ;;  %v4166_v58 = vld [vmem:[%s7060_s0 + $0x234] sm:$0xf]  ;;  %v4167_v59 = vld [vmem:[%s7060_s0 + $0x230] sm:$0xf] }
  0xa8   :  { %1253 = vst [vmem:[#allocation0 + $0x470] sm:$0xf] %v4165_v57  ;;  %1258 = vst [vmem:[#allocation0 + $0x468] sm:$0xf] %v4166_v58  ;;  %v4168_v60 = vld [vmem:[%s7060_s0 + $0x22c] sm:$0xf] }
  0xa9   :  { %1263 = vst [vmem:[#allocation0 + $0x460] sm:$0xf] %v4167_v59  ;;  %v4169_v61 = vld [vmem:[%s7060_s0 + $0x228] sm:$0xf]  ;;  %v4170_v62 = vld [vmem:[%s7060_s0 + $0x224] sm:$0xf] }
  0xaa   :  { %1268 = vst [vmem:[#allocation0 + $0x458] sm:$0xf] %v4168_v60  ;;  %1273 = vst [vmem:[#allocation0 + $0x450] sm:$0xf] %v4169_v61  ;;  %v4171_v63 = vld [vmem:[%s7060_s0 + $0x220] sm:$0xf] }
  0xab   :  { %1278 = vst [vmem:[#allocation0 + $0x448] sm:$0xf] %v4170_v62  ;;  %v4172_v0 = vld [vmem:[%s7060_s0 + $0x21c] sm:$0xf]  ;;  %v4173_v1 = vld [vmem:[%s7060_s0 + $0x218] sm:$0xf] }
  0xac   :  { %1283 = vst [vmem:[#allocation0 + $0x440] sm:$0xf] %v4171_v63  ;;  %1288 = vst [vmem:[#allocation0 + $0x438] sm:$0xf] %v4172_v0  ;;  %v4174_v2 = vld [vmem:[%s7060_s0 + $0x214] sm:$0xf] }
  0xad   :  { %1293 = vst [vmem:[#allocation0 + $0x430] sm:$0xf] %v4173_v1  ;;  %v4175_v3 = vld [vmem:[%s7060_s0 + $0x210] sm:$0xf]  ;;  %v4176_v4 = vld [vmem:[%s7060_s0 + $0x20c] sm:$0xf] }
  0xae   :  { %1298 = vst [vmem:[#allocation0 + $0x428] sm:$0xf] %v4174_v2  ;;  %1303 = vst [vmem:[#allocation0 + $0x420] sm:$0xf] %v4175_v3  ;;  %v4177_v5 = vld [vmem:[%s7060_s0 + $0x208] sm:$0xf] }
  0xaf   :  { %1308 = vst [vmem:[#allocation0 + $0x418] sm:$0xf] %v4176_v4  ;;  %v4178_v6 = vld [vmem:[%s7060_s0 + $0x204] sm:$0xf]  ;;  %v4179_v7 = vld [vmem:[%s7060_s0 + $0x200] sm:$0xf] }
  0xb0   :  { %1313 = vst [vmem:[#allocation0 + $0x410] sm:$0xf] %v4177_v5  ;;  %1318 = vst [vmem:[#allocation0 + $0x408] sm:$0xf] %v4178_v6  ;;  %v4180_v8 = vld [vmem:[%s7060_s0 + $0x1fc] sm:$0xf] }
  0xb1   :  { %1323 = vst [vmem:[#allocation0 + $0x400] sm:$0xf] %v4179_v7  ;;  %v4181_v9 = vld [vmem:[%s7060_s0 + $0x1f8] sm:$0xf]  ;;  %v4182_v10 = vld [vmem:[%s7060_s0 + $0x1f4] sm:$0xf] }
  0xb2   :  { %1328 = vst [vmem:[#allocation0 + $0x3f8] sm:$0xf] %v4180_v8  ;;  %1333 = vst [vmem:[#allocation0 + $0x3f0] sm:$0xf] %v4181_v9  ;;  %v4183_v11 = vld [vmem:[%s7060_s0 + $0x1f0] sm:$0xf] }
  0xb3   :  { %1338 = vst [vmem:[#allocation0 + $0x3e8] sm:$0xf] %v4182_v10  ;;  %v4184_v12 = vld [vmem:[%s7060_s0 + $0x1ec] sm:$0xf]  ;;  %v4185_v13 = vld [vmem:[%s7060_s0 + $0x1e8] sm:$0xf] }
  0xb4   :  { %1343 = vst [vmem:[#allocation0 + $0x3e0] sm:$0xf] %v4183_v11  ;;  %1348 = vst [vmem:[#allocation0 + $0x3d8] sm:$0xf] %v4184_v12  ;;  %v4186_v14 = vld [vmem:[%s7060_s0 + $0x1e4] sm:$0xf] }
  0xb5   :  { %1353 = vst [vmem:[#allocation0 + $0x3d0] sm:$0xf] %v4185_v13  ;;  %v4187_v15 = vld [vmem:[%s7060_s0 + $0x1e0] sm:$0xf]  ;;  %v4188_v16 = vld [vmem:[%s7060_s0 + $0x1dc] sm:$0xf] }
  0xb6   :  { %1358 = vst [vmem:[#allocation0 + $0x3c8] sm:$0xf] %v4186_v14  ;;  %1363 = vst [vmem:[#allocation0 + $0x3c0] sm:$0xf] %v4187_v15  ;;  %v4189_v17 = vld [vmem:[%s7060_s0 + $0x1d8] sm:$0xf] }
  0xb7   :  { %1368 = vst [vmem:[#allocation0 + $0x3b8] sm:$0xf] %v4188_v16  ;;  %v4190_v18 = vld [vmem:[%s7060_s0 + $0x1d4] sm:$0xf]  ;;  %v4191_v19 = vld [vmem:[%s7060_s0 + $0x1d0] sm:$0xf] }
  0xb8   :  { %1373 = vst [vmem:[#allocation0 + $0x3b0] sm:$0xf] %v4189_v17  ;;  %1378 = vst [vmem:[#allocation0 + $0x3a8] sm:$0xf] %v4190_v18  ;;  %v4192_v20 = vld [vmem:[%s7060_s0 + $0x1cc] sm:$0xf] }
  0xb9   :  { %1383 = vst [vmem:[#allocation0 + $0x3a0] sm:$0xf] %v4191_v19  ;;  %v4193_v21 = vld [vmem:[%s7060_s0 + $0x1c8] sm:$0xf]  ;;  %v4194_v22 = vld [vmem:[%s7060_s0 + $0x1c4] sm:$0xf] }
  0xba   :  { %1388 = vst [vmem:[#allocation0 + $0x398] sm:$0xf] %v4192_v20  ;;  %1393 = vst [vmem:[#allocation0 + $0x390] sm:$0xf] %v4193_v21  ;;  %v4195_v23 = vld [vmem:[%s7060_s0 + $0x1c0] sm:$0xf] }
  0xbb   :  { %1398 = vst [vmem:[#allocation0 + $0x388] sm:$0xf] %v4194_v22  ;;  %v4196_v24 = vld [vmem:[%s7060_s0 + $0x1bc] sm:$0xf]  ;;  %v4197_v25 = vld [vmem:[%s7060_s0 + $0x1b8] sm:$0xf] }
  0xbc   :  { %1403 = vst [vmem:[#allocation0 + $0x380] sm:$0xf] %v4195_v23  ;;  %1408 = vst [vmem:[#allocation0 + $0x378] sm:$0xf] %v4196_v24  ;;  %v4198_v26 = vld [vmem:[%s7060_s0 + $0x1b4] sm:$0xf] }
  0xbd   :  { %1413 = vst [vmem:[#allocation0 + $0x370] sm:$0xf] %v4197_v25  ;;  %v4199_v27 = vld [vmem:[%s7060_s0 + $0x1b0] sm:$0xf]  ;;  %v4200_v28 = vld [vmem:[%s7060_s0 + $0x1ac] sm:$0xf] }
  0xbe   :  { %1418 = vst [vmem:[#allocation0 + $0x368] sm:$0xf] %v4198_v26  ;;  %1423 = vst [vmem:[#allocation0 + $0x360] sm:$0xf] %v4199_v27  ;;  %v4201_v29 = vld [vmem:[%s7060_s0 + $0x1a8] sm:$0xf] }
  0xbf   :  { %1428 = vst [vmem:[#allocation0 + $0x358] sm:$0xf] %v4200_v28  ;;  %v4202_v30 = vld [vmem:[%s7060_s0 + $0x1a4] sm:$0xf]  ;;  %v4203_v31 = vld [vmem:[%s7060_s0 + $0x1a0] sm:$0xf] }
  0xc0   :  { %1433 = vst [vmem:[#allocation0 + $0x350] sm:$0xf] %v4201_v29  ;;  %1438 = vst [vmem:[#allocation0 + $0x348] sm:$0xf] %v4202_v30  ;;  %v4204_v32 = vld [vmem:[%s7060_s0 + $0x19c] sm:$0xf] }
  0xc1   :  { %1443 = vst [vmem:[#allocation0 + $0x340] sm:$0xf] %v4203_v31  ;;  %v4205_v33 = vld [vmem:[%s7060_s0 + $0x198] sm:$0xf]  ;;  %v4206_v34 = vld [vmem:[%s7060_s0 + $0x194] sm:$0xf] }
  0xc2   :  { %1448 = vst [vmem:[#allocation0 + $0x338] sm:$0xf] %v4204_v32  ;;  %1453 = vst [vmem:[#allocation0 + $0x330] sm:$0xf] %v4205_v33  ;;  %v4207_v35 = vld [vmem:[%s7060_s0 + $0x190] sm:$0xf] }
  0xc3   :  { %1458 = vst [vmem:[#allocation0 + $0x328] sm:$0xf] %v4206_v34  ;;  %v4208_v36 = vld [vmem:[%s7060_s0 + $0x18c] sm:$0xf]  ;;  %v4209_v37 = vld [vmem:[%s7060_s0 + $0x188] sm:$0xf] }
  0xc4   :  { %1463 = vst [vmem:[#allocation0 + $0x320] sm:$0xf] %v4207_v35  ;;  %1468 = vst [vmem:[#allocation0 + $0x318] sm:$0xf] %v4208_v36  ;;  %v4210_v38 = vld [vmem:[%s7060_s0 + $0x184] sm:$0xf] }
  0xc5   :  { %1473 = vst [vmem:[#allocation0 + $0x310] sm:$0xf] %v4209_v37  ;;  %v4211_v39 = vld [vmem:[%s7060_s0 + $0x180] sm:$0xf]  ;;  %v4212_v40 = vld [vmem:[%s7060_s0 + $0x17c] sm:$0xf] }
  0xc6   :  { %1478 = vst [vmem:[#allocation0 + $0x308] sm:$0xf] %v4210_v38  ;;  %1483 = vst [vmem:[#allocation0 + $0x300] sm:$0xf] %v4211_v39  ;;  %v4213_v41 = vld [vmem:[%s7060_s0 + $0x178] sm:$0xf] }
  0xc7   :  { %1488 = vst [vmem:[#allocation0 + $0x2f8] sm:$0xf] %v4212_v40  ;;  %v4214_v42 = vld [vmem:[%s7060_s0 + $0x174] sm:$0xf]  ;;  %v4215_v43 = vld [vmem:[%s7060_s0 + $0x170] sm:$0xf] }
  0xc8   :  { %1493 = vst [vmem:[#allocation0 + $0x2f0] sm:$0xf] %v4213_v41  ;;  %1498 = vst [vmem:[#allocation0 + $0x2e8] sm:$0xf] %v4214_v42  ;;  %v4216_v44 = vld [vmem:[%s7060_s0 + $0x16c] sm:$0xf] }
  0xc9   :  { %1503 = vst [vmem:[#allocation0 + $0x2e0] sm:$0xf] %v4215_v43  ;;  %v4217_v45 = vld [vmem:[%s7060_s0 + $0x168] sm:$0xf]  ;;  %v4218_v46 = vld [vmem:[%s7060_s0 + $0x164] sm:$0xf] }
  0xca   :  { %1508 = vst [vmem:[#allocation0 + $0x2d8] sm:$0xf] %v4216_v44  ;;  %1513 = vst [vmem:[#allocation0 + $0x2d0] sm:$0xf] %v4217_v45  ;;  %v4219_v47 = vld [vmem:[%s7060_s0 + $0x160] sm:$0xf] }
  0xcb   :  { %1518 = vst [vmem:[#allocation0 + $0x2c8] sm:$0xf] %v4218_v46  ;;  %v4220_v48 = vld [vmem:[%s7060_s0 + $0x15c] sm:$0xf]  ;;  %v4221_v49 = vld [vmem:[%s7060_s0 + $0x158] sm:$0xf] }
  0xcc   :  { %1523 = vst [vmem:[#allocation0 + $0x2c0] sm:$0xf] %v4219_v47  ;;  %1528 = vst [vmem:[#allocation0 + $0x2b8] sm:$0xf] %v4220_v48  ;;  %v4222_v50 = vld [vmem:[%s7060_s0 + $0x154] sm:$0xf] }
  0xcd   :  { %1533 = vst [vmem:[#allocation0 + $0x2b0] sm:$0xf] %v4221_v49  ;;  %v4223_v51 = vld [vmem:[%s7060_s0 + $0x150] sm:$0xf]  ;;  %v4224_v52 = vld [vmem:[%s7060_s0 + $0x14c] sm:$0xf] }
  0xce   :  { %1538 = vst [vmem:[#allocation0 + $0x2a8] sm:$0xf] %v4222_v50  ;;  %1543 = vst [vmem:[#allocation0 + $0x2a0] sm:$0xf] %v4223_v51  ;;  %v4225_v53 = vld [vmem:[%s7060_s0 + $0x148] sm:$0xf] }
  0xcf   :  { %1548 = vst [vmem:[#allocation0 + $0x298] sm:$0xf] %v4224_v52  ;;  %v4226_v54 = vld [vmem:[%s7060_s0 + $0x144] sm:$0xf]  ;;  %v4227_v55 = vld [vmem:[%s7060_s0 + $0x140] sm:$0xf] }
  0xd0   :  { %1553 = vst [vmem:[#allocation0 + $0x290] sm:$0xf] %v4225_v53  ;;  %1558 = vst [vmem:[#allocation0 + $0x288] sm:$0xf] %v4226_v54  ;;  %v4228_v56 = vld [vmem:[%s7060_s0 + $0x13c] sm:$0xf] }
  0xd1   :  { %1563 = vst [vmem:[#allocation0 + $0x280] sm:$0xf] %v4227_v55  ;;  %v4229_v57 = vld [vmem:[%s7060_s0 + $0x138] sm:$0xf]  ;;  %v4230_v58 = vld [vmem:[%s7060_s0 + $0x134] sm:$0xf] }
  0xd2   :  { %1568 = vst [vmem:[#allocation0 + $0x278] sm:$0xf] %v4228_v56  ;;  %1573 = vst [vmem:[#allocation0 + $0x270] sm:$0xf] %v4229_v57  ;;  %v4231_v59 = vld [vmem:[%s7060_s0 + $0x130] sm:$0xf] }
  0xd3   :  { %1578 = vst [vmem:[#allocation0 + $0x268] sm:$0xf] %v4230_v58  ;;  %v4232_v60 = vld [vmem:[%s7060_s0 + $0x12c] sm:$0xf]  ;;  %v4233_v61 = vld [vmem:[%s7060_s0 + $0x128] sm:$0xf] }
  0xd4   :  { %1583 = vst [vmem:[#allocation0 + $0x260] sm:$0xf] %v4231_v59  ;;  %1588 = vst [vmem:[#allocation0 + $0x258] sm:$0xf] %v4232_v60  ;;  %v4234_v62 = vld [vmem:[%s7060_s0 + $0x124] sm:$0xf] }
  0xd5   :  { %1593 = vst [vmem:[#allocation0 + $0x250] sm:$0xf] %v4233_v61  ;;  %v4235_v63 = vld [vmem:[%s7060_s0 + $0x120] sm:$0xf]  ;;  %v4236_v0 = vld [vmem:[%s7060_s0 + $0x11c] sm:$0xf] }
  0xd6   :  { %1598 = vst [vmem:[#allocation0 + $0x248] sm:$0xf] %v4234_v62  ;;  %1603 = vst [vmem:[#allocation0 + $0x240] sm:$0xf] %v4235_v63  ;;  %v4237_v1 = vld [vmem:[%s7060_s0 + $0x118] sm:$0xf] }
  0xd7   :  { %1608 = vst [vmem:[#allocation0 + $0x238] sm:$0xf] %v4236_v0  ;;  %v4238_v2 = vld [vmem:[%s7060_s0 + $0x114] sm:$0xf]  ;;  %v4239_v3 = vld [vmem:[%s7060_s0 + $0x110] sm:$0xf] }
  0xd8   :  { %1613 = vst [vmem:[#allocation0 + $0x230] sm:$0xf] %v4237_v1  ;;  %1618 = vst [vmem:[#allocation0 + $0x228] sm:$0xf] %v4238_v2  ;;  %v4240_v4 = vld [vmem:[%s7060_s0 + $0x10c] sm:$0xf] }
  0xd9   :  { %1623 = vst [vmem:[#allocation0 + $0x220] sm:$0xf] %v4239_v3  ;;  %v4241_v5 = vld [vmem:[%s7060_s0 + $0x108] sm:$0xf]  ;;  %v4242_v6 = vld [vmem:[%s7060_s0 + $0x104] sm:$0xf] }
  0xda   :  { %1628 = vst [vmem:[#allocation0 + $0x218] sm:$0xf] %v4240_v4  ;;  %1633 = vst [vmem:[#allocation0 + $0x210] sm:$0xf] %v4241_v5  ;;  %v4243_v7 = vld [vmem:[%s7060_s0 + $0x100] sm:$0xf] }
  0xdb   :  { %1638 = vst [vmem:[#allocation0 + $0x208] sm:$0xf] %v4242_v6  ;;  %v4244_v8 = vld [vmem:[%s7060_s0 + $0xfc] sm:$0xf]  ;;  %v4245_v9 = vld [vmem:[%s7060_s0 + $0xf8] sm:$0xf] }
  0xdc   :  { %1643 = vst [vmem:[#allocation0 + $0x200] sm:$0xf] %v4243_v7  ;;  %1648 = vst [vmem:[#allocation0 + $0x1f8] sm:$0xf] %v4244_v8  ;;  %v4246_v10 = vld [vmem:[%s7060_s0 + $0xf4] sm:$0xf] }
  0xdd   :  { %1653 = vst [vmem:[#allocation0 + $0x1f0] sm:$0xf] %v4245_v9  ;;  %v4247_v11 = vld [vmem:[%s7060_s0 + $0xf0] sm:$0xf]  ;;  %v4248_v12 = vld [vmem:[%s7060_s0 + $0xec] sm:$0xf] }
  0xde   :  { %1658 = vst [vmem:[#allocation0 + $0x1e8] sm:$0xf] %v4246_v10  ;;  %1663 = vst [vmem:[#allocation0 + $0x1e0] sm:$0xf] %v4247_v11  ;;  %v4249_v13 = vld [vmem:[%s7060_s0 + $0xe8] sm:$0xf] }
  0xdf   :  { %1668 = vst [vmem:[#allocation0 + $0x1d8] sm:$0xf] %v4248_v12  ;;  %v4250_v14 = vld [vmem:[%s7060_s0 + $0xe4] sm:$0xf]  ;;  %v4251_v15 = vld [vmem:[%s7060_s0 + $0xe0] sm:$0xf] }
  0xe0   :  { %1673 = vst [vmem:[#allocation0 + $0x1d0] sm:$0xf] %v4249_v13  ;;  %1678 = vst [vmem:[#allocation0 + $0x1c8] sm:$0xf] %v4250_v14  ;;  %v4252_v16 = vld [vmem:[%s7060_s0 + $0xdc] sm:$0xf] }
  0xe1   :  { %1683 = vst [vmem:[#allocation0 + $0x1c0] sm:$0xf] %v4251_v15  ;;  %v4253_v17 = vld [vmem:[%s7060_s0 + $0xd8] sm:$0xf]  ;;  %v4254_v18 = vld [vmem:[%s7060_s0 + $0xd4] sm:$0xf] }
  0xe2   :  { %1688 = vst [vmem:[#allocation0 + $0x1b8] sm:$0xf] %v4252_v16  ;;  %1693 = vst [vmem:[#allocation0 + $0x1b0] sm:$0xf] %v4253_v17  ;;  %v4255_v19 = vld [vmem:[%s7060_s0 + $0xd0] sm:$0xf] }
  0xe3   :  { %1698 = vst [vmem:[#allocation0 + $0x1a8] sm:$0xf] %v4254_v18  ;;  %v4256_v20 = vld [vmem:[%s7060_s0 + $0xcc] sm:$0xf]  ;;  %v4257_v21 = vld [vmem:[%s7060_s0 + $0xc8] sm:$0xf] }
  0xe4   :  { %1703 = vst [vmem:[#allocation0 + $0x1a0] sm:$0xf] %v4255_v19  ;;  %1708 = vst [vmem:[#allocation0 + $0x198] sm:$0xf] %v4256_v20  ;;  %v4258_v22 = vld [vmem:[%s7060_s0 + $0xc4] sm:$0xf] }
  0xe5   :  { %1713 = vst [vmem:[#allocation0 + $0x190] sm:$0xf] %v4257_v21  ;;  %v4259_v23 = vld [vmem:[%s7060_s0 + $0xc0] sm:$0xf]  ;;  %v4260_v24 = vld [vmem:[%s7060_s0 + $0xbc] sm:$0xf] }
  0xe6   :  { %1718 = vst [vmem:[#allocation0 + $0x188] sm:$0xf] %v4258_v22  ;;  %1723 = vst [vmem:[#allocation0 + $0x180] sm:$0xf] %v4259_v23  ;;  %v4261_v25 = vld [vmem:[%s7060_s0 + $0xb8] sm:$0xf] }
  0xe7   :  { %1728 = vst [vmem:[#allocation0 + $0x178] sm:$0xf] %v4260_v24  ;;  %v4262_v26 = vld [vmem:[%s7060_s0 + $0xb4] sm:$0xf]  ;;  %v4263_v27 = vld [vmem:[%s7060_s0 + $0xb0] sm:$0xf] }
  0xe8   :  { %1733 = vst [vmem:[#allocation0 + $0x170] sm:$0xf] %v4261_v25  ;;  %1738 = vst [vmem:[#allocation0 + $0x168] sm:$0xf] %v4262_v26  ;;  %v4264_v28 = vld [vmem:[%s7060_s0 + $0xac] sm:$0xf] }
  0xe9   :  { %1743 = vst [vmem:[#allocation0 + $0x160] sm:$0xf] %v4263_v27  ;;  %v4265_v29 = vld [vmem:[%s7060_s0 + $0xa8] sm:$0xf]  ;;  %v4266_v30 = vld [vmem:[%s7060_s0 + $0xa4] sm:$0xf] }
  0xea   :  { %1748 = vst [vmem:[#allocation0 + $0x158] sm:$0xf] %v4264_v28  ;;  %1753 = vst [vmem:[#allocation0 + $0x150] sm:$0xf] %v4265_v29  ;;  %v4267_v31 = vld [vmem:[%s7060_s0 + $0xa0] sm:$0xf] }
  0xeb   :  { %1758 = vst [vmem:[#allocation0 + $0x148] sm:$0xf] %v4266_v30  ;;  %v4268_v32 = vld [vmem:[%s7060_s0 + $0x9c] sm:$0xf]  ;;  %v4269_v33 = vld [vmem:[%s7060_s0 + $0x98] sm:$0xf] }
  0xec   :  { %1763 = vst [vmem:[#allocation0 + $0x140] sm:$0xf] %v4267_v31  ;;  %1768 = vst [vmem:[#allocation0 + $0x138] sm:$0xf] %v4268_v32  ;;  %v4270_v34 = vld [vmem:[%s7060_s0 + $0x94] sm:$0xf] }
  0xed   :  { %1773 = vst [vmem:[#allocation0 + $0x130] sm:$0xf] %v4269_v33  ;;  %v4271_v35 = vld [vmem:[%s7060_s0 + $0x90] sm:$0xf]  ;;  %v4272_v36 = vld [vmem:[%s7060_s0 + $0x8c] sm:$0xf] }
  0xee   :  { %1778 = vst [vmem:[#allocation0 + $0x128] sm:$0xf] %v4270_v34  ;;  %1783 = vst [vmem:[#allocation0 + $0x120] sm:$0xf] %v4271_v35  ;;  %v4273_v37 = vld [vmem:[%s7060_s0 + $0x88] sm:$0xf] }
  0xef   :  { %1788 = vst [vmem:[#allocation0 + $0x118] sm:$0xf] %v4272_v36  ;;  %v4274_v38 = vld [vmem:[%s7060_s0 + $0x84] sm:$0xf]  ;;  %v4275_v39 = vld [vmem:[%s7060_s0 + $0x80] sm:$0xf] }
  0xf0   :  { %1793 = vst [vmem:[#allocation0 + $0x110] sm:$0xf] %v4273_v37  ;;  %1798 = vst [vmem:[#allocation0 + $0x108] sm:$0xf] %v4274_v38  ;;  %v4276_v40 = vld [vmem:[%s7060_s0 + $0x7c] sm:$0xf] }
  0xf1   :  { %1803 = vst [vmem:[#allocation0 + $0x100] sm:$0xf] %v4275_v39  ;;  %v4277_v41 = vld [vmem:[%s7060_s0 + $0x78] sm:$0xf]  ;;  %v4278_v42 = vld [vmem:[%s7060_s0 + $0x74] sm:$0xf] }
  0xf2   :  { %1808 = vst [vmem:[#allocation0 + $0xf8] sm:$0xf] %v4276_v40  ;;  %1813 = vst [vmem:[#allocation0 + $0xf0] sm:$0xf] %v4277_v41  ;;  %v4279_v43 = vld [vmem:[%s7060_s0 + $0x70] sm:$0xf] }
  0xf3   :  { %1818 = vst [vmem:[#allocation0 + $0xe8] sm:$0xf] %v4278_v42  ;;  %v4280_v44 = vld [vmem:[%s7060_s0 + $0x6c] sm:$0xf]  ;;  %v4281_v45 = vld [vmem:[%s7060_s0 + $0x68] sm:$0xf] }
  0xf4   :  { %1823 = vst [vmem:[#allocation0 + $0xe0] sm:$0xf] %v4279_v43  ;;  %1828 = vst [vmem:[#allocation0 + $0xd8] sm:$0xf] %v4280_v44  ;;  %v4282_v46 = vld [vmem:[%s7060_s0 + $0x64] sm:$0xf] }
  0xf5   :  { %1833 = vst [vmem:[#allocation0 + $0xd0] sm:$0xf] %v4281_v45  ;;  %v4283_v47 = vld [vmem:[%s7060_s0 + $0x60] sm:$0xf]  ;;  %v4284_v48 = vld [vmem:[%s7060_s0 + $0x5c] sm:$0xf] }
  0xf6   :  { %1838 = vst [vmem:[#allocation0 + $0xc8] sm:$0xf] %v4282_v46  ;;  %1843 = vst [vmem:[#allocation0 + $0xc0] sm:$0xf] %v4283_v47  ;;  %v4285_v49 = vld [vmem:[%s7060_s0 + $0x58] sm:$0xf] }
  0xf7   :  { %1848 = vst [vmem:[#allocation0 + $0xb8] sm:$0xf] %v4284_v48  ;;  %v4286_v50 = vld [vmem:[%s7060_s0 + $0x54] sm:$0xf]  ;;  %v4287_v51 = vld [vmem:[%s7060_s0 + $0x50] sm:$0xf] }
  0xf8   :  { %1853 = vst [vmem:[#allocation0 + $0xb0] sm:$0xf] %v4285_v49  ;;  %1858 = vst [vmem:[#allocation0 + $0xa8] sm:$0xf] %v4286_v50  ;;  %v4288_v52 = vld [vmem:[%s7060_s0 + $0x4c] sm:$0xf] }
  0xf9   :  { %1863 = vst [vmem:[#allocation0 + $0xa0] sm:$0xf] %v4287_v51  ;;  %v4289_v53 = vld [vmem:[%s7060_s0 + $0x48] sm:$0xf]  ;;  %v4290_v54 = vld [vmem:[%s7060_s0 + $0x44] sm:$0xf] }
  0xfa   :  { %1868 = vst [vmem:[#allocation0 + $0x98] sm:$0xf] %v4288_v52  ;;  %1873 = vst [vmem:[#allocation0 + $0x90] sm:$0xf] %v4289_v53  ;;  %v4291_v55 = vld [vmem:[%s7060_s0 + $0x40] sm:$0xf] }
  0xfb   :  { %1878 = vst [vmem:[#allocation0 + $0x88] sm:$0xf] %v4290_v54  ;;  %v4292_v56 = vld [vmem:[%s7060_s0 + $0x3c] sm:$0xf]  ;;  %v4293_v57 = vld [vmem:[%s7060_s0 + $0x38] sm:$0xf] }
  0xfc   :  { %1883 = vst [vmem:[#allocation0 + $0x80] sm:$0xf] %v4291_v55  ;;  %1888 = vst [vmem:[#allocation0 + $0x78] sm:$0xf] %v4292_v56  ;;  %v4294_v58 = vld [vmem:[%s7060_s0 + $0x34] sm:$0xf] }
  0xfd   :  { %1893 = vst [vmem:[#allocation0 + $0x70] sm:$0xf] %v4293_v57  ;;  %v4295_v59 = vld [vmem:[%s7060_s0 + $0x30] sm:$0xf]  ;;  %v4296_v60 = vld [vmem:[%s7060_s0 + $0x2c] sm:$0xf] }
  0xfe   :  { %1898 = vst [vmem:[#allocation0 + $0x68] sm:$0xf] %v4294_v58  ;;  %1903 = vst [vmem:[#allocation0 + $0x60] sm:$0xf] %v4295_v59  ;;  %v4297_v61 = vld [vmem:[%s7060_s0 + $0x28] sm:$0xf] }
  0xff   :  { %1908 = vst [vmem:[#allocation0 + $0x58] sm:$0xf] %v4296_v60  ;;  %v4298_v62 = vld [vmem:[%s7060_s0 + $0x24] sm:$0xf]  ;;  %v4299_v63 = vld [vmem:[%s7060_s0 + $0x20] sm:$0xf] }
 0x100   :  { %1913 = vst [vmem:[#allocation0 + $0x50] sm:$0xf] %v4297_v61  ;;  %1918 = vst [vmem:[#allocation0 + $0x48] sm:$0xf] %v4298_v62  ;;  %v4300_v0 = vld [vmem:[%s7060_s0 + $0x1c] sm:$0xf] }
 0x101   :  { %1923 = vst [vmem:[#allocation0 + $0x40] sm:$0xf] %v4299_v63  ;;  %v4301_v1 = vld [vmem:[%s7060_s0 + $0x18] sm:$0xf]  ;;  %v4302_v2 = vld [vmem:[%s7060_s0 + $0x14] sm:$0xf] }
 0x102   :  { %1928 = vst [vmem:[#allocation0 + $0x38] sm:$0xf] %v4300_v0  ;;  %1933 = vst [vmem:[#allocation0 + $0x30] sm:$0xf] %v4301_v1  ;;  %v4303_v3 = vld [vmem:[%s7060_s0 + $0x10] sm:$0xf] }
 0x103   :  { %1938 = vst [vmem:[#allocation0 + $0x28] sm:$0xf] %v4302_v2  ;;  %v4304_v4 = vld [vmem:[%s7060_s0 + $0xc] sm:$0xf]  ;;  %v4305_v5 = vld [vmem:[%s7060_s0 + $0x8] sm:$0xf] }
 0x104   :  { %1943 = vst [vmem:[#allocation0 + $0x20] sm:$0xf] %v4303_v3  ;;  %1948 = vst [vmem:[#allocation0 + $0x18] sm:$0xf] %v4304_v4  ;;  %v4306_v6 = vld [vmem:[%s7060_s0 + $0x4] sm:$0xf] }
 0x105   :  { %1953 = vst [vmem:[#allocation0 + $0x10] sm:$0xf] %v4305_v5  ;;  %v1958_v7 = vld [vmem:[%s7060_s0] sm:$0xf]  ;;  %v2051_v8 = vld [vmem:[#allocation0 + $0xb8] sm:$0x7]  }
 0x106   :  { %1957 = vst [vmem:[#allocation0 + $0x8] sm:$0xf] %v4306_v6  ;;  %1959 = vst [vmem:[#allocation0] sm:$0xf] %v1958_v7  ;;  %v2039_v9 = vld [vmem:[#allocation0 + $0xa0] sm:$0x7]  }
 0x107   :  { %v2043_v10 = vld [vmem:[#allocation0 + $0xa8] sm:$0x7]   ;;  %v2047_v11 = vld [vmem:[#allocation0 + $0xb0] sm:$0x7]   ;;  %v2035_v14 = vld [vmem:[#allocation0 + $0x98] sm:$0x7]  }
 0x108   :  { %4329 = vst [vmem:[%s7061_s1 + $0x17] ss:$392 sm:$0x7] %v2051_v8   ;;  %v2027_v12 = vld [vmem:[#allocation0 + $0x88] sm:$0x7]  }
 0x109   :  { %v2031_v13 = vld [vmem:[#allocation0 + $0x90] sm:$0x7]   ;;  %4326 = vst [vmem:[%s7061_s1 + $0x14] ss:$392 sm:$0x7] %v2039_v9  }
 0x10a   :  { %4327 = vst [vmem:[%s7061_s1 + $0x15] ss:$392 sm:$0x7] %v2043_v10   ;;  %4328 = vst [vmem:[%s7061_s1 + $0x16] ss:$392 sm:$0x7] %v2047_v11  }
 0x10b   :  { %v2015_v15 = vld [vmem:[#allocation0 + $0x70] sm:$0x7]   ;;  %v2019_v16 = vld [vmem:[#allocation0 + $0x78] sm:$0x7]   ;;  %v2023_v17 = vld [vmem:[#allocation0 + $0x80] sm:$0x7]  }
 0x10c   :  { %4323 = vst [vmem:[%s7061_s1 + $0x11] ss:$392 sm:$0x7] %v2027_v12   ;;  %4324 = vst [vmem:[%s7061_s1 + $0x12] ss:$392 sm:$0x7] %v2031_v13  }
 0x10d   :  { %4325 = vst [vmem:[%s7061_s1 + $0x13] ss:$392 sm:$0x7] %v2035_v14   ;;  %v2003_v18 = vld [vmem:[#allocation0 + $0x58] sm:$0x7]  }
 0x10e   :  { %v2007_v19 = vld [vmem:[#allocation0 + $0x60] sm:$0x7]   ;;  %v2011_v20 = vld [vmem:[#allocation0 + $0x68] sm:$0x7]   ;;  %v1999_v23 = vld [vmem:[#allocation0 + $0x50] sm:$0x7]  }
 0x10f   :  { %4320 = vst [vmem:[%s7061_s1 + $0xe] ss:$392 sm:$0x7] %v2015_v15   ;;  %4321 = vst [vmem:[%s7061_s1 + $0xf] ss:$392 sm:$0x7] %v2019_v16  }
 0x110   :  { %4322 = vst [vmem:[%s7061_s1 + $0x10] ss:$392 sm:$0x7] %v2023_v17   ;;  %v1991_v21 = vld [vmem:[#allocation0 + $0x40] sm:$0x7]  }
 0x111   :  { %v1995_v22 = vld [vmem:[#allocation0 + $0x48] sm:$0x7]   ;;  %4317 = vst [vmem:[%s7061_s1 + $0xb] ss:$392 sm:$0x7] %v2003_v18  }
 0x112   :  { %4318 = vst [vmem:[%s7061_s1 + $0xc] ss:$392 sm:$0x7] %v2007_v19   ;;  %4319 = vst [vmem:[%s7061_s1 + $0xd] ss:$392 sm:$0x7] %v2011_v20  }
 0x113   :  { %v1979_v24 = vld [vmem:[#allocation0 + $0x28] sm:$0x7]   ;;  %v1983_v25 = vld [vmem:[#allocation0 + $0x30] sm:$0x7]   ;;  %v1987_v26 = vld [vmem:[#allocation0 + $0x38] sm:$0x7]  }
 0x114   :  { %4314 = vst [vmem:[%s7061_s1 + $0x8] ss:$392 sm:$0x7] %v1991_v21   ;;  %4315 = vst [vmem:[%s7061_s1 + $0x9] ss:$392 sm:$0x7] %v1995_v22  }
 0x115   :  { %4316 = vst [vmem:[%s7061_s1 + $0xa] ss:$392 sm:$0x7] %v1999_v23   ;;  %v1967_v27 = vld [vmem:[#allocation0 + $0x10] sm:$0x7]  }
 0x116   :  { %v1971_v28 = vld [vmem:[#allocation0 + $0x18] sm:$0x7]   ;;  %v1975_v29 = vld [vmem:[#allocation0 + $0x20] sm:$0x7]   ;;  %v1963_v31 = vld [vmem:[#allocation0 + $0x8] sm:$0x7]  }
 0x117   :  { %4311 = vst [vmem:[%s7061_s1 + $0x5] ss:$392 sm:$0x7] %v1979_v24   ;;  %4312 = vst [vmem:[%s7061_s1 + $0x6] ss:$392 sm:$0x7] %v1983_v25  }
 0x118   :  { %4313 = vst [vmem:[%s7061_s1 + $0x7] ss:$392 sm:$0x7] %v1987_v26   ;;  %v1960_v30 = vld [vmem:[#allocation0] sm:$0x7]  }
 0x119   :  { %4308 = vst [vmem:[%s7061_s1 + $0x2] ss:$392 sm:$0x7] %v1967_v27   ;;  %4309 = vst [vmem:[%s7061_s1 + $0x3] ss:$392 sm:$0x7] %v1971_v28  }
 0x11a   :  { %4310 = vst [vmem:[%s7061_s1 + $0x4] ss:$392 sm:$0x7] %v1975_v29   ;;  %v2055_v32 = vld [vmem:[#allocation0 + $0xc0] sm:$0x7]  }
 0x11b   :  { %1961 = vst [vmem:[%s7061_s1] ss:$392 sm:$0x7] %v1960_v30   ;;  %4307 = vst [vmem:[%s7061_s1 + $0x1] ss:$392 sm:$0x7] %v1963_v31  }
 0x11c   :  { %4330 = vst [vmem:[%s7061_s1 + $0x18] ss:$392 sm:$0x7] %v2055_v32   ;;  %v2059_v33 = vld [vmem:[#allocation0 + $0xc8] sm:$0x7]  }
 0x11d   :  { %v2063_v34 = vld [vmem:[#allocation0 + $0xd0] sm:$0x7]   ;;  %v2067_v35 = vld [vmem:[#allocation0 + $0xd8] sm:$0x7]   ;;  %v2071_v36 = vld [vmem:[#allocation0 + $0xe0] sm:$0x7]  }
 0x11e   :  { %4331 = vst [vmem:[%s7061_s1 + $0x19] ss:$392 sm:$0x7] %v2059_v33   ;;  %4332 = vst [vmem:[%s7061_s1 + $0x1a] ss:$392 sm:$0x7] %v2063_v34  }
 0x11f   :  { %4333 = vst [vmem:[%s7061_s1 + $0x1b] ss:$392 sm:$0x7] %v2067_v35   ;;  %v2075_v37 = vld [vmem:[#allocation0 + $0xe8] sm:$0x7]  }
 0x120   :  { %v2079_v38 = vld [vmem:[#allocation0 + $0xf0] sm:$0x7]   ;;  %4334 = vst [vmem:[%s7061_s1 + $0x1c] ss:$392 sm:$0x7] %v2071_v36  }
 0x121   :  { %4335 = vst [vmem:[%s7061_s1 + $0x1d] ss:$392 sm:$0x7] %v2075_v37   ;;  %4336 = vst [vmem:[%s7061_s1 + $0x1e] ss:$392 sm:$0x7] %v2079_v38  }
 0x122   :  { %v2083_v39 = vld [vmem:[#allocation0 + $0xf8] sm:$0x7]   ;;  %v2087_v40 = vld [vmem:[#allocation0 + $0x100] sm:$0x7]   ;;  %v2091_v41 = vld [vmem:[#allocation0 + $0x108] sm:$0x7]  }
 0x123   :  { %4337 = vst [vmem:[%s7061_s1 + $0x1f] ss:$392 sm:$0x7] %v2083_v39   ;;  %4338 = vst [vmem:[%s7061_s1 + $0x20] ss:$392 sm:$0x7] %v2087_v40  }
 0x124   :  { %4339 = vst [vmem:[%s7061_s1 + $0x21] ss:$392 sm:$0x7] %v2091_v41   ;;  %v2095_v42 = vld [vmem:[#allocation0 + $0x110] sm:$0x7]  }
 0x125   :  { %v2099_v43 = vld [vmem:[#allocation0 + $0x118] sm:$0x7]   ;;  %v2103_v44 = vld [vmem:[#allocation0 + $0x120] sm:$0x7]   ;;  %v2107_v45 = vld [vmem:[#allocation0 + $0x128] sm:$0x7]  }
 0x126   :  { %4340 = vst [vmem:[%s7061_s1 + $0x22] ss:$392 sm:$0x7] %v2095_v42   ;;  %4341 = vst [vmem:[%s7061_s1 + $0x23] ss:$392 sm:$0x7] %v2099_v43  }
 0x127   :  { %4342 = vst [vmem:[%s7061_s1 + $0x24] ss:$392 sm:$0x7] %v2103_v44   ;;  %v2111_v46 = vld [vmem:[#allocation0 + $0x130] sm:$0x7]  }
 0x128   :  { %v2115_v47 = vld [vmem:[#allocation0 + $0x138] sm:$0x7]   ;;  %4343 = vst [vmem:[%s7061_s1 + $0x25] ss:$392 sm:$0x7] %v2107_v45  }
 0x129   :  { %4344 = vst [vmem:[%s7061_s1 + $0x26] ss:$392 sm:$0x7] %v2111_v46   ;;  %4345 = vst [vmem:[%s7061_s1 + $0x27] ss:$392 sm:$0x7] %v2115_v47  }
 0x12a   :  { %v2119_v48 = vld [vmem:[#allocation0 + $0x140] sm:$0x7]   ;;  %v2123_v49 = vld [vmem:[#allocation0 + $0x148] sm:$0x7]   ;;  %v2127_v50 = vld [vmem:[#allocation0 + $0x150] sm:$0x7]  }
 0x12b   :  { %4346 = vst [vmem:[%s7061_s1 + $0x28] ss:$392 sm:$0x7] %v2119_v48   ;;  %4347 = vst [vmem:[%s7061_s1 + $0x29] ss:$392 sm:$0x7] %v2123_v49  }
 0x12c   :  { %4348 = vst [vmem:[%s7061_s1 + $0x2a] ss:$392 sm:$0x7] %v2127_v50   ;;  %v2131_v51 = vld [vmem:[#allocation0 + $0x158] sm:$0x7]  }
 0x12d   :  { %v2135_v52 = vld [vmem:[#allocation0 + $0x160] sm:$0x7]   ;;  %v2139_v53 = vld [vmem:[#allocation0 + $0x168] sm:$0x7]   ;;  %v2143_v54 = vld [vmem:[#allocation0 + $0x170] sm:$0x7]  }
 0x12e   :  { %4349 = vst [vmem:[%s7061_s1 + $0x2b] ss:$392 sm:$0x7] %v2131_v51   ;;  %4350 = vst [vmem:[%s7061_s1 + $0x2c] ss:$392 sm:$0x7] %v2135_v52  }
 0x12f   :  { %4351 = vst [vmem:[%s7061_s1 + $0x2d] ss:$392 sm:$0x7] %v2139_v53   ;;  %v2147_v55 = vld [vmem:[#allocation0 + $0x178] sm:$0x7]  }
 0x130   :  { %v2151_v56 = vld [vmem:[#allocation0 + $0x180] sm:$0x7]   ;;  %4352 = vst [vmem:[%s7061_s1 + $0x2e] ss:$392 sm:$0x7] %v2143_v54  }
 0x131   :  { %4353 = vst [vmem:[%s7061_s1 + $0x2f] ss:$392 sm:$0x7] %v2147_v55   ;;  %4354 = vst [vmem:[%s7061_s1 + $0x30] ss:$392 sm:$0x7] %v2151_v56  }
 0x132   :  { %v2155_v57 = vld [vmem:[#allocation0 + $0x188] sm:$0x7]   ;;  %v2159_v58 = vld [vmem:[#allocation0 + $0x190] sm:$0x7]   ;;  %v2163_v59 = vld [vmem:[#allocation0 + $0x198] sm:$0x7]  }
 0x133   :  { %4355 = vst [vmem:[%s7061_s1 + $0x31] ss:$392 sm:$0x7] %v2155_v57   ;;  %4356 = vst [vmem:[%s7061_s1 + $0x32] ss:$392 sm:$0x7] %v2159_v58  }
 0x134   :  { %4357 = vst [vmem:[%s7061_s1 + $0x33] ss:$392 sm:$0x7] %v2163_v59   ;;  %v2167_v60 = vld [vmem:[#allocation0 + $0x1a0] sm:$0x7]  }
 0x135   :  { %v2171_v61 = vld [vmem:[#allocation0 + $0x1a8] sm:$0x7]   ;;  %v2175_v62 = vld [vmem:[#allocation0 + $0x1b0] sm:$0x7]   ;;  %v2179_v63 = vld [vmem:[#allocation0 + $0x1b8] sm:$0x7]  }
 0x136   :  { %4358 = vst [vmem:[%s7061_s1 + $0x34] ss:$392 sm:$0x7] %v2167_v60   ;;  %4359 = vst [vmem:[%s7061_s1 + $0x35] ss:$392 sm:$0x7] %v2171_v61  }
 0x137   :  { %4360 = vst [vmem:[%s7061_s1 + $0x36] ss:$392 sm:$0x7] %v2175_v62   ;;  %v2183_v0 = vld [vmem:[#allocation0 + $0x1c0] sm:$0x7]  }
 0x138   :  { %v2187_v1 = vld [vmem:[#allocation0 + $0x1c8] sm:$0x7]   ;;  %4361 = vst [vmem:[%s7061_s1 + $0x37] ss:$392 sm:$0x7] %v2179_v63  }
 0x139   :  { %4362 = vst [vmem:[%s7061_s1 + $0x38] ss:$392 sm:$0x7] %v2183_v0   ;;  %4363 = vst [vmem:[%s7061_s1 + $0x39] ss:$392 sm:$0x7] %v2187_v1  }
 0x13a   :  { %v2191_v2 = vld [vmem:[#allocation0 + $0x1d0] sm:$0x7]   ;;  %v2195_v3 = vld [vmem:[#allocation0 + $0x1d8] sm:$0x7]   ;;  %v2199_v4 = vld [vmem:[#allocation0 + $0x1e0] sm:$0x7]  }
 0x13b   :  { %4364 = vst [vmem:[%s7061_s1 + $0x3a] ss:$392 sm:$0x7] %v2191_v2   ;;  %4365 = vst [vmem:[%s7061_s1 + $0x3b] ss:$392 sm:$0x7] %v2195_v3  }
 0x13c   :  { %4366 = vst [vmem:[%s7061_s1 + $0x3c] ss:$392 sm:$0x7] %v2199_v4   ;;  %v2203_v5 = vld [vmem:[#allocation0 + $0x1e8] sm:$0x7]  }
 0x13d   :  { %v2207_v6 = vld [vmem:[#allocation0 + $0x1f0] sm:$0x7]   ;;  %v2211_v7 = vld [vmem:[#allocation0 + $0x1f8] sm:$0x7]   ;;  %v2215_v8 = vld [vmem:[#allocation0 + $0x200] sm:$0x7]  }
 0x13e   :  { %4367 = vst [vmem:[%s7061_s1 + $0x3d] ss:$392 sm:$0x7] %v2203_v5   ;;  %4368 = vst [vmem:[%s7061_s1 + $0x3e] ss:$392 sm:$0x7] %v2207_v6  }
 0x13f   :  { %4369 = vst [vmem:[%s7061_s1 + $0x3f] ss:$392 sm:$0x7] %v2211_v7   ;;  %v2219_v9 = vld [vmem:[#allocation0 + $0x208] sm:$0x7]  }
 0x140   :  { %v2223_v10 = vld [vmem:[#allocation0 + $0x210] sm:$0x7]   ;;  %4370 = vst [vmem:[%s7061_s1 + $0x40] ss:$392 sm:$0x7] %v2215_v8  }
 0x141   :  { %4371 = vst [vmem:[%s7061_s1 + $0x41] ss:$392 sm:$0x7] %v2219_v9   ;;  %4372 = vst [vmem:[%s7061_s1 + $0x42] ss:$392 sm:$0x7] %v2223_v10  }
 0x142   :  { %v2227_v11 = vld [vmem:[#allocation0 + $0x218] sm:$0x7]   ;;  %v2231_v12 = vld [vmem:[#allocation0 + $0x220] sm:$0x7]   ;;  %v2235_v13 = vld [vmem:[#allocation0 + $0x228] sm:$0x7]  }
 0x143   :  { %4373 = vst [vmem:[%s7061_s1 + $0x43] ss:$392 sm:$0x7] %v2227_v11   ;;  %4374 = vst [vmem:[%s7061_s1 + $0x44] ss:$392 sm:$0x7] %v2231_v12  }
 0x144   :  { %4375 = vst [vmem:[%s7061_s1 + $0x45] ss:$392 sm:$0x7] %v2235_v13   ;;  %v2239_v14 = vld [vmem:[#allocation0 + $0x230] sm:$0x7]  }
 0x145   :  { %v2243_v15 = vld [vmem:[#allocation0 + $0x238] sm:$0x7]   ;;  %v2247_v16 = vld [vmem:[#allocation0 + $0x240] sm:$0x7]   ;;  %v2251_v17 = vld [vmem:[#allocation0 + $0x248] sm:$0x7]  }
 0x146   :  { %4376 = vst [vmem:[%s7061_s1 + $0x46] ss:$392 sm:$0x7] %v2239_v14   ;;  %4377 = vst [vmem:[%s7061_s1 + $0x47] ss:$392 sm:$0x7] %v2243_v15  }
 0x147   :  { %4378 = vst [vmem:[%s7061_s1 + $0x48] ss:$392 sm:$0x7] %v2247_v16   ;;  %v2255_v18 = vld [vmem:[#allocation0 + $0x250] sm:$0x7]  }
 0x148   :  { %v2259_v19 = vld [vmem:[#allocation0 + $0x258] sm:$0x7]   ;;  %4379 = vst [vmem:[%s7061_s1 + $0x49] ss:$392 sm:$0x7] %v2251_v17  }
 0x149   :  { %4380 = vst [vmem:[%s7061_s1 + $0x4a] ss:$392 sm:$0x7] %v2255_v18   ;;  %4381 = vst [vmem:[%s7061_s1 + $0x4b] ss:$392 sm:$0x7] %v2259_v19  }
 0x14a   :  { %v2263_v20 = vld [vmem:[#allocation0 + $0x260] sm:$0x7]   ;;  %v2267_v21 = vld [vmem:[#allocation0 + $0x268] sm:$0x7]   ;;  %v2271_v22 = vld [vmem:[#allocation0 + $0x270] sm:$0x7]  }
 0x14b   :  { %4382 = vst [vmem:[%s7061_s1 + $0x4c] ss:$392 sm:$0x7] %v2263_v20   ;;  %4383 = vst [vmem:[%s7061_s1 + $0x4d] ss:$392 sm:$0x7] %v2267_v21  }
 0x14c   :  { %4384 = vst [vmem:[%s7061_s1 + $0x4e] ss:$392 sm:$0x7] %v2271_v22   ;;  %v2275_v23 = vld [vmem:[#allocation0 + $0x278] sm:$0x7]  }
 0x14d   :  { %v2279_v24 = vld [vmem:[#allocation0 + $0x280] sm:$0x7]   ;;  %v2283_v25 = vld [vmem:[#allocation0 + $0x288] sm:$0x7]   ;;  %v2287_v26 = vld [vmem:[#allocation0 + $0x290] sm:$0x7]  }
 0x14e   :  { %4385 = vst [vmem:[%s7061_s1 + $0x4f] ss:$392 sm:$0x7] %v2275_v23   ;;  %4386 = vst [vmem:[%s7061_s1 + $0x50] ss:$392 sm:$0x7] %v2279_v24  }
 0x14f   :  { %4387 = vst [vmem:[%s7061_s1 + $0x51] ss:$392 sm:$0x7] %v2283_v25   ;;  %v2291_v27 = vld [vmem:[#allocation0 + $0x298] sm:$0x7]  }
 0x150   :  { %v2295_v28 = vld [vmem:[#allocation0 + $0x2a0] sm:$0x7]   ;;  %4388 = vst [vmem:[%s7061_s1 + $0x52] ss:$392 sm:$0x7] %v2287_v26  }
 0x151   :  { %4389 = vst [vmem:[%s7061_s1 + $0x53] ss:$392 sm:$0x7] %v2291_v27   ;;  %4390 = vst [vmem:[%s7061_s1 + $0x54] ss:$392 sm:$0x7] %v2295_v28  }
 0x152   :  { %v2299_v29 = vld [vmem:[#allocation0 + $0x2a8] sm:$0x7]   ;;  %v2303_v30 = vld [vmem:[#allocation0 + $0x2b0] sm:$0x7]   ;;  %v2307_v31 = vld [vmem:[#allocation0 + $0x2b8] sm:$0x7]  }
 0x153   :  { %4391 = vst [vmem:[%s7061_s1 + $0x55] ss:$392 sm:$0x7] %v2299_v29   ;;  %4392 = vst [vmem:[%s7061_s1 + $0x56] ss:$392 sm:$0x7] %v2303_v30  }
 0x154   :  { %4393 = vst [vmem:[%s7061_s1 + $0x57] ss:$392 sm:$0x7] %v2307_v31   ;;  %v2311_v32 = vld [vmem:[#allocation0 + $0x2c0] sm:$0x7]  }
 0x155   :  { %v2315_v33 = vld [vmem:[#allocation0 + $0x2c8] sm:$0x7]   ;;  %v2319_v34 = vld [vmem:[#allocation0 + $0x2d0] sm:$0x7]   ;;  %v2323_v35 = vld [vmem:[#allocation0 + $0x2d8] sm:$0x7]  }
 0x156   :  { %4394 = vst [vmem:[%s7061_s1 + $0x58] ss:$392 sm:$0x7] %v2311_v32   ;;  %4395 = vst [vmem:[%s7061_s1 + $0x59] ss:$392 sm:$0x7] %v2315_v33  }
 0x157   :  { %4396 = vst [vmem:[%s7061_s1 + $0x5a] ss:$392 sm:$0x7] %v2319_v34   ;;  %v2327_v36 = vld [vmem:[#allocation0 + $0x2e0] sm:$0x7]  }
 0x158   :  { %v2331_v37 = vld [vmem:[#allocation0 + $0x2e8] sm:$0x7]   ;;  %4397 = vst [vmem:[%s7061_s1 + $0x5b] ss:$392 sm:$0x7] %v2323_v35  }
 0x159   :  { %4398 = vst [vmem:[%s7061_s1 + $0x5c] ss:$392 sm:$0x7] %v2327_v36   ;;  %4399 = vst [vmem:[%s7061_s1 + $0x5d] ss:$392 sm:$0x7] %v2331_v37  }
 0x15a   :  { %v2335_v38 = vld [vmem:[#allocation0 + $0x2f0] sm:$0x7]   ;;  %v2339_v39 = vld [vmem:[#allocation0 + $0x2f8] sm:$0x7]   ;;  %v2343_v40 = vld [vmem:[#allocation0 + $0x300] sm:$0x7]  }
 0x15b   :  { %4400 = vst [vmem:[%s7061_s1 + $0x5e] ss:$392 sm:$0x7] %v2335_v38   ;;  %4401 = vst [vmem:[%s7061_s1 + $0x5f] ss:$392 sm:$0x7] %v2339_v39  }
 0x15c   :  { %4402 = vst [vmem:[%s7061_s1 + $0x60] ss:$392 sm:$0x7] %v2343_v40   ;;  %v2347_v41 = vld [vmem:[#allocation0 + $0x308] sm:$0x7]  }
 0x15d   :  { %v2351_v42 = vld [vmem:[#allocation0 + $0x310] sm:$0x7]   ;;  %v2355_v43 = vld [vmem:[#allocation0 + $0x318] sm:$0x7]   ;;  %v2359_v44 = vld [vmem:[#allocation0 + $0x320] sm:$0x7]  }
 0x15e   :  { %4403 = vst [vmem:[%s7061_s1 + $0x61] ss:$392 sm:$0x7] %v2347_v41   ;;  %4404 = vst [vmem:[%s7061_s1 + $0x62] ss:$392 sm:$0x7] %v2351_v42  }
 0x15f   :  { %4405 = vst [vmem:[%s7061_s1 + $0x63] ss:$392 sm:$0x7] %v2355_v43   ;;  %v2363_v45 = vld [vmem:[#allocation0 + $0x328] sm:$0x7]  }
 0x160   :  { %v2367_v46 = vld [vmem:[#allocation0 + $0x330] sm:$0x7]   ;;  %4406 = vst [vmem:[%s7061_s1 + $0x64] ss:$392 sm:$0x7] %v2359_v44  }
 0x161   :  { %4407 = vst [vmem:[%s7061_s1 + $0x65] ss:$392 sm:$0x7] %v2363_v45   ;;  %4408 = vst [vmem:[%s7061_s1 + $0x66] ss:$392 sm:$0x7] %v2367_v46  }
 0x162   :  { %v2371_v47 = vld [vmem:[#allocation0 + $0x338] sm:$0x7]   ;;  %v2375_v48 = vld [vmem:[#allocation0 + $0x340] sm:$0x7]   ;;  %v2379_v49 = vld [vmem:[#allocation0 + $0x348] sm:$0x7]  }
 0x163   :  { %4409 = vst [vmem:[%s7061_s1 + $0x67] ss:$392 sm:$0x7] %v2371_v47   ;;  %4410 = vst [vmem:[%s7061_s1 + $0x68] ss:$392 sm:$0x7] %v2375_v48  }
 0x164   :  { %4411 = vst [vmem:[%s7061_s1 + $0x69] ss:$392 sm:$0x7] %v2379_v49   ;;  %v2383_v50 = vld [vmem:[#allocation0 + $0x350] sm:$0x7]  }
 0x165   :  { %v2387_v51 = vld [vmem:[#allocation0 + $0x358] sm:$0x7]   ;;  %v2391_v52 = vld [vmem:[#allocation0 + $0x360] sm:$0x7]   ;;  %v2395_v53 = vld [vmem:[#allocation0 + $0x368] sm:$0x7]  }
 0x166   :  { %4412 = vst [vmem:[%s7061_s1 + $0x6a] ss:$392 sm:$0x7] %v2383_v50   ;;  %4413 = vst [vmem:[%s7061_s1 + $0x6b] ss:$392 sm:$0x7] %v2387_v51  }
 0x167   :  { %4414 = vst [vmem:[%s7061_s1 + $0x6c] ss:$392 sm:$0x7] %v2391_v52   ;;  %v2399_v54 = vld [vmem:[#allocation0 + $0x370] sm:$0x7]  }
 0x168   :  { %v2403_v55 = vld [vmem:[#allocation0 + $0x378] sm:$0x7]   ;;  %4415 = vst [vmem:[%s7061_s1 + $0x6d] ss:$392 sm:$0x7] %v2395_v53  }
 0x169   :  { %4416 = vst [vmem:[%s7061_s1 + $0x6e] ss:$392 sm:$0x7] %v2399_v54   ;;  %4417 = vst [vmem:[%s7061_s1 + $0x6f] ss:$392 sm:$0x7] %v2403_v55  }
 0x16a   :  { %v2407_v56 = vld [vmem:[#allocation0 + $0x380] sm:$0x7]   ;;  %v2411_v57 = vld [vmem:[#allocation0 + $0x388] sm:$0x7]   ;;  %v2415_v58 = vld [vmem:[#allocation0 + $0x390] sm:$0x7]  }
 0x16b   :  { %4418 = vst [vmem:[%s7061_s1 + $0x70] ss:$392 sm:$0x7] %v2407_v56   ;;  %4419 = vst [vmem:[%s7061_s1 + $0x71] ss:$392 sm:$0x7] %v2411_v57  }
 0x16c   :  { %4420 = vst [vmem:[%s7061_s1 + $0x72] ss:$392 sm:$0x7] %v2415_v58   ;;  %v2419_v59 = vld [vmem:[#allocation0 + $0x398] sm:$0x7]  }
 0x16d   :  { %v2423_v60 = vld [vmem:[#allocation0 + $0x3a0] sm:$0x7]   ;;  %v2427_v61 = vld [vmem:[#allocation0 + $0x3a8] sm:$0x7]   ;;  %v2431_v62 = vld [vmem:[#allocation0 + $0x3b0] sm:$0x7]  }
 0x16e   :  { %4421 = vst [vmem:[%s7061_s1 + $0x73] ss:$392 sm:$0x7] %v2419_v59   ;;  %4422 = vst [vmem:[%s7061_s1 + $0x74] ss:$392 sm:$0x7] %v2423_v60  }
 0x16f   :  { %4423 = vst [vmem:[%s7061_s1 + $0x75] ss:$392 sm:$0x7] %v2427_v61   ;;  %v2435_v63 = vld [vmem:[#allocation0 + $0x3b8] sm:$0x7]  }
 0x170   :  { %v2439_v0 = vld [vmem:[#allocation0 + $0x3c0] sm:$0x7]   ;;  %4424 = vst [vmem:[%s7061_s1 + $0x76] ss:$392 sm:$0x7] %v2431_v62  }
 0x171   :  { %4425 = vst [vmem:[%s7061_s1 + $0x77] ss:$392 sm:$0x7] %v2435_v63   ;;  %4426 = vst [vmem:[%s7061_s1 + $0x78] ss:$392 sm:$0x7] %v2439_v0  }
 0x172   :  { %v2443_v1 = vld [vmem:[#allocation0 + $0x3c8] sm:$0x7]   ;;  %v2447_v2 = vld [vmem:[#allocation0 + $0x3d0] sm:$0x7]   ;;  %v2451_v3 = vld [vmem:[#allocation0 + $0x3d8] sm:$0x7]  }
 0x173   :  { %4427 = vst [vmem:[%s7061_s1 + $0x79] ss:$392 sm:$0x7] %v2443_v1   ;;  %4428 = vst [vmem:[%s7061_s1 + $0x7a] ss:$392 sm:$0x7] %v2447_v2  }
 0x174   :  { %4429 = vst [vmem:[%s7061_s1 + $0x7b] ss:$392 sm:$0x7] %v2451_v3   ;;  %v2455_v4 = vld [vmem:[#allocation0 + $0x3e0] sm:$0x7]  }
 0x175   :  { %v2459_v5 = vld [vmem:[#allocation0 + $0x3e8] sm:$0x7]   ;;  %v2463_v6 = vld [vmem:[#allocation0 + $0x3f0] sm:$0x7]   ;;  %v2467_v7 = vld [vmem:[#allocation0 + $0x3f8] sm:$0x7]  }
 0x176   :  { %4430 = vst [vmem:[%s7061_s1 + $0x7c] ss:$392 sm:$0x7] %v2455_v4   ;;  %4431 = vst [vmem:[%s7061_s1 + $0x7d] ss:$392 sm:$0x7] %v2459_v5  }
 0x177   :  { %4432 = vst [vmem:[%s7061_s1 + $0x7e] ss:$392 sm:$0x7] %v2463_v6   ;;  %v2471_v8 = vld [vmem:[#allocation0 + $0x400] sm:$0x7]  }
 0x178   :  { %v2475_v9 = vld [vmem:[#allocation0 + $0x408] sm:$0x7]   ;;  %4433 = vst [vmem:[%s7061_s1 + $0x7f] ss:$392 sm:$0x7] %v2467_v7  }
 0x179   :  { %4434 = vst [vmem:[%s7061_s1 + $0x80] ss:$392 sm:$0x7] %v2471_v8   ;;  %4435 = vst [vmem:[%s7061_s1 + $0x81] ss:$392 sm:$0x7] %v2475_v9  }
 0x17a   :  { %v2479_v10 = vld [vmem:[#allocation0 + $0x410] sm:$0x7]   ;;  %v2483_v11 = vld [vmem:[#allocation0 + $0x418] sm:$0x7]   ;;  %v2487_v12 = vld [vmem:[#allocation0 + $0x420] sm:$0x7]  }
 0x17b   :  { %4436 = vst [vmem:[%s7061_s1 + $0x82] ss:$392 sm:$0x7] %v2479_v10   ;;  %4437 = vst [vmem:[%s7061_s1 + $0x83] ss:$392 sm:$0x7] %v2483_v11  }
 0x17c   :  { %4438 = vst [vmem:[%s7061_s1 + $0x84] ss:$392 sm:$0x7] %v2487_v12   ;;  %v2491_v13 = vld [vmem:[#allocation0 + $0x428] sm:$0x7]  }
 0x17d   :  { %v2495_v14 = vld [vmem:[#allocation0 + $0x430] sm:$0x7]   ;;  %v2499_v15 = vld [vmem:[#allocation0 + $0x438] sm:$0x7]   ;;  %v2503_v16 = vld [vmem:[#allocation0 + $0x440] sm:$0x7]  }
 0x17e   :  { %4439 = vst [vmem:[%s7061_s1 + $0x85] ss:$392 sm:$0x7] %v2491_v13   ;;  %4440 = vst [vmem:[%s7061_s1 + $0x86] ss:$392 sm:$0x7] %v2495_v14  }
 0x17f   :  { %4441 = vst [vmem:[%s7061_s1 + $0x87] ss:$392 sm:$0x7] %v2499_v15   ;;  %v2507_v17 = vld [vmem:[#allocation0 + $0x448] sm:$0x7]  }
 0x180   :  { %v2511_v18 = vld [vmem:[#allocation0 + $0x450] sm:$0x7]   ;;  %4442 = vst [vmem:[%s7061_s1 + $0x88] ss:$392 sm:$0x7] %v2503_v16  }
 0x181   :  { %4443 = vst [vmem:[%s7061_s1 + $0x89] ss:$392 sm:$0x7] %v2507_v17   ;;  %4444 = vst [vmem:[%s7061_s1 + $0x8a] ss:$392 sm:$0x7] %v2511_v18  }
 0x182   :  { %v2515_v19 = vld [vmem:[#allocation0 + $0x458] sm:$0x7]   ;;  %v2519_v20 = vld [vmem:[#allocation0 + $0x460] sm:$0x7]   ;;  %v2523_v21 = vld [vmem:[#allocation0 + $0x468] sm:$0x7]  }
 0x183   :  { %4445 = vst [vmem:[%s7061_s1 + $0x8b] ss:$392 sm:$0x7] %v2515_v19   ;;  %4446 = vst [vmem:[%s7061_s1 + $0x8c] ss:$392 sm:$0x7] %v2519_v20  }
 0x184   :  { %4447 = vst [vmem:[%s7061_s1 + $0x8d] ss:$392 sm:$0x7] %v2523_v21   ;;  %v2527_v22 = vld [vmem:[#allocation0 + $0x470] sm:$0x7]  }
 0x185   :  { %v2531_v23 = vld [vmem:[#allocation0 + $0x478] sm:$0x7]   ;;  %v2535_v24 = vld [vmem:[#allocation0 + $0x480] sm:$0x7]   ;;  %v2539_v25 = vld [vmem:[#allocation0 + $0x488] sm:$0x7]  }
 0x186   :  { %4448 = vst [vmem:[%s7061_s1 + $0x8e] ss:$392 sm:$0x7] %v2527_v22   ;;  %4449 = vst [vmem:[%s7061_s1 + $0x8f] ss:$392 sm:$0x7] %v2531_v23  }
 0x187   :  { %4450 = vst [vmem:[%s7061_s1 + $0x90] ss:$392 sm:$0x7] %v2535_v24   ;;  %v2543_v26 = vld [vmem:[#allocation0 + $0x490] sm:$0x7]  }
 0x188   :  { %v2547_v27 = vld [vmem:[#allocation0 + $0x498] sm:$0x7]   ;;  %4451 = vst [vmem:[%s7061_s1 + $0x91] ss:$392 sm:$0x7] %v2539_v25  }
 0x189   :  { %4452 = vst [vmem:[%s7061_s1 + $0x92] ss:$392 sm:$0x7] %v2543_v26   ;;  %4453 = vst [vmem:[%s7061_s1 + $0x93] ss:$392 sm:$0x7] %v2547_v27  }
 0x18a   :  { %v2551_v28 = vld [vmem:[#allocation0 + $0x4a0] sm:$0x7]   ;;  %v2555_v29 = vld [vmem:[#allocation0 + $0x4a8] sm:$0x7]   ;;  %v2559_v30 = vld [vmem:[#allocation0 + $0x4b0] sm:$0x7]  }
 0x18b   :  { %4454 = vst [vmem:[%s7061_s1 + $0x94] ss:$392 sm:$0x7] %v2551_v28   ;;  %4455 = vst [vmem:[%s7061_s1 + $0x95] ss:$392 sm:$0x7] %v2555_v29  }
 0x18c   :  { %4456 = vst [vmem:[%s7061_s1 + $0x96] ss:$392 sm:$0x7] %v2559_v30   ;;  %v2563_v31 = vld [vmem:[#allocation0 + $0x4b8] sm:$0x7]  }
 0x18d   :  { %v2567_v32 = vld [vmem:[#allocation0 + $0x4c0] sm:$0x7]   ;;  %v2571_v33 = vld [vmem:[#allocation0 + $0x4c8] sm:$0x7]   ;;  %v2575_v34 = vld [vmem:[#allocation0 + $0x4d0] sm:$0x7]  }
 0x18e   :  { %4457 = vst [vmem:[%s7061_s1 + $0x97] ss:$392 sm:$0x7] %v2563_v31   ;;  %4458 = vst [vmem:[%s7061_s1 + $0x98] ss:$392 sm:$0x7] %v2567_v32  }
 0x18f   :  { %4459 = vst [vmem:[%s7061_s1 + $0x99] ss:$392 sm:$0x7] %v2571_v33   ;;  %v2579_v35 = vld [vmem:[#allocation0 + $0x4d8] sm:$0x7]  }
 0x190   :  { %v2583_v36 = vld [vmem:[#allocation0 + $0x4e0] sm:$0x7]   ;;  %4460 = vst [vmem:[%s7061_s1 + $0x9a] ss:$392 sm:$0x7] %v2575_v34  }
 0x191   :  { %4461 = vst [vmem:[%s7061_s1 + $0x9b] ss:$392 sm:$0x7] %v2579_v35   ;;  %4462 = vst [vmem:[%s7061_s1 + $0x9c] ss:$392 sm:$0x7] %v2583_v36  }
 0x192   :  { %v2587_v37 = vld [vmem:[#allocation0 + $0x4e8] sm:$0x7]   ;;  %v2591_v38 = vld [vmem:[#allocation0 + $0x4f0] sm:$0x7]   ;;  %v2595_v39 = vld [vmem:[#allocation0 + $0x4f8] sm:$0x7]  }
 0x193   :  { %4463 = vst [vmem:[%s7061_s1 + $0x9d] ss:$392 sm:$0x7] %v2587_v37   ;;  %4464 = vst [vmem:[%s7061_s1 + $0x9e] ss:$392 sm:$0x7] %v2591_v38  }
 0x194   :  { %4465 = vst [vmem:[%s7061_s1 + $0x9f] ss:$392 sm:$0x7] %v2595_v39   ;;  %v2599_v40 = vld [vmem:[#allocation0 + $0x500] sm:$0x7]  }
 0x195   :  { %v2603_v41 = vld [vmem:[#allocation0 + $0x508] sm:$0x7]   ;;  %v2607_v42 = vld [vmem:[#allocation0 + $0x510] sm:$0x7]   ;;  %v2611_v43 = vld [vmem:[#allocation0 + $0x518] sm:$0x7]  }
 0x196   :  { %4466 = vst [vmem:[%s7061_s1 + $0xa0] ss:$392 sm:$0x7] %v2599_v40   ;;  %4467 = vst [vmem:[%s7061_s1 + $0xa1] ss:$392 sm:$0x7] %v2603_v41  }
 0x197   :  { %4468 = vst [vmem:[%s7061_s1 + $0xa2] ss:$392 sm:$0x7] %v2607_v42   ;;  %v2615_v44 = vld [vmem:[#allocation0 + $0x520] sm:$0x7]  }
 0x198   :  { %v2619_v45 = vld [vmem:[#allocation0 + $0x528] sm:$0x7]   ;;  %4469 = vst [vmem:[%s7061_s1 + $0xa3] ss:$392 sm:$0x7] %v2611_v43  }
 0x199   :  { %4470 = vst [vmem:[%s7061_s1 + $0xa4] ss:$392 sm:$0x7] %v2615_v44   ;;  %4471 = vst [vmem:[%s7061_s1 + $0xa5] ss:$392 sm:$0x7] %v2619_v45  }
 0x19a   :  { %v2623_v46 = vld [vmem:[#allocation0 + $0x530] sm:$0x7]   ;;  %v2627_v47 = vld [vmem:[#allocation0 + $0x538] sm:$0x7]   ;;  %v2631_v48 = vld [vmem:[#allocation0 + $0x540] sm:$0x7]  }
 0x19b   :  { %4472 = vst [vmem:[%s7061_s1 + $0xa6] ss:$392 sm:$0x7] %v2623_v46   ;;  %4473 = vst [vmem:[%s7061_s1 + $0xa7] ss:$392 sm:$0x7] %v2627_v47  }
 0x19c   :  { %4474 = vst [vmem:[%s7061_s1 + $0xa8] ss:$392 sm:$0x7] %v2631_v48   ;;  %v2635_v49 = vld [vmem:[#allocation0 + $0x548] sm:$0x7]  }
 0x19d   :  { %v2639_v50 = vld [vmem:[#allocation0 + $0x550] sm:$0x7]   ;;  %v2643_v51 = vld [vmem:[#allocation0 + $0x558] sm:$0x7]   ;;  %v2647_v52 = vld [vmem:[#allocation0 + $0x560] sm:$0x7]  }
 0x19e   :  { %4475 = vst [vmem:[%s7061_s1 + $0xa9] ss:$392 sm:$0x7] %v2635_v49   ;;  %4476 = vst [vmem:[%s7061_s1 + $0xaa] ss:$392 sm:$0x7] %v2639_v50  }
 0x19f   :  { %4477 = vst [vmem:[%s7061_s1 + $0xab] ss:$392 sm:$0x7] %v2643_v51   ;;  %v2651_v53 = vld [vmem:[#allocation0 + $0x568] sm:$0x7]  }
 0x1a0   :  { %v2655_v54 = vld [vmem:[#allocation0 + $0x570] sm:$0x7]   ;;  %4478 = vst [vmem:[%s7061_s1 + $0xac] ss:$392 sm:$0x7] %v2647_v52  }
 0x1a1   :  { %4479 = vst [vmem:[%s7061_s1 + $0xad] ss:$392 sm:$0x7] %v2651_v53   ;;  %4480 = vst [vmem:[%s7061_s1 + $0xae] ss:$392 sm:$0x7] %v2655_v54  }
 0x1a2   :  { %v2659_v55 = vld [vmem:[#allocation0 + $0x578] sm:$0x7]   ;;  %v2663_v56 = vld [vmem:[#allocation0 + $0x580] sm:$0x7]   ;;  %v2667_v57 = vld [vmem:[#allocation0 + $0x588] sm:$0x7]  }
 0x1a3   :  { %4481 = vst [vmem:[%s7061_s1 + $0xaf] ss:$392 sm:$0x7] %v2659_v55   ;;  %4482 = vst [vmem:[%s7061_s1 + $0xb0] ss:$392 sm:$0x7] %v2663_v56  }
 0x1a4   :  { %4483 = vst [vmem:[%s7061_s1 + $0xb1] ss:$392 sm:$0x7] %v2667_v57   ;;  %v2671_v58 = vld [vmem:[#allocation0 + $0x590] sm:$0x7]  }
 0x1a5   :  { %v2675_v59 = vld [vmem:[#allocation0 + $0x598] sm:$0x7]   ;;  %v2679_v60 = vld [vmem:[#allocation0 + $0x5a0] sm:$0x7]   ;;  %v2683_v61 = vld [vmem:[#allocation0 + $0x5a8] sm:$0x7]  }
 0x1a6   :  { %4484 = vst [vmem:[%s7061_s1 + $0xb2] ss:$392 sm:$0x7] %v2671_v58   ;;  %4485 = vst [vmem:[%s7061_s1 + $0xb3] ss:$392 sm:$0x7] %v2675_v59  }
 0x1a7   :  { %4486 = vst [vmem:[%s7061_s1 + $0xb4] ss:$392 sm:$0x7] %v2679_v60   ;;  %v2687_v62 = vld [vmem:[#allocation0 + $0x5b0] sm:$0x7]  }
 0x1a8   :  { %v2691_v63 = vld [vmem:[#allocation0 + $0x5b8] sm:$0x7]   ;;  %4487 = vst [vmem:[%s7061_s1 + $0xb5] ss:$392 sm:$0x7] %v2683_v61  }
 0x1a9   :  { %4488 = vst [vmem:[%s7061_s1 + $0xb6] ss:$392 sm:$0x7] %v2687_v62   ;;  %4489 = vst [vmem:[%s7061_s1 + $0xb7] ss:$392 sm:$0x7] %v2691_v63  }
 0x1aa   :  { %v2695_v0 = vld [vmem:[#allocation0 + $0x5c0] sm:$0x7]   ;;  %v2699_v1 = vld [vmem:[#allocation0 + $0x5c8] sm:$0x7]   ;;  %v2703_v2 = vld [vmem:[#allocation0 + $0x5d0] sm:$0x7]  }
 0x1ab   :  { %4490 = vst [vmem:[%s7061_s1 + $0xb8] ss:$392 sm:$0x7] %v2695_v0   ;;  %4491 = vst [vmem:[%s7061_s1 + $0xb9] ss:$392 sm:$0x7] %v2699_v1  }
 0x1ac   :  { %4492 = vst [vmem:[%s7061_s1 + $0xba] ss:$392 sm:$0x7] %v2703_v2   ;;  %v2707_v3 = vld [vmem:[#allocation0 + $0x5d8] sm:$0x7]  }
 0x1ad   :  { %v2711_v4 = vld [vmem:[#allocation0 + $0x5e0] sm:$0x7]   ;;  %v2715_v5 = vld [vmem:[#allocation0 + $0x5e8] sm:$0x7]   ;;  %v2719_v6 = vld [vmem:[#allocation0 + $0x5f0] sm:$0x7]  }
 0x1ae   :  { %4493 = vst [vmem:[%s7061_s1 + $0xbb] ss:$392 sm:$0x7] %v2707_v3   ;;  %4494 = vst [vmem:[%s7061_s1 + $0xbc] ss:$392 sm:$0x7] %v2711_v4  }
 0x1af   :  { %4495 = vst [vmem:[%s7061_s1 + $0xbd] ss:$392 sm:$0x7] %v2715_v5   ;;  %v2723_v7 = vld [vmem:[#allocation0 + $0x5f8] sm:$0x7]  }
 0x1b0   :  { %v2727_v8 = vld [vmem:[#allocation0 + $0x600] sm:$0x7]   ;;  %4496 = vst [vmem:[%s7061_s1 + $0xbe] ss:$392 sm:$0x7] %v2719_v6  }
 0x1b1   :  { %4497 = vst [vmem:[%s7061_s1 + $0xbf] ss:$392 sm:$0x7] %v2723_v7   ;;  %4498 = vst [vmem:[%s7061_s1 + $0xc0] ss:$392 sm:$0x7] %v2727_v8  }
 0x1b2   :  { %v2731_v9 = vld [vmem:[#allocation0 + $0x608] sm:$0x7]   ;;  %v2735_v10 = vld [vmem:[#allocation0 + $0x610] sm:$0x7]   ;;  %v2739_v11 = vld [vmem:[#allocation0 + $0x618] sm:$0x7]  }
 0x1b3   :  { %4499 = vst [vmem:[%s7061_s1 + $0xc1] ss:$392 sm:$0x7] %v2731_v9   ;;  %4500 = vst [vmem:[%s7061_s1 + $0xc2] ss:$392 sm:$0x7] %v2735_v10  }
 0x1b4   :  { %4501 = vst [vmem:[%s7061_s1 + $0xc3] ss:$392 sm:$0x7] %v2739_v11   ;;  %v2743_v12 = vld [vmem:[#allocation0 + $0x620] sm:$0x7]  }
 0x1b5   :  { %v2747_v13 = vld [vmem:[#allocation0 + $0x628] sm:$0x7]   ;;  %v2751_v14 = vld [vmem:[#allocation0 + $0x630] sm:$0x7]   ;;  %v2755_v15 = vld [vmem:[#allocation0 + $0x638] sm:$0x7]  }
 0x1b6   :  { %4502 = vst [vmem:[%s7061_s1 + $0xc4] ss:$392 sm:$0x7] %v2743_v12   ;;  %4503 = vst [vmem:[%s7061_s1 + $0xc5] ss:$392 sm:$0x7] %v2747_v13  }
 0x1b7   :  { %4504 = vst [vmem:[%s7061_s1 + $0xc6] ss:$392 sm:$0x7] %v2751_v14   ;;  %v2759_v16 = vld [vmem:[#allocation0 + $0x640] sm:$0x7]  }
 0x1b8   :  { %v2763_v17 = vld [vmem:[#allocation0 + $0x648] sm:$0x7]   ;;  %4505 = vst [vmem:[%s7061_s1 + $0xc7] ss:$392 sm:$0x7] %v2755_v15  }
 0x1b9   :  { %4506 = vst [vmem:[%s7061_s1 + $0xc8] ss:$392 sm:$0x7] %v2759_v16   ;;  %4507 = vst [vmem:[%s7061_s1 + $0xc9] ss:$392 sm:$0x7] %v2763_v17  }
 0x1ba   :  { %v2767_v18 = vld [vmem:[#allocation0 + $0x650] sm:$0x7]   ;;  %v2771_v19 = vld [vmem:[#allocation0 + $0x658] sm:$0x7]   ;;  %v2775_v20 = vld [vmem:[#allocation0 + $0x660] sm:$0x7]  }
 0x1bb   :  { %4508 = vst [vmem:[%s7061_s1 + $0xca] ss:$392 sm:$0x7] %v2767_v18   ;;  %4509 = vst [vmem:[%s7061_s1 + $0xcb] ss:$392 sm:$0x7] %v2771_v19  }
 0x1bc   :  { %4510 = vst [vmem:[%s7061_s1 + $0xcc] ss:$392 sm:$0x7] %v2775_v20   ;;  %v2779_v21 = vld [vmem:[#allocation0 + $0x668] sm:$0x7]  }
 0x1bd   :  { %v2783_v22 = vld [vmem:[#allocation0 + $0x670] sm:$0x7]   ;;  %v2787_v23 = vld [vmem:[#allocation0 + $0x678] sm:$0x7]   ;;  %v2791_v24 = vld [vmem:[#allocation0 + $0x680] sm:$0x7]  }
 0x1be   :  { %4511 = vst [vmem:[%s7061_s1 + $0xcd] ss:$392 sm:$0x7] %v2779_v21   ;;  %4512 = vst [vmem:[%s7061_s1 + $0xce] ss:$392 sm:$0x7] %v2783_v22  }
 0x1bf   :  { %4513 = vst [vmem:[%s7061_s1 + $0xcf] ss:$392 sm:$0x7] %v2787_v23   ;;  %v2795_v25 = vld [vmem:[#allocation0 + $0x688] sm:$0x7]  }
 0x1c0   :  { %v2799_v26 = vld [vmem:[#allocation0 + $0x690] sm:$0x7]   ;;  %4514 = vst [vmem:[%s7061_s1 + $0xd0] ss:$392 sm:$0x7] %v2791_v24  }
 0x1c1   :  { %4515 = vst [vmem:[%s7061_s1 + $0xd1] ss:$392 sm:$0x7] %v2795_v25   ;;  %4516 = vst [vmem:[%s7061_s1 + $0xd2] ss:$392 sm:$0x7] %v2799_v26  }
 0x1c2   :  { %v2803_v27 = vld [vmem:[#allocation0 + $0x698] sm:$0x7]   ;;  %v2807_v28 = vld [vmem:[#allocation0 + $0x6a0] sm:$0x7]   ;;  %v2811_v29 = vld [vmem:[#allocation0 + $0x6a8] sm:$0x7]  }
 0x1c3   :  { %4517 = vst [vmem:[%s7061_s1 + $0xd3] ss:$392 sm:$0x7] %v2803_v27   ;;  %4518 = vst [vmem:[%s7061_s1 + $0xd4] ss:$392 sm:$0x7] %v2807_v28  }
 0x1c4   :  { %4519 = vst [vmem:[%s7061_s1 + $0xd5] ss:$392 sm:$0x7] %v2811_v29   ;;  %v2815_v30 = vld [vmem:[#allocation0 + $0x6b0] sm:$0x7]  }
 0x1c5   :  { %v2819_v31 = vld [vmem:[#allocation0 + $0x6b8] sm:$0x7]   ;;  %v2823_v32 = vld [vmem:[#allocation0 + $0x6c0] sm:$0x7]   ;;  %v2827_v33 = vld [vmem:[#allocation0 + $0x6c8] sm:$0x7]  }
 0x1c6   :  { %4520 = vst [vmem:[%s7061_s1 + $0xd6] ss:$392 sm:$0x7] %v2815_v30   ;;  %4521 = vst [vmem:[%s7061_s1 + $0xd7] ss:$392 sm:$0x7] %v2819_v31  }
 0x1c7   :  { %4522 = vst [vmem:[%s7061_s1 + $0xd8] ss:$392 sm:$0x7] %v2823_v32   ;;  %v2831_v34 = vld [vmem:[#allocation0 + $0x6d0] sm:$0x7]  }
 0x1c8   :  { %v2835_v35 = vld [vmem:[#allocation0 + $0x6d8] sm:$0x7]   ;;  %4523 = vst [vmem:[%s7061_s1 + $0xd9] ss:$392 sm:$0x7] %v2827_v33  }
 0x1c9   :  { %4524 = vst [vmem:[%s7061_s1 + $0xda] ss:$392 sm:$0x7] %v2831_v34   ;;  %4525 = vst [vmem:[%s7061_s1 + $0xdb] ss:$392 sm:$0x7] %v2835_v35  }
 0x1ca   :  { %v2839_v36 = vld [vmem:[#allocation0 + $0x6e0] sm:$0x7]   ;;  %v2843_v37 = vld [vmem:[#allocation0 + $0x6e8] sm:$0x7]   ;;  %v2847_v38 = vld [vmem:[#allocation0 + $0x6f0] sm:$0x7]  }
 0x1cb   :  { %4526 = vst [vmem:[%s7061_s1 + $0xdc] ss:$392 sm:$0x7] %v2839_v36   ;;  %4527 = vst [vmem:[%s7061_s1 + $0xdd] ss:$392 sm:$0x7] %v2843_v37  }
 0x1cc   :  { %4528 = vst [vmem:[%s7061_s1 + $0xde] ss:$392 sm:$0x7] %v2847_v38   ;;  %v2851_v39 = vld [vmem:[#allocation0 + $0x6f8] sm:$0x7]  }
 0x1cd   :  { %v2855_v40 = vld [vmem:[#allocation0 + $0x700] sm:$0x7]   ;;  %v2859_v41 = vld [vmem:[#allocation0 + $0x708] sm:$0x7]   ;;  %v2863_v42 = vld [vmem:[#allocation0 + $0x710] sm:$0x7]  }
 0x1ce   :  { %4529 = vst [vmem:[%s7061_s1 + $0xdf] ss:$392 sm:$0x7] %v2851_v39   ;;  %4530 = vst [vmem:[%s7061_s1 + $0xe0] ss:$392 sm:$0x7] %v2855_v40  }
 0x1cf   :  { %4531 = vst [vmem:[%s7061_s1 + $0xe1] ss:$392 sm:$0x7] %v2859_v41   ;;  %v2867_v43 = vld [vmem:[#allocation0 + $0x718] sm:$0x7]  }
 0x1d0   :  { %v2871_v44 = vld [vmem:[#allocation0 + $0x720] sm:$0x7]   ;;  %4532 = vst [vmem:[%s7061_s1 + $0xe2] ss:$392 sm:$0x7] %v2863_v42  }
 0x1d1   :  { %4533 = vst [vmem:[%s7061_s1 + $0xe3] ss:$392 sm:$0x7] %v2867_v43   ;;  %4534 = vst [vmem:[%s7061_s1 + $0xe4] ss:$392 sm:$0x7] %v2871_v44  }
 0x1d2   :  { %v2875_v45 = vld [vmem:[#allocation0 + $0x728] sm:$0x7]   ;;  %v2879_v46 = vld [vmem:[#allocation0 + $0x730] sm:$0x7]   ;;  %v2883_v47 = vld [vmem:[#allocation0 + $0x738] sm:$0x7]  }
 0x1d3   :  { %4535 = vst [vmem:[%s7061_s1 + $0xe5] ss:$392 sm:$0x7] %v2875_v45   ;;  %4536 = vst [vmem:[%s7061_s1 + $0xe6] ss:$392 sm:$0x7] %v2879_v46  }
 0x1d4   :  { %4537 = vst [vmem:[%s7061_s1 + $0xe7] ss:$392 sm:$0x7] %v2883_v47   ;;  %v2887_v48 = vld [vmem:[#allocation0 + $0x740] sm:$0x7]  }
 0x1d5   :  { %v2891_v49 = vld [vmem:[#allocation0 + $0x748] sm:$0x7]   ;;  %v2895_v50 = vld [vmem:[#allocation0 + $0x750] sm:$0x7]   ;;  %v2899_v51 = vld [vmem:[#allocation0 + $0x758] sm:$0x7]  }
 0x1d6   :  { %4538 = vst [vmem:[%s7061_s1 + $0xe8] ss:$392 sm:$0x7] %v2887_v48   ;;  %4539 = vst [vmem:[%s7061_s1 + $0xe9] ss:$392 sm:$0x7] %v2891_v49  }
 0x1d7   :  { %4540 = vst [vmem:[%s7061_s1 + $0xea] ss:$392 sm:$0x7] %v2895_v50   ;;  %v2903_v52 = vld [vmem:[#allocation0 + $0x760] sm:$0x7]  }
 0x1d8   :  { %v2907_v53 = vld [vmem:[#allocation0 + $0x768] sm:$0x7]   ;;  %4541 = vst [vmem:[%s7061_s1 + $0xeb] ss:$392 sm:$0x7] %v2899_v51  }
 0x1d9   :  { %4542 = vst [vmem:[%s7061_s1 + $0xec] ss:$392 sm:$0x7] %v2903_v52   ;;  %4543 = vst [vmem:[%s7061_s1 + $0xed] ss:$392 sm:$0x7] %v2907_v53  }
 0x1da   :  { %v2911_v54 = vld [vmem:[#allocation0 + $0x770] sm:$0x7]   ;;  %v2915_v55 = vld [vmem:[#allocation0 + $0x778] sm:$0x7]   ;;  %v2919_v56 = vld [vmem:[#allocation0 + $0x780] sm:$0x7]  }
 0x1db   :  { %4544 = vst [vmem:[%s7061_s1 + $0xee] ss:$392 sm:$0x7] %v2911_v54   ;;  %4545 = vst [vmem:[%s7061_s1 + $0xef] ss:$392 sm:$0x7] %v2915_v55  }
 0x1dc   :  { %4546 = vst [vmem:[%s7061_s1 + $0xf0] ss:$392 sm:$0x7] %v2919_v56   ;;  %v2923_v57 = vld [vmem:[#allocation0 + $0x788] sm:$0x7]  }
 0x1dd   :  { %v2927_v58 = vld [vmem:[#allocation0 + $0x790] sm:$0x7]   ;;  %v2931_v59 = vld [vmem:[#allocation0 + $0x798] sm:$0x7]   ;;  %v2935_v60 = vld [vmem:[#allocation0 + $0x7a0] sm:$0x7]  }
 0x1de   :  { %4547 = vst [vmem:[%s7061_s1 + $0xf1] ss:$392 sm:$0x7] %v2923_v57   ;;  %4548 = vst [vmem:[%s7061_s1 + $0xf2] ss:$392 sm:$0x7] %v2927_v58  }
 0x1df   :  { %4549 = vst [vmem:[%s7061_s1 + $0xf3] ss:$392 sm:$0x7] %v2931_v59   ;;  %v2939_v61 = vld [vmem:[#allocation0 + $0x7a8] sm:$0x7]  }
 0x1e0   :  { %v2943_v62 = vld [vmem:[#allocation0 + $0x7b0] sm:$0x7]   ;;  %4550 = vst [vmem:[%s7061_s1 + $0xf4] ss:$392 sm:$0x7] %v2935_v60  }
 0x1e1   :  { %4551 = vst [vmem:[%s7061_s1 + $0xf5] ss:$392 sm:$0x7] %v2939_v61   ;;  %4552 = vst [vmem:[%s7061_s1 + $0xf6] ss:$392 sm:$0x7] %v2943_v62  }
 0x1e2   :  { %v2947_v63 = vld [vmem:[#allocation0 + $0x7b8] sm:$0x7]   ;;  %v2951_v0 = vld [vmem:[#allocation0 + $0x7c0] sm:$0x7]   ;;  %v2955_v1 = vld [vmem:[#allocation0 + $0x7c8] sm:$0x7]  }
 0x1e3   :  { %4553 = vst [vmem:[%s7061_s1 + $0xf7] ss:$392 sm:$0x7] %v2947_v63   ;;  %4554 = vst [vmem:[%s7061_s1 + $0xf8] ss:$392 sm:$0x7] %v2951_v0  }
 0x1e4   :  { %4555 = vst [vmem:[%s7061_s1 + $0xf9] ss:$392 sm:$0x7] %v2955_v1   ;;  %v2959_v2 = vld [vmem:[#allocation0 + $0x7d0] sm:$0x7]  }
 0x1e5   :  { %v2963_v3 = vld [vmem:[#allocation0 + $0x7d8] sm:$0x7]   ;;  %v2967_v4 = vld [vmem:[#allocation0 + $0x7e0] sm:$0x7]   ;;  %v2971_v5 = vld [vmem:[#allocation0 + $0x7e8] sm:$0x7]  }
 0x1e6   :  { %4556 = vst [vmem:[%s7061_s1 + $0xfa] ss:$392 sm:$0x7] %v2959_v2   ;;  %4557 = vst [vmem:[%s7061_s1 + $0xfb] ss:$392 sm:$0x7] %v2963_v3  }
 0x1e7   :  { %4558 = vst [vmem:[%s7061_s1 + $0xfc] ss:$392 sm:$0x7] %v2967_v4   ;;  %v2975_v6 = vld [vmem:[#allocation0 + $0x7f0] sm:$0x7]  }
 0x1e8   :  { %v2979_v7 = vld [vmem:[#allocation0 + $0x7f8] sm:$0x7]   ;;  %4559 = vst [vmem:[%s7061_s1 + $0xfd] ss:$392 sm:$0x7] %v2971_v5  }
 0x1e9   :  { %4560 = vst [vmem:[%s7061_s1 + $0xfe] ss:$392 sm:$0x7] %v2975_v6   ;;  %4561 = vst [vmem:[%s7061_s1 + $0xff] ss:$392 sm:$0x7] %v2979_v7  }
 0x1ea   :  { %v2983_v8 = vld [vmem:[#allocation0 + $0x800] sm:$0x7]   ;;  %v2987_v9 = vld [vmem:[#allocation0 + $0x808] sm:$0x7]   ;;  %v2991_v10 = vld [vmem:[#allocation0 + $0x810] sm:$0x7]  }
 0x1eb   :  { %4562 = vst [vmem:[%s7061_s1 + $0x100] ss:$392 sm:$0x7] %v2983_v8   ;;  %4563 = vst [vmem:[%s7061_s1 + $0x101] ss:$392 sm:$0x7] %v2987_v9  }
 0x1ec   :  { %4564 = vst [vmem:[%s7061_s1 + $0x102] ss:$392 sm:$0x7] %v2991_v10   ;;  %v2995_v11 = vld [vmem:[#allocation0 + $0x818] sm:$0x7]  }
 0x1ed   :  { %v2999_v12 = vld [vmem:[#allocation0 + $0x820] sm:$0x7]   ;;  %v3003_v13 = vld [vmem:[#allocation0 + $0x828] sm:$0x7]   ;;  %v3007_v14 = vld [vmem:[#allocation0 + $0x830] sm:$0x7]  }
 0x1ee   :  { %4565 = vst [vmem:[%s7061_s1 + $0x103] ss:$392 sm:$0x7] %v2995_v11   ;;  %4566 = vst [vmem:[%s7061_s1 + $0x104] ss:$392 sm:$0x7] %v2999_v12  }
 0x1ef   :  { %4567 = vst [vmem:[%s7061_s1 + $0x105] ss:$392 sm:$0x7] %v3003_v13   ;;  %v3011_v15 = vld [vmem:[#allocation0 + $0x838] sm:$0x7]  }
 0x1f0   :  { %v3015_v16 = vld [vmem:[#allocation0 + $0x840] sm:$0x7]   ;;  %4568 = vst [vmem:[%s7061_s1 + $0x106] ss:$392 sm:$0x7] %v3007_v14  }
 0x1f1   :  { %4569 = vst [vmem:[%s7061_s1 + $0x107] ss:$392 sm:$0x7] %v3011_v15   ;;  %4570 = vst [vmem:[%s7061_s1 + $0x108] ss:$392 sm:$0x7] %v3015_v16  }
 0x1f2   :  { %v3019_v17 = vld [vmem:[#allocation0 + $0x848] sm:$0x7]   ;;  %v3023_v18 = vld [vmem:[#allocation0 + $0x850] sm:$0x7]   ;;  %v3027_v19 = vld [vmem:[#allocation0 + $0x858] sm:$0x7]  }
 0x1f3   :  { %4571 = vst [vmem:[%s7061_s1 + $0x109] ss:$392 sm:$0x7] %v3019_v17   ;;  %4572 = vst [vmem:[%s7061_s1 + $0x10a] ss:$392 sm:$0x7] %v3023_v18  }
 0x1f4   :  { %4573 = vst [vmem:[%s7061_s1 + $0x10b] ss:$392 sm:$0x7] %v3027_v19   ;;  %v3031_v20 = vld [vmem:[#allocation0 + $0x860] sm:$0x7]  }
 0x1f5   :  { %v3035_v21 = vld [vmem:[#allocation0 + $0x868] sm:$0x7]   ;;  %v3039_v22 = vld [vmem:[#allocation0 + $0x870] sm:$0x7]   ;;  %v3043_v23 = vld [vmem:[#allocation0 + $0x878] sm:$0x7]  }
 0x1f6   :  { %4574 = vst [vmem:[%s7061_s1 + $0x10c] ss:$392 sm:$0x7] %v3031_v20   ;;  %4575 = vst [vmem:[%s7061_s1 + $0x10d] ss:$392 sm:$0x7] %v3035_v21  }
 0x1f7   :  { %4576 = vst [vmem:[%s7061_s1 + $0x10e] ss:$392 sm:$0x7] %v3039_v22   ;;  %v3047_v24 = vld [vmem:[#allocation0 + $0x880] sm:$0x7]  }
 0x1f8   :  { %v3051_v25 = vld [vmem:[#allocation0 + $0x888] sm:$0x7]   ;;  %4577 = vst [vmem:[%s7061_s1 + $0x10f] ss:$392 sm:$0x7] %v3043_v23  }
 0x1f9   :  { %4578 = vst [vmem:[%s7061_s1 + $0x110] ss:$392 sm:$0x7] %v3047_v24   ;;  %4579 = vst [vmem:[%s7061_s1 + $0x111] ss:$392 sm:$0x7] %v3051_v25  }
 0x1fa   :  { %v3055_v26 = vld [vmem:[#allocation0 + $0x890] sm:$0x7]   ;;  %v3059_v27 = vld [vmem:[#allocation0 + $0x898] sm:$0x7]   ;;  %v3063_v28 = vld [vmem:[#allocation0 + $0x8a0] sm:$0x7]  }
 0x1fb   :  { %4580 = vst [vmem:[%s7061_s1 + $0x112] ss:$392 sm:$0x7] %v3055_v26   ;;  %4581 = vst [vmem:[%s7061_s1 + $0x113] ss:$392 sm:$0x7] %v3059_v27  }
 0x1fc   :  { %4582 = vst [vmem:[%s7061_s1 + $0x114] ss:$392 sm:$0x7] %v3063_v28   ;;  %v3067_v29 = vld [vmem:[#allocation0 + $0x8a8] sm:$0x7]  }
 0x1fd   :  { %v3071_v30 = vld [vmem:[#allocation0 + $0x8b0] sm:$0x7]   ;;  %v3075_v31 = vld [vmem:[#allocation0 + $0x8b8] sm:$0x7]   ;;  %v3079_v32 = vld [vmem:[#allocation0 + $0x8c0] sm:$0x7]  }
 0x1fe   :  { %4583 = vst [vmem:[%s7061_s1 + $0x115] ss:$392 sm:$0x7] %v3067_v29   ;;  %4584 = vst [vmem:[%s7061_s1 + $0x116] ss:$392 sm:$0x7] %v3071_v30  }
 0x1ff   :  { %4585 = vst [vmem:[%s7061_s1 + $0x117] ss:$392 sm:$0x7] %v3075_v31   ;;  %v3083_v33 = vld [vmem:[#allocation0 + $0x8c8] sm:$0x7]  }
 0x200   :  { %v3087_v34 = vld [vmem:[#allocation0 + $0x8d0] sm:$0x7]   ;;  %4586 = vst [vmem:[%s7061_s1 + $0x118] ss:$392 sm:$0x7] %v3079_v32  }
 0x201   :  { %4587 = vst [vmem:[%s7061_s1 + $0x119] ss:$392 sm:$0x7] %v3083_v33   ;;  %4588 = vst [vmem:[%s7061_s1 + $0x11a] ss:$392 sm:$0x7] %v3087_v34  }
 0x202   :  { %v3091_v35 = vld [vmem:[#allocation0 + $0x8d8] sm:$0x7]   ;;  %v3095_v36 = vld [vmem:[#allocation0 + $0x8e0] sm:$0x7]   ;;  %v3099_v37 = vld [vmem:[#allocation0 + $0x8e8] sm:$0x7]  }
 0x203   :  { %4589 = vst [vmem:[%s7061_s1 + $0x11b] ss:$392 sm:$0x7] %v3091_v35   ;;  %4590 = vst [vmem:[%s7061_s1 + $0x11c] ss:$392 sm:$0x7] %v3095_v36  }
 0x204   :  { %4591 = vst [vmem:[%s7061_s1 + $0x11d] ss:$392 sm:$0x7] %v3099_v37   ;;  %v3103_v38 = vld [vmem:[#allocation0 + $0x8f0] sm:$0x7]  }
 0x205   :  { %v3107_v39 = vld [vmem:[#allocation0 + $0x8f8] sm:$0x7]   ;;  %v3111_v40 = vld [vmem:[#allocation0 + $0x900] sm:$0x7]   ;;  %v3115_v41 = vld [vmem:[#allocation0 + $0x908] sm:$0x7]  }
 0x206   :  { %4592 = vst [vmem:[%s7061_s1 + $0x11e] ss:$392 sm:$0x7] %v3103_v38   ;;  %4593 = vst [vmem:[%s7061_s1 + $0x11f] ss:$392 sm:$0x7] %v3107_v39  }
 0x207   :  { %4594 = vst [vmem:[%s7061_s1 + $0x120] ss:$392 sm:$0x7] %v3111_v40   ;;  %v3119_v42 = vld [vmem:[#allocation0 + $0x910] sm:$0x7]  }
 0x208   :  { %v3123_v43 = vld [vmem:[#allocation0 + $0x918] sm:$0x7]   ;;  %4595 = vst [vmem:[%s7061_s1 + $0x121] ss:$392 sm:$0x7] %v3115_v41  }
 0x209   :  { %4596 = vst [vmem:[%s7061_s1 + $0x122] ss:$392 sm:$0x7] %v3119_v42   ;;  %4597 = vst [vmem:[%s7061_s1 + $0x123] ss:$392 sm:$0x7] %v3123_v43  }
 0x20a   :  { %v3127_v44 = vld [vmem:[#allocation0 + $0x920] sm:$0x7]   ;;  %v3131_v45 = vld [vmem:[#allocation0 + $0x928] sm:$0x7]   ;;  %v3135_v46 = vld [vmem:[#allocation0 + $0x930] sm:$0x7]  }
 0x20b   :  { %4598 = vst [vmem:[%s7061_s1 + $0x124] ss:$392 sm:$0x7] %v3127_v44   ;;  %4599 = vst [vmem:[%s7061_s1 + $0x125] ss:$392 sm:$0x7] %v3131_v45  }
 0x20c   :  { %4600 = vst [vmem:[%s7061_s1 + $0x126] ss:$392 sm:$0x7] %v3135_v46   ;;  %v3139_v47 = vld [vmem:[#allocation0 + $0x938] sm:$0x7]  }
 0x20d   :  { %v3143_v48 = vld [vmem:[#allocation0 + $0x940] sm:$0x7]   ;;  %v3147_v49 = vld [vmem:[#allocation0 + $0x948] sm:$0x7]   ;;  %v3151_v50 = vld [vmem:[#allocation0 + $0x950] sm:$0x7]  }
 0x20e   :  { %4601 = vst [vmem:[%s7061_s1 + $0x127] ss:$392 sm:$0x7] %v3139_v47   ;;  %4602 = vst [vmem:[%s7061_s1 + $0x128] ss:$392 sm:$0x7] %v3143_v48  }
 0x20f   :  { %4603 = vst [vmem:[%s7061_s1 + $0x129] ss:$392 sm:$0x7] %v3147_v49   ;;  %v3155_v51 = vld [vmem:[#allocation0 + $0x958] sm:$0x7]  }
 0x210   :  { %v3159_v52 = vld [vmem:[#allocation0 + $0x960] sm:$0x7]   ;;  %4604 = vst [vmem:[%s7061_s1 + $0x12a] ss:$392 sm:$0x7] %v3151_v50  }
 0x211   :  { %4605 = vst [vmem:[%s7061_s1 + $0x12b] ss:$392 sm:$0x7] %v3155_v51   ;;  %4606 = vst [vmem:[%s7061_s1 + $0x12c] ss:$392 sm:$0x7] %v3159_v52  }
 0x212   :  { %v3163_v53 = vld [vmem:[#allocation0 + $0x968] sm:$0x7]   ;;  %v3167_v54 = vld [vmem:[#allocation0 + $0x970] sm:$0x7]   ;;  %v3171_v55 = vld [vmem:[#allocation0 + $0x978] sm:$0x7]  }
 0x213   :  { %4607 = vst [vmem:[%s7061_s1 + $0x12d] ss:$392 sm:$0x7] %v3163_v53   ;;  %4608 = vst [vmem:[%s7061_s1 + $0x12e] ss:$392 sm:$0x7] %v3167_v54  }
 0x214   :  { %4609 = vst [vmem:[%s7061_s1 + $0x12f] ss:$392 sm:$0x7] %v3171_v55   ;;  %v3175_v56 = vld [vmem:[#allocation0 + $0x980] sm:$0x7]  }
 0x215   :  { %v3179_v57 = vld [vmem:[#allocation0 + $0x988] sm:$0x7]   ;;  %v3183_v58 = vld [vmem:[#allocation0 + $0x990] sm:$0x7]   ;;  %v3187_v59 = vld [vmem:[#allocation0 + $0x998] sm:$0x7]  }
 0x216   :  { %4610 = vst [vmem:[%s7061_s1 + $0x130] ss:$392 sm:$0x7] %v3175_v56   ;;  %4611 = vst [vmem:[%s7061_s1 + $0x131] ss:$392 sm:$0x7] %v3179_v57  }
 0x217   :  { %4612 = vst [vmem:[%s7061_s1 + $0x132] ss:$392 sm:$0x7] %v3183_v58   ;;  %v3191_v60 = vld [vmem:[#allocation0 + $0x9a0] sm:$0x7]  }
 0x218   :  { %v3195_v61 = vld [vmem:[#allocation0 + $0x9a8] sm:$0x7]   ;;  %4613 = vst [vmem:[%s7061_s1 + $0x133] ss:$392 sm:$0x7] %v3187_v59  }
 0x219   :  { %4614 = vst [vmem:[%s7061_s1 + $0x134] ss:$392 sm:$0x7] %v3191_v60   ;;  %4615 = vst [vmem:[%s7061_s1 + $0x135] ss:$392 sm:$0x7] %v3195_v61  }
 0x21a   :  { %v3199_v62 = vld [vmem:[#allocation0 + $0x9b0] sm:$0x7]   ;;  %v3203_v63 = vld [vmem:[#allocation0 + $0x9b8] sm:$0x7]   ;;  %v3207_v0 = vld [vmem:[#allocation0 + $0x9c0] sm:$0x7]  }
 0x21b   :  { %4616 = vst [vmem:[%s7061_s1 + $0x136] ss:$392 sm:$0x7] %v3199_v62   ;;  %4617 = vst [vmem:[%s7061_s1 + $0x137] ss:$392 sm:$0x7] %v3203_v63  }
 0x21c   :  { %4618 = vst [vmem:[%s7061_s1 + $0x138] ss:$392 sm:$0x7] %v3207_v0   ;;  %v3211_v1 = vld [vmem:[#allocation0 + $0x9c8] sm:$0x7]  }
 0x21d   :  { %v3215_v2 = vld [vmem:[#allocation0 + $0x9d0] sm:$0x7]   ;;  %v3219_v3 = vld [vmem:[#allocation0 + $0x9d8] sm:$0x7]   ;;  %v3223_v4 = vld [vmem:[#allocation0 + $0x9e0] sm:$0x7]  }
 0x21e   :  { %4619 = vst [vmem:[%s7061_s1 + $0x139] ss:$392 sm:$0x7] %v3211_v1   ;;  %4620 = vst [vmem:[%s7061_s1 + $0x13a] ss:$392 sm:$0x7] %v3215_v2  }
 0x21f   :  { %4621 = vst [vmem:[%s7061_s1 + $0x13b] ss:$392 sm:$0x7] %v3219_v3   ;;  %v3227_v5 = vld [vmem:[#allocation0 + $0x9e8] sm:$0x7]  }
 0x220   :  { %v3231_v6 = vld [vmem:[#allocation0 + $0x9f0] sm:$0x7]   ;;  %4622 = vst [vmem:[%s7061_s1 + $0x13c] ss:$392 sm:$0x7] %v3223_v4  }
 0x221   :  { %4623 = vst [vmem:[%s7061_s1 + $0x13d] ss:$392 sm:$0x7] %v3227_v5   ;;  %4624 = vst [vmem:[%s7061_s1 + $0x13e] ss:$392 sm:$0x7] %v3231_v6  }
 0x222   :  { %v3235_v7 = vld [vmem:[#allocation0 + $0x9f8] sm:$0x7]   ;;  %v3239_v8 = vld [vmem:[#allocation0 + $0xa00] sm:$0x7]   ;;  %v3243_v9 = vld [vmem:[#allocation0 + $0xa08] sm:$0x7]  }
 0x223   :  { %4625 = vst [vmem:[%s7061_s1 + $0x13f] ss:$392 sm:$0x7] %v3235_v7   ;;  %4626 = vst [vmem:[%s7061_s1 + $0x140] ss:$392 sm:$0x7] %v3239_v8  }
 0x224   :  { %4627 = vst [vmem:[%s7061_s1 + $0x141] ss:$392 sm:$0x7] %v3243_v9   ;;  %v3247_v10 = vld [vmem:[#allocation0 + $0xa10] sm:$0x7]  }
 0x225   :  { %v3251_v11 = vld [vmem:[#allocation0 + $0xa18] sm:$0x7]   ;;  %v3255_v12 = vld [vmem:[#allocation0 + $0xa20] sm:$0x7]   ;;  %v3259_v13 = vld [vmem:[#allocation0 + $0xa28] sm:$0x7]  }
 0x226   :  { %4628 = vst [vmem:[%s7061_s1 + $0x142] ss:$392 sm:$0x7] %v3247_v10   ;;  %4629 = vst [vmem:[%s7061_s1 + $0x143] ss:$392 sm:$0x7] %v3251_v11  }
 0x227   :  { %4630 = vst [vmem:[%s7061_s1 + $0x144] ss:$392 sm:$0x7] %v3255_v12   ;;  %v3263_v14 = vld [vmem:[#allocation0 + $0xa30] sm:$0x7]  }
 0x228   :  { %v3267_v15 = vld [vmem:[#allocation0 + $0xa38] sm:$0x7]   ;;  %4631 = vst [vmem:[%s7061_s1 + $0x145] ss:$392 sm:$0x7] %v3259_v13  }
 0x229   :  { %4632 = vst [vmem:[%s7061_s1 + $0x146] ss:$392 sm:$0x7] %v3263_v14   ;;  %4633 = vst [vmem:[%s7061_s1 + $0x147] ss:$392 sm:$0x7] %v3267_v15  }
 0x22a   :  { %v3271_v16 = vld [vmem:[#allocation0 + $0xa40] sm:$0x7]   ;;  %v3275_v17 = vld [vmem:[#allocation0 + $0xa48] sm:$0x7]   ;;  %v3279_v18 = vld [vmem:[#allocation0 + $0xa50] sm:$0x7]  }
 0x22b   :  { %4634 = vst [vmem:[%s7061_s1 + $0x148] ss:$392 sm:$0x7] %v3271_v16   ;;  %4635 = vst [vmem:[%s7061_s1 + $0x149] ss:$392 sm:$0x7] %v3275_v17  }
 0x22c   :  { %4636 = vst [vmem:[%s7061_s1 + $0x14a] ss:$392 sm:$0x7] %v3279_v18   ;;  %v3283_v19 = vld [vmem:[#allocation0 + $0xa58] sm:$0x7]  }
 0x22d   :  { %v3287_v20 = vld [vmem:[#allocation0 + $0xa60] sm:$0x7]   ;;  %v3291_v21 = vld [vmem:[#allocation0 + $0xa68] sm:$0x7]   ;;  %v3295_v22 = vld [vmem:[#allocation0 + $0xa70] sm:$0x7]  }
 0x22e   :  { %4637 = vst [vmem:[%s7061_s1 + $0x14b] ss:$392 sm:$0x7] %v3283_v19   ;;  %4638 = vst [vmem:[%s7061_s1 + $0x14c] ss:$392 sm:$0x7] %v3287_v20  }
 0x22f   :  { %4639 = vst [vmem:[%s7061_s1 + $0x14d] ss:$392 sm:$0x7] %v3291_v21   ;;  %v3299_v23 = vld [vmem:[#allocation0 + $0xa78] sm:$0x7]  }
 0x230   :  { %v3303_v24 = vld [vmem:[#allocation0 + $0xa80] sm:$0x7]   ;;  %4640 = vst [vmem:[%s7061_s1 + $0x14e] ss:$392 sm:$0x7] %v3295_v22  }
 0x231   :  { %4641 = vst [vmem:[%s7061_s1 + $0x14f] ss:$392 sm:$0x7] %v3299_v23   ;;  %4642 = vst [vmem:[%s7061_s1 + $0x150] ss:$392 sm:$0x7] %v3303_v24  }
 0x232   :  { %v3307_v25 = vld [vmem:[#allocation0 + $0xa88] sm:$0x7]   ;;  %v3311_v26 = vld [vmem:[#allocation0 + $0xa90] sm:$0x7]   ;;  %v3315_v27 = vld [vmem:[#allocation0 + $0xa98] sm:$0x7]  }
 0x233   :  { %4643 = vst [vmem:[%s7061_s1 + $0x151] ss:$392 sm:$0x7] %v3307_v25   ;;  %4644 = vst [vmem:[%s7061_s1 + $0x152] ss:$392 sm:$0x7] %v3311_v26  }
 0x234   :  { %4645 = vst [vmem:[%s7061_s1 + $0x153] ss:$392 sm:$0x7] %v3315_v27   ;;  %v3319_v28 = vld [vmem:[#allocation0 + $0xaa0] sm:$0x7]  }
 0x235   :  { %v3323_v29 = vld [vmem:[#allocation0 + $0xaa8] sm:$0x7]   ;;  %v3327_v30 = vld [vmem:[#allocation0 + $0xab0] sm:$0x7]   ;;  %v3331_v31 = vld [vmem:[#allocation0 + $0xab8] sm:$0x7]  }
 0x236   :  { %4646 = vst [vmem:[%s7061_s1 + $0x154] ss:$392 sm:$0x7] %v3319_v28   ;;  %4647 = vst [vmem:[%s7061_s1 + $0x155] ss:$392 sm:$0x7] %v3323_v29  }
 0x237   :  { %4648 = vst [vmem:[%s7061_s1 + $0x156] ss:$392 sm:$0x7] %v3327_v30   ;;  %v3335_v32 = vld [vmem:[#allocation0 + $0xac0] sm:$0x7]  }
 0x238   :  { %v3339_v33 = vld [vmem:[#allocation0 + $0xac8] sm:$0x7]   ;;  %4649 = vst [vmem:[%s7061_s1 + $0x157] ss:$392 sm:$0x7] %v3331_v31  }
 0x239   :  { %4650 = vst [vmem:[%s7061_s1 + $0x158] ss:$392 sm:$0x7] %v3335_v32   ;;  %4651 = vst [vmem:[%s7061_s1 + $0x159] ss:$392 sm:$0x7] %v3339_v33  }
 0x23a   :  { %v3343_v34 = vld [vmem:[#allocation0 + $0xad0] sm:$0x7]   ;;  %v3347_v35 = vld [vmem:[#allocation0 + $0xad8] sm:$0x7]   ;;  %v3351_v36 = vld [vmem:[#allocation0 + $0xae0] sm:$0x7]  }
 0x23b   :  { %4652 = vst [vmem:[%s7061_s1 + $0x15a] ss:$392 sm:$0x7] %v3343_v34   ;;  %4653 = vst [vmem:[%s7061_s1 + $0x15b] ss:$392 sm:$0x7] %v3347_v35  }
 0x23c   :  { %4654 = vst [vmem:[%s7061_s1 + $0x15c] ss:$392 sm:$0x7] %v3351_v36   ;;  %v3355_v37 = vld [vmem:[#allocation0 + $0xae8] sm:$0x7]  }
 0x23d   :  { %v3359_v38 = vld [vmem:[#allocation0 + $0xaf0] sm:$0x7]   ;;  %v3363_v39 = vld [vmem:[#allocation0 + $0xaf8] sm:$0x7]   ;;  %v3367_v40 = vld [vmem:[#allocation0 + $0xb00] sm:$0x7]  }
 0x23e   :  { %4655 = vst [vmem:[%s7061_s1 + $0x15d] ss:$392 sm:$0x7] %v3355_v37   ;;  %4656 = vst [vmem:[%s7061_s1 + $0x15e] ss:$392 sm:$0x7] %v3359_v38  }
 0x23f   :  { %4657 = vst [vmem:[%s7061_s1 + $0x15f] ss:$392 sm:$0x7] %v3363_v39   ;;  %v3371_v41 = vld [vmem:[#allocation0 + $0xb08] sm:$0x7]  }
 0x240   :  { %v3375_v42 = vld [vmem:[#allocation0 + $0xb10] sm:$0x7]   ;;  %4658 = vst [vmem:[%s7061_s1 + $0x160] ss:$392 sm:$0x7] %v3367_v40  }
 0x241   :  { %4659 = vst [vmem:[%s7061_s1 + $0x161] ss:$392 sm:$0x7] %v3371_v41   ;;  %4660 = vst [vmem:[%s7061_s1 + $0x162] ss:$392 sm:$0x7] %v3375_v42  }
 0x242   :  { %v3379_v43 = vld [vmem:[#allocation0 + $0xb18] sm:$0x7]   ;;  %v3383_v44 = vld [vmem:[#allocation0 + $0xb20] sm:$0x7]   ;;  %v3387_v45 = vld [vmem:[#allocation0 + $0xb28] sm:$0x7]  }
 0x243   :  { %4661 = vst [vmem:[%s7061_s1 + $0x163] ss:$392 sm:$0x7] %v3379_v43   ;;  %4662 = vst [vmem:[%s7061_s1 + $0x164] ss:$392 sm:$0x7] %v3383_v44  }
 0x244   :  { %4663 = vst [vmem:[%s7061_s1 + $0x165] ss:$392 sm:$0x7] %v3387_v45   ;;  %v3391_v46 = vld [vmem:[#allocation0 + $0xb30] sm:$0x7]  }
 0x245   :  { %v3395_v47 = vld [vmem:[#allocation0 + $0xb38] sm:$0x7]   ;;  %v3399_v48 = vld [vmem:[#allocation0 + $0xb40] sm:$0x7]   ;;  %v3403_v49 = vld [vmem:[#allocation0 + $0xb48] sm:$0x7]  }
 0x246   :  { %4664 = vst [vmem:[%s7061_s1 + $0x166] ss:$392 sm:$0x7] %v3391_v46   ;;  %4665 = vst [vmem:[%s7061_s1 + $0x167] ss:$392 sm:$0x7] %v3395_v47  }
 0x247   :  { %4666 = vst [vmem:[%s7061_s1 + $0x168] ss:$392 sm:$0x7] %v3399_v48   ;;  %v3407_v50 = vld [vmem:[#allocation0 + $0xb50] sm:$0x7]  }
 0x248   :  { %v3411_v51 = vld [vmem:[#allocation0 + $0xb58] sm:$0x7]   ;;  %4667 = vst [vmem:[%s7061_s1 + $0x169] ss:$392 sm:$0x7] %v3403_v49  }
 0x249   :  { %4668 = vst [vmem:[%s7061_s1 + $0x16a] ss:$392 sm:$0x7] %v3407_v50   ;;  %4669 = vst [vmem:[%s7061_s1 + $0x16b] ss:$392 sm:$0x7] %v3411_v51  }
 0x24a   :  { %v3415_v52 = vld [vmem:[#allocation0 + $0xb60] sm:$0x7]   ;;  %v3419_v53 = vld [vmem:[#allocation0 + $0xb68] sm:$0x7]   ;;  %v3423_v54 = vld [vmem:[#allocation0 + $0xb70] sm:$0x7]  }
 0x24b   :  { %4670 = vst [vmem:[%s7061_s1 + $0x16c] ss:$392 sm:$0x7] %v3415_v52   ;;  %4671 = vst [vmem:[%s7061_s1 + $0x16d] ss:$392 sm:$0x7] %v3419_v53  }
 0x24c   :  { %4672 = vst [vmem:[%s7061_s1 + $0x16e] ss:$392 sm:$0x7] %v3423_v54   ;;  %v3427_v55 = vld [vmem:[#allocation0 + $0xb78] sm:$0x7]  }
 0x24d   :  { %v3431_v56 = vld [vmem:[#allocation0 + $0xb80] sm:$0x7]   ;;  %v3435_v57 = vld [vmem:[#allocation0 + $0xb88] sm:$0x7]   ;;  %v3439_v58 = vld [vmem:[#allocation0 + $0xb90] sm:$0x7]  }
 0x24e   :  { %4673 = vst [vmem:[%s7061_s1 + $0x16f] ss:$392 sm:$0x7] %v3427_v55   ;;  %4674 = vst [vmem:[%s7061_s1 + $0x170] ss:$392 sm:$0x7] %v3431_v56  }
 0x24f   :  { %4675 = vst [vmem:[%s7061_s1 + $0x171] ss:$392 sm:$0x7] %v3435_v57   ;;  %v3443_v59 = vld [vmem:[#allocation0 + $0xb98] sm:$0x7]  }
 0x250   :  { %v3447_v60 = vld [vmem:[#allocation0 + $0xba0] sm:$0x7]   ;;  %4676 = vst [vmem:[%s7061_s1 + $0x172] ss:$392 sm:$0x7] %v3439_v58  }
 0x251   :  { %4677 = vst [vmem:[%s7061_s1 + $0x173] ss:$392 sm:$0x7] %v3443_v59   ;;  %4678 = vst [vmem:[%s7061_s1 + $0x174] ss:$392 sm:$0x7] %v3447_v60  }
 0x252   :  { %v3451_v61 = vld [vmem:[#allocation0 + $0xba8] sm:$0x7]   ;;  %v3455_v62 = vld [vmem:[#allocation0 + $0xbb0] sm:$0x7]   ;;  %v3459_v63 = vld [vmem:[#allocation0 + $0xbb8] sm:$0x7]  }
 0x253   :  { %4679 = vst [vmem:[%s7061_s1 + $0x175] ss:$392 sm:$0x7] %v3451_v61   ;;  %4680 = vst [vmem:[%s7061_s1 + $0x176] ss:$392 sm:$0x7] %v3455_v62  }
 0x254   :  { %4681 = vst [vmem:[%s7061_s1 + $0x177] ss:$392 sm:$0x7] %v3459_v63   ;;  %v3463_v0 = vld [vmem:[#allocation0 + $0xbc0] sm:$0x7]  }
 0x255   :  { %v3467_v1 = vld [vmem:[#allocation0 + $0xbc8] sm:$0x7]   ;;  %v3471_v2 = vld [vmem:[#allocation0 + $0xbd0] sm:$0x7]   ;;  %v3475_v3 = vld [vmem:[#allocation0 + $0xbd8] sm:$0x7]  }
 0x256   :  { %4682 = vst [vmem:[%s7061_s1 + $0x178] ss:$392 sm:$0x7] %v3463_v0   ;;  %4683 = vst [vmem:[%s7061_s1 + $0x179] ss:$392 sm:$0x7] %v3467_v1  }
 0x257   :  { %4684 = vst [vmem:[%s7061_s1 + $0x17a] ss:$392 sm:$0x7] %v3471_v2   ;;  %v3479_v4 = vld [vmem:[#allocation0 + $0xbe0] sm:$0x7]  }
 0x258   :  { %v3483_v5 = vld [vmem:[#allocation0 + $0xbe8] sm:$0x7]   ;;  %4685 = vst [vmem:[%s7061_s1 + $0x17b] ss:$392 sm:$0x7] %v3475_v3  }
 0x259   :  { %4686 = vst [vmem:[%s7061_s1 + $0x17c] ss:$392 sm:$0x7] %v3479_v4   ;;  %4687 = vst [vmem:[%s7061_s1 + $0x17d] ss:$392 sm:$0x7] %v3483_v5  }
 0x25a   :  { %v3487_v6 = vld [vmem:[#allocation0 + $0xbf0] sm:$0x7]   ;;  %v3491_v7 = vld [vmem:[#allocation0 + $0xbf8] sm:$0x7]   ;;  %v3495_v8 = vld [vmem:[#allocation0 + $0xc00] sm:$0x7]  }
 0x25b   :  { %4688 = vst [vmem:[%s7061_s1 + $0x17e] ss:$392 sm:$0x7] %v3487_v6   ;;  %4689 = vst [vmem:[%s7061_s1 + $0x17f] ss:$392 sm:$0x7] %v3491_v7  }
 0x25c   :  { %4690 = vst [vmem:[%s7061_s1 + $0x180] ss:$392 sm:$0x7] %v3495_v8   ;;  %v3499_v9 = vld [vmem:[#allocation0 + $0xc08] sm:$0x7]  }
 0x25d   :  { %v3503_v10 = vld [vmem:[#allocation0 + $0xc10] sm:$0x7]   ;;  %v3507_v11 = vld [vmem:[#allocation0 + $0xc18] sm:$0x7]   ;;  %v3511_v12 = vld [vmem:[#allocation0 + $0xc20] sm:$0x7]  }
 0x25e   :  { %4691 = vst [vmem:[%s7061_s1 + $0x181] ss:$392 sm:$0x7] %v3499_v9   ;;  %4692 = vst [vmem:[%s7061_s1 + $0x182] ss:$392 sm:$0x7] %v3503_v10  }
 0x25f   :  { %4693 = vst [vmem:[%s7061_s1 + $0x183] ss:$392 sm:$0x7] %v3507_v11   ;;  %v3515_v13 = vld [vmem:[#allocation0 + $0xc28] sm:$0x7]  }
 0x260   :  { %v3519_v14 = vld [vmem:[#allocation0 + $0xc30] sm:$0x7]   ;;  %4694 = vst [vmem:[%s7061_s1 + $0x184] ss:$392 sm:$0x7] %v3511_v12  }
 0x261   :  { %4695 = vst [vmem:[%s7061_s1 + $0x185] ss:$392 sm:$0x7] %v3515_v13   ;;  %4696 = vst [vmem:[%s7061_s1 + $0x186] ss:$392 sm:$0x7] %v3519_v14  }
 0x262   :  { %v3523_v15 = vld [vmem:[#allocation0 + $0xc38] sm:$0x7]  }
 0x263   :  { %4697 = vst [vmem:[%s7061_s1 + $0x187] ss:$392 sm:$0x7] %v3523_v15  }

// kernel: mul.6
= control target key start
LH: loop header
LB: loop body
LE: loop exit
PB: predicated region body
PF: predicated region fallthrough
CT: control target
= control target key end

     0   :  { %s3246_s0 = inlined_call_operand.vmem [shape: f32[150528], index: 0, kind: input, shape index: {}]   ;;  %s3247_s1 = inlined_call_operand.vmem [shape: f32[150528], index: 1, kind: input, shape index: {}]   ;;  %s3248_s2 = inlined_call_operand.vmem [shape: f32[150528], index: 2, kind: output, shape index: {}]  }
   0x1   :  { %v3_v0 = vld [vmem:[%s3246_s0] sm:$0xff]  ;;  %v1470_v2 = vld [vmem:[%s3246_s0 + $0x8] sm:$0xff]  ;;  %v1473_v5 = vld [vmem:[%s3246_s0 + $0x10] sm:$0xff] }
   0x2   :  { %v4_v1 = vld [vmem:[%s3247_s1] sm:$0xff]  ;;  %v1471_v4 = vld [vmem:[%s3247_s1 + $0x8] sm:$0xff]  ;;  %v1474_v6 = vld [vmem:[%s3247_s1 + $0x10] sm:$0xff] }
   0x3   :  { %v7_v3 = vmul.f32 %v4_v1, %v3_v0  ;;  %v16_v7 = vmul.f32 %v1471_v4, %v1470_v2  ;;  %v26_v8 = vmul.f32 %v1474_v6, %v1473_v5  ;;  %v1476_v9 = vld [vmem:[%s3246_s0 + $0x18] sm:$0xff]  ;;  %v1479_v11 = vld [vmem:[%s3246_s0 + $0x20] sm:$0xff]  ;;  %v1482_v14 = vld [vmem:[%s3246_s0 + $0x28] sm:$0xff] }
   0x4   :  { %v1477_v10 = vld [vmem:[%s3247_s1 + $0x18] sm:$0xff]  ;;  %v1480_v13 = vld [vmem:[%s3247_s1 + $0x20] sm:$0xff]  ;;  %v1483_v15 = vld [vmem:[%s3247_s1 + $0x28] sm:$0xff] }
   0x5   :  { %9 = vst [vmem:[%s3248_s2] sm:$0xff] %v7_v3  ;;  %v36_v12 = vmul.f32 %v1477_v10, %v1476_v9  ;;  %1472 = vst [vmem:[%s3248_s2 + $0x8] sm:$0xff] %v16_v7  ;;  %v46_v16 = vmul.f32 %v1480_v13, %v1479_v11  ;;  %v56_v17 = vmul.f32 %v1483_v15, %v1482_v14  ;;  %v1485_v18 = vld [vmem:[%s3246_s0 + $0x30] sm:$0xff]  ;;  %v1488_v20 = vld [vmem:[%s3246_s0 + $0x38] sm:$0xff] }
   0x6   :  { %1475 = vst [vmem:[%s3248_s2 + $0x10] sm:$0xff] %v26_v8  ;;  %v1486_v19 = vld [vmem:[%s3247_s1 + $0x30] sm:$0xff]  ;;  %v1489_v22 = vld [vmem:[%s3247_s1 + $0x38] sm:$0xff]  ;;  %v1491_v23 = vld [vmem:[%s3246_s0 + $0x40] sm:$0xff] }
   0x7   :  { %1478 = vst [vmem:[%s3248_s2 + $0x18] sm:$0xff] %v36_v12  ;;  %v66_v21 = vmul.f32 %v1486_v19, %v1485_v18  ;;  %v1492_v24 = vld [vmem:[%s3247_s1 + $0x40] sm:$0xff]  ;;  %1481 = vst [vmem:[%s3248_s2 + $0x20] sm:$0xff] %v46_v16  ;;  %v76_v25 = vmul.f32 %v1489_v22, %v1488_v20  ;;  %v1494_v27 = vld [vmem:[%s3246_s0 + $0x48] sm:$0xff] }
   0x8   :  { %1484 = vst [vmem:[%s3248_s2 + $0x28] sm:$0xff] %v56_v17  ;;  %v86_v26 = vmul.f32 %v1492_v24, %v1491_v23  ;;  %v1495_v28 = vld [vmem:[%s3247_s1 + $0x48] sm:$0xff]  ;;  %v1497_v29 = vld [vmem:[%s3246_s0 + $0x50] sm:$0xff]  ;;  %v1500_v32 = vld [vmem:[%s3246_s0 + $0x58] sm:$0xff] }
   0x9   :  { %1487 = vst [vmem:[%s3248_s2 + $0x30] sm:$0xff] %v66_v21  ;;  %v96_v30 = vmul.f32 %v1495_v28, %v1494_v27  ;;  %v1498_v31 = vld [vmem:[%s3247_s1 + $0x50] sm:$0xff]  ;;  %v1501_v33 = vld [vmem:[%s3247_s1 + $0x58] sm:$0xff]  ;;  %1490 = vst [vmem:[%s3248_s2 + $0x38] sm:$0xff] %v76_v25 }
   0xa   :  { %1493 = vst [vmem:[%s3248_s2 + $0x40] sm:$0xff] %v86_v26  ;;  %v106_v34 = vmul.f32 %v1498_v31, %v1497_v29  ;;  %v116_v35 = vmul.f32 %v1501_v33, %v1500_v32  ;;  %v1503_v36 = vld [vmem:[%s3246_s0 + $0x60] sm:$0xff]  ;;  %v1506_v38 = vld [vmem:[%s3246_s0 + $0x68] sm:$0xff]  ;;  %v1509_v41 = vld [vmem:[%s3246_s0 + $0x70] sm:$0xff] }
   0xb   :  { %v1504_v37 = vld [vmem:[%s3247_s1 + $0x60] sm:$0xff]  ;;  %1496 = vst [vmem:[%s3248_s2 + $0x48] sm:$0xff] %v96_v30  ;;  %v1507_v40 = vld [vmem:[%s3247_s1 + $0x68] sm:$0xff]  ;;  %v1510_v42 = vld [vmem:[%s3247_s1 + $0x70] sm:$0xff] }
   0xc   :  { %v126_v39 = vmul.f32 %v1504_v37, %v1503_v36  ;;  %1499 = vst [vmem:[%s3248_s2 + $0x50] sm:$0xff] %v106_v34  ;;  %1502 = vst [vmem:[%s3248_s2 + $0x58] sm:$0xff] %v116_v35  ;;  %v136_v43 = vmul.f32 %v1507_v40, %v1506_v38  ;;  %v146_v44 = vmul.f32 %v1510_v42, %v1509_v41  ;;  %v1512_v45 = vld [vmem:[%s3246_s0 + $0x78] sm:$0xff]  ;;  %v1515_v47 = vld [vmem:[%s3246_s0 + $0x80] sm:$0xff] }
   0xd   :  { %v1513_v46 = vld [vmem:[%s3247_s1 + $0x78] sm:$0xff]  ;;  %v1516_v49 = vld [vmem:[%s3247_s1 + $0x80] sm:$0xff]  ;;  %v1518_v50 = vld [vmem:[%s3246_s0 + $0x88] sm:$0xff] }
   0xe   :  { %1505 = vst [vmem:[%s3248_s2 + $0x60] sm:$0xff] %v126_v39  ;;  %v156_v48 = vmul.f32 %v1513_v46, %v1512_v45  ;;  %v1519_v51 = vld [vmem:[%s3247_s1 + $0x88] sm:$0xff]  ;;  %1508 = vst [vmem:[%s3248_s2 + $0x68] sm:$0xff] %v136_v43  ;;  %v166_v52 = vmul.f32 %v1516_v49, %v1515_v47  ;;  %v1521_v54 = vld [vmem:[%s3246_s0 + $0x90] sm:$0xff] }
   0xf   :  { %1511 = vst [vmem:[%s3248_s2 + $0x70] sm:$0xff] %v146_v44  ;;  %v176_v53 = vmul.f32 %v1519_v51, %v1518_v50  ;;  %v1522_v55 = vld [vmem:[%s3247_s1 + $0x90] sm:$0xff]  ;;  %v1524_v56 = vld [vmem:[%s3246_s0 + $0x98] sm:$0xff]  ;;  %v1527_v59 = vld [vmem:[%s3246_s0 + $0xa0] sm:$0xff] }
  0x10   :  { %1514 = vst [vmem:[%s3248_s2 + $0x78] sm:$0xff] %v156_v48  ;;  %v186_v57 = vmul.f32 %v1522_v55, %v1521_v54  ;;  %v1525_v58 = vld [vmem:[%s3247_s1 + $0x98] sm:$0xff]  ;;  %v1528_v60 = vld [vmem:[%s3247_s1 + $0xa0] sm:$0xff]  ;;  %1517 = vst [vmem:[%s3248_s2 + $0x80] sm:$0xff] %v166_v52 }
  0x11   :  { %1520 = vst [vmem:[%s3248_s2 + $0x88] sm:$0xff] %v176_v53  ;;  %v196_v61 = vmul.f32 %v1525_v58, %v1524_v56  ;;  %v206_v62 = vmul.f32 %v1528_v60, %v1527_v59  ;;  %v1530_v63 = vld [vmem:[%s3246_s0 + $0xa8] sm:$0xff]  ;;  %v1533_v1 = vld [vmem:[%s3246_s0 + $0xb0] sm:$0xff]  ;;  %v1536_v4 = vld [vmem:[%s3246_s0 + $0xb8] sm:$0xff] }
  0x12   :  { %v1531_v0 = vld [vmem:[%s3247_s1 + $0xa8] sm:$0xff]  ;;  %1523 = vst [vmem:[%s3248_s2 + $0x90] sm:$0xff] %v186_v57  ;;  %v1534_v3 = vld [vmem:[%s3247_s1 + $0xb0] sm:$0xff]  ;;  %v1537_v5 = vld [vmem:[%s3247_s1 + $0xb8] sm:$0xff] }
  0x13   :  { %v216_v2 = vmul.f32 %v1531_v0, %v1530_v63  ;;  %1526 = vst [vmem:[%s3248_s2 + $0x98] sm:$0xff] %v196_v61  ;;  %1529 = vst [vmem:[%s3248_s2 + $0xa0] sm:$0xff] %v206_v62  ;;  %v226_v6 = vmul.f32 %v1534_v3, %v1533_v1  ;;  %v236_v7 = vmul.f32 %v1537_v5, %v1536_v4  ;;  %v1539_v8 = vld [vmem:[%s3246_s0 + $0xc0] sm:$0xff]  ;;  %v1542_v10 = vld [vmem:[%s3246_s0 + $0xc8] sm:$0xff] }
  0x14   :  { %v1540_v9 = vld [vmem:[%s3247_s1 + $0xc0] sm:$0xff]  ;;  %v1543_v12 = vld [vmem:[%s3247_s1 + $0xc8] sm:$0xff]  ;;  %v1545_v13 = vld [vmem:[%s3246_s0 + $0xd0] sm:$0xff] }
  0x15   :  { %1532 = vst [vmem:[%s3248_s2 + $0xa8] sm:$0xff] %v216_v2  ;;  %v246_v11 = vmul.f32 %v1540_v9, %v1539_v8  ;;  %v1546_v14 = vld [vmem:[%s3247_s1 + $0xd0] sm:$0xff]  ;;  %1535 = vst [vmem:[%s3248_s2 + $0xb0] sm:$0xff] %v226_v6  ;;  %v256_v15 = vmul.f32 %v1543_v12, %v1542_v10  ;;  %v1548_v17 = vld [vmem:[%s3246_s0 + $0xd8] sm:$0xff] }
  0x16   :  { %1538 = vst [vmem:[%s3248_s2 + $0xb8] sm:$0xff] %v236_v7  ;;  %v266_v16 = vmul.f32 %v1546_v14, %v1545_v13  ;;  %v1549_v18 = vld [vmem:[%s3247_s1 + $0xd8] sm:$0xff]  ;;  %v1551_v19 = vld [vmem:[%s3246_s0 + $0xe0] sm:$0xff]  ;;  %v1554_v22 = vld [vmem:[%s3246_s0 + $0xe8] sm:$0xff] }
  0x17   :  { %1541 = vst [vmem:[%s3248_s2 + $0xc0] sm:$0xff] %v246_v11  ;;  %v276_v20 = vmul.f32 %v1549_v18, %v1548_v17  ;;  %v1552_v21 = vld [vmem:[%s3247_s1 + $0xe0] sm:$0xff]  ;;  %v1555_v23 = vld [vmem:[%s3247_s1 + $0xe8] sm:$0xff]  ;;  %1544 = vst [vmem:[%s3248_s2 + $0xc8] sm:$0xff] %v256_v15 }
  0x18   :  { %1547 = vst [vmem:[%s3248_s2 + $0xd0] sm:$0xff] %v266_v16  ;;  %v286_v24 = vmul.f32 %v1552_v21, %v1551_v19  ;;  %v296_v25 = vmul.f32 %v1555_v23, %v1554_v22  ;;  %v1557_v26 = vld [vmem:[%s3246_s0 + $0xf0] sm:$0xff]  ;;  %v1560_v28 = vld [vmem:[%s3246_s0 + $0xf8] sm:$0xff]  ;;  %v1563_v31 = vld [vmem:[%s3246_s0 + $0x100] sm:$0xff] }
  0x19   :  { %v1558_v27 = vld [vmem:[%s3247_s1 + $0xf0] sm:$0xff]  ;;  %1550 = vst [vmem:[%s3248_s2 + $0xd8] sm:$0xff] %v276_v20  ;;  %v1561_v30 = vld [vmem:[%s3247_s1 + $0xf8] sm:$0xff]  ;;  %v1564_v32 = vld [vmem:[%s3247_s1 + $0x100] sm:$0xff] }
  0x1a   :  { %v306_v29 = vmul.f32 %v1558_v27, %v1557_v26  ;;  %1553 = vst [vmem:[%s3248_s2 + $0xe0] sm:$0xff] %v286_v24  ;;  %1556 = vst [vmem:[%s3248_s2 + $0xe8] sm:$0xff] %v296_v25  ;;  %v316_v33 = vmul.f32 %v1561_v30, %v1560_v28  ;;  %v326_v34 = vmul.f32 %v1564_v32, %v1563_v31  ;;  %v1566_v35 = vld [vmem:[%s3246_s0 + $0x108] sm:$0xff]  ;;  %v1569_v37 = vld [vmem:[%s3246_s0 + $0x110] sm:$0xff] }
  0x1b   :  { %v1567_v36 = vld [vmem:[%s3247_s1 + $0x108] sm:$0xff]  ;;  %v1570_v39 = vld [vmem:[%s3247_s1 + $0x110] sm:$0xff]  ;;  %v1572_v40 = vld [vmem:[%s3246_s0 + $0x118] sm:$0xff] }
  0x1c   :  { %1559 = vst [vmem:[%s3248_s2 + $0xf0] sm:$0xff] %v306_v29  ;;  %v336_v38 = vmul.f32 %v1567_v36, %v1566_v35  ;;  %v1573_v41 = vld [vmem:[%s3247_s1 + $0x118] sm:$0xff]  ;;  %1562 = vst [vmem:[%s3248_s2 + $0xf8] sm:$0xff] %v316_v33  ;;  %v346_v42 = vmul.f32 %v1570_v39, %v1569_v37  ;;  %v1575_v44 = vld [vmem:[%s3246_s0 + $0x120] sm:$0xff] }
  0x1d   :  { %1565 = vst [vmem:[%s3248_s2 + $0x100] sm:$0xff] %v326_v34  ;;  %v356_v43 = vmul.f32 %v1573_v41, %v1572_v40  ;;  %v1576_v45 = vld [vmem:[%s3247_s1 + $0x120] sm:$0xff]  ;;  %v1578_v46 = vld [vmem:[%s3246_s0 + $0x128] sm:$0xff]  ;;  %v1581_v49 = vld [vmem:[%s3246_s0 + $0x130] sm:$0xff] }
  0x1e   :  { %1568 = vst [vmem:[%s3248_s2 + $0x108] sm:$0xff] %v336_v38  ;;  %v366_v47 = vmul.f32 %v1576_v45, %v1575_v44  ;;  %v1579_v48 = vld [vmem:[%s3247_s1 + $0x128] sm:$0xff]  ;;  %v1582_v50 = vld [vmem:[%s3247_s1 + $0x130] sm:$0xff]  ;;  %1571 = vst [vmem:[%s3248_s2 + $0x110] sm:$0xff] %v346_v42 }
  0x1f   :  { %1574 = vst [vmem:[%s3248_s2 + $0x118] sm:$0xff] %v356_v43  ;;  %v376_v51 = vmul.f32 %v1579_v48, %v1578_v46  ;;  %v386_v52 = vmul.f32 %v1582_v50, %v1581_v49  ;;  %v1584_v53 = vld [vmem:[%s3246_s0 + $0x138] sm:$0xff]  ;;  %v1587_v55 = vld [vmem:[%s3246_s0 + $0x140] sm:$0xff]  ;;  %v1590_v58 = vld [vmem:[%s3246_s0 + $0x148] sm:$0xff] }
  0x20   :  { %v1585_v54 = vld [vmem:[%s3247_s1 + $0x138] sm:$0xff]  ;;  %1577 = vst [vmem:[%s3248_s2 + $0x120] sm:$0xff] %v366_v47  ;;  %v1588_v57 = vld [vmem:[%s3247_s1 + $0x140] sm:$0xff]  ;;  %v1591_v59 = vld [vmem:[%s3247_s1 + $0x148] sm:$0xff] }
  0x21   :  { %v396_v56 = vmul.f32 %v1585_v54, %v1584_v53  ;;  %1580 = vst [vmem:[%s3248_s2 + $0x128] sm:$0xff] %v376_v51  ;;  %1583 = vst [vmem:[%s3248_s2 + $0x130] sm:$0xff] %v386_v52  ;;  %v406_v60 = vmul.f32 %v1588_v57, %v1587_v55  ;;  %v416_v61 = vmul.f32 %v1591_v59, %v1590_v58  ;;  %v1593_v62 = vld [vmem:[%s3246_s0 + $0x150] sm:$0xff]  ;;  %v1596_v0 = vld [vmem:[%s3246_s0 + $0x158] sm:$0xff] }
  0x22   :  { %v1594_v63 = vld [vmem:[%s3247_s1 + $0x150] sm:$0xff]  ;;  %v1597_v2 = vld [vmem:[%s3247_s1 + $0x158] sm:$0xff]  ;;  %v1599_v3 = vld [vmem:[%s3246_s0 + $0x160] sm:$0xff] }
  0x23   :  { %1586 = vst [vmem:[%s3248_s2 + $0x138] sm:$0xff] %v396_v56  ;;  %v426_v1 = vmul.f32 %v1594_v63, %v1593_v62  ;;  %v1600_v4 = vld [vmem:[%s3247_s1 + $0x160] sm:$0xff]  ;;  %1589 = vst [vmem:[%s3248_s2 + $0x140] sm:$0xff] %v406_v60  ;;  %v436_v5 = vmul.f32 %v1597_v2, %v1596_v0  ;;  %v1602_v7 = vld [vmem:[%s3246_s0 + $0x168] sm:$0xff] }
  0x24   :  { %1592 = vst [vmem:[%s3248_s2 + $0x148] sm:$0xff] %v416_v61  ;;  %v446_v6 = vmul.f32 %v1600_v4, %v1599_v3  ;;  %v1603_v8 = vld [vmem:[%s3247_s1 + $0x168] sm:$0xff]  ;;  %v1605_v9 = vld [vmem:[%s3246_s0 + $0x170] sm:$0xff]  ;;  %v1608_v12 = vld [vmem:[%s3246_s0 + $0x178] sm:$0xff] }
  0x25   :  { %1595 = vst [vmem:[%s3248_s2 + $0x150] sm:$0xff] %v426_v1  ;;  %v456_v10 = vmul.f32 %v1603_v8, %v1602_v7  ;;  %v1606_v11 = vld [vmem:[%s3247_s1 + $0x170] sm:$0xff]  ;;  %v1609_v13 = vld [vmem:[%s3247_s1 + $0x178] sm:$0xff]  ;;  %1598 = vst [vmem:[%s3248_s2 + $0x158] sm:$0xff] %v436_v5 }
  0x26   :  { %1601 = vst [vmem:[%s3248_s2 + $0x160] sm:$0xff] %v446_v6  ;;  %v466_v14 = vmul.f32 %v1606_v11, %v1605_v9  ;;  %v476_v15 = vmul.f32 %v1609_v13, %v1608_v12  ;;  %v1611_v16 = vld [vmem:[%s3246_s0 + $0x180] sm:$0xff]  ;;  %v1614_v18 = vld [vmem:[%s3246_s0 + $0x188] sm:$0xff]  ;;  %v1617_v21 = vld [vmem:[%s3246_s0 + $0x190] sm:$0xff] }
  0x27   :  { %v1612_v17 = vld [vmem:[%s3247_s1 + $0x180] sm:$0xff]  ;;  %1604 = vst [vmem:[%s3248_s2 + $0x168] sm:$0xff] %v456_v10  ;;  %v1615_v20 = vld [vmem:[%s3247_s1 + $0x188] sm:$0xff]  ;;  %v1618_v22 = vld [vmem:[%s3247_s1 + $0x190] sm:$0xff] }
  0x28   :  { %v486_v19 = vmul.f32 %v1612_v17, %v1611_v16  ;;  %1607 = vst [vmem:[%s3248_s2 + $0x170] sm:$0xff] %v466_v14  ;;  %1610 = vst [vmem:[%s3248_s2 + $0x178] sm:$0xff] %v476_v15  ;;  %v496_v23 = vmul.f32 %v1615_v20, %v1614_v18  ;;  %v506_v24 = vmul.f32 %v1618_v22, %v1617_v21  ;;  %v1620_v25 = vld [vmem:[%s3246_s0 + $0x198] sm:$0xff]  ;;  %v1623_v27 = vld [vmem:[%s3246_s0 + $0x1a0] sm:$0xff] }
  0x29   :  { %v1621_v26 = vld [vmem:[%s3247_s1 + $0x198] sm:$0xff]  ;;  %v1624_v29 = vld [vmem:[%s3247_s1 + $0x1a0] sm:$0xff]  ;;  %v1626_v30 = vld [vmem:[%s3246_s0 + $0x1a8] sm:$0xff] }
  0x2a   :  { %1613 = vst [vmem:[%s3248_s2 + $0x180] sm:$0xff] %v486_v19  ;;  %v516_v28 = vmul.f32 %v1621_v26, %v1620_v25  ;;  %v1627_v31 = vld [vmem:[%s3247_s1 + $0x1a8] sm:$0xff]  ;;  %1616 = vst [vmem:[%s3248_s2 + $0x188] sm:$0xff] %v496_v23  ;;  %v526_v32 = vmul.f32 %v1624_v29, %v1623_v27  ;;  %v1629_v34 = vld [vmem:[%s3246_s0 + $0x1b0] sm:$0xff] }
  0x2b   :  { %1619 = vst [vmem:[%s3248_s2 + $0x190] sm:$0xff] %v506_v24  ;;  %v536_v33 = vmul.f32 %v1627_v31, %v1626_v30  ;;  %v1630_v35 = vld [vmem:[%s3247_s1 + $0x1b0] sm:$0xff]  ;;  %v1632_v36 = vld [vmem:[%s3246_s0 + $0x1b8] sm:$0xff]  ;;  %v1635_v39 = vld [vmem:[%s3246_s0 + $0x1c0] sm:$0xff] }
  0x2c   :  { %1622 = vst [vmem:[%s3248_s2 + $0x198] sm:$0xff] %v516_v28  ;;  %v546_v37 = vmul.f32 %v1630_v35, %v1629_v34  ;;  %v1633_v38 = vld [vmem:[%s3247_s1 + $0x1b8] sm:$0xff]  ;;  %v1636_v40 = vld [vmem:[%s3247_s1 + $0x1c0] sm:$0xff]  ;;  %1625 = vst [vmem:[%s3248_s2 + $0x1a0] sm:$0xff] %v526_v32 }
  0x2d   :  { %1628 = vst [vmem:[%s3248_s2 + $0x1a8] sm:$0xff] %v536_v33  ;;  %v556_v41 = vmul.f32 %v1633_v38, %v1632_v36  ;;  %v566_v42 = vmul.f32 %v1636_v40, %v1635_v39  ;;  %v1638_v43 = vld [vmem:[%s3246_s0 + $0x1c8] sm:$0xff]  ;;  %v1641_v45 = vld [vmem:[%s3246_s0 + $0x1d0] sm:$0xff]  ;;  %v1644_v48 = vld [vmem:[%s3246_s0 + $0x1d8] sm:$0xff] }
  0x2e   :  { %v1639_v44 = vld [vmem:[%s3247_s1 + $0x1c8] sm:$0xff]  ;;  %1631 = vst [vmem:[%s3248_s2 + $0x1b0] sm:$0xff] %v546_v37  ;;  %v1642_v47 = vld [vmem:[%s3247_s1 + $0x1d0] sm:$0xff]  ;;  %v1645_v49 = vld [vmem:[%s3247_s1 + $0x1d8] sm:$0xff] }
  0x2f   :  { %v576_v46 = vmul.f32 %v1639_v44, %v1638_v43  ;;  %1634 = vst [vmem:[%s3248_s2 + $0x1b8] sm:$0xff] %v556_v41  ;;  %1637 = vst [vmem:[%s3248_s2 + $0x1c0] sm:$0xff] %v566_v42  ;;  %v586_v50 = vmul.f32 %v1642_v47, %v1641_v45  ;;  %v596_v51 = vmul.f32 %v1645_v49, %v1644_v48  ;;  %v1647_v52 = vld [vmem:[%s3246_s0 + $0x1e0] sm:$0xff]  ;;  %v1650_v54 = vld [vmem:[%s3246_s0 + $0x1e8] sm:$0xff] }
  0x30   :  { %v1648_v53 = vld [vmem:[%s3247_s1 + $0x1e0] sm:$0xff]  ;;  %v1651_v56 = vld [vmem:[%s3247_s1 + $0x1e8] sm:$0xff]  ;;  %v1653_v57 = vld [vmem:[%s3246_s0 + $0x1f0] sm:$0xff] }
  0x31   :  { %1640 = vst [vmem:[%s3248_s2 + $0x1c8] sm:$0xff] %v576_v46  ;;  %v606_v55 = vmul.f32 %v1648_v53, %v1647_v52  ;;  %v1654_v58 = vld [vmem:[%s3247_s1 + $0x1f0] sm:$0xff]  ;;  %1643 = vst [vmem:[%s3248_s2 + $0x1d0] sm:$0xff] %v586_v50  ;;  %v616_v59 = vmul.f32 %v1651_v56, %v1650_v54  ;;  %v1656_v61 = vld [vmem:[%s3246_s0 + $0x1f8] sm:$0xff] }
  0x32   :  { %1646 = vst [vmem:[%s3248_s2 + $0x1d8] sm:$0xff] %v596_v51  ;;  %v626_v60 = vmul.f32 %v1654_v58, %v1653_v57  ;;  %v1657_v62 = vld [vmem:[%s3247_s1 + $0x1f8] sm:$0xff]  ;;  %v1659_v63 = vld [vmem:[%s3246_s0 + $0x200] sm:$0xff]  ;;  %v1662_v2 = vld [vmem:[%s3246_s0 + $0x208] sm:$0xff] }
  0x33   :  { %1649 = vst [vmem:[%s3248_s2 + $0x1e0] sm:$0xff] %v606_v55  ;;  %v636_v0 = vmul.f32 %v1657_v62, %v1656_v61  ;;  %v1660_v1 = vld [vmem:[%s3247_s1 + $0x200] sm:$0xff]  ;;  %v1663_v3 = vld [vmem:[%s3247_s1 + $0x208] sm:$0xff]  ;;  %1652 = vst [vmem:[%s3248_s2 + $0x1e8] sm:$0xff] %v616_v59 }
  0x34   :  { %1655 = vst [vmem:[%s3248_s2 + $0x1f0] sm:$0xff] %v626_v60  ;;  %v646_v4 = vmul.f32 %v1660_v1, %v1659_v63  ;;  %v656_v5 = vmul.f32 %v1663_v3, %v1662_v2  ;;  %v1665_v6 = vld [vmem:[%s3246_s0 + $0x210] sm:$0xff]  ;;  %v1668_v8 = vld [vmem:[%s3246_s0 + $0x218] sm:$0xff]  ;;  %v1671_v11 = vld [vmem:[%s3246_s0 + $0x220] sm:$0xff] }
  0x35   :  { %v1666_v7 = vld [vmem:[%s3247_s1 + $0x210] sm:$0xff]  ;;  %1658 = vst [vmem:[%s3248_s2 + $0x1f8] sm:$0xff] %v636_v0  ;;  %v1669_v10 = vld [vmem:[%s3247_s1 + $0x218] sm:$0xff]  ;;  %v1672_v12 = vld [vmem:[%s3247_s1 + $0x220] sm:$0xff] }
  0x36   :  { %v666_v9 = vmul.f32 %v1666_v7, %v1665_v6  ;;  %1661 = vst [vmem:[%s3248_s2 + $0x200] sm:$0xff] %v646_v4  ;;  %1664 = vst [vmem:[%s3248_s2 + $0x208] sm:$0xff] %v656_v5  ;;  %v676_v13 = vmul.f32 %v1669_v10, %v1668_v8  ;;  %v686_v14 = vmul.f32 %v1672_v12, %v1671_v11  ;;  %v1674_v15 = vld [vmem:[%s3246_s0 + $0x228] sm:$0xff]  ;;  %v1677_v17 = vld [vmem:[%s3246_s0 + $0x230] sm:$0xff] }
  0x37   :  { %v1675_v16 = vld [vmem:[%s3247_s1 + $0x228] sm:$0xff]  ;;  %v1678_v19 = vld [vmem:[%s3247_s1 + $0x230] sm:$0xff]  ;;  %v1680_v20 = vld [vmem:[%s3246_s0 + $0x238] sm:$0xff] }
  0x38   :  { %1667 = vst [vmem:[%s3248_s2 + $0x210] sm:$0xff] %v666_v9  ;;  %v696_v18 = vmul.f32 %v1675_v16, %v1674_v15  ;;  %v1681_v21 = vld [vmem:[%s3247_s1 + $0x238] sm:$0xff]  ;;  %1670 = vst [vmem:[%s3248_s2 + $0x218] sm:$0xff] %v676_v13  ;;  %v706_v22 = vmul.f32 %v1678_v19, %v1677_v17  ;;  %v1683_v24 = vld [vmem:[%s3246_s0 + $0x240] sm:$0xff] }
  0x39   :  { %1673 = vst [vmem:[%s3248_s2 + $0x220] sm:$0xff] %v686_v14  ;;  %v716_v23 = vmul.f32 %v1681_v21, %v1680_v20  ;;  %v1684_v25 = vld [vmem:[%s3247_s1 + $0x240] sm:$0xff]  ;;  %v1686_v26 = vld [vmem:[%s3246_s0 + $0x248] sm:$0xff]  ;;  %v1689_v29 = vld [vmem:[%s3246_s0 + $0x250] sm:$0xff] }
  0x3a   :  { %1676 = vst [vmem:[%s3248_s2 + $0x228] sm:$0xff] %v696_v18  ;;  %v726_v27 = vmul.f32 %v1684_v25, %v1683_v24  ;;  %v1687_v28 = vld [vmem:[%s3247_s1 + $0x248] sm:$0xff]  ;;  %v1690_v30 = vld [vmem:[%s3247_s1 + $0x250] sm:$0xff]  ;;  %1679 = vst [vmem:[%s3248_s2 + $0x230] sm:$0xff] %v706_v22 }
  0x3b   :  { %1682 = vst [vmem:[%s3248_s2 + $0x238] sm:$0xff] %v716_v23  ;;  %v736_v31 = vmul.f32 %v1687_v28, %v1686_v26  ;;  %v746_v32 = vmul.f32 %v1690_v30, %v1689_v29  ;;  %v1692_v33 = vld [vmem:[%s3246_s0 + $0x258] sm:$0xff]  ;;  %v1695_v35 = vld [vmem:[%s3246_s0 + $0x260] sm:$0xff]  ;;  %v1698_v38 = vld [vmem:[%s3246_s0 + $0x268] sm:$0xff] }
  0x3c   :  { %v1693_v34 = vld [vmem:[%s3247_s1 + $0x258] sm:$0xff]  ;;  %1685 = vst [vmem:[%s3248_s2 + $0x240] sm:$0xff] %v726_v27  ;;  %v1696_v37 = vld [vmem:[%s3247_s1 + $0x260] sm:$0xff]  ;;  %v1699_v39 = vld [vmem:[%s3247_s1 + $0x268] sm:$0xff] }
  0x3d   :  { %v756_v36 = vmul.f32 %v1693_v34, %v1692_v33  ;;  %1688 = vst [vmem:[%s3248_s2 + $0x248] sm:$0xff] %v736_v31  ;;  %1691 = vst [vmem:[%s3248_s2 + $0x250] sm:$0xff] %v746_v32  ;;  %v766_v40 = vmul.f32 %v1696_v37, %v1695_v35  ;;  %v776_v41 = vmul.f32 %v1699_v39, %v1698_v38  ;;  %v1701_v42 = vld [vmem:[%s3246_s0 + $0x270] sm:$0xff]  ;;  %v1704_v44 = vld [vmem:[%s3246_s0 + $0x278] sm:$0xff] }
  0x3e   :  { %v1702_v43 = vld [vmem:[%s3247_s1 + $0x270] sm:$0xff]  ;;  %v1705_v46 = vld [vmem:[%s3247_s1 + $0x278] sm:$0xff]  ;;  %v1707_v47 = vld [vmem:[%s3246_s0 + $0x280] sm:$0xff] }
  0x3f   :  { %1694 = vst [vmem:[%s3248_s2 + $0x258] sm:$0xff] %v756_v36  ;;  %v786_v45 = vmul.f32 %v1702_v43, %v1701_v42  ;;  %v1708_v48 = vld [vmem:[%s3247_s1 + $0x280] sm:$0xff]  ;;  %1697 = vst [vmem:[%s3248_s2 + $0x260] sm:$0xff] %v766_v40  ;;  %v796_v49 = vmul.f32 %v1705_v46, %v1704_v44  ;;  %v1710_v51 = vld [vmem:[%s3246_s0 + $0x288] sm:$0xff] }
  0x40   :  { %1700 = vst [vmem:[%s3248_s2 + $0x268] sm:$0xff] %v776_v41  ;;  %v806_v50 = vmul.f32 %v1708_v48, %v1707_v47  ;;  %v1711_v52 = vld [vmem:[%s3247_s1 + $0x288] sm:$0xff]  ;;  %v1713_v53 = vld [vmem:[%s3246_s0 + $0x290] sm:$0xff]  ;;  %v1716_v56 = vld [vmem:[%s3246_s0 + $0x298] sm:$0xff] }
  0x41   :  { %1703 = vst [vmem:[%s3248_s2 + $0x270] sm:$0xff] %v786_v45  ;;  %v816_v54 = vmul.f32 %v1711_v52, %v1710_v51  ;;  %v1714_v55 = vld [vmem:[%s3247_s1 + $0x290] sm:$0xff]  ;;  %v1717_v57 = vld [vmem:[%s3247_s1 + $0x298] sm:$0xff]  ;;  %1706 = vst [vmem:[%s3248_s2 + $0x278] sm:$0xff] %v796_v49 }
  0x42   :  { %1709 = vst [vmem:[%s3248_s2 + $0x280] sm:$0xff] %v806_v50  ;;  %v826_v58 = vmul.f32 %v1714_v55, %v1713_v53  ;;  %v836_v59 = vmul.f32 %v1717_v57, %v1716_v56  ;;  %v1719_v60 = vld [vmem:[%s3246_s0 + $0x2a0] sm:$0xff]  ;;  %v1722_v62 = vld [vmem:[%s3246_s0 + $0x2a8] sm:$0xff]  ;;  %v1725_v1 = vld [vmem:[%s3246_s0 + $0x2b0] sm:$0xff] }
  0x43   :  { %v1720_v61 = vld [vmem:[%s3247_s1 + $0x2a0] sm:$0xff]  ;;  %1712 = vst [vmem:[%s3248_s2 + $0x288] sm:$0xff] %v816_v54  ;;  %v1723_v0 = vld [vmem:[%s3247_s1 + $0x2a8] sm:$0xff]  ;;  %v1726_v2 = vld [vmem:[%s3247_s1 + $0x2b0] sm:$0xff] }
  0x44   :  { %v846_v63 = vmul.f32 %v1720_v61, %v1719_v60  ;;  %1715 = vst [vmem:[%s3248_s2 + $0x290] sm:$0xff] %v826_v58  ;;  %1718 = vst [vmem:[%s3248_s2 + $0x298] sm:$0xff] %v836_v59  ;;  %v856_v3 = vmul.f32 %v1723_v0, %v1722_v62  ;;  %v866_v4 = vmul.f32 %v1726_v2, %v1725_v1  ;;  %v1728_v5 = vld [vmem:[%s3246_s0 + $0x2b8] sm:$0xff]  ;;  %v1731_v7 = vld [vmem:[%s3246_s0 + $0x2c0] sm:$0xff] }
  0x45   :  { %v1729_v6 = vld [vmem:[%s3247_s1 + $0x2b8] sm:$0xff]  ;;  %v1732_v9 = vld [vmem:[%s3247_s1 + $0x2c0] sm:$0xff]  ;;  %v1734_v10 = vld [vmem:[%s3246_s0 + $0x2c8] sm:$0xff] }
  0x46   :  { %1721 = vst [vmem:[%s3248_s2 + $0x2a0] sm:$0xff] %v846_v63  ;;  %v876_v8 = vmul.f32 %v1729_v6, %v1728_v5  ;;  %v1735_v11 = vld [vmem:[%s3247_s1 + $0x2c8] sm:$0xff]  ;;  %1724 = vst [vmem:[%s3248_s2 + $0x2a8] sm:$0xff] %v856_v3  ;;  %v886_v12 = vmul.f32 %v1732_v9, %v1731_v7  ;;  %v1737_v14 = vld [vmem:[%s3246_s0 + $0x2d0] sm:$0xff] }
  0x47   :  { %1727 = vst [vmem:[%s3248_s2 + $0x2b0] sm:$0xff] %v866_v4  ;;  %v896_v13 = vmul.f32 %v1735_v11, %v1734_v10  ;;  %v1738_v15 = vld [vmem:[%s3247_s1 + $0x2d0] sm:$0xff]  ;;  %v1740_v16 = vld [vmem:[%s3246_s0 + $0x2d8] sm:$0xff]  ;;  %v1743_v19 = vld [vmem:[%s3246_s0 + $0x2e0] sm:$0xff] }
  0x48   :  { %1730 = vst [vmem:[%s3248_s2 + $0x2b8] sm:$0xff] %v876_v8  ;;  %v906_v17 = vmul.f32 %v1738_v15, %v1737_v14  ;;  %v1741_v18 = vld [vmem:[%s3247_s1 + $0x2d8] sm:$0xff]  ;;  %v1744_v20 = vld [vmem:[%s3247_s1 + $0x2e0] sm:$0xff]  ;;  %1733 = vst [vmem:[%s3248_s2 + $0x2c0] sm:$0xff] %v886_v12 }
  0x49   :  { %1736 = vst [vmem:[%s3248_s2 + $0x2c8] sm:$0xff] %v896_v13  ;;  %v916_v21 = vmul.f32 %v1741_v18, %v1740_v16  ;;  %v926_v22 = vmul.f32 %v1744_v20, %v1743_v19  ;;  %v1746_v23 = vld [vmem:[%s3246_s0 + $0x2e8] sm:$0xff]  ;;  %v1749_v25 = vld [vmem:[%s3246_s0 + $0x2f0] sm:$0xff]  ;;  %v1752_v28 = vld [vmem:[%s3246_s0 + $0x2f8] sm:$0xff] }
  0x4a   :  { %v1747_v24 = vld [vmem:[%s3247_s1 + $0x2e8] sm:$0xff]  ;;  %1739 = vst [vmem:[%s3248_s2 + $0x2d0] sm:$0xff] %v906_v17  ;;  %v1750_v27 = vld [vmem:[%s3247_s1 + $0x2f0] sm:$0xff]  ;;  %v1753_v29 = vld [vmem:[%s3247_s1 + $0x2f8] sm:$0xff] }
  0x4b   :  { %v936_v26 = vmul.f32 %v1747_v24, %v1746_v23  ;;  %1742 = vst [vmem:[%s3248_s2 + $0x2d8] sm:$0xff] %v916_v21  ;;  %1745 = vst [vmem:[%s3248_s2 + $0x2e0] sm:$0xff] %v926_v22  ;;  %v946_v30 = vmul.f32 %v1750_v27, %v1749_v25  ;;  %v956_v31 = vmul.f32 %v1753_v29, %v1752_v28  ;;  %v1755_v32 = vld [vmem:[%s3246_s0 + $0x300] sm:$0xff]  ;;  %v1758_v34 = vld [vmem:[%s3246_s0 + $0x308] sm:$0xff] }
  0x4c   :  { %v1756_v33 = vld [vmem:[%s3247_s1 + $0x300] sm:$0xff]  ;;  %v1759_v36 = vld [vmem:[%s3247_s1 + $0x308] sm:$0xff]  ;;  %v1761_v37 = vld [vmem:[%s3246_s0 + $0x310] sm:$0xff] }
  0x4d   :  { %1748 = vst [vmem:[%s3248_s2 + $0x2e8] sm:$0xff] %v936_v26  ;;  %v966_v35 = vmul.f32 %v1756_v33, %v1755_v32  ;;  %v1762_v38 = vld [vmem:[%s3247_s1 + $0x310] sm:$0xff]  ;;  %1751 = vst [vmem:[%s3248_s2 + $0x2f0] sm:$0xff] %v946_v30  ;;  %v976_v39 = vmul.f32 %v1759_v36, %v1758_v34  ;;  %v1764_v41 = vld [vmem:[%s3246_s0 + $0x318] sm:$0xff] }
  0x4e   :  { %1754 = vst [vmem:[%s3248_s2 + $0x2f8] sm:$0xff] %v956_v31  ;;  %v986_v40 = vmul.f32 %v1762_v38, %v1761_v37  ;;  %v1765_v42 = vld [vmem:[%s3247_s1 + $0x318] sm:$0xff]  ;;  %v1767_v43 = vld [vmem:[%s3246_s0 + $0x320] sm:$0xff]  ;;  %v1770_v46 = vld [vmem:[%s3246_s0 + $0x328] sm:$0xff] }
  0x4f   :  { %1757 = vst [vmem:[%s3248_s2 + $0x300] sm:$0xff] %v966_v35  ;;  %v996_v44 = vmul.f32 %v1765_v42, %v1764_v41  ;;  %v1768_v45 = vld [vmem:[%s3247_s1 + $0x320] sm:$0xff]  ;;  %v1771_v47 = vld [vmem:[%s3247_s1 + $0x328] sm:$0xff]  ;;  %1760 = vst [vmem:[%s3248_s2 + $0x308] sm:$0xff] %v976_v39 }
  0x50   :  { %1763 = vst [vmem:[%s3248_s2 + $0x310] sm:$0xff] %v986_v40  ;;  %v1006_v48 = vmul.f32 %v1768_v45, %v1767_v43  ;;  %v1016_v49 = vmul.f32 %v1771_v47, %v1770_v46  ;;  %v1773_v50 = vld [vmem:[%s3246_s0 + $0x330] sm:$0xff]  ;;  %v1776_v52 = vld [vmem:[%s3246_s0 + $0x338] sm:$0xff]  ;;  %v1779_v55 = vld [vmem:[%s3246_s0 + $0x340] sm:$0xff] }
  0x51   :  { %v1774_v51 = vld [vmem:[%s3247_s1 + $0x330] sm:$0xff]  ;;  %1766 = vst [vmem:[%s3248_s2 + $0x318] sm:$0xff] %v996_v44  ;;  %v1777_v54 = vld [vmem:[%s3247_s1 + $0x338] sm:$0xff]  ;;  %v1780_v56 = vld [vmem:[%s3247_s1 + $0x340] sm:$0xff] }
  0x52   :  { %v1026_v53 = vmul.f32 %v1774_v51, %v1773_v50  ;;  %1769 = vst [vmem:[%s3248_s2 + $0x320] sm:$0xff] %v1006_v48  ;;  %1772 = vst [vmem:[%s3248_s2 + $0x328] sm:$0xff] %v1016_v49  ;;  %v1036_v57 = vmul.f32 %v1777_v54, %v1776_v52  ;;  %v1046_v58 = vmul.f32 %v1780_v56, %v1779_v55  ;;  %v1782_v59 = vld [vmem:[%s3246_s0 + $0x348] sm:$0xff]  ;;  %v1785_v61 = vld [vmem:[%s3246_s0 + $0x350] sm:$0xff] }
  0x53   :  { %v1783_v60 = vld [vmem:[%s3247_s1 + $0x348] sm:$0xff]  ;;  %v1786_v63 = vld [vmem:[%s3247_s1 + $0x350] sm:$0xff]  ;;  %v1788_v0 = vld [vmem:[%s3246_s0 + $0x358] sm:$0xff] }
  0x54   :  { %1775 = vst [vmem:[%s3248_s2 + $0x330] sm:$0xff] %v1026_v53  ;;  %v1056_v62 = vmul.f32 %v1783_v60, %v1782_v59  ;;  %v1789_v1 = vld [vmem:[%s3247_s1 + $0x358] sm:$0xff]  ;;  %1778 = vst [vmem:[%s3248_s2 + $0x338] sm:$0xff] %v1036_v57  ;;  %v1066_v2 = vmul.f32 %v1786_v63, %v1785_v61  ;;  %v1791_v4 = vld [vmem:[%s3246_s0 + $0x360] sm:$0xff] }
  0x55   :  { %1781 = vst [vmem:[%s3248_s2 + $0x340] sm:$0xff] %v1046_v58  ;;  %v1076_v3 = vmul.f32 %v1789_v1, %v1788_v0  ;;  %v1792_v5 = vld [vmem:[%s3247_s1 + $0x360] sm:$0xff]  ;;  %v1794_v6 = vld [vmem:[%s3246_s0 + $0x368] sm:$0xff]  ;;  %v1797_v9 = vld [vmem:[%s3246_s0 + $0x370] sm:$0xff] }
  0x56   :  { %1784 = vst [vmem:[%s3248_s2 + $0x348] sm:$0xff] %v1056_v62  ;;  %v1086_v7 = vmul.f32 %v1792_v5, %v1791_v4  ;;  %v1795_v8 = vld [vmem:[%s3247_s1 + $0x368] sm:$0xff]  ;;  %v1798_v10 = vld [vmem:[%s3247_s1 + $0x370] sm:$0xff]  ;;  %1787 = vst [vmem:[%s3248_s2 + $0x350] sm:$0xff] %v1066_v2 }
  0x57   :  { %1790 = vst [vmem:[%s3248_s2 + $0x358] sm:$0xff] %v1076_v3  ;;  %v1096_v11 = vmul.f32 %v1795_v8, %v1794_v6  ;;  %v1106_v12 = vmul.f32 %v1798_v10, %v1797_v9  ;;  %v1800_v13 = vld [vmem:[%s3246_s0 + $0x378] sm:$0xff]  ;;  %v1803_v15 = vld [vmem:[%s3246_s0 + $0x380] sm:$0xff]  ;;  %v1806_v18 = vld [vmem:[%s3246_s0 + $0x388] sm:$0xff] }
  0x58   :  { %v1801_v14 = vld [vmem:[%s3247_s1 + $0x378] sm:$0xff]  ;;  %1793 = vst [vmem:[%s3248_s2 + $0x360] sm:$0xff] %v1086_v7  ;;  %v1804_v17 = vld [vmem:[%s3247_s1 + $0x380] sm:$0xff]  ;;  %v1807_v19 = vld [vmem:[%s3247_s1 + $0x388] sm:$0xff] }
  0x59   :  { %v1116_v16 = vmul.f32 %v1801_v14, %v1800_v13  ;;  %1796 = vst [vmem:[%s3248_s2 + $0x368] sm:$0xff] %v1096_v11  ;;  %1799 = vst [vmem:[%s3248_s2 + $0x370] sm:$0xff] %v1106_v12  ;;  %v1126_v20 = vmul.f32 %v1804_v17, %v1803_v15  ;;  %v1136_v21 = vmul.f32 %v1807_v19, %v1806_v18  ;;  %v1809_v22 = vld [vmem:[%s3246_s0 + $0x390] sm:$0xff]  ;;  %v1812_v24 = vld [vmem:[%s3246_s0 + $0x398] sm:$0xff] }
  0x5a   :  { %v1810_v23 = vld [vmem:[%s3247_s1 + $0x390] sm:$0xff]  ;;  %v1813_v26 = vld [vmem:[%s3247_s1 + $0x398] sm:$0xff]  ;;  %v1815_v27 = vld [vmem:[%s3246_s0 + $0x3a0] sm:$0xff] }
  0x5b   :  { %1802 = vst [vmem:[%s3248_s2 + $0x378] sm:$0xff] %v1116_v16  ;;  %v1146_v25 = vmul.f32 %v1810_v23, %v1809_v22  ;;  %v1816_v28 = vld [vmem:[%s3247_s1 + $0x3a0] sm:$0xff]  ;;  %1805 = vst [vmem:[%s3248_s2 + $0x380] sm:$0xff] %v1126_v20  ;;  %v1156_v29 = vmul.f32 %v1813_v26, %v1812_v24  ;;  %v1818_v31 = vld [vmem:[%s3246_s0 + $0x3a8] sm:$0xff] }
  0x5c   :  { %1808 = vst [vmem:[%s3248_s2 + $0x388] sm:$0xff] %v1136_v21  ;;  %v1166_v30 = vmul.f32 %v1816_v28, %v1815_v27  ;;  %v1819_v32 = vld [vmem:[%s3247_s1 + $0x3a8] sm:$0xff]  ;;  %v1821_v33 = vld [vmem:[%s3246_s0 + $0x3b0] sm:$0xff]  ;;  %v1824_v36 = vld [vmem:[%s3246_s0 + $0x3b8] sm:$0xff] }
  0x5d   :  { %1811 = vst [vmem:[%s3248_s2 + $0x390] sm:$0xff] %v1146_v25  ;;  %v1176_v34 = vmul.f32 %v1819_v32, %v1818_v31  ;;  %v1822_v35 = vld [vmem:[%s3247_s1 + $0x3b0] sm:$0xff]  ;;  %v1825_v37 = vld [vmem:[%s3247_s1 + $0x3b8] sm:$0xff]  ;;  %1814 = vst [vmem:[%s3248_s2 + $0x398] sm:$0xff] %v1156_v29 }
  0x5e   :  { %1817 = vst [vmem:[%s3248_s2 + $0x3a0] sm:$0xff] %v1166_v30  ;;  %v1186_v38 = vmul.f32 %v1822_v35, %v1821_v33  ;;  %v1196_v39 = vmul.f32 %v1825_v37, %v1824_v36  ;;  %v1827_v40 = vld [vmem:[%s3246_s0 + $0x3c0] sm:$0xff]  ;;  %v1830_v42 = vld [vmem:[%s3246_s0 + $0x3c8] sm:$0xff]  ;;  %v1833_v45 = vld [vmem:[%s3246_s0 + $0x3d0] sm:$0xff] }
  0x5f   :  { %v1828_v41 = vld [vmem:[%s3247_s1 + $0x3c0] sm:$0xff]  ;;  %1820 = vst [vmem:[%s3248_s2 + $0x3a8] sm:$0xff] %v1176_v34  ;;  %v1831_v44 = vld [vmem:[%s3247_s1 + $0x3c8] sm:$0xff]  ;;  %v1834_v46 = vld [vmem:[%s3247_s1 + $0x3d0] sm:$0xff] }
  0x60   :  { %v1206_v43 = vmul.f32 %v1828_v41, %v1827_v40  ;;  %1823 = vst [vmem:[%s3248_s2 + $0x3b0] sm:$0xff] %v1186_v38  ;;  %1826 = vst [vmem:[%s3248_s2 + $0x3b8] sm:$0xff] %v1196_v39  ;;  %v1216_v47 = vmul.f32 %v1831_v44, %v1830_v42  ;;  %v1226_v48 = vmul.f32 %v1834_v46, %v1833_v45  ;;  %v1836_v49 = vld [vmem:[%s3246_s0 + $0x3d8] sm:$0xff]  ;;  %v1839_v51 = vld [vmem:[%s3246_s0 + $0x3e0] sm:$0xff] }
  0x61   :  { %v1837_v50 = vld [vmem:[%s3247_s1 + $0x3d8] sm:$0xff]  ;;  %v1840_v53 = vld [vmem:[%s3247_s1 + $0x3e0] sm:$0xff]  ;;  %v1842_v54 = vld [vmem:[%s3246_s0 + $0x3e8] sm:$0xff] }
  0x62   :  { %1829 = vst [vmem:[%s3248_s2 + $0x3c0] sm:$0xff] %v1206_v43  ;;  %v1236_v52 = vmul.f32 %v1837_v50, %v1836_v49  ;;  %v1843_v55 = vld [vmem:[%s3247_s1 + $0x3e8] sm:$0xff]  ;;  %1832 = vst [vmem:[%s3248_s2 + $0x3c8] sm:$0xff] %v1216_v47  ;;  %v1246_v56 = vmul.f32 %v1840_v53, %v1839_v51  ;;  %v1845_v58 = vld [vmem:[%s3246_s0 + $0x3f0] sm:$0xff] }
  0x63   :  { %1835 = vst [vmem:[%s3248_s2 + $0x3d0] sm:$0xff] %v1226_v48  ;;  %v1256_v57 = vmul.f32 %v1843_v55, %v1842_v54  ;;  %v1846_v59 = vld [vmem:[%s3247_s1 + $0x3f0] sm:$0xff]  ;;  %v1848_v60 = vld [vmem:[%s3246_s0 + $0x3f8] sm:$0xff]  ;;  %v1851_v63 = vld [vmem:[%s3246_s0 + $0x400] sm:$0xff] }
  0x64   :  { %1838 = vst [vmem:[%s3248_s2 + $0x3d8] sm:$0xff] %v1236_v52  ;;  %v1266_v61 = vmul.f32 %v1846_v59, %v1845_v58  ;;  %v1849_v62 = vld [vmem:[%s3247_s1 + $0x3f8] sm:$0xff]  ;;  %v1852_v0 = vld [vmem:[%s3247_s1 + $0x400] sm:$0xff]  ;;  %1841 = vst [vmem:[%s3248_s2 + $0x3e0] sm:$0xff] %v1246_v56 }
  0x65   :  { %1844 = vst [vmem:[%s3248_s2 + $0x3e8] sm:$0xff] %v1256_v57  ;;  %v1276_v1 = vmul.f32 %v1849_v62, %v1848_v60  ;;  %v1286_v2 = vmul.f32 %v1852_v0, %v1851_v63  ;;  %v1854_v3 = vld [vmem:[%s3246_s0 + $0x408] sm:$0xff]  ;;  %v1857_v5 = vld [vmem:[%s3246_s0 + $0x410] sm:$0xff]  ;;  %v1860_v8 = vld [vmem:[%s3246_s0 + $0x418] sm:$0xff] }
  0x66   :  { %v1855_v4 = vld [vmem:[%s3247_s1 + $0x408] sm:$0xff]  ;;  %1847 = vst [vmem:[%s3248_s2 + $0x3f0] sm:$0xff] %v1266_v61  ;;  %v1858_v7 = vld [vmem:[%s3247_s1 + $0x410] sm:$0xff]  ;;  %v1861_v9 = vld [vmem:[%s3247_s1 + $0x418] sm:$0xff] }
  0x67   :  { %v1296_v6 = vmul.f32 %v1855_v4, %v1854_v3  ;;  %1850 = vst [vmem:[%s3248_s2 + $0x3f8] sm:$0xff] %v1276_v1  ;;  %1853 = vst [vmem:[%s3248_s2 + $0x400] sm:$0xff] %v1286_v2  ;;  %v1306_v10 = vmul.f32 %v1858_v7, %v1857_v5  ;;  %v1316_v11 = vmul.f32 %v1861_v9, %v1860_v8  ;;  %v1863_v12 = vld [vmem:[%s3246_s0 + $0x420] sm:$0xff]  ;;  %v1866_v14 = vld [vmem:[%s3246_s0 + $0x428] sm:$0xff] }
  0x68   :  { %v1864_v13 = vld [vmem:[%s3247_s1 + $0x420] sm:$0xff]  ;;  %v1867_v16 = vld [vmem:[%s3247_s1 + $0x428] sm:$0xff]  ;;  %v1869_v17 = vld [vmem:[%s3246_s0 + $0x430] sm:$0xff] }
  0x69   :  { %1856 = vst [vmem:[%s3248_s2 + $0x408] sm:$0xff] %v1296_v6  ;;  %v1326_v15 = vmul.f32 %v1864_v13, %v1863_v12  ;;  %v1870_v18 = vld [vmem:[%s3247_s1 + $0x430] sm:$0xff]  ;;  %1859 = vst [vmem:[%s3248_s2 + $0x410] sm:$0xff] %v1306_v10  ;;  %v1336_v19 = vmul.f32 %v1867_v16, %v1866_v14  ;;  %v1872_v21 = vld [vmem:[%s3246_s0 + $0x438] sm:$0xff] }
  0x6a   :  { %1862 = vst [vmem:[%s3248_s2 + $0x418] sm:$0xff] %v1316_v11  ;;  %v1346_v20 = vmul.f32 %v1870_v18, %v1869_v17  ;;  %v1873_v22 = vld [vmem:[%s3247_s1 + $0x438] sm:$0xff]  ;;  %v1875_v23 = vld [vmem:[%s3246_s0 + $0x440] sm:$0xff]  ;;  %v1878_v26 = vld [vmem:[%s3246_s0 + $0x448] sm:$0xff] }
  0x6b   :  { %1865 = vst [vmem:[%s3248_s2 + $0x420] sm:$0xff] %v1326_v15  ;;  %v1356_v24 = vmul.f32 %v1873_v22, %v1872_v21  ;;  %v1876_v25 = vld [vmem:[%s3247_s1 + $0x440] sm:$0xff]  ;;  %v1879_v27 = vld [vmem:[%s3247_s1 + $0x448] sm:$0xff]  ;;  %1868 = vst [vmem:[%s3248_s2 + $0x428] sm:$0xff] %v1336_v19 }
  0x6c   :  { %1871 = vst [vmem:[%s3248_s2 + $0x430] sm:$0xff] %v1346_v20  ;;  %v1366_v28 = vmul.f32 %v1876_v25, %v1875_v23  ;;  %v1376_v29 = vmul.f32 %v1879_v27, %v1878_v26  ;;  %v1881_v30 = vld [vmem:[%s3246_s0 + $0x450] sm:$0xff]  ;;  %v1884_v32 = vld [vmem:[%s3246_s0 + $0x458] sm:$0xff]  ;;  %v1887_v35 = vld [vmem:[%s3246_s0 + $0x460] sm:$0xff] }
  0x6d   :  { %v1882_v31 = vld [vmem:[%s3247_s1 + $0x450] sm:$0xff]  ;;  %1874 = vst [vmem:[%s3248_s2 + $0x438] sm:$0xff] %v1356_v24  ;;  %v1885_v34 = vld [vmem:[%s3247_s1 + $0x458] sm:$0xff]  ;;  %v1888_v36 = vld [vmem:[%s3247_s1 + $0x460] sm:$0xff] }
  0x6e   :  { %v1386_v33 = vmul.f32 %v1882_v31, %v1881_v30  ;;  %1877 = vst [vmem:[%s3248_s2 + $0x440] sm:$0xff] %v1366_v28  ;;  %1880 = vst [vmem:[%s3248_s2 + $0x448] sm:$0xff] %v1376_v29  ;;  %v1396_v37 = vmul.f32 %v1885_v34, %v1884_v32  ;;  %v1406_v38 = vmul.f32 %v1888_v36, %v1887_v35  ;;  %v1890_v39 = vld [vmem:[%s3246_s0 + $0x468] sm:$0xff]  ;;  %v1893_v41 = vld [vmem:[%s3246_s0 + $0x470] sm:$0xff] }
  0x6f   :  { %v1891_v40 = vld [vmem:[%s3247_s1 + $0x468] sm:$0xff]  ;;  %v1894_v43 = vld [vmem:[%s3247_s1 + $0x470] sm:$0xff]  ;;  %v1896_v44 = vld [vmem:[%s3246_s0 + $0x478] sm:$0xff] }
  0x70   :  { %1883 = vst [vmem:[%s3248_s2 + $0x450] sm:$0xff] %v1386_v33  ;;  %v1416_v42 = vmul.f32 %v1891_v40, %v1890_v39  ;;  %v1897_v45 = vld [vmem:[%s3247_s1 + $0x478] sm:$0xff]  ;;  %1886 = vst [vmem:[%s3248_s2 + $0x458] sm:$0xff] %v1396_v37  ;;  %v1426_v46 = vmul.f32 %v1894_v43, %v1893_v41  ;;  %v1899_v48 = vld [vmem:[%s3246_s0 + $0x480] sm:$0xff] }
  0x71   :  { %1889 = vst [vmem:[%s3248_s2 + $0x460] sm:$0xff] %v1406_v38  ;;  %v1436_v47 = vmul.f32 %v1897_v45, %v1896_v44  ;;  %v1900_v49 = vld [vmem:[%s3247_s1 + $0x480] sm:$0xff]  ;;  %v1902_v50 = vld [vmem:[%s3246_s0 + $0x488] sm:$0xff]  ;;  %v1905_v53 = vld [vmem:[%s3246_s0 + $0x490] sm:$0xff] }
  0x72   :  { %1892 = vst [vmem:[%s3248_s2 + $0x468] sm:$0xff] %v1416_v42  ;;  %v1446_v51 = vmul.f32 %v1900_v49, %v1899_v48  ;;  %v1903_v52 = vld [vmem:[%s3247_s1 + $0x488] sm:$0xff]  ;;  %v1906_v54 = vld [vmem:[%s3247_s1 + $0x490] sm:$0xff]  ;;  %1895 = vst [vmem:[%s3248_s2 + $0x470] sm:$0xff] %v1426_v46 }
  0x73   :  { %1898 = vst [vmem:[%s3248_s2 + $0x478] sm:$0xff] %v1436_v47  ;;  %v1456_v55 = vmul.f32 %v1903_v52, %v1902_v50  ;;  %v1466_v56 = vmul.f32 %v1906_v54, %v1905_v53 }
  0x74   :  { %1901 = vst [vmem:[%s3248_s2 + $0x480] sm:$0xff] %v1446_v51 }
  0x75   :  { %1904 = vst [vmem:[%s3248_s2 + $0x488] sm:$0xff] %v1456_v55  ;;  %1907 = vst [vmem:[%s3248_s2 + $0x490] sm:$0xff] %v1466_v56 }

// kernel: l_clip_cr.3
= control target key start
LH: loop header
LB: loop body
LE: loop exit
PB: predicated region body
PF: predicated region fallthrough
CT: control target
= control target key end

     0   :  { %s278_s0 = inlined_call_operand.vmem [shape: f32[2,6,128], index: 0, kind: input, shape index: {}]   ;;  %s279_s1 = inlined_call_operand.vmem [shape: f32[1,128], index: 1, kind: input, shape index: {}]   ;;  %s280_s2 = inlined_call_operand.vmem [shape: f32[8,128], index: 2, kind: input, shape index: {}]   ;;  %s281_s3 = inlined_call_operand.hbm [shape: f32[1,1], index: 3, kind: output, shape index: {}]  }
   0x1   :  { %v15_v0 = vld [vmem:[%s278_s0] sm:$0x3f]  ;;  %v185_v1 = vld [vmem:[%s278_s0 + $0x8] sm:$0x3f] }
   0x2   :  { %v186_v2 = vld [vmem:[%s279_s1] ss:$0 sm:$0xff]  ;;  %v18_v3 = vadd.f32 %v185_v1, %v15_v0 }
   0x3   :  { %8 = vsyncpa [#allocation3], 0  ;;  %vm28_vm0 = vcmask 1045504   ;;  %v35_v7 = vld [vmem:[%s280_s2] sm:$0xff]  ;;  %v230_v8 = vmov 0.0   ;;  %vm231_vm1 = vmmov 0   ;;  %v120_v23 = vlaneseq }
   0x4   :  { %v26_v4 = vadd.f32 %v186_v2, %v18_v3  ;;  %189 = vmatprep.subr.mxu0 %v230_v8  ;;  %191 = vmatprep.mubr.msk.f32.mxu0 %vm231_vm1, %v230_v8  ;;  %vm107_vm2 = vcmask 62464   ;;  %vm124_vm8 = vcmask 62520   ;;  %s232_s0 = smov 121   ;;  %s233_s1 = smov [#allocation2]   ;;  %vm169_vm9 = vcmask 0  }
   0x5   :  { %190 = vmatpush3.xpose.msra.mxu0 %v35_v7  ;;  %v121_v24 = vshrl.u32 %v120_v23, 7  ;;  %s177_s2 = sshll.u32 %s233_s1, 4  ;;  %s178_s2 = int_to_ptr.vmem [resolvable:$true] %s177_s2 }
   0x6   :  { %v27_v5 = vmul.f32 %v26_v4, %v26_v4  ;;  %s206_s20 = scalar_lea.vmem %s178_s2, 16  ;;  %s210_s21 = scalar_lea.vmem %s178_s2, 32 }
   0x7   :  { %vm134_vm3 = vcmp.ge.s32.totalorder %v121_v24, 2  ;;  %vm135_vm4 = vcmp.lt.s32.totalorder %v121_v24, 4  ;;  %vm146_vm5 = vcmp.ge.s32.totalorder %v121_v24, 4  ;;  %vm122_vm6 = vcmp.lt.s32.totalorder %v121_v24, 2  ;;  %p207_p0 = scmp.ne.s32.totalorder %s178_s2, %s206_s20  ;;  %p211_p1 = scmp.lt.s32.totalorder %s178_s2, %s178_s2 }
   0x8   :  { %v29_v6 = vsel %vm28_vm0, %v27_v5, 0.0  ;;  %vm136_vm7 = vmand %vm134_vm3, %vm135_vm4  ;;  %p212_p2 = scmp.lt.s32.totalorder %s210_s21, %s206_s20 }
   0x9   :  { %30 = vadd.xlane.f32.xlu0 %v29_v6 }
   0xa   :  { %p213_p3 = por %p212_p2, %p211_p1 }
   0xc   :  { %p214_p4 = pnand %p213_p3, %p207_p0 }
  0x96   :  { %v31_v9 = vpop.xlane.xlu0 %30 }
  0x97   :  { %v32_v10 = vadd.f32 1e-12, %v31_v9 }
  0x99   :  { %198 = vrsqrt.f32 %v32_v10 }
  0xa3   :  { %v199_v11 = vpop.eup %198 }
  0xa4   :  { %v34_v12 = vmul.f32 %v199_v11, %v26_v4 }
  0xa6   :  { %192 = vmatmul.mubr.f32.vlgmr.msra.gmra.mrb[0].mxu0 %v34_v12 }
 0x179   :  { %v102_v13 = vpop.f32.mrb[0].mxu0 }
 0x17a   :  { %v106_v14 = vmul.f32 100.0, %v102_v13  ;;  %v193_v15 = vpop.f32.mrb[1].mxu0 }
 0x17c   :  { %v108_v16 = vsel %vm107_vm2, %v106_v14, -inf }
 0x17d   :  { %109 = vmax.xlane.f32.xlu0 %v108_v16 }
 0x20a   :  { %v110_v17 = vpop.xlane.xlu0 %109 }
 0x20b   :  { %v111_v18 = vsub.f32 %v106_v14, %v110_v17 }
 0x20d   :  { %v112_v19 = vmul.f32 1.442695, %v111_v18 }
 0x20f   :  { %200 = vpow2.f32 %v112_v19 }
 0x219   :  { %v201_v20 = vpop.eup %200 }
 0x21a   :  { %v114_v21 = vsel %vm107_vm2, %v201_v20, 0.0 }
 0x21b   :  { %115 = vadd.xlane.f32.xlu1 %v114_v21 }
 0x2a8   :  { %v116_v22 = vpop.xlane.xlu1 %115 }
 0x2a9   :  { %202 = vrcp.f32 %v116_v22 }
 0x2b3   :  { %v203_v25 = vpop.eup %202 }
 0x2b4   :  { %v118_v26 = vmul.f32 %v203_v25, %v201_v20 }
 0x2b6   :  { %v119_v27 = vsub.f32 1.0, %v118_v26 }
 0x2b8   :  { %v147_v28 = vsel %vm146_vm5, %v119_v27, 0.0  ;;  %v123_v29 = vsel %vm122_vm6, %v119_v27, 0.0  ;;  %v137_v30 = vsel %vm136_vm7, %v119_v27, 0.0 }
 0x2b9   :  { %v125_v31 = vsel %vm124_vm8, %v123_v29, 0.0  ;;  %v138_v32 = vsel %vm124_vm8, %v137_v30, 0.0  ;;  %v148_v33 = vsel %vm124_vm8, %v147_v28, 0.0 }
 0x2ba   :  { %v126_v34 = vrot.slane %v125_v31, 4  ;;  %v139_v35 = vrot.slane %v138_v32, 4  ;;  %v149_v36 = vrot.slane %v148_v33, 4 }
 0x2bc   :  { %v127_v37 = vadd.f32 %v126_v34, %v125_v31  ;;  %v140_v38 = vadd.f32 %v139_v35, %v138_v32  ;;  %v150_v39 = vadd.f32 %v149_v36, %v148_v33 }
 0x2be   :  { %v128_v40 = vrot.slane %v127_v37, 2  ;;  %v151_v41 = vrot.slane %v150_v39, 2  ;;  %v141_v42 = vrot.slane %v140_v38, 2 }
 0x2c0   :  { %v129_v43 = vadd.f32 %v128_v40, %v127_v37  ;;  %v152_v44 = vadd.f32 %v151_v41, %v150_v39  ;;  %v142_v47 = vadd.f32 %v141_v42, %v140_v38 }
 0x2c2   :  { %v130_v45 = vrot.slane %v129_v43, 1  ;;  %v153_v46 = vrot.slane %v152_v44, 1  ;;  %v143_v52 = vrot.slane %v142_v47, 1 }
 0x2c4   :  { %v131_v48 = vadd.f32 %v130_v45, %v129_v43  ;;  %v154_v49 = vadd.f32 %v153_v46, %v152_v44  ;;  %v144_v55 = vadd.f32 %v143_v52, %v142_v47 }
 0x2c6   :  { %v133_v50 = vmul.f32 0.5, %v131_v48  ;;  %v155_v51 = vmul.f32 0.5, %v154_v49  ;;  %v145_v57 = vmul.f32 0.5, %v144_v55 }
 0x2c8   :  { %v158_v53 = vsub.f32 %v133_v50, %v155_v51  ;;  %v156_v58 = vsub.f32 %v133_v50, %v145_v57 }
 0x2ca   :  { %v159_v54 = vmul.f32 %v158_v53, %v158_v53  ;;  %v157_v59 = vmul.f32 %v156_v58, %v156_v58 }
 0x2cc   :  { %v160_v56 = vadd.f32 1e-05, %v159_v54 }
 0x2ce   :  { %204 = vrcp.f32 %v160_v56 }
 0x2d8   :  { %v205_v60 = vpop.eup %204 }
 0x2d9   :  { %v162_v61 = vmul.f32 %v205_v60, %v157_v59 }
 0x2db   :  { %v163_v62 = vmax.f32 %v162_v61, 0.0 }
 0x2dd   :  { %v164_v63 = vmin.f32 %v163_v62, 1.0 }
 0x2df   :  { %166 = vrot.lane.b32.xlu1 %v164_v63, %s232_s0 }
 0x351   :  { %v167_v0 = vpop.permute.xlu1 %166 }
 0x352   :  { %170 = vst.msk [vmem:[#allocation2] sm:$0x1] %vm169_vm9, %v167_v0 }
 0x353   :  { %217 = shalt.err (!%p214_p4)
}
 0x354   :  { %s218_s24 = scalar_lea.hbm %s281_s3, 16 }
 0x355   :  { %p219_p5 = scmp.ne.s32.totalorder %s281_s3, %s218_s24  ;;  %p222_p6 = scmp.lt.u32.totalorder %s218_s24, %s281_s3 }
 0x357   :  { %p224_p7 = pnand %p222_p6, %p219_p5 }
 0x359   :  { %227 = shalt.err (!%p224_p7)
}
 0x35a   :  { %180 = dma.vmem_to_hbm [thread:$0]  %s178_s2, 16, %s281_s3, [#allocation3]  }
 0x35b   :  { %228 = dma.done.wait [#allocation3], 16  }
 0x35c   :  { %229 = vsyncadd [#allocation3], 4294967280 }
 0x35d   :  { %184 = vsyncpa [#allocation3], 1 }

// kernel: l_clip_cr.2
= control target key start
LH: loop header
LB: loop body
LE: loop exit
PB: predicated region body
PF: predicated region fallthrough
CT: control target
= control target key end

     0   :  { %7 = vsyncpa [#allocation3], 0  ;;  %s25398_s0 = inlined_call_operand.vmem [shape: bf16[6,150528], index: 0, kind: input, shape index: {}]   ;;  %s25399_s1 = inlined_call_operand.hbm [shape: bf16[150528,128], index: 1, kind: input, shape index: {}]   ;;  %s25400_s2 = inlined_call_operand.vmem [shape: f32[2,6,128], index: 2, kind: output, shape index: {}]  }
   0x1   :  { %9 = vsyncpa [#allocation3 + $0x1], 0  ;;  %s23455_s9 = smov 0   ;;  %s23457_s10 = smov 0  }
   0x2   :  { %s23459_s11 = smov 0   ;;  %s23461_s12 = smov 0  }
   0x3   :  { %s23463_s13 = smov 0   ;;  %s23465_s14 = smov 0  }
   0x4   :  { %s23467_s15 = smov 0   ;;  %s23469_s16 = smov 0  }
   0x5 LB: > { %s17566_s17 = sadd.s32 4294967295, %s23434_s16   ;;  %s24_s18 = sadd.s32 1, %s23426_s14  ;;  %s23434_s16 = sphi %s23469_s16, %s15_s16   ;;  %s23430_s15 = sphi %s23467_s15, %s25409_s15   ;;  %s23426_s14 = sphi %s23465_s14, %s25408_s14   ;;  %s23422_s13 = sphi %s23463_s13, %s25407_s13   ;;  %s23418_s12 = sphi %s23461_s12, %s25406_s12   ;;  %s23414_s11 = sphi %s23459_s11, %s25405_s11   ;;  %s23410_s10 = sphi %s23457_s10, %s25404_s10   ;;  %s23406_s9 = sphi %s23455_s9, %s25403_s9  }
   0x6   : > { %p25_p0 = scmp.ge.s32.totalorder %s24_s18, 3  ;;  %s27_s19 = sadd.s32 1, %s23430_s15 }
   0x7   : > { %s61_s20 = smul.u32 3, %s23430_s15  ;;  %s68_s21 = sadd.s32 1, %s23414_s11 }
   0x8   : > { %s25411_s18 = smov (%p25_p0, %s24_s18), 0  ;;  %s25413_s19 = smov (!%p25_p0, %s27_s19), %s23430_s15 }
   0x9   : > { %s62_s22 = sadd.s32 %s23426_s14, %s61_s20  ;;  %p75_p1 = scmp.ne.s32.totalorder %s23414_s11, %s23410_s10 }
   0xa   : > { %p29_p2 = scmp.ge.s32.totalorder %s25413_s19, 2  ;;  %p76_p3 = scmp.eq.s32.totalorder %s23434_s16, 0 }
   0xb   : > { %p81_p4 = scmp.ne.s32.totalorder %s23410_s10, %s23406_s9  ;;  %p82_p5 = scmp.eq.s32.totalorder %s17566_s17, 0 }
   0xc   : > { %s25415_s19 = smov (%p29_p2, %s25413_s19), 0  ;;  %p77_p6 = por %p76_p3, %p75_p1 }
   0xd   : > { %p23508_p7 = por %p82_p5, %p81_p4  ;;  %s63_s24 = smul.u32 3, %s25415_s19 }
   0xe   : > { %p21506_p8 = scmp.lt.s32.totalorder %s23434_s16, 6  ;;  %s144_s25 = sand.u32 1, %s23414_s11  }
   0xf   : > { %s64_s26 = sadd.s32 %s63_s24, %s25411_s18  ;;  %s21498_s28 = smul.u32 12544, %s144_s25 }
  0x10   : > { %s65_s27 = ssub.s32 %s62_s22, %s64_s26  ;;  %s19341_s29 = smul.u32 200704, %s62_s22 }
  0x11   : > { %p66_p9 = scmp.eq.s32.totalorder %s65_s27, 0  ;;  %p23516_p10 = pnand %p21506_p8, %p77_p6 }
  0x12   : > { %s23526_s6 = scalar_lea.hbm %s25399_s1, %s19341_s29  ;;  %s148_s7 = scalar_lea.vmem [#allocation2], %s21498_s28 }
  0x13   : > { %s23521_s3 = scalar_select %p66_p9, %s23414_s11, %s68_s21  }
  0x14   : > { %s157_s8 = sshll.u32 %s148_s7, 4  ;;  %s23530_s9 = scalar_lea.sflag [#allocation3], %s144_s25  ;;  %s23528_s8 = int_to_ptr.vmem [resolvable:$true] %s157_s8 }
  0x15   : > { %s23338_s17 = scalar_lea.hbm %s23526_s6, 200704  ;;  %p23340_p12 = pneg %p23516_p10 }
  0x16   : > { %p23339_p11 = scmp.ne.s32.totalorder %s23526_s6, %s23338_s17  ;;  %s23343_s22 = scalar_lea.hbm %s25399_s1, 1204224 }
  0x17   : > { %p23344_p1 = scmp.lt.u32.totalorder %s23526_s6, %s25399_s1  ;;  %p23345_p2 = scmp.lt.u32.totalorder %s23343_s22, %s23338_s17 }
  0x18   : > { %p23341_p13 = pnand %p23340_p12, %p23339_p11  ;;  %p23347_p4 = scmp.lt.u32.totalorder %s23338_s17, %s23526_s6 }
  0x19   : > { %p23346_p3 = por %p23345_p2, %p23344_p1 }
  0x1a   : > { %p23342_p0 = pneg %p23341_p13 }
  0x1b   : > { %p23348_p5 = por %p23347_p4, %p23346_p3 }
  0x1d   : > { %p23349_p6 = pnand %p23348_p5, %p23342_p0 }
  0x1f   : > { %23352 = shalt.err (!%p23349_p6)
}
  0x20   : > { %s23353_s25 = scalar_lea.vmem %s23528_s8, 200704  ;;  %s23436_s27 = smov [#allocation2]  }
  0x21   : > { %p23354_p8 = scmp.ne.s32.totalorder %s23528_s8, %s23353_s25  ;;  %s23358_s28 = sshll.u32 %s23436_s27, 4  ;;  %s23359_s28 = int_to_ptr.vmem [resolvable:$false] %s23358_s28 }
  0x22   : > { %s23360_s29 = scalar_lea.vmem %s23359_s28, 401408  ;;  %p23361_p13 = scmp.lt.s32.totalorder %s23528_s8, %s23359_s28 }
  0x23   : > { %p23356_p9 = pnand %p23354_p8, %p23340_p12  ;;  %p23362_p1 = scmp.lt.s32.totalorder %s23360_s29, %s23353_s25 }
  0x25   : > { %p23357_p11 = pneg %p23356_p9  ;;  %p23363_p2 = por %p23362_p1, %p23361_p13 }
  0x27   : > { %p23364_p3 = pnand %p23363_p2, %p23357_p11 }
  0x29   : > { %23367 = shalt.err (!%p23364_p3)
}
  0x2a   : > { %s23437_s4 = smov 64   ;;  %s23438_s5 = smov 4  }
  0x2b   : > { %21505 = dma.hbm_to_vmem [thread:$0]  (!%p23516_p10), %s23526_s6, 200704, %s23528_s8, %s23530_s9, %s23437_s4, %s23437_s4, %s23438_s5  }
  0x2c   : > { %p17571_p12 = scmp.ge.s32.totalorder %s23434_s16, 1  ;;  %p165_p0 = scmp.lt.s32.totalorder %s23434_s16, 7 }
  0x2e   : > { %p166_p4 = pnand %p17571_p12, %p165_p0 }
  0x2f   : > { %s171_s7 = sand.u32 (!%p166_p4), 1, %s23410_s10  }
  0x30   : > { %169 = sbr.rel (%p166_p4) target bundleno = 1859 (0x743), region = 28  ;;  %s172_s20 = scalar_lea.sflag (!%p166_p4), [#allocation3], %s171_s7 }
  0x31   : > { %s21499_s17 = smul.u32 (!%p166_p4), 12544, %s171_s7 }
  0x33   : > { %s23561_s21 = scalar_lea.vmem (!%p166_p4), [#allocation2], %s21499_s17 }
  0x37   : > { %23401 = dma.done.wait (%p23508_p7), %s172_s20, 200704  }
  0x38   : > { %23403 = vsyncadd (%p23508_p7), %s172_s20, 4294766592  ;;  %s202_s30 = smul.u32 3, %s23422_s13  ;;  %p215_p10 = scmp.lt.s32.totalorder %s23422_s13, 1 }
  0x39   : > { %p17574_p7 = scmp.ne.s32.totalorder %s23418_s12, 0 }
  0x3a   : > { %s203_s6 = sadd.s32 %s23418_s12, %s202_s30  ;;  %s25417_s13 = smov (!%p215_p10, %s23422_s13), 1  ;;  %v23439_v0 = vmov (!%p17574_p7), 0.0  }
  0x3b   : > { %s204_s8 = smul.u32 196, %s203_s6  ;;  %s17573_s9 = sshll.u32 %s25417_s13, 3 }
  0x3c   : > { %s23574_s26 = scalar_lea.vmem %s25400_s2, %s17573_s9  ;;  %223 = sbr.rel (%p17574_p7) target bundleno = 67 (0x43), region = 36 }
  0x3d   : > { %p205_p5 = scmp.lt.s32.totalorder %s204_s8, 1175  ;;  %224 = vst [vmem:[%s23574_s26] sm:$0x3f] (!%p17574_p7), %v23439_v0 }
  0x3f   : > { %s25419_s8 = smov (!%p205_p5, %s204_s8), 1175 }
  0x40   : > { %s17572_s25 = sshll.u32 %s25419_s8, 2 }
  0x41   : > { %s23579_s28 = scalar_lea.vmem %s25398_s0, %s17572_s25 }
  0x43 PF: > { %v21574_v1 = vld [vmem:[%s23561_s21 + $0x40] sm:$0xff]   ;;  %v21578_v5 = vld [vmem:[%s23561_s21 + $0x48] sm:$0xff]   ;;  %v21582_v9 = vld [vmem:[%s23561_s21 + $0x50] sm:$0xff]  }
  0x44   : > { %v21575_v2 = vld [vmem:[%s23561_s21 + $0xc0] sm:$0xff]   ;;  %19342 = vmatprep.subr.bf16.mxu0 %v21574_v1  ;;  %v21579_v6 = vld [vmem:[%s23561_s21 + $0xc8] sm:$0xff]   ;;  %v21583_v10 = vld [vmem:[%s23561_s21 + $0xd0] sm:$0xff]  }
  0x45   : > { %v21576_v3 = vld [vmem:[%s23561_s21] sm:$0xff]   ;;  %19364 = vmatprep.subr.bf16.mxu1 %v21575_v2  ;;  %v21580_v7 = vld [vmem:[%s23561_s21 + $0x8] sm:$0xff]   ;;  %v21584_v11 = vld [vmem:[%s23561_s21 + $0x10] sm:$0xff]  }
  0x46   : > { %v21577_v4 = vld [vmem:[%s23561_s21 + $0x80] sm:$0xff]   ;;  %19343 = vmatpush3.bf16.msra.mxu0 %v21576_v3  ;;  %v21581_v8 = vld [vmem:[%s23561_s21 + $0x88] sm:$0xff]   ;;  %v21585_v12 = vld [vmem:[%s23561_s21 + $0x90] sm:$0xff]  }
  0x47   : > { %19365 = vmatpush3.bf16.msra.mxu1 %v21577_v4  ;;  %19344 = vmatprep.subr.bf16.mxu0 %v21578_v5  ;;  %v21586_v13 = vld [vmem:[%s23561_s21 + $0x58] sm:$0xff]   ;;  %v21590_v17 = vld [vmem:[%s23561_s21 + $0x60] sm:$0xff]   ;;  %v21594_v21 = vld [vmem:[%s23561_s21 + $0x68] sm:$0xff]  }
  0x48   : > { %19366 = vmatprep.subr.bf16.mxu1 %v21579_v6  ;;  %v21587_v14 = vld [vmem:[%s23561_s21 + $0xd8] sm:$0xff]   ;;  %v21591_v18 = vld [vmem:[%s23561_s21 + $0xe0] sm:$0xff]   ;;  %v21595_v22 = vld [vmem:[%s23561_s21 + $0xe8] sm:$0xff]  }
  0x49   : > { %v21588_v15 = vld [vmem:[%s23561_s21 + $0x18] sm:$0xff]   ;;  %v21592_v19 = vld [vmem:[%s23561_s21 + $0x20] sm:$0xff]   ;;  %v21596_v23 = vld [vmem:[%s23561_s21 + $0x28] sm:$0xff]  }
  0x4a   : > { %19345 = vmatpush3.bf16.msra.mxu0 %v21580_v7  ;;  %v21589_v16 = vld [vmem:[%s23561_s21 + $0x98] sm:$0xff]   ;;  %v21593_v20 = vld [vmem:[%s23561_s21 + $0xa0] sm:$0xff]   ;;  %v21597_v24 = vld [vmem:[%s23561_s21 + $0xa8] sm:$0xff]  }
  0x4b   : > { %19367 = vmatpush3.bf16.msra.mxu1 %v21581_v8  ;;  %19346 = vmatprep.subr.bf16.mxu0 %v21582_v9  ;;  %v21598_v25 = vld [vmem:[%s23561_s21 + $0x70] sm:$0xff]   ;;  %v21602_v29 = vld [vmem:[%s23561_s21 + $0x78] sm:$0xff]   ;;  %v226_v33 = vld [vmem:[%s23579_s28] sm:$0x77] }
  0x4c   : > { %19368 = vmatprep.subr.bf16.mxu1 %v21583_v10  ;;  %v21599_v26 = vld [vmem:[%s23561_s21 + $0xf0] sm:$0xff]   ;;  %v21603_v30 = vld [vmem:[%s23561_s21 + $0xf8] sm:$0xff]   ;;  %v227_v34 = vld [vmem:[%s23579_s28 + $0x8] sm:$0x77]  ;;  %v17575_v35 = vcombine.low %v226_v33, %v226_v33  ;;  %v17576_v36 = vcombine.high %v226_v33, %v226_v33 }
  0x4d   : > { %v21600_v27 = vld [vmem:[%s23561_s21 + $0x30] sm:$0xff]   ;;  %v21604_v31 = vld [vmem:[%s23561_s21 + $0x38] sm:$0xff]   ;;  %v17577_v37 = vcombine.low %v227_v34, %v227_v34  ;;  %v17578_v38 = vcombine.high %v227_v34, %v227_v34  ;;  %v21610_v39 = vld [vmem:[%s23561_s21 + $0x140] sm:$0xff]  }
  0x4e   : > { %19347 = vmatpush3.bf16.msra.mxu0 %v21584_v11  ;;  %v21601_v28 = vld [vmem:[%s23561_s21 + $0xb0] sm:$0xff]   ;;  %v21605_v32 = vld [vmem:[%s23561_s21 + $0xb8] sm:$0xff]   ;;  %v21611_v40 = vld [vmem:[%s23561_s21 + $0x1c0] sm:$0xff]   ;;  %13586 = vmatprep.mubr.bf16.mxu0 %v17576_v36 }
  0x4f   : > { %19369 = vmatpush3.bf16.msra.mxu1 %v21585_v12  ;;  %19348 = vmatprep.subr.bf16.mxu0 %v21586_v13  ;;  %v21612_v41 = vld [vmem:[%s23561_s21 + $0x100] sm:$0xff]   ;;  %v21614_v43 = vld [vmem:[%s23561_s21 + $0x148] sm:$0xff]   ;;  %v21618_v47 = vld [vmem:[%s23561_s21 + $0x150] sm:$0xff]  }
  0x50   : > { %19370 = vmatprep.subr.bf16.mxu1 %v21587_v14  ;;  %13626 = vmatprep.mubr.bf16.mxu1 %v17578_v38  ;;  %v21613_v42 = vld [vmem:[%s23561_s21 + $0x180] sm:$0xff]   ;;  %v21615_v44 = vld [vmem:[%s23561_s21 + $0x1c8] sm:$0xff]   ;;  %v21619_v48 = vld [vmem:[%s23561_s21 + $0x1d0] sm:$0xff]  }
  0x51   : > { %v21616_v45 = vld [vmem:[%s23561_s21 + $0x108] sm:$0xff]   ;;  %v21620_v49 = vld [vmem:[%s23561_s21 + $0x110] sm:$0xff]   ;;  %v21622_v51 = vld [vmem:[%s23561_s21 + $0x158] sm:$0xff]  }
  0x52   : > { %19349 = vmatpush3.bf16.msra.mxu0 %v21588_v15  ;;  %v21617_v46 = vld [vmem:[%s23561_s21 + $0x188] sm:$0xff]   ;;  %v21621_v50 = vld [vmem:[%s23561_s21 + $0x190] sm:$0xff]   ;;  %v21623_v52 = vld [vmem:[%s23561_s21 + $0x1d8] sm:$0xff]  }
  0x53   : > { %19371 = vmatpush3.bf16.msra.mxu1 %v21589_v16  ;;  %19350 = vmatprep.subr.bf16.mxu0 %v21590_v17  ;;  %v21624_v53 = vld [vmem:[%s23561_s21 + $0x118] sm:$0xff]   ;;  %v21626_v55 = vld [vmem:[%s23561_s21 + $0x160] sm:$0xff]   ;;  %v21630_v59 = vld [vmem:[%s23561_s21 + $0x168] sm:$0xff]  }
  0x54   : > { %19372 = vmatprep.subr.bf16.mxu1 %v21591_v18  ;;  %v21625_v54 = vld [vmem:[%s23561_s21 + $0x198] sm:$0xff]   ;;  %v21627_v56 = vld [vmem:[%s23561_s21 + $0x1e0] sm:$0xff]   ;;  %v21631_v60 = vld [vmem:[%s23561_s21 + $0x1e8] sm:$0xff]  }
  0x55   : > { %v21628_v57 = vld [vmem:[%s23561_s21 + $0x120] sm:$0xff]   ;;  %v21632_v61 = vld [vmem:[%s23561_s21 + $0x128] sm:$0xff]   ;;  %v21634_v63 = vld [vmem:[%s23561_s21 + $0x170] sm:$0xff]  }
  0x56   : > { %19351 = vmatpush3.bf16.msra.mxu0 %v21592_v19  ;;  %v21629_v58 = vld [vmem:[%s23561_s21 + $0x1a0] sm:$0xff]   ;;  %v21633_v62 = vld [vmem:[%s23561_s21 + $0x1a8] sm:$0xff]   ;;  %v21635_v0 = vld [vmem:[%s23561_s21 + $0x1f0] sm:$0xff]  }
  0x57   : > { %19373 = vmatpush3.bf16.msra.mxu1 %v21593_v20  ;;  %19352 = vmatprep.subr.bf16.mxu0 %v21594_v21  ;;  %v21636_v1 = vld [vmem:[%s23561_s21 + $0x130] sm:$0xff]   ;;  %v21638_v3 = vld [vmem:[%s23561_s21 + $0x178] sm:$0xff]   ;;  %v21646_v13 = vld [vmem:[%s23561_s21 + $0x240] sm:$0xff]  }
  0x58   : > { %19374 = vmatprep.subr.bf16.mxu1 %v21595_v22  ;;  %v21637_v2 = vld [vmem:[%s23561_s21 + $0x1b0] sm:$0xff]   ;;  %v21639_v4 = vld [vmem:[%s23561_s21 + $0x1f8] sm:$0xff]   ;;  %v21647_v14 = vld [vmem:[%s23561_s21 + $0x2c0] sm:$0xff]  }
  0x59   : > { %v21640_v5 = vld [vmem:[%s23561_s21 + $0x138] sm:$0xff]   ;;  %v228_v7 = vld [vmem:[%s23579_s28 + $0x10] sm:$0x77]  ;;  %v21648_v15 = vld [vmem:[%s23561_s21 + $0x200] sm:$0xff]  }
  0x5a   : > { %19353 = vmatpush3.bf16.msra.mxu0 %v21596_v23  ;;  %v21641_v6 = vld [vmem:[%s23561_s21 + $0x1b8] sm:$0xff]   ;;  %v17579_v8 = vcombine.low %v228_v7, %v228_v7  ;;  %v17580_v9 = vcombine.high %v228_v7, %v228_v7  ;;  %v21649_v16 = vld [vmem:[%s23561_s21 + $0x280] sm:$0xff]   ;;  %v21650_v17 = vld [vmem:[%s23561_s21 + $0x248] sm:$0xff]  }
  0x5b   : > { %19375 = vmatpush3.bf16.msra.mxu1 %v21597_v24  ;;  %19354 = vmatprep.subr.bf16.mxu0 %v21598_v25  ;;  %v229_v10 = vld [vmem:[%s23579_s28 + $0x18] sm:$0x77]  ;;  %v21651_v18 = vld [vmem:[%s23561_s21 + $0x2c8] sm:$0xff]   ;;  %v21654_v21 = vld [vmem:[%s23561_s21 + $0x250] sm:$0xff]  }
  0x5c   : > { %19376 = vmatprep.subr.bf16.mxu1 %v21599_v26  ;;  %v17581_v11 = vcombine.low %v229_v10, %v229_v10  ;;  %v17582_v12 = vcombine.high %v229_v10, %v229_v10  ;;  %v21652_v19 = vld [vmem:[%s23561_s21 + $0x208] sm:$0xff]   ;;  %v21655_v22 = vld [vmem:[%s23561_s21 + $0x2d0] sm:$0xff]   ;;  %v21658_v25 = vld [vmem:[%s23561_s21 + $0x258] sm:$0xff]  }
  0x5d   : > { %v21653_v20 = vld [vmem:[%s23561_s21 + $0x288] sm:$0xff]   ;;  %v21656_v23 = vld [vmem:[%s23561_s21 + $0x210] sm:$0xff]   ;;  %v21659_v26 = vld [vmem:[%s23561_s21 + $0x2d8] sm:$0xff]  }
  0x5e   : > { %19355 = vmatpush3.bf16.msra.mxu0 %v21600_v27  ;;  %v21657_v24 = vld [vmem:[%s23561_s21 + $0x290] sm:$0xff]   ;;  %v21660_v27 = vld [vmem:[%s23561_s21 + $0x218] sm:$0xff]   ;;  %v21666_v33 = vld [vmem:[%s23561_s21 + $0x268] sm:$0xff]  }
  0x5f   : > { %19377 = vmatpush3.bf16.msra.mxu1 %v21601_v28  ;;  %19356 = vmatprep.subr.bf16.mxu0 %v21602_v29  ;;  %v21661_v28 = vld [vmem:[%s23561_s21 + $0x298] sm:$0xff]   ;;  %v21662_v29 = vld [vmem:[%s23561_s21 + $0x260] sm:$0xff]   ;;  %v21667_v34 = vld [vmem:[%s23561_s21 + $0x2e8] sm:$0xff]  }
  0x60   : > { %19378 = vmatprep.subr.bf16.mxu1 %v21603_v30  ;;  %v21663_v30 = vld [vmem:[%s23561_s21 + $0x2e0] sm:$0xff]   ;;  %v21669_v36 = vld [vmem:[%s23561_s21 + $0x2a8] sm:$0xff]   ;;  %v21671_v38 = vld [vmem:[%s23561_s21 + $0x2f0] sm:$0xff]  }
  0x61   : > { %v21702_v7 = vld [vmem:[%s23561_s21 + $0x368] sm:$0xff]  }
  0x62   : > { %19357 = vmatpush3.bf16.msra.mxu0 %v21604_v31  ;;  %v21664_v31 = vld [vmem:[%s23561_s21 + $0x220] sm:$0xff]   ;;  %v21705_v10 = vld [vmem:[%s23561_s21 + $0x3a8] sm:$0xff]  }
  0x63   : > { %19379 = vmatpush3.bf16.msra.mxu1 %v21605_v32  ;;  %19386 = vmatprep.subr.bf16.mxu0 %v21610_v39  ;;  %v21665_v32 = vld [vmem:[%s23561_s21 + $0x2a0] sm:$0xff]   ;;  %v21672_v39 = vld [vmem:[%s23561_s21 + $0x230] sm:$0xff]  }
  0x64   : > { %19408 = vmatprep.subr.bf16.mxu1 %v21611_v40  ;;  %v21673_v40 = vld [vmem:[%s23561_s21 + $0x2b0] sm:$0xff]  }
  0x65   : > { %13587 = vmatmul.mubr.bf16.vlgmr.msra.gmra.mrb[0].mxu0 %v17575_v35  ;;  %v21668_v35 = vld [vmem:[%s23561_s21 + $0x228] sm:$0xff]  }
  0x66   : > { %13627 = vmatmul.mubr.bf16.vlgmr.msra.gmra.mrb[0].mxu1 %v17577_v37  ;;  %19387 = vmatpush3.bf16.msra.mxu0 %v21612_v41  ;;  %v21670_v37 = vld [vmem:[%s23561_s21 + $0x270] sm:$0xff]   ;;  %v21674_v41 = vld [vmem:[%s23561_s21 + $0x278] sm:$0xff]  }
  0x67   : > { %19409 = vmatpush3.bf16.msra.mxu1 %v21613_v42  ;;  %19388 = vmatprep.subr.bf16.mxu0 %v21614_v43  ;;  %v21675_v42 = vld [vmem:[%s23561_s21 + $0x2f8] sm:$0xff]  }
  0x68   : > { %19410 = vmatprep.subr.bf16.mxu1 %v21615_v44  ;;  %13666 = vmatprep.mubr.bf16.mxu0 %v17580_v9  ;;  %v21676_v43 = vld [vmem:[%s23561_s21 + $0x238] sm:$0xff]   ;;  %v21704_v9 = vld [vmem:[%s23561_s21 + $0x328] sm:$0xff]  }
  0x69   : > { %13706 = vmatprep.mubr.bf16.mxu1 %v17582_v12  ;;  %v21677_v44 = vld [vmem:[%s23561_s21 + $0x2b8] sm:$0xff]   ;;  %v21707_v12 = vld [vmem:[%s23561_s21 + $0x3f0] sm:$0xff]  }
  0x6a   : > { %19389 = vmatpush3.bf16.msra.mxu0 %v21616_v45  ;;  %v230_v45 = vld [vmem:[%s23579_s28 + $0x20] sm:$0x77] }
  0x6b   : > { %19411 = vmatpush3.bf16.msra.mxu1 %v21617_v46  ;;  %19390 = vmatprep.subr.bf16.mxu0 %v21618_v47  ;;  %v231_v46 = vld [vmem:[%s23579_s28 + $0x28] sm:$0x77]  ;;  %v17583_v47 = vcombine.low %v230_v45, %v230_v45 }
  0x6c   : > { %19412 = vmatprep.subr.bf16.mxu1 %v21619_v48  ;;  %v17584_v48 = vcombine.high %v230_v45, %v230_v45  ;;  %v21738_v45 = vld [vmem:[%s23561_s21 + $0x468] sm:$0xff]  }
  0x6e   : > { %19391 = vmatpush3.bf16.msra.mxu0 %v21620_v49  ;;  %v17585_v49 = vcombine.low %v231_v46, %v231_v46 }
  0x6f   : > { %19413 = vmatpush3.bf16.msra.mxu1 %v21621_v50  ;;  %19392 = vmatprep.subr.bf16.mxu0 %v21622_v51  ;;  %v17586_v50 = vcombine.high %v231_v46, %v231_v46  ;;  %v21682_v51 = vld [vmem:[%s23561_s21 + $0x340] sm:$0xff]   ;;  %v21739_v46 = vld [vmem:[%s23561_s21 + $0x4e8] sm:$0xff]  }
  0x70   : > { %19414 = vmatprep.subr.bf16.mxu1 %v21623_v52  ;;  %v21683_v52 = vld [vmem:[%s23561_s21 + $0x3c0] sm:$0xff]  }
  0x72   : > { %19393 = vmatpush3.bf16.msra.mxu0 %v21624_v53  ;;  %v21684_v53 = vld [vmem:[%s23561_s21 + $0x300] sm:$0xff]  }
  0x73   : > { %19415 = vmatpush3.bf16.msra.mxu1 %v21625_v54  ;;  %19394 = vmatprep.subr.bf16.mxu0 %v21626_v55  ;;  %v21685_v54 = vld [vmem:[%s23561_s21 + $0x380] sm:$0xff]   ;;  %v21686_v55 = vld [vmem:[%s23561_s21 + $0x348] sm:$0xff]  }
  0x74   : > { %19416 = vmatprep.subr.bf16.mxu1 %v21627_v56  ;;  %v21687_v56 = vld [vmem:[%s23561_s21 + $0x3c8] sm:$0xff]  }
  0x76   : > { %19395 = vmatpush3.bf16.msra.mxu0 %v21628_v57  ;;  %v21688_v57 = vld [vmem:[%s23561_s21 + $0x308] sm:$0xff]  }
  0x77   : > { %19417 = vmatpush3.bf16.msra.mxu1 %v21629_v58  ;;  %19396 = vmatprep.subr.bf16.mxu0 %v21630_v59  ;;  %v21689_v58 = vld [vmem:[%s23561_s21 + $0x388] sm:$0xff]   ;;  %v21690_v59 = vld [vmem:[%s23561_s21 + $0x350] sm:$0xff]  }
  0x78   : > { %19418 = vmatprep.subr.bf16.mxu1 %v21631_v60  ;;  %v21691_v60 = vld [vmem:[%s23561_s21 + $0x3d0] sm:$0xff]  }
  0x7a   : > { %19397 = vmatpush3.bf16.msra.mxu0 %v21632_v61  ;;  %v21692_v61 = vld [vmem:[%s23561_s21 + $0x310] sm:$0xff]  }
  0x7b   : > { %19419 = vmatpush3.bf16.msra.mxu1 %v21633_v62  ;;  %19398 = vmatprep.subr.bf16.mxu0 %v21634_v63  ;;  %v21693_v62 = vld [vmem:[%s23561_s21 + $0x390] sm:$0xff]   ;;  %v21694_v63 = vld [vmem:[%s23561_s21 + $0x358] sm:$0xff]  }
  0x7c   : > { %19420 = vmatprep.subr.bf16.mxu1 %v21635_v0  ;;  %v21695_v0 = vld [vmem:[%s23561_s21 + $0x3d8] sm:$0xff]  }
  0x7e   : > { %19399 = vmatpush3.bf16.msra.mxu0 %v21636_v1  ;;  %v21696_v1 = vld [vmem:[%s23561_s21 + $0x318] sm:$0xff]  }
  0x7f   : > { %19421 = vmatpush3.bf16.msra.mxu1 %v21637_v2  ;;  %19400 = vmatprep.subr.bf16.mxu0 %v21638_v3  ;;  %v21697_v2 = vld [vmem:[%s23561_s21 + $0x398] sm:$0xff]   ;;  %v21698_v3 = vld [vmem:[%s23561_s21 + $0x360] sm:$0xff]  }
  0x80   : > { %19422 = vmatprep.subr.bf16.mxu1 %v21639_v4  ;;  %v21699_v4 = vld [vmem:[%s23561_s21 + $0x3e0] sm:$0xff]  }
  0x82   : > { %19401 = vmatpush3.bf16.msra.mxu0 %v21640_v5  ;;  %v21700_v5 = vld [vmem:[%s23561_s21 + $0x320] sm:$0xff]  }
  0x83   : > { %19423 = vmatpush3.bf16.msra.mxu1 %v21641_v6  ;;  %19430 = vmatprep.subr.bf16.mxu0 %v21646_v13  ;;  %v21701_v6 = vld [vmem:[%s23561_s21 + $0x3a0] sm:$0xff]   ;;  %v21708_v13 = vld [vmem:[%s23561_s21 + $0x330] sm:$0xff]  }
  0x84   : > { %19452 = vmatprep.subr.bf16.mxu1 %v21647_v14  ;;  %v21709_v14 = vld [vmem:[%s23561_s21 + $0x3b0] sm:$0xff]  }
  0x85   : > { %13667 = vmatmul.mubr.bf16.vlgmr.msra.gmra.mrb[4].mxu0 %v17579_v8  ;;  %v21703_v8 = vld [vmem:[%s23561_s21 + $0x3e8] sm:$0xff]  }
  0x86   : > { %13707 = vmatmul.mubr.bf16.vlgmr.msra.gmra.mrb[4].mxu1 %v17581_v11  ;;  %19431 = vmatpush3.bf16.msra.mxu0 %v21648_v15  ;;  %v21706_v11 = vld [vmem:[%s23561_s21 + $0x370] sm:$0xff]   ;;  %v21710_v15 = vld [vmem:[%s23561_s21 + $0x378] sm:$0xff]  }
  0x87   : > { %19453 = vmatpush3.bf16.msra.mxu1 %v21649_v16  ;;  %19432 = vmatprep.subr.bf16.mxu0 %v21650_v17  ;;  %v21711_v16 = vld [vmem:[%s23561_s21 + $0x3f8] sm:$0xff]  }
  0x88   : > { %19454 = vmatprep.subr.bf16.mxu1 %v21651_v18  ;;  %13746 = vmatprep.mubr.bf16.mxu0 %v17584_v48  ;;  %v21712_v17 = vld [vmem:[%s23561_s21 + $0x338] sm:$0xff]   ;;  %v21741_v48 = vld [vmem:[%s23561_s21 + $0x4a8] sm:$0xff]  }
  0x89   : > { %13786 = vmatprep.mubr.bf16.mxu1 %v17586_v50  ;;  %v21713_v18 = vld [vmem:[%s23561_s21 + $0x3b8] sm:$0xff]   ;;  %v21743_v50 = vld [vmem:[%s23561_s21 + $0x4f0] sm:$0xff]  }
  0x8a   : > { %19433 = vmatpush3.bf16.msra.mxu0 %v21652_v19  ;;  %v232_v19 = vld [vmem:[%s23579_s28 + $0x30] sm:$0x77] }
  0x8b   : > { %19455 = vmatpush3.bf16.msra.mxu1 %v21653_v20  ;;  %19434 = vmatprep.subr.bf16.mxu0 %v21654_v21  ;;  %v233_v20 = vld [vmem:[%s23579_s28 + $0x38] sm:$0x77]  ;;  %v17587_v21 = vcombine.low %v232_v19, %v232_v19 }
  0x8c   : > { %19456 = vmatprep.subr.bf16.mxu1 %v21655_v22  ;;  %v17588_v22 = vcombine.high %v232_v19, %v232_v19  ;;  %v21774_v19 = vld [vmem:[%s23561_s21 + $0x568] sm:$0xff]  }
  0x8e   : > { %19435 = vmatpush3.bf16.msra.mxu0 %v21656_v23  ;;  %v17589_v23 = vcombine.low %v233_v20, %v233_v20 }
  0x8f   : > { %19457 = vmatpush3.bf16.msra.mxu1 %v21657_v24  ;;  %19436 = vmatprep.subr.bf16.mxu0 %v21658_v25  ;;  %v21718_v24 = vld [vmem:[%s23561_s21 + $0x440] sm:$0xff]   ;;  %v17590_v25 = vcombine.high %v233_v20, %v233_v20  ;;  %v21775_v20 = vld [vmem:[%s23561_s21 + $0x5e8] sm:$0xff]  }
  0x90   : > { %19458 = vmatprep.subr.bf16.mxu1 %v21659_v26  ;;  %v21719_v26 = vld [vmem:[%s23561_s21 + $0x4c0] sm:$0xff]  }
  0x92   : > { %19437 = vmatpush3.bf16.msra.mxu0 %v21660_v27  ;;  %v21720_v27 = vld [vmem:[%s23561_s21 + $0x400] sm:$0xff]  }
  0x93   : > { %19459 = vmatpush3.bf16.msra.mxu1 %v21661_v28  ;;  %19438 = vmatprep.subr.bf16.mxu0 %v21662_v29  ;;  %v21721_v28 = vld [vmem:[%s23561_s21 + $0x480] sm:$0xff]   ;;  %v21722_v29 = vld [vmem:[%s23561_s21 + $0x448] sm:$0xff]  }
  0x94   : > { %19460 = vmatprep.subr.bf16.mxu1 %v21663_v30  ;;  %v21723_v30 = vld [vmem:[%s23561_s21 + $0x4c8] sm:$0xff]  }
  0x96   : > { %19439 = vmatpush3.bf16.msra.mxu0 %v21664_v31  ;;  %v21724_v31 = vld [vmem:[%s23561_s21 + $0x408] sm:$0xff]  }
  0x97   : > { %19461 = vmatpush3.bf16.msra.mxu1 %v21665_v32  ;;  %19440 = vmatprep.subr.bf16.mxu0 %v21666_v33  ;;  %v21725_v32 = vld [vmem:[%s23561_s21 + $0x488] sm:$0xff]   ;;  %v21726_v33 = vld [vmem:[%s23561_s21 + $0x450] sm:$0xff]  }
  0x98   : > { %19462 = vmatprep.subr.bf16.mxu1 %v21667_v34  ;;  %v21727_v34 = vld [vmem:[%s23561_s21 + $0x4d0] sm:$0xff]  }
  0x9a   : > { %19441 = vmatpush3.bf16.msra.mxu0 %v21668_v35  ;;  %v21728_v35 = vld [vmem:[%s23561_s21 + $0x410] sm:$0xff]  }
  0x9b   : > { %19463 = vmatpush3.bf16.msra.mxu1 %v21669_v36  ;;  %19442 = vmatprep.subr.bf16.mxu0 %v21670_v37  ;;  %v21729_v36 = vld [vmem:[%s23561_s21 + $0x490] sm:$0xff]   ;;  %v21730_v37 = vld [vmem:[%s23561_s21 + $0x458] sm:$0xff]  }
  0x9c   : > { %19464 = vmatprep.subr.bf16.mxu1 %v21671_v38  ;;  %v21731_v38 = vld [vmem:[%s23561_s21 + $0x4d8] sm:$0xff]  }
  0x9e   : > { %19443 = vmatpush3.bf16.msra.mxu0 %v21672_v39  ;;  %v21732_v39 = vld [vmem:[%s23561_s21 + $0x418] sm:$0xff]  }
  0x9f   : > { %19465 = vmatpush3.bf16.msra.mxu1 %v21673_v40  ;;  %19444 = vmatprep.subr.bf16.mxu0 %v21674_v41  ;;  %v21733_v40 = vld [vmem:[%s23561_s21 + $0x498] sm:$0xff]   ;;  %v21734_v41 = vld [vmem:[%s23561_s21 + $0x460] sm:$0xff]  }
  0xa0   : > { %19466 = vmatprep.subr.bf16.mxu1 %v21675_v42  ;;  %v21735_v42 = vld [vmem:[%s23561_s21 + $0x4e0] sm:$0xff]  }
  0xa2   : > { %19445 = vmatpush3.bf16.msra.mxu0 %v21676_v43  ;;  %v21736_v43 = vld [vmem:[%s23561_s21 + $0x420] sm:$0xff]  }
  0xa3   : > { %19467 = vmatpush3.bf16.msra.mxu1 %v21677_v44  ;;  %19474 = vmatprep.subr.bf16.mxu0 %v21682_v51  ;;  %v21737_v44 = vld [vmem:[%s23561_s21 + $0x4a0] sm:$0xff]   ;;  %v21744_v51 = vld [vmem:[%s23561_s21 + $0x430] sm:$0xff]  }
  0xa4   : > { %19496 = vmatprep.subr.bf16.mxu1 %v21683_v52  ;;  %v21745_v52 = vld [vmem:[%s23561_s21 + $0x4b0] sm:$0xff]  }
  0xa5   : > { %13747 = vmatmul.mubr.bf16.vlgmr.msra.gmra.mrb[8].mxu0 %v17583_v47  ;;  %v21740_v47 = vld [vmem:[%s23561_s21 + $0x428] sm:$0xff]  }
  0xa6   : > { %13787 = vmatmul.mubr.bf16.vlgmr.msra.gmra.mrb[8].mxu1 %v17585_v49  ;;  %19475 = vmatpush3.bf16.msra.mxu0 %v21684_v53  ;;  %v21742_v49 = vld [vmem:[%s23561_s21 + $0x470] sm:$0xff]   ;;  %v21746_v53 = vld [vmem:[%s23561_s21 + $0x478] sm:$0xff]  }
  0xa7   : > { %19497 = vmatpush3.bf16.msra.mxu1 %v21685_v54  ;;  %19476 = vmatprep.subr.bf16.mxu0 %v21686_v55  ;;  %v21747_v54 = vld [vmem:[%s23561_s21 + $0x4f8] sm:$0xff]  }
  0xa8   : > { %19498 = vmatprep.subr.bf16.mxu1 %v21687_v56  ;;  %13826 = vmatprep.mubr.bf16.mxu0 %v17588_v22  ;;  %v21748_v55 = vld [vmem:[%s23561_s21 + $0x438] sm:$0xff]   ;;  %v21777_v22 = vld [vmem:[%s23561_s21 + $0x5a8] sm:$0xff]  }
  0xa9   : > { %13866 = vmatprep.mubr.bf16.mxu1 %v17590_v25  ;;  %v21749_v56 = vld [vmem:[%s23561_s21 + $0x4b8] sm:$0xff]   ;;  %v21780_v25 = vld [vmem:[%s23561_s21 + $0x530] sm:$0xff]  }
  0xaa   : > { %19477 = vmatpush3.bf16.msra.mxu0 %v21688_v57  ;;  %v234_v57 = vld [vmem:[%s23579_s28 + $0x40] sm:$0x77] }
  0xab   : > { %19499 = vmatpush3.bf16.msra.mxu1 %v21689_v58  ;;  %19478 = vmatprep.subr.bf16.mxu0 %v21690_v59  ;;  %v17591_v58 = vcombine.low %v234_v57, %v234_v57  ;;  %v17592_v59 = vcombine.high %v234_v57, %v234_v57  ;;  %v21810_v57 = vld [vmem:[%s23561_s21 + $0x668] sm:$0xff]  }
  0xac   : > { %19500 = vmatprep.subr.bf16.mxu1 %v21691_v60  ;;  %v235_v60 = vld [vmem:[%s23579_s28 + $0x48] sm:$0x77] }
  0xae   : > { %19479 = vmatpush3.bf16.msra.mxu0 %v21692_v61  ;;  %v17593_v61 = vcombine.low %v235_v60, %v235_v60 }
  0xaf   : > { %19501 = vmatpush3.bf16.msra.mxu1 %v21693_v62  ;;  %19480 = vmatprep.subr.bf16.mxu0 %v21694_v63  ;;  %v17594_v62 = vcombine.high %v235_v60, %v235_v60  ;;  %v21754_v63 = vld [vmem:[%s23561_s21 + $0x540] sm:$0xff]   ;;  %v21813_v60 = vld [vmem:[%s23561_s21 + $0x6a8] sm:$0xff]  }
  0xb0   : > { %19502 = vmatprep.subr.bf16.mxu1 %v21695_v0  ;;  %v21755_v0 = vld [vmem:[%s23561_s21 + $0x5c0] sm:$0xff]  }
  0xb2   : > { %19481 = vmatpush3.bf16.msra.mxu0 %v21696_v1  ;;  %v21756_v1 = vld [vmem:[%s23561_s21 + $0x500] sm:$0xff]  }
  0xb3   : > { %19503 = vmatpush3.bf16.msra.mxu1 %v21697_v2  ;;  %19482 = vmatprep.subr.bf16.mxu0 %v21698_v3  ;;  %v21757_v2 = vld [vmem:[%s23561_s21 + $0x580] sm:$0xff]   ;;  %v21758_v3 = vld [vmem:[%s23561_s21 + $0x548] sm:$0xff]  }
  0xb4   : > { %19504 = vmatprep.subr.bf16.mxu1 %v21699_v4  ;;  %v21759_v4 = vld [vmem:[%s23561_s21 + $0x5c8] sm:$0xff]  }
  0xb6   : > { %19483 = vmatpush3.bf16.msra.mxu0 %v21700_v5  ;;  %v21760_v5 = vld [vmem:[%s23561_s21 + $0x508] sm:$0xff]  }
  0xb7   : > { %19505 = vmatpush3.bf16.msra.mxu1 %v21701_v6  ;;  %19484 = vmatprep.subr.bf16.mxu0 %v21702_v7  ;;  %v21761_v6 = vld [vmem:[%s23561_s21 + $0x588] sm:$0xff]   ;;  %v21762_v7 = vld [vmem:[%s23561_s21 + $0x550] sm:$0xff]  }
  0xb8   : > { %19506 = vmatprep.subr.bf16.mxu1 %v21703_v8  ;;  %v21763_v8 = vld [vmem:[%s23561_s21 + $0x5d0] sm:$0xff]  }
  0xba   : > { %19485 = vmatpush3.bf16.msra.mxu0 %v21704_v9  ;;  %v21764_v9 = vld [vmem:[%s23561_s21 + $0x510] sm:$0xff]  }
  0xbb   : > { %19507 = vmatpush3.bf16.msra.mxu1 %v21705_v10  ;;  %19486 = vmatprep.subr.bf16.mxu0 %v21706_v11  ;;  %v21765_v10 = vld [vmem:[%s23561_s21 + $0x590] sm:$0xff]   ;;  %v21766_v11 = vld [vmem:[%s23561_s21 + $0x558] sm:$0xff]  }
  0xbc   : > { %19508 = vmatprep.subr.bf16.mxu1 %v21707_v12  ;;  %v21767_v12 = vld [vmem:[%s23561_s21 + $0x5d8] sm:$0xff]  }
  0xbe   : > { %19487 = vmatpush3.bf16.msra.mxu0 %v21708_v13  ;;  %v21768_v13 = vld [vmem:[%s23561_s21 + $0x518] sm:$0xff]  }
  0xbf   : > { %19509 = vmatpush3.bf16.msra.mxu1 %v21709_v14  ;;  %19488 = vmatprep.subr.bf16.mxu0 %v21710_v15  ;;  %v21769_v14 = vld [vmem:[%s23561_s21 + $0x598] sm:$0xff]   ;;  %v21770_v15 = vld [vmem:[%s23561_s21 + $0x560] sm:$0xff]  }
  0xc0   : > { %19510 = vmatprep.subr.bf16.mxu1 %v21711_v16  ;;  %v21771_v16 = vld [vmem:[%s23561_s21 + $0x5e0] sm:$0xff]  }
  0xc2   : > { %19489 = vmatpush3.bf16.msra.mxu0 %v21712_v17  ;;  %v21772_v17 = vld [vmem:[%s23561_s21 + $0x520] sm:$0xff]  }
  0xc3   : > { %19511 = vmatpush3.bf16.msra.mxu1 %v21713_v18  ;;  %19518 = vmatprep.subr.bf16.mxu0 %v21718_v24  ;;  %v21773_v18 = vld [vmem:[%s23561_s21 + $0x5a0] sm:$0xff]   ;;  %v21779_v24 = vld [vmem:[%s23561_s21 + $0x5f0] sm:$0xff]  }
  0xc4   : > { %19540 = vmatprep.subr.bf16.mxu1 %v21719_v26  ;;  %v21781_v26 = vld [vmem:[%s23561_s21 + $0x5b0] sm:$0xff]  }
  0xc5   : > { %13827 = vmatmul.mubr.bf16.vlgmr.msra.gmra.mrb[12].mxu0 %v17587_v21  ;;  %v21776_v21 = vld [vmem:[%s23561_s21 + $0x528] sm:$0xff]  }
  0xc6   : > { %13867 = vmatmul.mubr.bf16.vlgmr.msra.gmra.mrb[12].mxu1 %v17589_v23  ;;  %19519 = vmatpush3.bf16.msra.mxu0 %v21720_v27  ;;  %v21778_v23 = vld [vmem:[%s23561_s21 + $0x570] sm:$0xff]   ;;  %v21782_v27 = vld [vmem:[%s23561_s21 + $0x578] sm:$0xff]  }
  0xc7   : > { %19541 = vmatpush3.bf16.msra.mxu1 %v21721_v28  ;;  %19520 = vmatprep.subr.bf16.mxu0 %v21722_v29  ;;  %v21783_v28 = vld [vmem:[%s23561_s21 + $0x5f8] sm:$0xff]  }
  0xc8   : > { %19542 = vmatprep.subr.bf16.mxu1 %v21723_v30  ;;  %13906 = vmatprep.mubr.bf16.mxu0 %v17592_v59  ;;  %v21784_v29 = vld [vmem:[%s23561_s21 + $0x538] sm:$0xff]   ;;  %v21812_v59 = vld [vmem:[%s23561_s21 + $0x628] sm:$0xff]  }
  0xc9   : > { %13946 = vmatprep.mubr.bf16.mxu1 %v17594_v62  ;;  %v21785_v30 = vld [vmem:[%s23561_s21 + $0x5b8] sm:$0xff]   ;;  %v21815_v62 = vld [vmem:[%s23561_s21 + $0x6f0] sm:$0xff]  }
  0xca   : > { %19521 = vmatpush3.bf16.msra.mxu0 %v21724_v31  ;;  %v236_v31 = vld [vmem:[%s23579_s28 + $0x50] sm:$0x77] }
  0xcb   : > { %19543 = vmatpush3.bf16.msra.mxu1 %v21725_v32  ;;  %19522 = vmatprep.subr.bf16.mxu0 %v21726_v33  ;;  %v237_v32 = vld [vmem:[%s23579_s28 + $0x58] sm:$0x77]  ;;  %v17595_v33 = vcombine.low %v236_v31, %v236_v31 }
  0xcc   : > { %19544 = vmatprep.subr.bf16.mxu1 %v21727_v34  ;;  %v17596_v34 = vcombine.high %v236_v31, %v236_v31  ;;  %v21845_v31 = vld [vmem:[%s23561_s21 + $0x7a0] sm:$0xff]  }
  0xce   : > { %19523 = vmatpush3.bf16.msra.mxu0 %v21728_v35  ;;  %v17597_v35 = vcombine.low %v237_v32, %v237_v32 }
  0xcf   : > { %19545 = vmatpush3.bf16.msra.mxu1 %v21729_v36  ;;  %19524 = vmatprep.subr.bf16.mxu0 %v21730_v37  ;;  %v17598_v36 = vcombine.high %v237_v32, %v237_v32  ;;  %v21790_v37 = vld [vmem:[%s23561_s21 + $0x640] sm:$0xff]  }
  0xd0   : > { %19546 = vmatprep.subr.bf16.mxu1 %v21731_v38  ;;  %v21791_v38 = vld [vmem:[%s23561_s21 + $0x6c0] sm:$0xff]  }
  0xd2   : > { %19525 = vmatpush3.bf16.msra.mxu0 %v21732_v39  ;;  %v21792_v39 = vld [vmem:[%s23561_s21 + $0x600] sm:$0xff]  }
  0xd3   : > { %19547 = vmatpush3.bf16.msra.mxu1 %v21733_v40  ;;  %19526 = vmatprep.subr.bf16.mxu0 %v21734_v41  ;;  %v21793_v40 = vld [vmem:[%s23561_s21 + $0x680] sm:$0xff]   ;;  %v21794_v41 = vld [vmem:[%s23561_s21 + $0x648] sm:$0xff]  }
  0xd4   : > { %19548 = vmatprep.subr.bf16.mxu1 %v21735_v42  ;;  %v21795_v42 = vld [vmem:[%s23561_s21 + $0x6c8] sm:$0xff]  }
  0xd6   : > { %19527 = vmatpush3.bf16.msra.mxu0 %v21736_v43  ;;  %v21796_v43 = vld [vmem:[%s23561_s21 + $0x608] sm:$0xff]  }
  0xd7   : > { %19549 = vmatpush3.bf16.msra.mxu1 %v21737_v44  ;;  %19528 = vmatprep.subr.bf16.mxu0 %v21738_v45  ;;  %v21797_v44 = vld [vmem:[%s23561_s21 + $0x688] sm:$0xff]   ;;  %v21798_v45 = vld [vmem:[%s23561_s21 + $0x650] sm:$0xff]  }
  0xd8   : > { %19550 = vmatprep.subr.bf16.mxu1 %v21739_v46  ;;  %v21799_v46 = vld [vmem:[%s23561_s21 + $0x6d0] sm:$0xff]  }
  0xda   : > { %19529 = vmatpush3.bf16.msra.mxu0 %v21740_v47  ;;  %v21800_v47 = vld [vmem:[%s23561_s21 + $0x610] sm:$0xff]  }
  0xdb   : > { %19551 = vmatpush3.bf16.msra.mxu1 %v21741_v48  ;;  %19530 = vmatprep.subr.bf16.mxu0 %v21742_v49  ;;  %v21801_v48 = vld [vmem:[%s23561_s21 + $0x690] sm:$0xff]   ;;  %v21802_v49 = vld [vmem:[%s23561_s21 + $0x658] sm:$0xff]  }
  0xdc   : > { %19552 = vmatprep.subr.bf16.mxu1 %v21743_v50  ;;  %v21803_v50 = vld [vmem:[%s23561_s21 + $0x6d8] sm:$0xff]  }
  0xde   : > { %19531 = vmatpush3.bf16.msra.mxu0 %v21744_v51  ;;  %v21804_v51 = vld [vmem:[%s23561_s21 + $0x618] sm:$0xff]  }
  0xdf   : > { %19553 = vmatpush3.bf16.msra.mxu1 %v21745_v52  ;;  %19532 = vmatprep.subr.bf16.mxu0 %v21746_v53  ;;  %v21805_v52 = vld [vmem:[%s23561_s21 + $0x698] sm:$0xff]   ;;  %v21806_v53 = vld [vmem:[%s23561_s21 + $0x660] sm:$0xff]  }
  0xe0   : > { %19554 = vmatprep.subr.bf16.mxu1 %v21747_v54  ;;  %v21807_v54 = vld [vmem:[%s23561_s21 + $0x6e0] sm:$0xff]  }
  0xe2   : > { %19533 = vmatpush3.bf16.msra.mxu0 %v21748_v55  ;;  %v21808_v55 = vld [vmem:[%s23561_s21 + $0x620] sm:$0xff]  }
  0xe3   : > { %19555 = vmatpush3.bf16.msra.mxu1 %v21749_v56  ;;  %19562 = vmatprep.subr.bf16.mxu0 %v21754_v63  ;;  %v21809_v56 = vld [vmem:[%s23561_s21 + $0x6a0] sm:$0xff]   ;;  %v21816_v63 = vld [vmem:[%s23561_s21 + $0x630] sm:$0xff]  }
  0xe4   : > { %19584 = vmatprep.subr.bf16.mxu1 %v21755_v0  ;;  %v21817_v0 = vld [vmem:[%s23561_s21 + $0x6b0] sm:$0xff]  }
  0xe5   : > { %13907 = vmatmul.mubr.bf16.vlgmr.msra.gmra.mrb[16].mxu0 %v17591_v58  ;;  %v21811_v58 = vld [vmem:[%s23561_s21 + $0x6e8] sm:$0xff]  }
  0xe6   : > { %13947 = vmatmul.mubr.bf16.vlgmr.msra.gmra.mrb[16].mxu1 %v17593_v61  ;;  %19563 = vmatpush3.bf16.msra.mxu0 %v21756_v1  ;;  %v21814_v61 = vld [vmem:[%s23561_s21 + $0x670] sm:$0xff]   ;;  %v21818_v1 = vld [vmem:[%s23561_s21 + $0x678] sm:$0xff]  }
  0xe7   : > { %19585 = vmatpush3.bf16.msra.mxu1 %v21757_v2  ;;  %19564 = vmatprep.subr.bf16.mxu0 %v21758_v3  ;;  %v21819_v2 = vld [vmem:[%s23561_s21 + $0x6f8] sm:$0xff]  }
  0xe8   : > { %19586 = vmatprep.subr.bf16.mxu1 %v21759_v4  ;;  %13986 = vmatprep.mubr.bf16.mxu0 %v17596_v34  ;;  %v21820_v3 = vld [vmem:[%s23561_s21 + $0x638] sm:$0xff]   ;;  %v21846_v34 = vld [vmem:[%s23561_s21 + $0x768] sm:$0xff]  }
  0xe9   : > { %14026 = vmatprep.mubr.bf16.mxu1 %v17598_v36  ;;  %v21821_v4 = vld [vmem:[%s23561_s21 + $0x6b8] sm:$0xff]  }
  0xea   : > { %19565 = vmatpush3.bf16.msra.mxu0 %v21760_v5  ;;  %v238_v5 = vld [vmem:[%s23579_s28 + $0x60] sm:$0x77] }
  0xeb   : > { %19587 = vmatpush3.bf16.msra.mxu1 %v21761_v6  ;;  %19566 = vmatprep.subr.bf16.mxu0 %v21762_v7  ;;  %v239_v6 = vld [vmem:[%s23579_s28 + $0x68] sm:$0x77]  ;;  %v17599_v7 = vcombine.low %v238_v5, %v238_v5 }
  0xec   : > { %19588 = vmatprep.subr.bf16.mxu1 %v21763_v8  ;;  %v17600_v8 = vcombine.high %v238_v5, %v238_v5  ;;  %v21871_v5 = vld [vmem:[%s23561_s21 + $0x8d0] sm:$0xff]  }
  0xee   : > { %19567 = vmatpush3.bf16.msra.mxu0 %v21764_v9  ;;  %v17601_v9 = vcombine.low %v239_v6, %v239_v6 }
  0xef   : > { %19589 = vmatpush3.bf16.msra.mxu1 %v21765_v10  ;;  %19568 = vmatprep.subr.bf16.mxu0 %v21766_v11  ;;  %v21826_v10 = vld [vmem:[%s23561_s21 + $0x740] sm:$0xff]   ;;  %v17602_v11 = vcombine.high %v239_v6, %v239_v6  ;;  %v21872_v6 = vld [vmem:[%s23561_s21 + $0x810] sm:$0xff]  }
  0xf0   : > { %19590 = vmatprep.subr.bf16.mxu1 %v21767_v12  ;;  %v21827_v12 = vld [vmem:[%s23561_s21 + $0x7c0] sm:$0xff]  }
  0xf2   : > { %19569 = vmatpush3.bf16.msra.mxu0 %v21768_v13  ;;  %v21828_v13 = vld [vmem:[%s23561_s21 + $0x700] sm:$0xff]  }
  0xf3   : > { %19591 = vmatpush3.bf16.msra.mxu1 %v21769_v14  ;;  %19570 = vmatprep.subr.bf16.mxu0 %v21770_v15  ;;  %v21829_v14 = vld [vmem:[%s23561_s21 + $0x780] sm:$0xff]   ;;  %v21830_v15 = vld [vmem:[%s23561_s21 + $0x748] sm:$0xff]  }
  0xf4   : > { %19592 = vmatprep.subr.bf16.mxu1 %v21771_v16  ;;  %v21831_v16 = vld [vmem:[%s23561_s21 + $0x7c8] sm:$0xff]  }
  0xf6   : > { %19571 = vmatpush3.bf16.msra.mxu0 %v21772_v17  ;;  %v21832_v17 = vld [vmem:[%s23561_s21 + $0x708] sm:$0xff]  }
  0xf7   : > { %19593 = vmatpush3.bf16.msra.mxu1 %v21773_v18  ;;  %19572 = vmatprep.subr.bf16.mxu0 %v21774_v19  ;;  %v21833_v18 = vld [vmem:[%s23561_s21 + $0x788] sm:$0xff]   ;;  %v21834_v19 = vld [vmem:[%s23561_s21 + $0x750] sm:$0xff]  }
  0xf8   : > { %19594 = vmatprep.subr.bf16.mxu1 %v21775_v20  ;;  %v21835_v20 = vld [vmem:[%s23561_s21 + $0x7d0] sm:$0xff]  }
  0xfa   : > { %19573 = vmatpush3.bf16.msra.mxu0 %v21776_v21  ;;  %v21836_v21 = vld [vmem:[%s23561_s21 + $0x710] sm:$0xff]  }
  0xfb   : > { %19595 = vmatpush3.bf16.msra.mxu1 %v21777_v22  ;;  %19574 = vmatprep.subr.bf16.mxu0 %v21778_v23  ;;  %v21837_v22 = vld [vmem:[%s23561_s21 + $0x790] sm:$0xff]   ;;  %v21838_v23 = vld [vmem:[%s23561_s21 + $0x758] sm:$0xff]  }
  0xfc   : > { %19596 = vmatprep.subr.bf16.mxu1 %v21779_v24  ;;  %v21839_v24 = vld [vmem:[%s23561_s21 + $0x7d8] sm:$0xff]  }
  0xfe   : > { %19575 = vmatpush3.bf16.msra.mxu0 %v21780_v25  ;;  %v21840_v25 = vld [vmem:[%s23561_s21 + $0x718] sm:$0xff]  }
  0xff   : > { %19597 = vmatpush3.bf16.msra.mxu1 %v21781_v26  ;;  %19576 = vmatprep.subr.bf16.mxu0 %v21782_v27  ;;  %v21841_v26 = vld [vmem:[%s23561_s21 + $0x798] sm:$0xff]   ;;  %v21842_v27 = vld [vmem:[%s23561_s21 + $0x760] sm:$0xff]  }
 0x100   : > { %19598 = vmatprep.subr.bf16.mxu1 %v21783_v28  ;;  %v21843_v28 = vld [vmem:[%s23561_s21 + $0x7e0] sm:$0xff]  }
 0x102   : > { %19577 = vmatpush3.bf16.msra.mxu0 %v21784_v29  ;;  %v21844_v29 = vld [vmem:[%s23561_s21 + $0x720] sm:$0xff]  }
 0x103   : > { %19599 = vmatpush3.bf16.msra.mxu1 %v21785_v30  ;;  %19606 = vmatprep.subr.bf16.mxu0 %v21790_v37  ;;  %v21847_v37 = vld [vmem:[%s23561_s21 + $0x7e8] sm:$0xff]  }
 0x104   : > { %19628 = vmatprep.subr.bf16.mxu1 %v21791_v38 }
 0x105   : > { %13987 = vmatmul.mubr.bf16.vlgmr.msra.gmra.mrb[20].mxu0 %v17595_v33 }
 0x106   : > { %14027 = vmatmul.mubr.bf16.vlgmr.msra.gmra.mrb[20].mxu1 %v17597_v35  ;;  %19607 = vmatpush3.bf16.msra.mxu0 %v21792_v39 }
 0x107   : > { %19629 = vmatpush3.bf16.msra.mxu1 %v21793_v40  ;;  %19608 = vmatprep.subr.bf16.mxu0 %v21794_v41  ;;  %v21848_v41 = vld [vmem:[%s23561_s21 + $0x728] sm:$0xff]  }
 0x108   : > { %19630 = vmatprep.subr.bf16.mxu1 %v21795_v42  ;;  %14066 = vmatprep.mubr.bf16.mxu0 %v17600_v8  ;;  %v21874_v8 = vld [vmem:[%s23561_s21 + $0x858] sm:$0xff]  }
 0x109   : > { %14106 = vmatprep.mubr.bf16.mxu1 %v17602_v11  ;;  %v21877_v11 = vld [vmem:[%s23561_s21 + $0x898] sm:$0xff]  }
 0x10a   : > { %19609 = vmatpush3.bf16.msra.mxu0 %v21796_v43 }
 0x10b   : > { %19631 = vmatpush3.bf16.msra.mxu1 %v21797_v44  ;;  %19610 = vmatprep.subr.bf16.mxu0 %v21798_v45  ;;  %v21849_v44 = vld [vmem:[%s23561_s21 + $0x7a8] sm:$0xff]  }
 0x10c   : > { %19632 = vmatprep.subr.bf16.mxu1 %v21799_v46  ;;  %v21850_v46 = vld [vmem:[%s23561_s21 + $0x770] sm:$0xff]  }
 0x10e   : > { %19611 = vmatpush3.bf16.msra.mxu0 %v21800_v47  ;;  %v21851_v47 = vld [vmem:[%s23561_s21 + $0x7f0] sm:$0xff]  }
 0x10f   : > { %19633 = vmatpush3.bf16.msra.mxu1 %v21801_v48  ;;  %19612 = vmatprep.subr.bf16.mxu0 %v21802_v49  ;;  %v21852_v48 = vld [vmem:[%s23561_s21 + $0x730] sm:$0xff]  }
 0x110   : > { %19634 = vmatprep.subr.bf16.mxu1 %v21803_v50  ;;  %v21853_v49 = vld [vmem:[%s23561_s21 + $0x7b0] sm:$0xff]   ;;  %v21854_v50 = vld [vmem:[%s23561_s21 + $0x778] sm:$0xff]  }
 0x112   : > { %19613 = vmatpush3.bf16.msra.mxu0 %v21804_v51  ;;  %v21855_v51 = vld [vmem:[%s23561_s21 + $0x7f8] sm:$0xff]  }
 0x113   : > { %19635 = vmatpush3.bf16.msra.mxu1 %v21805_v52  ;;  %19614 = vmatprep.subr.bf16.mxu0 %v21806_v53  ;;  %v21856_v52 = vld [vmem:[%s23561_s21 + $0x738] sm:$0xff]  }
 0x114   : > { %19636 = vmatprep.subr.bf16.mxu1 %v21807_v54  ;;  %v21857_v53 = vld [vmem:[%s23561_s21 + $0x7b8] sm:$0xff]   ;;  %v240_v54 = vld [vmem:[%s23579_s28 + $0x70] sm:$0x77] }
 0x116   : > { %19615 = vmatpush3.bf16.msra.mxu0 %v21808_v55  ;;  %v241_v55 = vld [vmem:[%s23579_s28 + $0x78] sm:$0x77] }
 0x117   : > { %19637 = vmatpush3.bf16.msra.mxu1 %v21809_v56  ;;  %19616 = vmatprep.subr.bf16.mxu0 %v21810_v57  ;;  %v17603_v56 = vcombine.low %v240_v54, %v240_v54  ;;  %v17604_v57 = vcombine.high %v240_v54, %v240_v54  ;;  %v21906_v54 = vld [vmem:[%s23561_s21 + $0x950] sm:$0xff]  }
 0x118   : > { %19638 = vmatprep.subr.bf16.mxu1 %v21811_v58  ;;  %v17605_v58 = vcombine.low %v241_v55, %v241_v55 }
 0x11a   : > { %19617 = vmatpush3.bf16.msra.mxu0 %v21812_v59  ;;  %v21862_v59 = vld [vmem:[%s23561_s21 + $0x840] sm:$0xff]  }
 0x11b   : > { %19639 = vmatpush3.bf16.msra.mxu1 %v21813_v60  ;;  %19618 = vmatprep.subr.bf16.mxu0 %v21814_v61  ;;  %v17606_v60 = vcombine.high %v241_v55, %v241_v55  ;;  %v21863_v61 = vld [vmem:[%s23561_s21 + $0x8c0] sm:$0xff]   ;;  %v21907_v55 = vld [vmem:[%s23561_s21 + $0x9d0] sm:$0xff]  }
 0x11c   : > { %19640 = vmatprep.subr.bf16.mxu1 %v21815_v62  ;;  %v21864_v62 = vld [vmem:[%s23561_s21 + $0x800] sm:$0xff]  }
 0x11e   : > { %19619 = vmatpush3.bf16.msra.mxu0 %v21816_v63  ;;  %v21865_v63 = vld [vmem:[%s23561_s21 + $0x880] sm:$0xff]  }
 0x11f   : > { %19641 = vmatpush3.bf16.msra.mxu1 %v21817_v0  ;;  %19620 = vmatprep.subr.bf16.mxu0 %v21818_v1  ;;  %v21866_v0 = vld [vmem:[%s23561_s21 + $0x848] sm:$0xff]  }
 0x120   : > { %19642 = vmatprep.subr.bf16.mxu1 %v21819_v2  ;;  %v21867_v1 = vld [vmem:[%s23561_s21 + $0x8c8] sm:$0xff]  }
 0x121   : > { %v21868_v2 = vld [vmem:[%s23561_s21 + $0x808] sm:$0xff]  }
 0x122   : > { %19621 = vmatpush3.bf16.msra.mxu0 %v21820_v3  ;;  %v21869_v3 = vld [vmem:[%s23561_s21 + $0x888] sm:$0xff]  }
 0x123   : > { %19643 = vmatpush3.bf16.msra.mxu1 %v21821_v4  ;;  %19650 = vmatprep.subr.bf16.mxu0 %v21826_v10  ;;  %v21870_v4 = vld [vmem:[%s23561_s21 + $0x850] sm:$0xff]   ;;  %v21876_v10 = vld [vmem:[%s23561_s21 + $0x818] sm:$0xff]  }
 0x124   : > { %19672 = vmatprep.subr.bf16.mxu1 %v21827_v12  ;;  %v21878_v12 = vld [vmem:[%s23561_s21 + $0x860] sm:$0xff]  }
 0x125   : > { %14067 = vmatmul.mubr.bf16.vlgmr.msra.gmra.mrb[24].mxu0 %v17599_v7  ;;  %v21873_v7 = vld [vmem:[%s23561_s21 + $0x890] sm:$0xff]  }
 0x126   : > { %14107 = vmatmul.mubr.bf16.vlgmr.msra.gmra.mrb[24].mxu1 %v17601_v9  ;;  %19651 = vmatpush3.bf16.msra.mxu0 %v21828_v13  ;;  %v21875_v9 = vld [vmem:[%s23561_s21 + $0x8d8] sm:$0xff]   ;;  %v21879_v13 = vld [vmem:[%s23561_s21 + $0x8e0] sm:$0xff]  }
 0x127   : > { %19673 = vmatpush3.bf16.msra.mxu1 %v21829_v14  ;;  %19652 = vmatprep.subr.bf16.mxu0 %v21830_v15  ;;  %v21880_v14 = vld [vmem:[%s23561_s21 + $0x820] sm:$0xff]  }
 0x128   : > { %19674 = vmatprep.subr.bf16.mxu1 %v21831_v16  ;;  %14146 = vmatprep.mubr.bf16.mxu0 %v17604_v57  ;;  %v21881_v16 = vld [vmem:[%s23561_s21 + $0x8a0] sm:$0xff]   ;;  %v21909_v57 = vld [vmem:[%s23561_s21 + $0x990] sm:$0xff]  }
 0x129   : > { %14186 = vmatprep.mubr.bf16.mxu1 %v17606_v60  ;;  %v21912_v60 = vld [vmem:[%s23561_s21 + $0x918] sm:$0xff]  }
 0x12a   : > { %19653 = vmatpush3.bf16.msra.mxu0 %v21832_v17 }
 0x12b   : > { %19675 = vmatpush3.bf16.msra.mxu1 %v21833_v18  ;;  %19654 = vmatprep.subr.bf16.mxu0 %v21834_v19  ;;  %v21882_v19 = vld [vmem:[%s23561_s21 + $0x868] sm:$0xff]  }
 0x12c   : > { %19676 = vmatprep.subr.bf16.mxu1 %v21835_v20 }
 0x12e   : > { %19655 = vmatpush3.bf16.msra.mxu0 %v21836_v21 }
 0x12f   : > { %19677 = vmatpush3.bf16.msra.mxu1 %v21837_v22  ;;  %19656 = vmatprep.subr.bf16.mxu0 %v21838_v23  ;;  %v21883_v22 = vld [vmem:[%s23561_s21 + $0x8e8] sm:$0xff]  }
 0x130   : > { %19678 = vmatprep.subr.bf16.mxu1 %v21839_v24 }
 0x132   : > { %19657 = vmatpush3.bf16.msra.mxu0 %v21840_v25 }
 0x133   : > { %19679 = vmatpush3.bf16.msra.mxu1 %v21841_v26  ;;  %19658 = vmatprep.subr.bf16.mxu0 %v21842_v27  ;;  %v21884_v27 = vld [vmem:[%s23561_s21 + $0x828] sm:$0xff]  }
 0x134   : > { %19680 = vmatprep.subr.bf16.mxu1 %v21843_v28 }
 0x136   : > { %19659 = vmatpush3.bf16.msra.mxu0 %v21844_v29  ;;  %v21885_v29 = vld [vmem:[%s23561_s21 + $0x8a8] sm:$0xff]  }
 0x137   : > { %19681 = vmatpush3.bf16.msra.mxu1 %v21845_v31  ;;  %19660 = vmatprep.subr.bf16.mxu0 %v21846_v34  ;;  %v21888_v34 = vld [vmem:[%s23561_s21 + $0x830] sm:$0xff]  }
 0x138   : > { %v19358_v30 = vpop.f32.mrb[0].mxu0  ;;  %19682 = vmatprep.subr.bf16.mxu1 %v21847_v37  ;;  %v21891_v37 = vld [vmem:[%s23561_s21 + $0x8f8] sm:$0xff]  }
 0x139   : > { %v19380_v32 = vpop.f32.mrb[0].mxu1  ;;  %v19359_v33 = vpop.f32.mrb[1].mxu0 }
 0x13a   : > { %v19360_v35 = vadd.f32 %v19359_v33, %v19358_v30  ;;  %v19381_v36 = vpop.f32.mrb[1].mxu1  ;;  %v19361_v39 = vpop.f32.mrb[2].mxu0  ;;  %19661 = vmatpush3.bf16.msra.mxu0 %v21848_v41  ;;  %v21887_v33 = vld [vmem:[%s23561_s21 + $0x8f0] sm:$0xff]   ;;  %v243_v41 = vld [vmem:[%s23579_s28 + $0x88] sm:$0x77] }
 0x13b   : > { %v19382_v38 = vadd.f32 %v19381_v36, %v19380_v32  ;;  %v19383_v40 = vpop.f32.mrb[2].mxu1  ;;  %v19362_v42 = vpop.f32.mrb[3].mxu0  ;;  %19683 = vmatpush3.bf16.msra.mxu1 %v21849_v44  ;;  %19662 = vmatprep.subr.bf16.mxu0 %v21850_v46  ;;  %v21886_v32 = vld [vmem:[%s23561_s21 + $0x870] sm:$0xff]   ;;  %v21890_v36 = vld [vmem:[%s23561_s21 + $0x878] sm:$0xff]   ;;  %v17609_v44 = vcombine.low %v243_v41, %v243_v41  ;;  %v17610_v46 = vcombine.high %v243_v41, %v243_v41 }
 0x13c   : > { %v19384_v45 = vpop.f32.mrb[3].mxu1  ;;  %19684 = vmatprep.subr.bf16.mxu1 %v21851_v47  ;;  %v21893_v39 = vld [vmem:[%s23561_s21 + $0x8b8] sm:$0xff]   ;;  %v242_v40 = vld [vmem:[%s23579_s28 + $0x80] sm:$0x77]  ;;  %v21943_v41 = vld [vmem:[%s23561_s21 + $0xad0] sm:$0xff]  }
 0x13d   : > { %v23844_v43 = vadd.f32 %v19382_v38, %v19360_v35  ;;  %v21889_v35 = vld [vmem:[%s23561_s21 + $0x8b0] sm:$0xff]   ;;  %v21892_v38 = vld [vmem:[%s23561_s21 + $0x838] sm:$0xff]   ;;  %v17607_v42 = vcombine.low %v242_v40, %v242_v40  ;;  %v21898_v45 = vld [vmem:[%s23561_s21 + $0x940] sm:$0xff]  }
 0x13e   : > { %19663 = vmatpush3.bf16.msra.mxu0 %v21852_v48  ;;  %v21899_v47 = vld [vmem:[%s23561_s21 + $0x9c0] sm:$0xff]  }
 0x13f   : > { %19685 = vmatpush3.bf16.msra.mxu1 %v21853_v49  ;;  %19664 = vmatprep.subr.bf16.mxu0 %v21854_v50  ;;  %v21900_v48 = vld [vmem:[%s23561_s21 + $0x900] sm:$0xff]   ;;  %v21902_v50 = vld [vmem:[%s23561_s21 + $0x948] sm:$0xff]  }
 0x140   : > { %19686 = vmatprep.subr.bf16.mxu1 %v21855_v51  ;;  %v21901_v49 = vld [vmem:[%s23561_s21 + $0x980] sm:$0xff]   ;;  %v21903_v51 = vld [vmem:[%s23561_s21 + $0x9c8] sm:$0xff]  }
 0x142   : > { %19665 = vmatpush3.bf16.msra.mxu0 %v21856_v52  ;;  %v21904_v52 = vld [vmem:[%s23561_s21 + $0x908] sm:$0xff]  }
 0x143   : > { %19687 = vmatpush3.bf16.msra.mxu1 %v21857_v53  ;;  %19694 = vmatprep.subr.bf16.mxu0 %v21862_v59  ;;  %v21905_v53 = vld [vmem:[%s23561_s21 + $0x988] sm:$0xff]   ;;  %v21911_v59 = vld [vmem:[%s23561_s21 + $0x9d8] sm:$0xff]  }
 0x144   : > { %19716 = vmatprep.subr.bf16.mxu1 %v21863_v61  ;;  %v21913_v61 = vld [vmem:[%s23561_s21 + $0x998] sm:$0xff]  }
 0x145   : > { %14147 = vmatmul.mubr.bf16.vlgmr.msra.gmra.mrb[28].mxu0 %v17603_v56  ;;  %v21908_v56 = vld [vmem:[%s23561_s21 + $0x910] sm:$0xff]  }
 0x146   : > { %14187 = vmatmul.mubr.bf16.vlgmr.msra.gmra.mrb[28].mxu1 %v17605_v58  ;;  %19695 = vmatpush3.bf16.msra.mxu0 %v21864_v62  ;;  %v21910_v58 = vld [vmem:[%s23561_s21 + $0x958] sm:$0xff]   ;;  %v21914_v62 = vld [vmem:[%s23561_s21 + $0x960] sm:$0xff]  }
 0x147   : > { %19717 = vmatpush3.bf16.msra.mxu1 %v21865_v63  ;;  %19696 = vmatprep.subr.bf16.mxu0 %v21866_v0  ;;  %v21915_v63 = vld [vmem:[%s23561_s21 + $0x9e0] sm:$0xff]  }
 0x148   : > { %19718 = vmatprep.subr.bf16.mxu1 %v21867_v1  ;;  %14266 = vmatprep.mubr.bf16.mxu1 %v17610_v46  ;;  %v21916_v1 = vld [vmem:[%s23561_s21 + $0x920] sm:$0xff]   ;;  %v21948_v46 = vld [vmem:[%s23561_s21 + $0xa18] sm:$0xff]  }
 0x14a   : > { %19697 = vmatpush3.bf16.msra.mxu0 %v21868_v2 }
 0x14b   : > { %19719 = vmatpush3.bf16.msra.mxu1 %v21869_v3  ;;  %19698 = vmatprep.subr.bf16.mxu0 %v21870_v4  ;;  %v21917_v3 = vld [vmem:[%s23561_s21 + $0x9a0] sm:$0xff]  }
 0x14c   : > { %19720 = vmatprep.subr.bf16.mxu1 %v21871_v5 }
 0x14e   : > { %19699 = vmatpush3.bf16.msra.mxu0 %v21872_v6  ;;  %v21918_v6 = vld [vmem:[%s23561_s21 + $0x968] sm:$0xff]  }
 0x14f   : > { %19721 = vmatpush3.bf16.msra.mxu1 %v21873_v7  ;;  %19700 = vmatprep.subr.bf16.mxu0 %v21874_v8 }
 0x150   : > { %19722 = vmatprep.subr.bf16.mxu1 %v21875_v9  ;;  %v21919_v9 = vld [vmem:[%s23561_s21 + $0x9e8] sm:$0xff]  }
 0x152   : > { %19701 = vmatpush3.bf16.msra.mxu0 %v21876_v10 }
 0x153   : > { %19723 = vmatpush3.bf16.msra.mxu1 %v21877_v11  ;;  %19702 = vmatprep.subr.bf16.mxu0 %v21878_v12  ;;  %v21920_v12 = vld [vmem:[%s23561_s21 + $0x928] sm:$0xff]  }
 0x154   : > { %19724 = vmatprep.subr.bf16.mxu1 %v21879_v13 }
 0x156   : > { %19703 = vmatpush3.bf16.msra.mxu0 %v21880_v14  ;;  %v21921_v14 = vld [vmem:[%s23561_s21 + $0x9a8] sm:$0xff]  }
 0x157   : > { %19725 = vmatpush3.bf16.msra.mxu1 %v21881_v16  ;;  %19704 = vmatprep.subr.bf16.mxu0 %v21882_v19  ;;  %v21923_v19 = vld [vmem:[%s23561_s21 + $0x9f0] sm:$0xff]  }
 0x158   : > { %v19402_v15 = vpop.f32.mrb[4].mxu0  ;;  %19726 = vmatprep.subr.bf16.mxu1 %v21883_v22  ;;  %v21926_v22 = vld [vmem:[%s23561_s21 + $0x978] sm:$0xff]  }
 0x159   : > { %v19424_v17 = vpop.f32.mrb[4].mxu1  ;;  %v19403_v18 = vpop.f32.mrb[5].mxu0 }
 0x15a   : > { %v19404_v20 = vadd.f32 %v19403_v18, %v19402_v15  ;;  %v19425_v21 = vpop.f32.mrb[5].mxu1  ;;  %v19405_v24 = vpop.f32.mrb[6].mxu0  ;;  %19705 = vmatpush3.bf16.msra.mxu0 %v21884_v27 }
 0x15b   : > { %v19426_v23 = vadd.f32 %v19425_v21, %v19424_v17  ;;  %v19427_v25 = vpop.f32.mrb[6].mxu1  ;;  %v19406_v28 = vpop.f32.mrb[7].mxu0  ;;  %19727 = vmatpush3.bf16.msra.mxu1 %v21885_v29  ;;  %19706 = vmatprep.subr.bf16.mxu0 %v21886_v32  ;;  %v21922_v17 = vld [vmem:[%s23561_s21 + $0x970] sm:$0xff]   ;;  %v21928_v24 = vld [vmem:[%s23561_s21 + $0x938] sm:$0xff]   ;;  %v21934_v32 = vld [vmem:[%s23561_s21 + $0xa40] sm:$0xff]  }
 0x15c   : > { %v13669_v26 = vadd.f32 %v19404_v20, %v23844_v43  ;;  %v19428_v30 = vpop.f32.mrb[7].mxu1  ;;  %19728 = vmatprep.subr.bf16.mxu1 %v21887_v33  ;;  %v17608_v43 = vcombine.high %v242_v40, %v242_v40  ;;  %v21924_v20 = vld [vmem:[%s23561_s21 + $0x930] sm:$0xff]   ;;  %v21929_v25 = vld [vmem:[%s23561_s21 + $0x9b8] sm:$0xff]   ;;  %v21935_v33 = vld [vmem:[%s23561_s21 + $0xac0] sm:$0xff]  }
 0x15d   : > { %v21925_v21 = vld [vmem:[%s23561_s21 + $0x9b0] sm:$0xff]   ;;  %v245_v29 = vld [vmem:[%s23579_s28 + $0x98] sm:$0x77] }
 0x15e   : > { %v23882_v31 = vadd.f32 %v19426_v23, %v13669_v26  ;;  %19707 = vmatpush3.bf16.msra.mxu0 %v21888_v34  ;;  %14226 = vmatprep.mubr.bf16.mxu0 %v17608_v43  ;;  %v21927_v23 = vld [vmem:[%s23561_s21 + $0x9f8] sm:$0xff]   ;;  %v244_v26 = vld [vmem:[%s23579_s28 + $0x90] sm:$0x77]  ;;  %v17613_v30 = vcombine.low %v245_v29, %v245_v29  ;;  %v21936_v34 = vld [vmem:[%s23561_s21 + $0xa00] sm:$0xff]  }
 0x15f   : > { %19729 = vmatpush3.bf16.msra.mxu1 %v21889_v35  ;;  %19708 = vmatprep.subr.bf16.mxu0 %v21890_v36  ;;  %v17611_v27 = vcombine.low %v244_v26, %v244_v26  ;;  %v17612_v28 = vcombine.high %v244_v26, %v244_v26  ;;  %v21937_v35 = vld [vmem:[%s23561_s21 + $0xa80] sm:$0xff]   ;;  %v21938_v36 = vld [vmem:[%s23561_s21 + $0xa48] sm:$0xff]   ;;  %v21942_v40 = vld [vmem:[%s23561_s21 + $0xa50] sm:$0xff]  }
 0x160   : > { %19730 = vmatprep.subr.bf16.mxu1 %v21891_v37  ;;  %v21939_v37 = vld [vmem:[%s23561_s21 + $0xac8] sm:$0xff]   ;;  %v21945_v43 = vld [vmem:[%s23561_s21 + $0xa90] sm:$0xff]  }
 0x161   : > { %v21978_v26 = vld [vmem:[%s23561_s21 + $0xb50] sm:$0xff]  }
 0x162   : > { %19709 = vmatpush3.bf16.msra.mxu0 %v21892_v38  ;;  %v21940_v38 = vld [vmem:[%s23561_s21 + $0xa08] sm:$0xff]  }
 0x163   : > { %19731 = vmatpush3.bf16.msra.mxu1 %v21893_v39  ;;  %19738 = vmatprep.subr.bf16.mxu0 %v21898_v45  ;;  %v21941_v39 = vld [vmem:[%s23561_s21 + $0xa88] sm:$0xff]   ;;  %v21947_v45 = vld [vmem:[%s23561_s21 + $0xad8] sm:$0xff]  }
 0x164   : > { %19760 = vmatprep.subr.bf16.mxu1 %v21899_v47  ;;  %v21949_v47 = vld [vmem:[%s23561_s21 + $0xa98] sm:$0xff]  }
 0x165   : > { %14227 = vmatmul.mubr.bf16.vlgmr.msra.gmra.mrb[32].mxu0 %v17607_v42  ;;  %v21944_v42 = vld [vmem:[%s23561_s21 + $0xa10] sm:$0xff]  }
 0x166   : > { %14267 = vmatmul.mubr.bf16.vlgmr.msra.gmra.mrb[32].mxu1 %v17609_v44  ;;  %19739 = vmatpush3.bf16.msra.mxu0 %v21900_v48  ;;  %v21946_v44 = vld [vmem:[%s23561_s21 + $0xa58] sm:$0xff]   ;;  %v21950_v48 = vld [vmem:[%s23561_s21 + $0xa60] sm:$0xff]  }
 0x167   : > { %19761 = vmatpush3.bf16.msra.mxu1 %v21901_v49  ;;  %19740 = vmatprep.subr.bf16.mxu0 %v21902_v50  ;;  %v21951_v49 = vld [vmem:[%s23561_s21 + $0xae0] sm:$0xff]  }
 0x168   : > { %19762 = vmatprep.subr.bf16.mxu1 %v21903_v51  ;;  %14306 = vmatprep.mubr.bf16.mxu0 %v17612_v28  ;;  %v21952_v51 = vld [vmem:[%s23561_s21 + $0xa20] sm:$0xff]   ;;  %v21980_v28 = vld [vmem:[%s23561_s21 + $0xb10] sm:$0xff]  }
 0x16a   : > { %19741 = vmatpush3.bf16.msra.mxu0 %v21904_v52 }
 0x16b   : > { %19763 = vmatpush3.bf16.msra.mxu1 %v21905_v53  ;;  %19742 = vmatprep.subr.bf16.mxu0 %v21906_v54  ;;  %v21953_v53 = vld [vmem:[%s23561_s21 + $0xaa0] sm:$0xff]  }
 0x16c   : > { %19764 = vmatprep.subr.bf16.mxu1 %v21907_v55 }
 0x16e   : > { %19743 = vmatpush3.bf16.msra.mxu0 %v21908_v56  ;;  %v21954_v56 = vld [vmem:[%s23561_s21 + $0xa68] sm:$0xff]  }
 0x16f   : > { %19765 = vmatpush3.bf16.msra.mxu1 %v21909_v57  ;;  %19744 = vmatprep.subr.bf16.mxu0 %v21910_v58 }
 0x170   : > { %19766 = vmatprep.subr.bf16.mxu1 %v21911_v59  ;;  %v21955_v59 = vld [vmem:[%s23561_s21 + $0xae8] sm:$0xff]  }
 0x172   : > { %19745 = vmatpush3.bf16.msra.mxu0 %v21912_v60 }
 0x173   : > { %19767 = vmatpush3.bf16.msra.mxu1 %v21913_v61  ;;  %19746 = vmatprep.subr.bf16.mxu0 %v21914_v62  ;;  %v21956_v62 = vld [vmem:[%s23561_s21 + $0xa28] sm:$0xff]  }
 0x174   : > { %19768 = vmatprep.subr.bf16.mxu1 %v21915_v63 }
 0x176   : > { %19747 = vmatpush3.bf16.msra.mxu0 %v21916_v1 }
 0x177   : > { %19769 = vmatpush3.bf16.msra.mxu1 %v21917_v3  ;;  %19748 = vmatprep.subr.bf16.mxu0 %v21918_v6  ;;  %v21958_v3 = vld [vmem:[%s23561_s21 + $0xa70] sm:$0xff]  }
 0x178   : > { %v19446_v0 = vpop.f32.mrb[8].mxu0  ;;  %19770 = vmatprep.subr.bf16.mxu1 %v21919_v9  ;;  %v21960_v6 = vld [vmem:[%s23561_s21 + $0xa30] sm:$0xff]   ;;  %v21963_v9 = vld [vmem:[%s23561_s21 + $0xaf8] sm:$0xff]  }
 0x179   : > { %v19468_v2 = vpop.f32.mrb[8].mxu1  ;;  %v19447_v4 = vpop.f32.mrb[9].mxu0 }
 0x17a   : > { %v19469_v5 = vpop.f32.mrb[9].mxu1  ;;  %v19448_v7 = vadd.f32 %v19447_v4, %v19446_v0  ;;  %v19449_v10 = vpop.f32.mrb[10].mxu0  ;;  %19749 = vmatpush3.bf16.msra.mxu0 %v21920_v12  ;;  %v21957_v0 = vld [vmem:[%s23561_s21 + $0xaa8] sm:$0xff]   ;;  %v246_v12 = vld [vmem:[%s23579_s28 + $0xa0] sm:$0x77] }
 0x17b   : > { %v19470_v8 = vadd.f32 %v19469_v5, %v19468_v2  ;;  %v19471_v11 = vpop.f32.mrb[10].mxu1  ;;  %v19450_v15 = vpop.f32.mrb[11].mxu0  ;;  %19771 = vmatpush3.bf16.msra.mxu1 %v21921_v14  ;;  %19750 = vmatprep.subr.bf16.mxu0 %v21922_v17  ;;  %v21959_v5 = vld [vmem:[%s23561_s21 + $0xaf0] sm:$0xff]   ;;  %v21964_v10 = vld [vmem:[%s23561_s21 + $0xa38] sm:$0xff]   ;;  %v17615_v14 = vcombine.low %v246_v12, %v246_v12 }
 0x17c   : > { %v13749_v13 = vadd.f32 %v19448_v7, %v23882_v31  ;;  %v19472_v16 = vpop.f32.mrb[11].mxu1  ;;  %19772 = vmatprep.subr.bf16.mxu1 %v21923_v19  ;;  %v17614_v31 = vcombine.high %v245_v29, %v245_v29  ;;  %v21961_v7 = vld [vmem:[%s23561_s21 + $0xab0] sm:$0xff]   ;;  %v21965_v11 = vld [vmem:[%s23561_s21 + $0xab8] sm:$0xff]   ;;  %v17616_v15 = vcombine.high %v246_v12, %v246_v12  ;;  %v21971_v19 = vld [vmem:[%s23561_s21 + $0xbc0] sm:$0xff]  }
 0x17d   : > { %v21981_v29 = vld [vmem:[%s23561_s21 + $0xb90] sm:$0xff]  }
 0x17e   : > { %v23920_v18 = vadd.f32 %v19470_v8, %v13749_v13  ;;  %19751 = vmatpush3.bf16.msra.mxu0 %v21924_v20  ;;  %14346 = vmatprep.mubr.bf16.mxu1 %v17614_v31  ;;  %v21962_v8 = vld [vmem:[%s23561_s21 + $0xa78] sm:$0xff]   ;;  %v247_v13 = vld [vmem:[%s23579_s28 + $0xa8] sm:$0x77]  ;;  %v21972_v20 = vld [vmem:[%s23561_s21 + $0xb00] sm:$0xff]  }
 0x17f   : > { %19773 = vmatpush3.bf16.msra.mxu1 %v21925_v21  ;;  %19752 = vmatprep.subr.bf16.mxu0 %v21926_v22  ;;  %v17617_v16 = vcombine.low %v247_v13, %v247_v13  ;;  %v17618_v17 = vcombine.high %v247_v13, %v247_v13  ;;  %v21973_v21 = vld [vmem:[%s23561_s21 + $0xb80] sm:$0xff]   ;;  %v21974_v22 = vld [vmem:[%s23561_s21 + $0xb48] sm:$0xff]   ;;  %v21983_v31 = vld [vmem:[%s23561_s21 + $0xbd8] sm:$0xff]  }
 0x180   : > { %19774 = vmatprep.subr.bf16.mxu1 %v21927_v23  ;;  %v21975_v23 = vld [vmem:[%s23561_s21 + $0xbc8] sm:$0xff]   ;;  %v22014_v12 = vld [vmem:[%s23561_s21 + $0xc50] sm:$0xff]  }
 0x181   : > { %v22015_v13 = vld [vmem:[%s23561_s21 + $0xcd0] sm:$0xff]  }
 0x182   : > { %19753 = vmatpush3.bf16.msra.mxu0 %v21928_v24  ;;  %v21976_v24 = vld [vmem:[%s23561_s21 + $0xb08] sm:$0xff]  }
 0x183   : > { %19775 = vmatpush3.bf16.msra.mxu1 %v21929_v25  ;;  %19782 = vmatprep.subr.bf16.mxu0 %v21934_v32  ;;  %v21977_v25 = vld [vmem:[%s23561_s21 + $0xb88] sm:$0xff]   ;;  %v21984_v32 = vld [vmem:[%s23561_s21 + $0xb18] sm:$0xff]  }
 0x184   : > { %19804 = vmatprep.subr.bf16.mxu1 %v21935_v33  ;;  %v21985_v33 = vld [vmem:[%s23561_s21 + $0xb98] sm:$0xff]  }
 0x185   : > { %14307 = vmatmul.mubr.bf16.vlgmr.msra.gmra.mrb[36].mxu0 %v17611_v27  ;;  %v21979_v27 = vld [vmem:[%s23561_s21 + $0xbd0] sm:$0xff]  }
 0x186   : > { %14347 = vmatmul.mubr.bf16.vlgmr.msra.gmra.mrb[36].mxu1 %v17613_v30  ;;  %19783 = vmatpush3.bf16.msra.mxu0 %v21936_v34  ;;  %v21982_v30 = vld [vmem:[%s23561_s21 + $0xb58] sm:$0xff]   ;;  %v21986_v34 = vld [vmem:[%s23561_s21 + $0xb60] sm:$0xff]  }
 0x187   : > { %19805 = vmatpush3.bf16.msra.mxu1 %v21937_v35  ;;  %19784 = vmatprep.subr.bf16.mxu0 %v21938_v36  ;;  %v21987_v35 = vld [vmem:[%s23561_s21 + $0xbe0] sm:$0xff]  }
 0x188   : > { %19806 = vmatprep.subr.bf16.mxu1 %v21939_v37  ;;  %14386 = vmatprep.mubr.bf16.mxu0 %v17616_v15  ;;  %v21988_v36 = vld [vmem:[%s23561_s21 + $0xb20] sm:$0xff]   ;;  %v22017_v15 = vld [vmem:[%s23561_s21 + $0xc90] sm:$0xff]  }
 0x189   : > { %14426 = vmatprep.mubr.bf16.mxu1 %v17618_v17  ;;  %v22019_v17 = vld [vmem:[%s23561_s21 + $0xcd8] sm:$0xff]  }
 0x18a   : > { %19785 = vmatpush3.bf16.msra.mxu0 %v21940_v38  ;;  %v21989_v38 = vld [vmem:[%s23561_s21 + $0xba0] sm:$0xff]  }
 0x18b   : > { %19807 = vmatpush3.bf16.msra.mxu1 %v21941_v39  ;;  %19786 = vmatprep.subr.bf16.mxu0 %v21942_v40 }
 0x18c   : > { %19808 = vmatprep.subr.bf16.mxu1 %v21943_v41 }
 0x18e   : > { %19787 = vmatpush3.bf16.msra.mxu0 %v21944_v42 }
 0x18f   : > { %19809 = vmatpush3.bf16.msra.mxu1 %v21945_v43  ;;  %19788 = vmatprep.subr.bf16.mxu0 %v21946_v44  ;;  %v21990_v44 = vld [vmem:[%s23561_s21 + $0xb68] sm:$0xff]  }
 0x190   : > { %19810 = vmatprep.subr.bf16.mxu1 %v21947_v45 }
 0x192   : > { %19789 = vmatpush3.bf16.msra.mxu0 %v21948_v46  ;;  %v21991_v46 = vld [vmem:[%s23561_s21 + $0xbe8] sm:$0xff]  }
 0x193   : > { %19811 = vmatpush3.bf16.msra.mxu1 %v21949_v47  ;;  %19790 = vmatprep.subr.bf16.mxu0 %v21950_v48 }
 0x194   : > { %19812 = vmatprep.subr.bf16.mxu1 %v21951_v49  ;;  %v21992_v49 = vld [vmem:[%s23561_s21 + $0xb28] sm:$0xff]  }
 0x196   : > { %19791 = vmatpush3.bf16.msra.mxu0 %v21952_v51  ;;  %v21993_v51 = vld [vmem:[%s23561_s21 + $0xba8] sm:$0xff]  }
 0x197   : > { %19813 = vmatpush3.bf16.msra.mxu1 %v21953_v53  ;;  %19792 = vmatprep.subr.bf16.mxu0 %v21954_v56  ;;  %v21996_v56 = vld [vmem:[%s23561_s21 + $0xb30] sm:$0xff]  }
 0x198   : > { %v19490_v50 = vpop.f32.mrb[12].mxu0  ;;  %19814 = vmatprep.subr.bf16.mxu1 %v21955_v59  ;;  %v21999_v59 = vld [vmem:[%s23561_s21 + $0xbf8] sm:$0xff]  }
 0x199   : > { %v19512_v52 = vpop.f32.mrb[12].mxu1  ;;  %v19491_v54 = vpop.f32.mrb[13].mxu0 }
 0x19a   : > { %v19513_v55 = vpop.f32.mrb[13].mxu1  ;;  %v19492_v57 = vadd.f32 %v19491_v54, %v19490_v50  ;;  %v19493_v60 = vpop.f32.mrb[14].mxu0  ;;  %19793 = vmatpush3.bf16.msra.mxu0 %v21956_v62  ;;  %v21994_v54 = vld [vmem:[%s23561_s21 + $0xb70] sm:$0xff]  }
 0x19b   : > { %v19514_v58 = vadd.f32 %v19513_v55, %v19512_v52  ;;  %v19515_v61 = vpop.f32.mrb[14].mxu1  ;;  %v19494_v1 = vpop.f32.mrb[15].mxu0  ;;  %19815 = vmatpush3.bf16.msra.mxu1 %v21957_v0  ;;  %19794 = vmatprep.subr.bf16.mxu0 %v21958_v3  ;;  %v21995_v55 = vld [vmem:[%s23561_s21 + $0xbf0] sm:$0xff]   ;;  %v22000_v60 = vld [vmem:[%s23561_s21 + $0xb38] sm:$0xff]  }
 0x19c   : > { %v13829_v63 = vadd.f32 %v19492_v57, %v23920_v18  ;;  %v19516_v2 = vpop.f32.mrb[15].mxu1  ;;  %19816 = vmatprep.subr.bf16.mxu1 %v21959_v5  ;;  %v21970_v18 = vld [vmem:[%s23561_s21 + $0xb40] sm:$0xff]   ;;  %v21997_v57 = vld [vmem:[%s23561_s21 + $0xbb0] sm:$0xff]   ;;  %v22001_v61 = vld [vmem:[%s23561_s21 + $0xbb8] sm:$0xff]  }
 0x19d   : > { %v248_v62 = vld [vmem:[%s23579_s28 + $0xb0] sm:$0x77]  ;;  %v22007_v5 = vld [vmem:[%s23561_s21 + $0xcc0] sm:$0xff]  }
 0x19e   : > { %v23957_v4 = vadd.f32 %v19514_v58, %v13829_v63  ;;  %19795 = vmatpush3.bf16.msra.mxu0 %v21960_v6  ;;  %v21998_v58 = vld [vmem:[%s23561_s21 + $0xb78] sm:$0xff]   ;;  %v17619_v0 = vcombine.low %v248_v62, %v248_v62  ;;  %v17620_v1 = vcombine.high %v248_v62, %v248_v62  ;;  %v22008_v6 = vld [vmem:[%s23561_s21 + $0xc00] sm:$0xff]   ;;  %v22050_v62 = vld [vmem:[%s23561_s21 + $0xd50] sm:$0xff]  }
 0x19f   : > { %19817 = vmatpush3.bf16.msra.mxu1 %v21961_v7  ;;  %19796 = vmatprep.subr.bf16.mxu0 %v21962_v8  ;;  %v249_v63 = vld [vmem:[%s23579_s28 + $0xb8] sm:$0x77]  ;;  %v22009_v7 = vld [vmem:[%s23561_s21 + $0xc80] sm:$0xff]   ;;  %v22010_v8 = vld [vmem:[%s23561_s21 + $0xc48] sm:$0xff]  }
 0x1a0   : > { %19818 = vmatprep.subr.bf16.mxu1 %v21963_v9  ;;  %v17621_v2 = vcombine.low %v249_v63, %v249_v63  ;;  %v17622_v3 = vcombine.high %v249_v63, %v249_v63  ;;  %v22011_v9 = vld [vmem:[%s23561_s21 + $0xcc8] sm:$0xff]   ;;  %v22051_v63 = vld [vmem:[%s23561_s21 + $0xdd0] sm:$0xff]  }
 0x1a2   : > { %19797 = vmatpush3.bf16.msra.mxu0 %v21964_v10  ;;  %v22012_v10 = vld [vmem:[%s23561_s21 + $0xc08] sm:$0xff]  }
 0x1a3   : > { %19819 = vmatpush3.bf16.msra.mxu1 %v21965_v11  ;;  %19826 = vmatprep.subr.bf16.mxu0 %v21970_v18  ;;  %v22013_v11 = vld [vmem:[%s23561_s21 + $0xc88] sm:$0xff]   ;;  %v22020_v18 = vld [vmem:[%s23561_s21 + $0xc18] sm:$0xff]  }
 0x1a4   : > { %19848 = vmatprep.subr.bf16.mxu1 %v21971_v19  ;;  %v22021_v19 = vld [vmem:[%s23561_s21 + $0xc98] sm:$0xff]  }
 0x1a5   : > { %14387 = vmatmul.mubr.bf16.vlgmr.msra.gmra.mrb[40].mxu0 %v17615_v14  ;;  %v22016_v14 = vld [vmem:[%s23561_s21 + $0xc10] sm:$0xff]  }
 0x1a6   : > { %14427 = vmatmul.mubr.bf16.vlgmr.msra.gmra.mrb[40].mxu1 %v17617_v16  ;;  %19827 = vmatpush3.bf16.msra.mxu0 %v21972_v20  ;;  %v22018_v16 = vld [vmem:[%s23561_s21 + $0xc58] sm:$0xff]   ;;  %v22022_v20 = vld [vmem:[%s23561_s21 + $0xc60] sm:$0xff]  }
 0x1a7   : > { %19849 = vmatpush3.bf16.msra.mxu1 %v21973_v21  ;;  %19828 = vmatprep.subr.bf16.mxu0 %v21974_v22  ;;  %v22023_v21 = vld [vmem:[%s23561_s21 + $0xce0] sm:$0xff]  }
 0x1a8   : > { %19850 = vmatprep.subr.bf16.mxu1 %v21975_v23  ;;  %14466 = vmatprep.mubr.bf16.mxu0 %v17620_v1  ;;  %v22024_v23 = vld [vmem:[%s23561_s21 + $0xc20] sm:$0xff]   ;;  %v22053_v1 = vld [vmem:[%s23561_s21 + $0xd90] sm:$0xff]  }
 0x1a9   : > { %14506 = vmatprep.mubr.bf16.mxu1 %v17622_v3  ;;  %v22055_v3 = vld [vmem:[%s23561_s21 + $0xdd8] sm:$0xff]  }
 0x1aa   : > { %19829 = vmatpush3.bf16.msra.mxu0 %v21976_v24 }
 0x1ab   : > { %19851 = vmatpush3.bf16.msra.mxu1 %v21977_v25  ;;  %19830 = vmatprep.subr.bf16.mxu0 %v21978_v26  ;;  %v22025_v25 = vld [vmem:[%s23561_s21 + $0xca0] sm:$0xff]  }
 0x1ac   : > { %19852 = vmatprep.subr.bf16.mxu1 %v21979_v27 }
 0x1ae   : > { %19831 = vmatpush3.bf16.msra.mxu0 %v21980_v28 }
 0x1af   : > { %19853 = vmatpush3.bf16.msra.mxu1 %v21981_v29  ;;  %19832 = vmatprep.subr.bf16.mxu0 %v21982_v30  ;;  %v22026_v29 = vld [vmem:[%s23561_s21 + $0xc68] sm:$0xff]  }
 0x1b0   : > { %19854 = vmatprep.subr.bf16.mxu1 %v21983_v31  ;;  %v22027_v31 = vld [vmem:[%s23561_s21 + $0xce8] sm:$0xff]  }
 0x1b2   : > { %19833 = vmatpush3.bf16.msra.mxu0 %v21984_v32 }
 0x1b3   : > { %19855 = vmatpush3.bf16.msra.mxu1 %v21985_v33  ;;  %19834 = vmatprep.subr.bf16.mxu0 %v21986_v34 }
 0x1b4   : > { %19856 = vmatprep.subr.bf16.mxu1 %v21987_v35  ;;  %v22028_v35 = vld [vmem:[%s23561_s21 + $0xc28] sm:$0xff]  }
 0x1b6   : > { %19835 = vmatpush3.bf16.msra.mxu0 %v21988_v36  ;;  %v22029_v36 = vld [vmem:[%s23561_s21 + $0xca8] sm:$0xff]  }
 0x1b7   : > { %19857 = vmatpush3.bf16.msra.mxu1 %v21989_v38  ;;  %19836 = vmatprep.subr.bf16.mxu0 %v21990_v44  ;;  %v22034_v44 = vld [vmem:[%s23561_s21 + $0xc78] sm:$0xff]  }
 0x1b8   : > { %v19534_v37 = vpop.f32.mrb[16].mxu0  ;;  %19858 = vmatprep.subr.bf16.mxu1 %v21991_v46  ;;  %v22036_v46 = vld [vmem:[%s23561_s21 + $0xc38] sm:$0xff]  }
 0x1b9   : > { %v19556_v39 = vpop.f32.mrb[16].mxu1  ;;  %v19535_v40 = vpop.f32.mrb[17].mxu0 }
 0x1ba   : > { %v19557_v41 = vpop.f32.mrb[17].mxu1  ;;  %v19536_v42 = vadd.f32 %v19535_v40, %v19534_v37  ;;  %v19537_v45 = vpop.f32.mrb[18].mxu0  ;;  %19837 = vmatpush3.bf16.msra.mxu0 %v21992_v49  ;;  %v22030_v40 = vld [vmem:[%s23561_s21 + $0xc70] sm:$0xff]   ;;  %v251_v49 = vld [vmem:[%s23579_s28 + $0xc8] sm:$0x77] }
 0x1bb   : > { %v19558_v43 = vadd.f32 %v19557_v41, %v19556_v39  ;;  %v19559_v47 = vpop.f32.mrb[18].mxu1  ;;  %v19538_v50 = vpop.f32.mrb[19].mxu0  ;;  %19859 = vmatpush3.bf16.msra.mxu1 %v21993_v51  ;;  %19838 = vmatprep.subr.bf16.mxu0 %v21994_v54  ;;  %v22031_v41 = vld [vmem:[%s23561_s21 + $0xcf0] sm:$0xff]   ;;  %v22035_v45 = vld [vmem:[%s23561_s21 + $0xcf8] sm:$0xff]   ;;  %v17626_v54 = vcombine.high %v251_v49, %v251_v49 }
 0x1bc   : > { %v13909_v48 = vadd.f32 %v19536_v42, %v23957_v4  ;;  %v19560_v52 = vpop.f32.mrb[19].mxu1  ;;  %19860 = vmatprep.subr.bf16.mxu1 %v21995_v55  ;;  %v22006_v4 = vld [vmem:[%s23561_s21 + $0xc40] sm:$0xff]   ;;  %v22032_v42 = vld [vmem:[%s23561_s21 + $0xc30] sm:$0xff]   ;;  %v22037_v47 = vld [vmem:[%s23561_s21 + $0xcb8] sm:$0xff]  }
 0x1bd   : > { %v17625_v52 = vcombine.low %v251_v49, %v251_v49  ;;  %v22043_v55 = vld [vmem:[%s23561_s21 + $0xdc0] sm:$0xff]   ;;  %v22087_v49 = vld [vmem:[%s23561_s21 + $0xed0] sm:$0xff]  }
 0x1be   : > { %v23993_v53 = vadd.f32 %v19558_v43, %v13909_v48  ;;  %19839 = vmatpush3.bf16.msra.mxu0 %v21996_v56  ;;  %v22033_v43 = vld [vmem:[%s23561_s21 + $0xcb0] sm:$0xff]   ;;  %v250_v48 = vld [vmem:[%s23579_s28 + $0xc0] sm:$0x77] }
 0x1bf   : > { %19861 = vmatpush3.bf16.msra.mxu1 %v21997_v57  ;;  %19840 = vmatprep.subr.bf16.mxu0 %v21998_v58  ;;  %v17623_v50 = vcombine.low %v250_v48, %v250_v48  ;;  %v17624_v51 = vcombine.high %v250_v48, %v250_v48  ;;  %v22044_v56 = vld [vmem:[%s23561_s21 + $0xd00] sm:$0xff]   ;;  %v22046_v58 = vld [vmem:[%s23561_s21 + $0xd48] sm:$0xff]   ;;  %v22086_v48 = vld [vmem:[%s23561_s21 + $0xe50] sm:$0xff]  }
 0x1c0   : > { %19862 = vmatprep.subr.bf16.mxu1 %v21999_v59  ;;  %v22045_v57 = vld [vmem:[%s23561_s21 + $0xd80] sm:$0xff]   ;;  %v22047_v59 = vld [vmem:[%s23561_s21 + $0xdc8] sm:$0xff]  }
 0x1c2   : > { %19841 = vmatpush3.bf16.msra.mxu0 %v22000_v60  ;;  %v22048_v60 = vld [vmem:[%s23561_s21 + $0xd08] sm:$0xff]  }
 0x1c3   : > { %19863 = vmatpush3.bf16.msra.mxu1 %v22001_v61  ;;  %19870 = vmatprep.subr.bf16.mxu0 %v22006_v4  ;;  %v22049_v61 = vld [vmem:[%s23561_s21 + $0xd88] sm:$0xff]   ;;  %v22056_v4 = vld [vmem:[%s23561_s21 + $0xd18] sm:$0xff]  }
 0x1c4   : > { %19892 = vmatprep.subr.bf16.mxu1 %v22007_v5  ;;  %v22057_v5 = vld [vmem:[%s23561_s21 + $0xd98] sm:$0xff]  }
 0x1c5   : > { %14467 = vmatmul.mubr.bf16.vlgmr.msra.gmra.mrb[44].mxu0 %v17619_v0  ;;  %v22052_v0 = vld [vmem:[%s23561_s21 + $0xd10] sm:$0xff]  }
 0x1c6   : > { %14507 = vmatmul.mubr.bf16.vlgmr.msra.gmra.mrb[44].mxu1 %v17621_v2  ;;  %19871 = vmatpush3.bf16.msra.mxu0 %v22008_v6  ;;  %v22054_v2 = vld [vmem:[%s23561_s21 + $0xd58] sm:$0xff]   ;;  %v22058_v6 = vld [vmem:[%s23561_s21 + $0xd60] sm:$0xff]  }
 0x1c7   : > { %19893 = vmatpush3.bf16.msra.mxu1 %v22009_v7  ;;  %19872 = vmatprep.subr.bf16.mxu0 %v22010_v8  ;;  %v22059_v7 = vld [vmem:[%s23561_s21 + $0xde0] sm:$0xff]  }
 0x1c8   : > { %19894 = vmatprep.subr.bf16.mxu1 %v22011_v9  ;;  %14546 = vmatprep.mubr.bf16.mxu0 %v17624_v51  ;;  %v22060_v9 = vld [vmem:[%s23561_s21 + $0xd20] sm:$0xff]   ;;  %v22089_v51 = vld [vmem:[%s23561_s21 + $0xe90] sm:$0xff]  }
 0x1c9   : > { %14586 = vmatprep.mubr.bf16.mxu1 %v17626_v54  ;;  %v22092_v54 = vld [vmem:[%s23561_s21 + $0xe18] sm:$0xff]  }
 0x1ca   : > { %19873 = vmatpush3.bf16.msra.mxu0 %v22012_v10 }
 0x1cb   : > { %19895 = vmatpush3.bf16.msra.mxu1 %v22013_v11  ;;  %19874 = vmatprep.subr.bf16.mxu0 %v22014_v12  ;;  %v22061_v11 = vld [vmem:[%s23561_s21 + $0xda0] sm:$0xff]  }
 0x1cc   : > { %19896 = vmatprep.subr.bf16.mxu1 %v22015_v13 }
 0x1ce   : > { %19875 = vmatpush3.bf16.msra.mxu0 %v22016_v14  ;;  %v22062_v14 = vld [vmem:[%s23561_s21 + $0xd68] sm:$0xff]  }
 0x1cf   : > { %19897 = vmatpush3.bf16.msra.mxu1 %v22017_v15  ;;  %19876 = vmatprep.subr.bf16.mxu0 %v22018_v16 }
 0x1d0   : > { %19898 = vmatprep.subr.bf16.mxu1 %v22019_v17  ;;  %v22063_v17 = vld [vmem:[%s23561_s21 + $0xde8] sm:$0xff]  }
 0x1d2   : > { %19877 = vmatpush3.bf16.msra.mxu0 %v22020_v18 }
 0x1d3   : > { %19899 = vmatpush3.bf16.msra.mxu1 %v22021_v19  ;;  %19878 = vmatprep.subr.bf16.mxu0 %v22022_v20  ;;  %v22064_v20 = vld [vmem:[%s23561_s21 + $0xd28] sm:$0xff]  }
 0x1d4   : > { %19900 = vmatprep.subr.bf16.mxu1 %v22023_v21 }
 0x1d6   : > { %19879 = vmatpush3.bf16.msra.mxu0 %v22024_v23 }
 0x1d7   : > { %19901 = vmatpush3.bf16.msra.mxu1 %v22025_v25  ;;  %19880 = vmatprep.subr.bf16.mxu0 %v22026_v29  ;;  %v22066_v25 = vld [vmem:[%s23561_s21 + $0xd70] sm:$0xff]  }
 0x1d8   : > { %v19578_v22 = vpop.f32.mrb[20].mxu0  ;;  %19902 = vmatprep.subr.bf16.mxu1 %v22027_v31  ;;  %v22069_v29 = vld [vmem:[%s23561_s21 + $0xdb0] sm:$0xff]   ;;  %v22071_v31 = vld [vmem:[%s23561_s21 + $0xdf8] sm:$0xff]  }
 0x1d9   : > { %v19600_v24 = vpop.f32.mrb[20].mxu1  ;;  %v19579_v26 = vpop.f32.mrb[21].mxu0 }
 0x1da   : > { %v19580_v27 = vadd.f32 %v19579_v26, %v19578_v22  ;;  %v19601_v28 = vpop.f32.mrb[21].mxu1  ;;  %v19581_v32 = vpop.f32.mrb[22].mxu0  ;;  %19881 = vmatpush3.bf16.msra.mxu0 %v22028_v35  ;;  %v22065_v22 = vld [vmem:[%s23561_s21 + $0xda8] sm:$0xff]  }
 0x1db   : > { %v19602_v30 = vadd.f32 %v19601_v28, %v19600_v24  ;;  %v19603_v34 = vpop.f32.mrb[22].mxu1  ;;  %v19582_v37 = vpop.f32.mrb[23].mxu0  ;;  %19903 = vmatpush3.bf16.msra.mxu1 %v22029_v36  ;;  %19882 = vmatprep.subr.bf16.mxu0 %v22030_v40  ;;  %v22068_v28 = vld [vmem:[%s23561_s21 + $0xd30] sm:$0xff]   ;;  %v22072_v32 = vld [vmem:[%s23561_s21 + $0xd38] sm:$0xff]   ;;  %v22078_v40 = vld [vmem:[%s23561_s21 + $0xe40] sm:$0xff]  }
 0x1dc   : > { %v13989_v33 = vadd.f32 %v19580_v27, %v23993_v53  ;;  %v19604_v39 = vpop.f32.mrb[23].mxu1  ;;  %19904 = vmatprep.subr.bf16.mxu1 %v22031_v41  ;;  %v22042_v53 = vld [vmem:[%s23561_s21 + $0xd40] sm:$0xff]   ;;  %v22067_v27 = vld [vmem:[%s23561_s21 + $0xdf0] sm:$0xff]   ;;  %v253_v37 = vld [vmem:[%s23579_s28 + $0xd8] sm:$0x77] }
 0x1dd   : > { %v252_v34 = vld [vmem:[%s23579_s28 + $0xd0] sm:$0x77]  ;;  %v17630_v39 = vcombine.high %v253_v37, %v253_v37  ;;  %v22079_v41 = vld [vmem:[%s23561_s21 + $0xec0] sm:$0xff]  }
 0x1de   : > { %v24030_v38 = vadd.f32 %v19602_v30, %v13989_v33  ;;  %19883 = vmatpush3.bf16.msra.mxu0 %v22032_v42  ;;  %v22070_v30 = vld [vmem:[%s23561_s21 + $0xd78] sm:$0xff]   ;;  %v17627_v35 = vcombine.low %v252_v34, %v252_v34  ;;  %v17628_v36 = vcombine.high %v252_v34, %v252_v34  ;;  %v22080_v42 = vld [vmem:[%s23561_s21 + $0xe00] sm:$0xff]   ;;  %v22122_v34 = vld [vmem:[%s23561_s21 + $0xf50] sm:$0xff]  }
 0x1df   : > { %19905 = vmatpush3.bf16.msra.mxu1 %v22033_v43  ;;  %19884 = vmatprep.subr.bf16.mxu0 %v22034_v44  ;;  %v22073_v33 = vld [vmem:[%s23561_s21 + $0xdb8] sm:$0xff]   ;;  %v22081_v43 = vld [vmem:[%s23561_s21 + $0xe80] sm:$0xff]   ;;  %v22082_v44 = vld [vmem:[%s23561_s21 + $0xe48] sm:$0xff]  }
 0x1e0   : > { %19906 = vmatprep.subr.bf16.mxu1 %v22035_v45  ;;  %v22083_v45 = vld [vmem:[%s23561_s21 + $0xec8] sm:$0xff]  }
 0x1e2   : > { %19885 = vmatpush3.bf16.msra.mxu0 %v22036_v46  ;;  %v22084_v46 = vld [vmem:[%s23561_s21 + $0xe08] sm:$0xff]  }
 0x1e3   : > { %19907 = vmatpush3.bf16.msra.mxu1 %v22037_v47  ;;  %19914 = vmatprep.subr.bf16.mxu0 %v22042_v53  ;;  %v22085_v47 = vld [vmem:[%s23561_s21 + $0xe88] sm:$0xff]   ;;  %v22091_v53 = vld [vmem:[%s23561_s21 + $0xed8] sm:$0xff]  }
 0x1e4   : > { %19936 = vmatprep.subr.bf16.mxu1 %v22043_v55  ;;  %v22093_v55 = vld [vmem:[%s23561_s21 + $0xe98] sm:$0xff]  }
 0x1e5   : > { %14547 = vmatmul.mubr.bf16.vlgmr.msra.gmra.mrb[48].mxu0 %v17623_v50  ;;  %v22088_v50 = vld [vmem:[%s23561_s21 + $0xe10] sm:$0xff]  }
 0x1e6   : > { %14587 = vmatmul.mubr.bf16.vlgmr.msra.gmra.mrb[48].mxu1 %v17625_v52  ;;  %19915 = vmatpush3.bf16.msra.mxu0 %v22044_v56  ;;  %v22090_v52 = vld [vmem:[%s23561_s21 + $0xe58] sm:$0xff]   ;;  %v22094_v56 = vld [vmem:[%s23561_s21 + $0xe60] sm:$0xff]  }
 0x1e7   : > { %19937 = vmatpush3.bf16.msra.mxu1 %v22045_v57  ;;  %19916 = vmatprep.subr.bf16.mxu0 %v22046_v58  ;;  %v22095_v57 = vld [vmem:[%s23561_s21 + $0xee0] sm:$0xff]  }
 0x1e8   : > { %19938 = vmatprep.subr.bf16.mxu1 %v22047_v59  ;;  %14626 = vmatprep.mubr.bf16.mxu0 %v17628_v36  ;;  %v22096_v59 = vld [vmem:[%s23561_s21 + $0xe20] sm:$0xff]   ;;  %v22124_v36 = vld [vmem:[%s23561_s21 + $0xf10] sm:$0xff]  }
 0x1e9   : > { %14666 = vmatprep.mubr.bf16.mxu1 %v17630_v39  ;;  %v22127_v39 = vld [vmem:[%s23561_s21 + $0xfd8] sm:$0xff]  }
 0x1ea   : > { %19917 = vmatpush3.bf16.msra.mxu0 %v22048_v60 }
 0x1eb   : > { %19939 = vmatpush3.bf16.msra.mxu1 %v22049_v61  ;;  %19918 = vmatprep.subr.bf16.mxu0 %v22050_v62  ;;  %v22097_v61 = vld [vmem:[%s23561_s21 + $0xea0] sm:$0xff]  }
 0x1ec   : > { %19940 = vmatprep.subr.bf16.mxu1 %v22051_v63 }
 0x1ee   : > { %19919 = vmatpush3.bf16.msra.mxu0 %v22052_v0  ;;  %v22098_v0 = vld [vmem:[%s23561_s21 + $0xe68] sm:$0xff]  }
 0x1ef   : > { %19941 = vmatpush3.bf16.msra.mxu1 %v22053_v1  ;;  %19920 = vmatprep.subr.bf16.mxu0 %v22054_v2 }
 0x1f0   : > { %19942 = vmatprep.subr.bf16.mxu1 %v22055_v3  ;;  %v22099_v3 = vld [vmem:[%s23561_s21 + $0xee8] sm:$0xff]  }
 0x1f2   : > { %19921 = vmatpush3.bf16.msra.mxu0 %v22056_v4 }
 0x1f3   : > { %19943 = vmatpush3.bf16.msra.mxu1 %v22057_v5  ;;  %19922 = vmatprep.subr.bf16.mxu0 %v22058_v6  ;;  %v22100_v6 = vld [vmem:[%s23561_s21 + $0xe28] sm:$0xff]  }
 0x1f4   : > { %19944 = vmatprep.subr.bf16.mxu1 %v22059_v7 }
 0x1f6   : > { %19923 = vmatpush3.bf16.msra.mxu0 %v22060_v9 }
 0x1f7   : > { %19945 = vmatpush3.bf16.msra.mxu1 %v22061_v11  ;;  %19924 = vmatprep.subr.bf16.mxu0 %v22062_v14  ;;  %v22102_v11 = vld [vmem:[%s23561_s21 + $0xe70] sm:$0xff]  }
 0x1f8   : > { %v19622_v8 = vpop.f32.mrb[24].mxu0  ;;  %19946 = vmatprep.subr.bf16.mxu1 %v22063_v17  ;;  %v22104_v14 = vld [vmem:[%s23561_s21 + $0xe30] sm:$0xff]   ;;  %v22107_v17 = vld [vmem:[%s23561_s21 + $0xef8] sm:$0xff]  }
 0x1f9   : > { %v19644_v10 = vpop.f32.mrb[24].mxu1  ;;  %v19623_v12 = vpop.f32.mrb[25].mxu0 }
 0x1fa   : > { %v19645_v13 = vpop.f32.mrb[25].mxu1  ;;  %v19624_v15 = vadd.f32 %v19623_v12, %v19622_v8  ;;  %v19625_v18 = vpop.f32.mrb[26].mxu0  ;;  %19925 = vmatpush3.bf16.msra.mxu0 %v22064_v20  ;;  %v22101_v8 = vld [vmem:[%s23561_s21 + $0xea8] sm:$0xff]   ;;  %v254_v20 = vld [vmem:[%s23579_s28 + $0xe0] sm:$0x77] }
 0x1fb   : > { %v19646_v16 = vadd.f32 %v19645_v13, %v19644_v10  ;;  %v19647_v19 = vpop.f32.mrb[26].mxu1  ;;  %v19626_v23 = vpop.f32.mrb[27].mxu0  ;;  %19947 = vmatpush3.bf16.msra.mxu1 %v22065_v22  ;;  %19926 = vmatprep.subr.bf16.mxu0 %v22066_v25  ;;  %v22103_v13 = vld [vmem:[%s23561_s21 + $0xef0] sm:$0xff]   ;;  %v22108_v18 = vld [vmem:[%s23561_s21 + $0xe38] sm:$0xff]   ;;  %v17631_v22 = vcombine.low %v254_v20, %v254_v20 }
 0x1fc   : > { %v14069_v21 = vadd.f32 %v19624_v15, %v24030_v38  ;;  %v19648_v24 = vpop.f32.mrb[27].mxu1  ;;  %19948 = vmatprep.subr.bf16.mxu1 %v22067_v27  ;;  %v17629_v38 = vcombine.low %v253_v37, %v253_v37  ;;  %v22105_v15 = vld [vmem:[%s23561_s21 + $0xeb0] sm:$0xff]   ;;  %v22109_v19 = vld [vmem:[%s23561_s21 + $0xeb8] sm:$0xff]   ;;  %v17632_v23 = vcombine.high %v254_v20, %v254_v20  ;;  %v22115_v27 = vld [vmem:[%s23561_s21 + $0xfc0] sm:$0xff]  }
 0x1fd   : > { %v22125_v37 = vld [vmem:[%s23561_s21 + $0xf90] sm:$0xff]  }
 0x1fe   : > { %v24068_v26 = vadd.f32 %v19646_v16, %v14069_v21  ;;  %19927 = vmatpush3.bf16.msra.mxu0 %v22068_v28  ;;  %v22106_v16 = vld [vmem:[%s23561_s21 + $0xe78] sm:$0xff]   ;;  %v255_v21 = vld [vmem:[%s23579_s28 + $0xe8] sm:$0x77]  ;;  %v22116_v28 = vld [vmem:[%s23561_s21 + $0xf00] sm:$0xff]  }
 0x1ff   : > { %19949 = vmatpush3.bf16.msra.mxu1 %v22069_v29  ;;  %19928 = vmatprep.subr.bf16.mxu0 %v22070_v30  ;;  %v17633_v24 = vcombine.low %v255_v21, %v255_v21  ;;  %v17634_v25 = vcombine.high %v255_v21, %v255_v21  ;;  %v22117_v29 = vld [vmem:[%s23561_s21 + $0xf80] sm:$0xff]   ;;  %v22118_v30 = vld [vmem:[%s23561_s21 + $0xf48] sm:$0xff]   ;;  %v22158_v20 = vld [vmem:[%s23561_s21 + $0x1050] sm:$0xff]  }
 0x200   : > { %19950 = vmatprep.subr.bf16.mxu1 %v22071_v31  ;;  %v22119_v31 = vld [vmem:[%s23561_s21 + $0xfc8] sm:$0xff]   ;;  %v22159_v21 = vld [vmem:[%s23561_s21 + $0x10d0] sm:$0xff]  }
 0x202   : > { %19929 = vmatpush3.bf16.msra.mxu0 %v22072_v32  ;;  %v22120_v32 = vld [vmem:[%s23561_s21 + $0xf08] sm:$0xff]  }
 0x203   : > { %19951 = vmatpush3.bf16.msra.mxu1 %v22073_v33  ;;  %19958 = vmatprep.subr.bf16.mxu0 %v22078_v40  ;;  %v22121_v33 = vld [vmem:[%s23561_s21 + $0xf88] sm:$0xff]   ;;  %v22128_v40 = vld [vmem:[%s23561_s21 + $0xf18] sm:$0xff]  }
 0x204   : > { %19980 = vmatprep.subr.bf16.mxu1 %v22079_v41  ;;  %v22129_v41 = vld [vmem:[%s23561_s21 + $0xf98] sm:$0xff]  }
 0x205   : > { %14627 = vmatmul.mubr.bf16.vlgmr.msra.gmra.mrb[52].mxu0 %v17627_v35  ;;  %v22123_v35 = vld [vmem:[%s23561_s21 + $0xfd0] sm:$0xff]  }
 0x206   : > { %14667 = vmatmul.mubr.bf16.vlgmr.msra.gmra.mrb[52].mxu1 %v17629_v38  ;;  %19959 = vmatpush3.bf16.msra.mxu0 %v22080_v42  ;;  %v22126_v38 = vld [vmem:[%s23561_s21 + $0xf58] sm:$0xff]   ;;  %v22130_v42 = vld [vmem:[%s23561_s21 + $0xf60] sm:$0xff]  }
 0x207   : > { %19981 = vmatpush3.bf16.msra.mxu1 %v22081_v43  ;;  %19960 = vmatprep.subr.bf16.mxu0 %v22082_v44  ;;  %v22131_v43 = vld [vmem:[%s23561_s21 + $0xfe0] sm:$0xff]  }
 0x208   : > { %19982 = vmatprep.subr.bf16.mxu1 %v22083_v45  ;;  %14706 = vmatprep.mubr.bf16.mxu0 %v17632_v23  ;;  %v22132_v44 = vld [vmem:[%s23561_s21 + $0xf20] sm:$0xff]   ;;  %v22161_v23 = vld [vmem:[%s23561_s21 + $0x1090] sm:$0xff]  }
 0x209   : > { %14746 = vmatprep.mubr.bf16.mxu1 %v17634_v25  ;;  %v22163_v25 = vld [vmem:[%s23561_s21 + $0x10d8] sm:$0xff]  }
 0x20a   : > { %19961 = vmatpush3.bf16.msra.mxu0 %v22084_v46  ;;  %v22133_v46 = vld [vmem:[%s23561_s21 + $0xfa0] sm:$0xff]  }
 0x20b   : > { %19983 = vmatpush3.bf16.msra.mxu1 %v22085_v47  ;;  %19962 = vmatprep.subr.bf16.mxu0 %v22086_v48 }
 0x20c   : > { %19984 = vmatprep.subr.bf16.mxu1 %v22087_v49 }
 0x20e   : > { %19963 = vmatpush3.bf16.msra.mxu0 %v22088_v50 }
 0x20f   : > { %19985 = vmatpush3.bf16.msra.mxu1 %v22089_v51  ;;  %19964 = vmatprep.subr.bf16.mxu0 %v22090_v52  ;;  %v22134_v52 = vld [vmem:[%s23561_s21 + $0xf68] sm:$0xff]  }
 0x210   : > { %19986 = vmatprep.subr.bf16.mxu1 %v22091_v53 }
 0x212   : > { %19965 = vmatpush3.bf16.msra.mxu0 %v22092_v54  ;;  %v22135_v54 = vld [vmem:[%s23561_s21 + $0xfe8] sm:$0xff]  }
 0x213   : > { %19987 = vmatpush3.bf16.msra.mxu1 %v22093_v55  ;;  %19966 = vmatprep.subr.bf16.mxu0 %v22094_v56 }
 0x214   : > { %19988 = vmatprep.subr.bf16.mxu1 %v22095_v57  ;;  %v22136_v57 = vld [vmem:[%s23561_s21 + $0xf28] sm:$0xff]  }
 0x216   : > { %19967 = vmatpush3.bf16.msra.mxu0 %v22096_v59  ;;  %v22137_v59 = vld [vmem:[%s23561_s21 + $0xfa8] sm:$0xff]  }
 0x217   : > { %19989 = vmatpush3.bf16.msra.mxu1 %v22097_v61  ;;  %19968 = vmatprep.subr.bf16.mxu0 %v22098_v0  ;;  %v22140_v0 = vld [vmem:[%s23561_s21 + $0xf30] sm:$0xff]  }
 0x218   : > { %v19666_v58 = vpop.f32.mrb[28].mxu0  ;;  %19990 = vmatprep.subr.bf16.mxu1 %v22099_v3  ;;  %v22143_v3 = vld [vmem:[%s23561_s21 + $0xff8] sm:$0xff]  }
 0x219   : > { %v19688_v60 = vpop.f32.mrb[28].mxu1  ;;  %v19667_v62 = vpop.f32.mrb[29].mxu0 }
 0x21a   : > { %v19689_v63 = vpop.f32.mrb[29].mxu1  ;;  %v19668_v1 = vadd.f32 %v19667_v62, %v19666_v58  ;;  %v19669_v4 = vpop.f32.mrb[30].mxu0  ;;  %19969 = vmatpush3.bf16.msra.mxu0 %v22100_v6  ;;  %v22138_v62 = vld [vmem:[%s23561_s21 + $0xf70] sm:$0xff]  }
 0x21b   : > { %v19690_v2 = vadd.f32 %v19689_v63, %v19688_v60  ;;  %v19691_v5 = vpop.f32.mrb[30].mxu1  ;;  %v19670_v9 = vpop.f32.mrb[31].mxu0  ;;  %19991 = vmatpush3.bf16.msra.mxu1 %v22101_v8  ;;  %19970 = vmatprep.subr.bf16.mxu0 %v22102_v11  ;;  %v22139_v63 = vld [vmem:[%s23561_s21 + $0xff0] sm:$0xff]   ;;  %v22144_v4 = vld [vmem:[%s23561_s21 + $0xf38] sm:$0xff]  }
 0x21c   : > { %v14149_v7 = vadd.f32 %v19668_v1, %v24068_v26  ;;  %v19692_v10 = vpop.f32.mrb[31].mxu1  ;;  %19992 = vmatprep.subr.bf16.mxu1 %v22103_v13  ;;  %v22114_v26 = vld [vmem:[%s23561_s21 + $0xf40] sm:$0xff]   ;;  %v22141_v1 = vld [vmem:[%s23561_s21 + $0xfb0] sm:$0xff]   ;;  %v22145_v5 = vld [vmem:[%s23561_s21 + $0xfb8] sm:$0xff]  }
 0x21d   : > { %v256_v6 = vld [vmem:[%s23579_s28 + $0xf0] sm:$0x77]  ;;  %v22151_v13 = vld [vmem:[%s23561_s21 + $0x10c0] sm:$0xff]  }
 0x21e   : > { %v24105_v12 = vadd.f32 %v19690_v2, %v14149_v7  ;;  %19971 = vmatpush3.bf16.msra.mxu0 %v22104_v14  ;;  %v22142_v2 = vld [vmem:[%s23561_s21 + $0xf78] sm:$0xff]   ;;  %v17635_v8 = vcombine.low %v256_v6, %v256_v6  ;;  %v17636_v9 = vcombine.high %v256_v6, %v256_v6  ;;  %v22152_v14 = vld [vmem:[%s23561_s21 + $0x1000] sm:$0xff]   ;;  %v22194_v6 = vld [vmem:[%s23561_s21 + $0x1150] sm:$0xff]  }
 0x21f   : > { %19993 = vmatpush3.bf16.msra.mxu1 %v22105_v15  ;;  %19972 = vmatprep.subr.bf16.mxu0 %v22106_v16  ;;  %v257_v7 = vld [vmem:[%s23579_s28 + $0xf8] sm:$0x77]  ;;  %v22153_v15 = vld [vmem:[%s23561_s21 + $0x1080] sm:$0xff]   ;;  %v22154_v16 = vld [vmem:[%s23561_s21 + $0x1048] sm:$0xff]  }
 0x220   : > { %19994 = vmatprep.subr.bf16.mxu1 %v22107_v17  ;;  %v17637_v10 = vcombine.low %v257_v7, %v257_v7  ;;  %v17638_v11 = vcombine.high %v257_v7, %v257_v7  ;;  %v22155_v17 = vld [vmem:[%s23561_s21 + $0x10c8] sm:$0xff]   ;;  %v22195_v7 = vld [vmem:[%s23561_s21 + $0x11d0] sm:$0xff]  }
 0x222   : > { %19973 = vmatpush3.bf16.msra.mxu0 %v22108_v18  ;;  %v22156_v18 = vld [vmem:[%s23561_s21 + $0x1008] sm:$0xff]  }
 0x223   : > { %19995 = vmatpush3.bf16.msra.mxu1 %v22109_v19  ;;  %20002 = vmatprep.subr.bf16.mxu0 %v22114_v26  ;;  %v22157_v19 = vld [vmem:[%s23561_s21 + $0x1088] sm:$0xff]   ;;  %v22164_v26 = vld [vmem:[%s23561_s21 + $0x1018] sm:$0xff]  }
 0x224   : > { %20024 = vmatprep.subr.bf16.mxu1 %v22115_v27  ;;  %v22165_v27 = vld [vmem:[%s23561_s21 + $0x1098] sm:$0xff]  }
 0x225   : > { %14707 = vmatmul.mubr.bf16.vlgmr.msra.gmra.mrb[56].mxu0 %v17631_v22  ;;  %v22160_v22 = vld [vmem:[%s23561_s21 + $0x1010] sm:$0xff]  }
 0x226   : > { %14747 = vmatmul.mubr.bf16.vlgmr.msra.gmra.mrb[56].mxu1 %v17633_v24  ;;  %20003 = vmatpush3.bf16.msra.mxu0 %v22116_v28  ;;  %v22162_v24 = vld [vmem:[%s23561_s21 + $0x1058] sm:$0xff]   ;;  %v22166_v28 = vld [vmem:[%s23561_s21 + $0x1060] sm:$0xff]  }
 0x227   : > { %20025 = vmatpush3.bf16.msra.mxu1 %v22117_v29  ;;  %20004 = vmatprep.subr.bf16.mxu0 %v22118_v30  ;;  %v22167_v29 = vld [vmem:[%s23561_s21 + $0x10e0] sm:$0xff]  }
 0x228   : > { %20026 = vmatprep.subr.bf16.mxu1 %v22119_v31  ;;  %14786 = vmatprep.mubr.bf16.mxu0 %v17636_v9  ;;  %v22168_v30 = vld [vmem:[%s23561_s21 + $0x1020] sm:$0xff]   ;;  %v22197_v9 = vld [vmem:[%s23561_s21 + $0x1190] sm:$0xff]  }
 0x229   : > { %14826 = vmatprep.mubr.bf16.mxu1 %v17638_v11  ;;  %v22199_v11 = vld [vmem:[%s23561_s21 + $0x11d8] sm:$0xff]  }
 0x22a   : > { %20005 = vmatpush3.bf16.msra.mxu0 %v22120_v32  ;;  %v22169_v32 = vld [vmem:[%s23561_s21 + $0x10a0] sm:$0xff]  }
 0x22b   : > { %20027 = vmatpush3.bf16.msra.mxu1 %v22121_v33  ;;  %20006 = vmatprep.subr.bf16.mxu0 %v22122_v34 }
 0x22c   : > { %20028 = vmatprep.subr.bf16.mxu1 %v22123_v35 }
 0x22e   : > { %20007 = vmatpush3.bf16.msra.mxu0 %v22124_v36 }
 0x22f   : > { %20029 = vmatpush3.bf16.msra.mxu1 %v22125_v37  ;;  %20008 = vmatprep.subr.bf16.mxu0 %v22126_v38  ;;  %v22170_v38 = vld [vmem:[%s23561_s21 + $0x1068] sm:$0xff]  }
 0x230   : > { %20030 = vmatprep.subr.bf16.mxu1 %v22127_v39 }
 0x232   : > { %20009 = vmatpush3.bf16.msra.mxu0 %v22128_v40  ;;  %v22171_v40 = vld [vmem:[%s23561_s21 + $0x10e8] sm:$0xff]  }
 0x233   : > { %20031 = vmatpush3.bf16.msra.mxu1 %v22129_v41  ;;  %20010 = vmatprep.subr.bf16.mxu0 %v22130_v42 }
 0x234   : > { %20032 = vmatprep.subr.bf16.mxu1 %v22131_v43  ;;  %v22172_v43 = vld [vmem:[%s23561_s21 + $0x1028] sm:$0xff]  }
 0x236   : > { %20011 = vmatpush3.bf16.msra.mxu0 %v22132_v44 }
 0x237   : > { %20033 = vmatpush3.bf16.msra.mxu1 %v22133_v46  ;;  %20012 = vmatprep.subr.bf16.mxu0 %v22134_v52  ;;  %v22178_v52 = vld [vmem:[%s23561_s21 + $0x1078] sm:$0xff]  }
 0x238   : > { %v19710_v45 = vpop.f32.mrb[32].mxu0  ;;  %20034 = vmatprep.subr.bf16.mxu1 %v22135_v54  ;;  %v22180_v54 = vld [vmem:[%s23561_s21 + $0x1038] sm:$0xff]  }
 0x239   : > { %v19732_v47 = vpop.f32.mrb[32].mxu1  ;;  %v19711_v48 = vpop.f32.mrb[33].mxu0 }
 0x23a   : > { %v19733_v49 = vpop.f32.mrb[33].mxu1  ;;  %v19712_v50 = vadd.f32 %v19711_v48, %v19710_v45  ;;  %v19713_v53 = vpop.f32.mrb[34].mxu0  ;;  %20013 = vmatpush3.bf16.msra.mxu0 %v22136_v57  ;;  %v22173_v45 = vld [vmem:[%s23561_s21 + $0x10a8] sm:$0xff]   ;;  %v22174_v48 = vld [vmem:[%s23561_s21 + $0x1070] sm:$0xff]  }
 0x23b   : > { %v19734_v51 = vadd.f32 %v19733_v49, %v19732_v47  ;;  %v19735_v55 = vpop.f32.mrb[34].mxu1  ;;  %v19714_v58 = vpop.f32.mrb[35].mxu0  ;;  %20035 = vmatpush3.bf16.msra.mxu1 %v22137_v59  ;;  %20014 = vmatprep.subr.bf16.mxu0 %v22138_v62  ;;  %v22175_v49 = vld [vmem:[%s23561_s21 + $0x10f0] sm:$0xff]   ;;  %v22179_v53 = vld [vmem:[%s23561_s21 + $0x10f8] sm:$0xff]   ;;  %v259_v57 = vld [vmem:[%s23579_s28 + $0x108] sm:$0x77] }
 0x23c   : > { %v14229_v56 = vadd.f32 %v19712_v50, %v24105_v12  ;;  %v19736_v60 = vpop.f32.mrb[35].mxu1  ;;  %20036 = vmatprep.subr.bf16.mxu1 %v22139_v63  ;;  %v22150_v12 = vld [vmem:[%s23561_s21 + $0x1040] sm:$0xff]   ;;  %v22176_v50 = vld [vmem:[%s23561_s21 + $0x1030] sm:$0xff]   ;;  %v22181_v55 = vld [vmem:[%s23561_s21 + $0x10b8] sm:$0xff]  }
 0x23d   : > { %v17641_v60 = vcombine.low %v259_v57, %v259_v57  ;;  %v22186_v62 = vld [vmem:[%s23561_s21 + $0x1140] sm:$0xff]  }
 0x23e   : > { %v24141_v61 = vadd.f32 %v19734_v51, %v14229_v56  ;;  %20015 = vmatpush3.bf16.msra.mxu0 %v22140_v0  ;;  %v22177_v51 = vld [vmem:[%s23561_s21 + $0x10b0] sm:$0xff]   ;;  %v258_v56 = vld [vmem:[%s23579_s28 + $0x100] sm:$0x77] }
 0x23f   : > { %20037 = vmatpush3.bf16.msra.mxu1 %v22141_v1  ;;  %20016 = vmatprep.subr.bf16.mxu0 %v22142_v2  ;;  %v17639_v58 = vcombine.low %v258_v56, %v258_v56  ;;  %v17640_v59 = vcombine.high %v258_v56, %v258_v56  ;;  %v22187_v63 = vld [vmem:[%s23561_s21 + $0x11c0] sm:$0xff]   ;;  %v22190_v2 = vld [vmem:[%s23561_s21 + $0x1148] sm:$0xff]   ;;  %v22230_v56 = vld [vmem:[%s23561_s21 + $0x1250] sm:$0xff]  }
 0x240   : > { %20038 = vmatprep.subr.bf16.mxu1 %v22143_v3  ;;  %v22188_v0 = vld [vmem:[%s23561_s21 + $0x1100] sm:$0xff]   ;;  %v22191_v3 = vld [vmem:[%s23561_s21 + $0x11c8] sm:$0xff]  }
 0x241   : > { %v22189_v1 = vld [vmem:[%s23561_s21 + $0x1180] sm:$0xff]  }
 0x242   : > { %20017 = vmatpush3.bf16.msra.mxu0 %v22144_v4  ;;  %v22192_v4 = vld [vmem:[%s23561_s21 + $0x1108] sm:$0xff]  }
 0x243   : > { %20039 = vmatpush3.bf16.msra.mxu1 %v22145_v5  ;;  %20046 = vmatprep.subr.bf16.mxu0 %v22150_v12  ;;  %v22193_v5 = vld [vmem:[%s23561_s21 + $0x1188] sm:$0xff]   ;;  %v22200_v12 = vld [vmem:[%s23561_s21 + $0x1118] sm:$0xff]  }
 0x244   : > { %20068 = vmatprep.subr.bf16.mxu1 %v22151_v13  ;;  %v22201_v13 = vld [vmem:[%s23561_s21 + $0x1198] sm:$0xff]  }
 0x245   : > { %14787 = vmatmul.mubr.bf16.vlgmr.msra.gmra.mrb[60].mxu0 %v17635_v8  ;;  %v22196_v8 = vld [vmem:[%s23561_s21 + $0x1110] sm:$0xff]  }
 0x246   : > { %14827 = vmatmul.mubr.bf16.vlgmr.msra.gmra.mrb[60].mxu1 %v17637_v10  ;;  %20047 = vmatpush3.bf16.msra.mxu0 %v22152_v14  ;;  %v22198_v10 = vld [vmem:[%s23561_s21 + $0x1158] sm:$0xff]   ;;  %v22202_v14 = vld [vmem:[%s23561_s21 + $0x1160] sm:$0xff]  }
 0x247   : > { %20069 = vmatpush3.bf16.msra.mxu1 %v22153_v15  ;;  %20048 = vmatprep.subr.bf16.mxu0 %v22154_v16  ;;  %v22203_v15 = vld [vmem:[%s23561_s21 + $0x11e0] sm:$0xff]  }
 0x248   : > { %20070 = vmatprep.subr.bf16.mxu1 %v22155_v17  ;;  %14866 = vmatprep.mubr.bf16.mxu0 %v17640_v59  ;;  %v22204_v17 = vld [vmem:[%s23561_s21 + $0x1120] sm:$0xff]   ;;  %v22233_v59 = vld [vmem:[%s23561_s21 + $0x1290] sm:$0xff]  }
 0x24a   : > { %20049 = vmatpush3.bf16.msra.mxu0 %v22156_v18 }
 0x24b   : > { %20071 = vmatpush3.bf16.msra.mxu1 %v22157_v19  ;;  %20050 = vmatprep.subr.bf16.mxu0 %v22158_v20  ;;  %v22205_v19 = vld [vmem:[%s23561_s21 + $0x11a0] sm:$0xff]  }
 0x24c   : > { %20072 = vmatprep.subr.bf16.mxu1 %v22159_v21 }
 0x24e   : > { %20051 = vmatpush3.bf16.msra.mxu0 %v22160_v22 }
 0x24f   : > { %20073 = vmatpush3.bf16.msra.mxu1 %v22161_v23  ;;  %20052 = vmatprep.subr.bf16.mxu0 %v22162_v24  ;;  %v22206_v23 = vld [vmem:[%s23561_s21 + $0x1168] sm:$0xff]  }
 0x250   : > { %20074 = vmatprep.subr.bf16.mxu1 %v22163_v25  ;;  %v22207_v25 = vld [vmem:[%s23561_s21 + $0x11e8] sm:$0xff]  }
 0x252   : > { %20053 = vmatpush3.bf16.msra.mxu0 %v22164_v26 }
 0x253   : > { %20075 = vmatpush3.bf16.msra.mxu1 %v22165_v27  ;;  %20054 = vmatprep.subr.bf16.mxu0 %v22166_v28 }
 0x254   : > { %20076 = vmatprep.subr.bf16.mxu1 %v22167_v29  ;;  %v22208_v29 = vld [vmem:[%s23561_s21 + $0x1128] sm:$0xff]  }
 0x256   : > { %20055 = vmatpush3.bf16.msra.mxu0 %v22168_v30  ;;  %v22209_v30 = vld [vmem:[%s23561_s21 + $0x11a8] sm:$0xff]  }
 0x257   : > { %20077 = vmatpush3.bf16.msra.mxu1 %v22169_v32  ;;  %20056 = vmatprep.subr.bf16.mxu0 %v22170_v38  ;;  %v22214_v38 = vld [vmem:[%s23561_s21 + $0x1178] sm:$0xff]  }
 0x258   : > { %v19754_v31 = vpop.f32.mrb[36].mxu0  ;;  %20078 = vmatprep.subr.bf16.mxu1 %v22171_v40  ;;  %v22216_v40 = vld [vmem:[%s23561_s21 + $0x1138] sm:$0xff]  }
 0x259   : > { %v19776_v33 = vpop.f32.mrb[36].mxu1  ;;  %v19755_v34 = vpop.f32.mrb[37].mxu0 }
 0x25a   : > { %v19777_v35 = vpop.f32.mrb[37].mxu1  ;;  %v19756_v36 = vadd.f32 %v19755_v34, %v19754_v31  ;;  %v19757_v39 = vpop.f32.mrb[38].mxu0  ;;  %20057 = vmatpush3.bf16.msra.mxu0 %v22172_v43  ;;  %v22210_v34 = vld [vmem:[%s23561_s21 + $0x1170] sm:$0xff]   ;;  %v261_v43 = vld [vmem:[%s23579_s28 + $0x118] sm:$0x77] }
 0x25b   : > { %v19778_v37 = vadd.f32 %v19777_v35, %v19776_v33  ;;  %v19779_v41 = vpop.f32.mrb[38].mxu1  ;;  %v19758_v44 = vpop.f32.mrb[39].mxu0  ;;  %20079 = vmatpush3.bf16.msra.mxu1 %v22173_v45  ;;  %20058 = vmatprep.subr.bf16.mxu0 %v22174_v48  ;;  %v22211_v35 = vld [vmem:[%s23561_s21 + $0x11f0] sm:$0xff]   ;;  %v22215_v39 = vld [vmem:[%s23561_s21 + $0x11f8] sm:$0xff]   ;;  %v17646_v48 = vcombine.high %v261_v43, %v261_v43 }
 0x25c   : > { %v14309_v42 = vadd.f32 %v19756_v36, %v24141_v61  ;;  %v19780_v46 = vpop.f32.mrb[39].mxu1  ;;  %20080 = vmatprep.subr.bf16.mxu1 %v22175_v49  ;;  %v17642_v61 = vcombine.high %v259_v57, %v259_v57  ;;  %v22212_v36 = vld [vmem:[%s23561_s21 + $0x1130] sm:$0xff]   ;;  %v22217_v41 = vld [vmem:[%s23561_s21 + $0x11b8] sm:$0xff]   ;;  %v22223_v49 = vld [vmem:[%s23561_s21 + $0x12c0] sm:$0xff]  }
 0x25d   : > { %v17645_v46 = vcombine.low %v261_v43, %v261_v43  ;;  %v22231_v57 = vld [vmem:[%s23561_s21 + $0x12d0] sm:$0xff]  }
 0x25e   : > { %v24178_v47 = vadd.f32 %v19778_v37, %v14309_v42  ;;  %20059 = vmatpush3.bf16.msra.mxu0 %v22176_v50  ;;  %14906 = vmatprep.mubr.bf16.mxu1 %v17642_v61  ;;  %v22213_v37 = vld [vmem:[%s23561_s21 + $0x11b0] sm:$0xff]   ;;  %v22224_v50 = vld [vmem:[%s23561_s21 + $0x1200] sm:$0xff]   ;;  %v22235_v61 = vld [vmem:[%s23561_s21 + $0x12d8] sm:$0xff]  }
 0x25f   : > { %20081 = vmatpush3.bf16.msra.mxu1 %v22177_v51  ;;  %20060 = vmatprep.subr.bf16.mxu0 %v22178_v52  ;;  %v260_v42 = vld [vmem:[%s23579_s28 + $0x110] sm:$0x77]  ;;  %v22225_v51 = vld [vmem:[%s23561_s21 + $0x1280] sm:$0xff]   ;;  %v22226_v52 = vld [vmem:[%s23561_s21 + $0x1248] sm:$0xff]  }
 0x260   : > { %20082 = vmatprep.subr.bf16.mxu1 %v22179_v53  ;;  %v17643_v44 = vcombine.low %v260_v42, %v260_v42  ;;  %v17644_v45 = vcombine.high %v260_v42, %v260_v42  ;;  %v22227_v53 = vld [vmem:[%s23561_s21 + $0x12c8] sm:$0xff]   ;;  %v22266_v42 = vld [vmem:[%s23561_s21 + $0x1350] sm:$0xff]  }
 0x261   : > { %v22267_v43 = vld [vmem:[%s23561_s21 + $0x13d0] sm:$0xff]  }
 0x262   : > { %20061 = vmatpush3.bf16.msra.mxu0 %v22180_v54  ;;  %v22228_v54 = vld [vmem:[%s23561_s21 + $0x1208] sm:$0xff]  }
 0x263   : > { %20083 = vmatpush3.bf16.msra.mxu1 %v22181_v55  ;;  %20090 = vmatprep.subr.bf16.mxu0 %v22186_v62  ;;  %v22229_v55 = vld [vmem:[%s23561_s21 + $0x1288] sm:$0xff]   ;;  %v22236_v62 = vld [vmem:[%s23561_s21 + $0x1218] sm:$0xff]  }
 0x264   : > { %20112 = vmatprep.subr.bf16.mxu1 %v22187_v63  ;;  %v22237_v63 = vld [vmem:[%s23561_s21 + $0x1298] sm:$0xff]  }
 0x265   : > { %14867 = vmatmul.mubr.bf16.vlgmr.msra.gmra.mrb[64].mxu0 %v17639_v58  ;;  %v22232_v58 = vld [vmem:[%s23561_s21 + $0x1210] sm:$0xff]  }
 0x266   : > { %14907 = vmatmul.mubr.bf16.vlgmr.msra.gmra.mrb[64].mxu1 %v17641_v60  ;;  %20091 = vmatpush3.bf16.msra.mxu0 %v22188_v0  ;;  %v22234_v60 = vld [vmem:[%s23561_s21 + $0x1258] sm:$0xff]   ;;  %v22238_v0 = vld [vmem:[%s23561_s21 + $0x1260] sm:$0xff]  }
 0x267   : > { %20113 = vmatpush3.bf16.msra.mxu1 %v22189_v1  ;;  %20092 = vmatprep.subr.bf16.mxu0 %v22190_v2  ;;  %v22239_v1 = vld [vmem:[%s23561_s21 + $0x12e0] sm:$0xff]  }
 0x268   : > { %20114 = vmatprep.subr.bf16.mxu1 %v22191_v3  ;;  %14946 = vmatprep.mubr.bf16.mxu0 %v17644_v45  ;;  %v22240_v3 = vld [vmem:[%s23561_s21 + $0x1220] sm:$0xff]   ;;  %v22269_v45 = vld [vmem:[%s23561_s21 + $0x1390] sm:$0xff]  }
 0x269   : > { %14986 = vmatprep.mubr.bf16.mxu1 %v17646_v48  ;;  %v22272_v48 = vld [vmem:[%s23561_s21 + $0x1318] sm:$0xff]  }
 0x26a   : > { %20093 = vmatpush3.bf16.msra.mxu0 %v22192_v4 }
 0x26b   : > { %20115 = vmatpush3.bf16.msra.mxu1 %v22193_v5  ;;  %20094 = vmatprep.subr.bf16.mxu0 %v22194_v6  ;;  %v22241_v5 = vld [vmem:[%s23561_s21 + $0x12a0] sm:$0xff]  }
 0x26c   : > { %20116 = vmatprep.subr.bf16.mxu1 %v22195_v7 }
 0x26e   : > { %20095 = vmatpush3.bf16.msra.mxu0 %v22196_v8  ;;  %v22242_v8 = vld [vmem:[%s23561_s21 + $0x1268] sm:$0xff]  }
 0x26f   : > { %20117 = vmatpush3.bf16.msra.mxu1 %v22197_v9  ;;  %20096 = vmatprep.subr.bf16.mxu0 %v22198_v10 }
 0x270   : > { %20118 = vmatprep.subr.bf16.mxu1 %v22199_v11  ;;  %v22243_v11 = vld [vmem:[%s23561_s21 + $0x12e8] sm:$0xff]  }
 0x272   : > { %20097 = vmatpush3.bf16.msra.mxu0 %v22200_v12 }
 0x273   : > { %20119 = vmatpush3.bf16.msra.mxu1 %v22201_v13  ;;  %20098 = vmatprep.subr.bf16.mxu0 %v22202_v14  ;;  %v22244_v14 = vld [vmem:[%s23561_s21 + $0x1228] sm:$0xff]  }
 0x274   : > { %20120 = vmatprep.subr.bf16.mxu1 %v22203_v15 }
 0x276   : > { %20099 = vmatpush3.bf16.msra.mxu0 %v22204_v17 }
 0x277   : > { %20121 = vmatpush3.bf16.msra.mxu1 %v22205_v19  ;;  %20100 = vmatprep.subr.bf16.mxu0 %v22206_v23  ;;  %v22246_v19 = vld [vmem:[%s23561_s21 + $0x1270] sm:$0xff]  }
 0x278   : > { %v19798_v16 = vpop.f32.mrb[40].mxu0  ;;  %20122 = vmatprep.subr.bf16.mxu1 %v22207_v25  ;;  %v22249_v23 = vld [vmem:[%s23561_s21 + $0x12b0] sm:$0xff]   ;;  %v22251_v25 = vld [vmem:[%s23561_s21 + $0x12f8] sm:$0xff]  }
 0x279   : > { %v19820_v18 = vpop.f32.mrb[40].mxu1  ;;  %v19799_v20 = vpop.f32.mrb[41].mxu0 }
 0x27a   : > { %v19800_v21 = vadd.f32 %v19799_v20, %v19798_v16  ;;  %v19821_v22 = vpop.f32.mrb[41].mxu1  ;;  %v19801_v26 = vpop.f32.mrb[42].mxu0  ;;  %20101 = vmatpush3.bf16.msra.mxu0 %v22208_v29  ;;  %v22245_v16 = vld [vmem:[%s23561_s21 + $0x12a8] sm:$0xff]  }
 0x27b   : > { %v19822_v24 = vadd.f32 %v19821_v22, %v19820_v18  ;;  %v19823_v28 = vpop.f32.mrb[42].mxu1  ;;  %v19802_v31 = vpop.f32.mrb[43].mxu0  ;;  %20123 = vmatpush3.bf16.msra.mxu1 %v22209_v30  ;;  %20102 = vmatprep.subr.bf16.mxu0 %v22210_v34  ;;  %v22248_v22 = vld [vmem:[%s23561_s21 + $0x1230] sm:$0xff]   ;;  %v22252_v26 = vld [vmem:[%s23561_s21 + $0x1238] sm:$0xff]   ;;  %v22258_v34 = vld [vmem:[%s23561_s21 + $0x1340] sm:$0xff]  }
 0x27c   : > { %v14389_v27 = vadd.f32 %v19800_v21, %v24178_v47  ;;  %v19824_v33 = vpop.f32.mrb[43].mxu1  ;;  %20124 = vmatprep.subr.bf16.mxu1 %v22211_v35  ;;  %v22222_v47 = vld [vmem:[%s23561_s21 + $0x1240] sm:$0xff]   ;;  %v22247_v21 = vld [vmem:[%s23561_s21 + $0x12f0] sm:$0xff]   ;;  %v263_v31 = vld [vmem:[%s23579_s28 + $0x128] sm:$0x77] }
 0x27d   : > { %v262_v28 = vld [vmem:[%s23579_s28 + $0x120] sm:$0x77]  ;;  %v17650_v33 = vcombine.high %v263_v31, %v263_v31 }
 0x27e   : > { %v24215_v32 = vadd.f32 %v19822_v24, %v14389_v27  ;;  %20103 = vmatpush3.bf16.msra.mxu0 %v22212_v36  ;;  %v22250_v24 = vld [vmem:[%s23561_s21 + $0x1278] sm:$0xff]   ;;  %v17647_v29 = vcombine.low %v262_v28, %v262_v28  ;;  %v17648_v30 = vcombine.high %v262_v28, %v262_v28  ;;  %v22259_v35 = vld [vmem:[%s23561_s21 + $0x13c0] sm:$0xff]   ;;  %v22302_v28 = vld [vmem:[%s23561_s21 + $0x1450] sm:$0xff]  }
 0x27f   : > { %20125 = vmatpush3.bf16.msra.mxu1 %v22213_v37  ;;  %20104 = vmatprep.subr.bf16.mxu0 %v22214_v38  ;;  %v22253_v27 = vld [vmem:[%s23561_s21 + $0x12b8] sm:$0xff]   ;;  %v22260_v36 = vld [vmem:[%s23561_s21 + $0x1300] sm:$0xff]   ;;  %v22262_v38 = vld [vmem:[%s23561_s21 + $0x1348] sm:$0xff]  }
 0x280   : > { %20126 = vmatprep.subr.bf16.mxu1 %v22215_v39  ;;  %v22261_v37 = vld [vmem:[%s23561_s21 + $0x1380] sm:$0xff]   ;;  %v22263_v39 = vld [vmem:[%s23561_s21 + $0x13c8] sm:$0xff]  }
 0x282   : > { %20105 = vmatpush3.bf16.msra.mxu0 %v22216_v40  ;;  %v22264_v40 = vld [vmem:[%s23561_s21 + $0x1308] sm:$0xff]  }
 0x283   : > { %20127 = vmatpush3.bf16.msra.mxu1 %v22217_v41  ;;  %20134 = vmatprep.subr.bf16.mxu0 %v22222_v47  ;;  %v22265_v41 = vld [vmem:[%s23561_s21 + $0x1388] sm:$0xff]   ;;  %v22271_v47 = vld [vmem:[%s23561_s21 + $0x13d8] sm:$0xff]  }
 0x284   : > { %20156 = vmatprep.subr.bf16.mxu1 %v22223_v49  ;;  %v22273_v49 = vld [vmem:[%s23561_s21 + $0x1398] sm:$0xff]  }
 0x285   : > { %14947 = vmatmul.mubr.bf16.vlgmr.msra.gmra.mrb[68].mxu0 %v17643_v44  ;;  %v22268_v44 = vld [vmem:[%s23561_s21 + $0x1310] sm:$0xff]  }
 0x286   : > { %14987 = vmatmul.mubr.bf16.vlgmr.msra.gmra.mrb[68].mxu1 %v17645_v46  ;;  %20135 = vmatpush3.bf16.msra.mxu0 %v22224_v50  ;;  %v22270_v46 = vld [vmem:[%s23561_s21 + $0x1358] sm:$0xff]   ;;  %v22274_v50 = vld [vmem:[%s23561_s21 + $0x1360] sm:$0xff]  }
 0x287   : > { %20157 = vmatpush3.bf16.msra.mxu1 %v22225_v51  ;;  %20136 = vmatprep.subr.bf16.mxu0 %v22226_v52  ;;  %v22275_v51 = vld [vmem:[%s23561_s21 + $0x13e0] sm:$0xff]  }
 0x288   : > { %20158 = vmatprep.subr.bf16.mxu1 %v22227_v53  ;;  %15026 = vmatprep.mubr.bf16.mxu0 %v17648_v30  ;;  %v22276_v53 = vld [vmem:[%s23561_s21 + $0x1320] sm:$0xff]   ;;  %v22304_v30 = vld [vmem:[%s23561_s21 + $0x1410] sm:$0xff]  }
 0x289   : > { %15066 = vmatprep.mubr.bf16.mxu1 %v17650_v33  ;;  %v22307_v33 = vld [vmem:[%s23561_s21 + $0x14d8] sm:$0xff]  }
 0x28a   : > { %20137 = vmatpush3.bf16.msra.mxu0 %v22228_v54 }
 0x28b   : > { %20159 = vmatpush3.bf16.msra.mxu1 %v22229_v55  ;;  %20138 = vmatprep.subr.bf16.mxu0 %v22230_v56  ;;  %v22277_v55 = vld [vmem:[%s23561_s21 + $0x13a0] sm:$0xff]  }
 0x28c   : > { %20160 = vmatprep.subr.bf16.mxu1 %v22231_v57 }
 0x28e   : > { %20139 = vmatpush3.bf16.msra.mxu0 %v22232_v58  ;;  %v22278_v58 = vld [vmem:[%s23561_s21 + $0x1368] sm:$0xff]  }
 0x28f   : > { %20161 = vmatpush3.bf16.msra.mxu1 %v22233_v59  ;;  %20140 = vmatprep.subr.bf16.mxu0 %v22234_v60 }
 0x290   : > { %20162 = vmatprep.subr.bf16.mxu1 %v22235_v61  ;;  %v22279_v61 = vld [vmem:[%s23561_s21 + $0x13e8] sm:$0xff]  }
 0x292   : > { %20141 = vmatpush3.bf16.msra.mxu0 %v22236_v62 }
 0x293   : > { %20163 = vmatpush3.bf16.msra.mxu1 %v22237_v63  ;;  %20142 = vmatprep.subr.bf16.mxu0 %v22238_v0  ;;  %v22280_v0 = vld [vmem:[%s23561_s21 + $0x1328] sm:$0xff]  }
 0x294   : > { %20164 = vmatprep.subr.bf16.mxu1 %v22239_v1 }
 0x296   : > { %20143 = vmatpush3.bf16.msra.mxu0 %v22240_v3 }
 0x297   : > { %20165 = vmatpush3.bf16.msra.mxu1 %v22241_v5  ;;  %20144 = vmatprep.subr.bf16.mxu0 %v22242_v8  ;;  %v22282_v5 = vld [vmem:[%s23561_s21 + $0x1370] sm:$0xff]  }
 0x298   : > { %v19842_v2 = vpop.f32.mrb[44].mxu0  ;;  %20166 = vmatprep.subr.bf16.mxu1 %v22243_v11  ;;  %v22284_v8 = vld [vmem:[%s23561_s21 + $0x1330] sm:$0xff]   ;;  %v22287_v11 = vld [vmem:[%s23561_s21 + $0x13f8] sm:$0xff]  }
 0x299   : > { %v19864_v4 = vpop.f32.mrb[44].mxu1  ;;  %v19843_v6 = vpop.f32.mrb[45].mxu0 }
 0x29a   : > { %v19865_v7 = vpop.f32.mrb[45].mxu1  ;;  %v19844_v9 = vadd.f32 %v19843_v6, %v19842_v2  ;;  %v19845_v12 = vpop.f32.mrb[46].mxu0  ;;  %20145 = vmatpush3.bf16.msra.mxu0 %v22244_v14  ;;  %v22281_v2 = vld [vmem:[%s23561_s21 + $0x13a8] sm:$0xff]   ;;  %v264_v14 = vld [vmem:[%s23579_s28 + $0x130] sm:$0x77] }
 0x29b   : > { %v19866_v10 = vadd.f32 %v19865_v7, %v19864_v4  ;;  %v19867_v13 = vpop.f32.mrb[46].mxu1  ;;  %v19846_v17 = vpop.f32.mrb[47].mxu0  ;;  %20167 = vmatpush3.bf16.msra.mxu1 %v22245_v16  ;;  %20146 = vmatprep.subr.bf16.mxu0 %v22246_v19  ;;  %v22283_v7 = vld [vmem:[%s23561_s21 + $0x13f0] sm:$0xff]   ;;  %v22288_v12 = vld [vmem:[%s23561_s21 + $0x1338] sm:$0xff]   ;;  %v17651_v16 = vcombine.low %v264_v14, %v264_v14 }
 0x29c   : > { %v14469_v15 = vadd.f32 %v19844_v9, %v24215_v32  ;;  %v19868_v18 = vpop.f32.mrb[47].mxu1  ;;  %20168 = vmatprep.subr.bf16.mxu1 %v22247_v21  ;;  %v17649_v32 = vcombine.low %v263_v31, %v263_v31  ;;  %v22285_v9 = vld [vmem:[%s23561_s21 + $0x13b0] sm:$0xff]   ;;  %v22289_v13 = vld [vmem:[%s23561_s21 + $0x13b8] sm:$0xff]   ;;  %v17652_v17 = vcombine.high %v264_v14, %v264_v14  ;;  %v22295_v21 = vld [vmem:[%s23561_s21 + $0x14c0] sm:$0xff]  }
 0x29d   : > { %v22305_v31 = vld [vmem:[%s23561_s21 + $0x1490] sm:$0xff]  }
 0x29e   : > { %v24253_v20 = vadd.f32 %v19866_v10, %v14469_v15  ;;  %20147 = vmatpush3.bf16.msra.mxu0 %v22248_v22  ;;  %v22286_v10 = vld [vmem:[%s23561_s21 + $0x1378] sm:$0xff]   ;;  %v22296_v22 = vld [vmem:[%s23561_s21 + $0x1400] sm:$0xff]   ;;  %v22338_v14 = vld [vmem:[%s23561_s21 + $0x1550] sm:$0xff]  }
 0x29f   : > { %20169 = vmatpush3.bf16.msra.mxu1 %v22249_v23  ;;  %20148 = vmatprep.subr.bf16.mxu0 %v22250_v24  ;;  %v265_v15 = vld [vmem:[%s23579_s28 + $0x138] sm:$0x77]  ;;  %v22297_v23 = vld [vmem:[%s23561_s21 + $0x1480] sm:$0xff]   ;;  %v22298_v24 = vld [vmem:[%s23561_s21 + $0x1448] sm:$0xff]  }
 0x2a0   : > { %20170 = vmatprep.subr.bf16.mxu1 %v22251_v25  ;;  %v17653_v18 = vcombine.low %v265_v15, %v265_v15  ;;  %v17654_v19 = vcombine.high %v265_v15, %v265_v15  ;;  %v22299_v25 = vld [vmem:[%s23561_s21 + $0x14c8] sm:$0xff]   ;;  %v22339_v15 = vld [vmem:[%s23561_s21 + $0x15d0] sm:$0xff]  }
 0x2a2   : > { %20149 = vmatpush3.bf16.msra.mxu0 %v22252_v26  ;;  %v22300_v26 = vld [vmem:[%s23561_s21 + $0x1408] sm:$0xff]  }
 0x2a3   : > { %20171 = vmatpush3.bf16.msra.mxu1 %v22253_v27  ;;  %20178 = vmatprep.subr.bf16.mxu0 %v22258_v34  ;;  %v22301_v27 = vld [vmem:[%s23561_s21 + $0x1488] sm:$0xff]   ;;  %v22308_v34 = vld [vmem:[%s23561_s21 + $0x1418] sm:$0xff]  }
 0x2a4   : > { %20200 = vmatprep.subr.bf16.mxu1 %v22259_v35  ;;  %v22309_v35 = vld [vmem:[%s23561_s21 + $0x1498] sm:$0xff]  }
 0x2a5   : > { %15027 = vmatmul.mubr.bf16.vlgmr.msra.gmra.mrb[72].mxu0 %v17647_v29  ;;  %v22303_v29 = vld [vmem:[%s23561_s21 + $0x14d0] sm:$0xff]  }
 0x2a6   : > { %15067 = vmatmul.mubr.bf16.vlgmr.msra.gmra.mrb[72].mxu1 %v17649_v32  ;;  %20179 = vmatpush3.bf16.msra.mxu0 %v22260_v36  ;;  %v22306_v32 = vld [vmem:[%s23561_s21 + $0x1458] sm:$0xff]   ;;  %v22310_v36 = vld [vmem:[%s23561_s21 + $0x1460] sm:$0xff]  }
 0x2a7   : > { %20201 = vmatpush3.bf16.msra.mxu1 %v22261_v37  ;;  %20180 = vmatprep.subr.bf16.mxu0 %v22262_v38  ;;  %v22311_v37 = vld [vmem:[%s23561_s21 + $0x14e0] sm:$0xff]  }
 0x2a8   : > { %20202 = vmatprep.subr.bf16.mxu1 %v22263_v39  ;;  %15106 = vmatprep.mubr.bf16.mxu0 %v17652_v17  ;;  %v22312_v38 = vld [vmem:[%s23561_s21 + $0x1420] sm:$0xff]   ;;  %v22341_v17 = vld [vmem:[%s23561_s21 + $0x1590] sm:$0xff]  }
 0x2a9   : > { %15146 = vmatprep.mubr.bf16.mxu1 %v17654_v19  ;;  %v22343_v19 = vld [vmem:[%s23561_s21 + $0x15d8] sm:$0xff]  }
 0x2aa   : > { %20181 = vmatpush3.bf16.msra.mxu0 %v22264_v40  ;;  %v22313_v40 = vld [vmem:[%s23561_s21 + $0x14a0] sm:$0xff]  }
 0x2ab   : > { %20203 = vmatpush3.bf16.msra.mxu1 %v22265_v41  ;;  %20182 = vmatprep.subr.bf16.mxu0 %v22266_v42 }
 0x2ac   : > { %20204 = vmatprep.subr.bf16.mxu1 %v22267_v43 }
 0x2ae   : > { %20183 = vmatpush3.bf16.msra.mxu0 %v22268_v44 }
 0x2af   : > { %20205 = vmatpush3.bf16.msra.mxu1 %v22269_v45  ;;  %20184 = vmatprep.subr.bf16.mxu0 %v22270_v46  ;;  %v22314_v46 = vld [vmem:[%s23561_s21 + $0x1468] sm:$0xff]  }
 0x2b0   : > { %20206 = vmatprep.subr.bf16.mxu1 %v22271_v47 }
 0x2b2   : > { %20185 = vmatpush3.bf16.msra.mxu0 %v22272_v48  ;;  %v22315_v48 = vld [vmem:[%s23561_s21 + $0x14e8] sm:$0xff]  }
 0x2b3   : > { %20207 = vmatpush3.bf16.msra.mxu1 %v22273_v49  ;;  %20186 = vmatprep.subr.bf16.mxu0 %v22274_v50 }
 0x2b4   : > { %20208 = vmatprep.subr.bf16.mxu1 %v22275_v51  ;;  %v22316_v51 = vld [vmem:[%s23561_s21 + $0x1428] sm:$0xff]  }
 0x2b6   : > { %20187 = vmatpush3.bf16.msra.mxu0 %v22276_v53  ;;  %v22317_v53 = vld [vmem:[%s23561_s21 + $0x14a8] sm:$0xff]  }
 0x2b7   : > { %20209 = vmatpush3.bf16.msra.mxu1 %v22277_v55  ;;  %20188 = vmatprep.subr.bf16.mxu0 %v22278_v58  ;;  %v22320_v58 = vld [vmem:[%s23561_s21 + $0x1430] sm:$0xff]  }
 0x2b8   : > { %v19886_v52 = vpop.f32.mrb[48].mxu0  ;;  %20210 = vmatprep.subr.bf16.mxu1 %v22279_v61  ;;  %v22323_v61 = vld [vmem:[%s23561_s21 + $0x14f8] sm:$0xff]  }
 0x2b9   : > { %v19908_v54 = vpop.f32.mrb[48].mxu1  ;;  %v19887_v56 = vpop.f32.mrb[49].mxu0 }
 0x2ba   : > { %v19909_v57 = vpop.f32.mrb[49].mxu1  ;;  %v19888_v59 = vadd.f32 %v19887_v56, %v19886_v52  ;;  %v19889_v62 = vpop.f32.mrb[50].mxu0  ;;  %20189 = vmatpush3.bf16.msra.mxu0 %v22280_v0  ;;  %v22318_v56 = vld [vmem:[%s23561_s21 + $0x1470] sm:$0xff]   ;;  %v266_v0 = vld [vmem:[%s23579_s28 + $0x140] sm:$0x77] }
 0x2bb   : > { %v19910_v60 = vadd.f32 %v19909_v57, %v19908_v54  ;;  %v19911_v63 = vpop.f32.mrb[50].mxu1  ;;  %v19890_v3 = vpop.f32.mrb[51].mxu0  ;;  %20211 = vmatpush3.bf16.msra.mxu1 %v22281_v2  ;;  %20190 = vmatprep.subr.bf16.mxu0 %v22282_v5  ;;  %v22319_v57 = vld [vmem:[%s23561_s21 + $0x14f0] sm:$0xff]   ;;  %v22324_v62 = vld [vmem:[%s23561_s21 + $0x1438] sm:$0xff]   ;;  %v17655_v2 = vcombine.low %v266_v0, %v266_v0 }
 0x2bc   : > { %v14549_v1 = vadd.f32 %v19888_v59, %v24253_v20  ;;  %v19912_v4 = vpop.f32.mrb[51].mxu1  ;;  %20212 = vmatprep.subr.bf16.mxu1 %v22283_v7  ;;  %v22294_v20 = vld [vmem:[%s23561_s21 + $0x1440] sm:$0xff]   ;;  %v22321_v59 = vld [vmem:[%s23561_s21 + $0x14b0] sm:$0xff]   ;;  %v22325_v63 = vld [vmem:[%s23561_s21 + $0x14b8] sm:$0xff]   ;;  %v17656_v3 = vcombine.high %v266_v0, %v266_v0 }
 0x2bd   : > { %v22331_v7 = vld [vmem:[%s23561_s21 + $0x15c0] sm:$0xff]   ;;  %v22374_v0 = vld [vmem:[%s23561_s21 + $0x1650] sm:$0xff]  }
 0x2be   : > { %v24290_v6 = vadd.f32 %v19910_v60, %v14549_v1  ;;  %20191 = vmatpush3.bf16.msra.mxu0 %v22284_v8  ;;  %v22322_v60 = vld [vmem:[%s23561_s21 + $0x1478] sm:$0xff]   ;;  %v267_v1 = vld [vmem:[%s23579_s28 + $0x148] sm:$0x77]  ;;  %v22332_v8 = vld [vmem:[%s23561_s21 + $0x1500] sm:$0xff]  }
 0x2bf   : > { %20213 = vmatpush3.bf16.msra.mxu1 %v22285_v9  ;;  %20192 = vmatprep.subr.bf16.mxu0 %v22286_v10  ;;  %v17657_v4 = vcombine.low %v267_v1, %v267_v1  ;;  %v17658_v5 = vcombine.high %v267_v1, %v267_v1  ;;  %v22333_v9 = vld [vmem:[%s23561_s21 + $0x1580] sm:$0xff]   ;;  %v22334_v10 = vld [vmem:[%s23561_s21 + $0x1548] sm:$0xff]   ;;  %v22375_v1 = vld [vmem:[%s23561_s21 + $0x16d0] sm:$0xff]  }
 0x2c0   : > { %20214 = vmatprep.subr.bf16.mxu1 %v22287_v11  ;;  %v22335_v11 = vld [vmem:[%s23561_s21 + $0x15c8] sm:$0xff]  }
 0x2c2   : > { %20193 = vmatpush3.bf16.msra.mxu0 %v22288_v12  ;;  %v22336_v12 = vld [vmem:[%s23561_s21 + $0x1508] sm:$0xff]  }
 0x2c3   : > { %20215 = vmatpush3.bf16.msra.mxu1 %v22289_v13  ;;  %20222 = vmatprep.subr.bf16.mxu0 %v22294_v20  ;;  %v22337_v13 = vld [vmem:[%s23561_s21 + $0x1588] sm:$0xff]   ;;  %v22344_v20 = vld [vmem:[%s23561_s21 + $0x1518] sm:$0xff]  }
 0x2c4   : > { %20244 = vmatprep.subr.bf16.mxu1 %v22295_v21  ;;  %v22345_v21 = vld [vmem:[%s23561_s21 + $0x1598] sm:$0xff]  }
 0x2c5   : > { %15107 = vmatmul.mubr.bf16.vlgmr.msra.gmra.mrb[76].mxu0 %v17651_v16  ;;  %v22340_v16 = vld [vmem:[%s23561_s21 + $0x1510] sm:$0xff]  }
 0x2c6   : > { %15147 = vmatmul.mubr.bf16.vlgmr.msra.gmra.mrb[76].mxu1 %v17653_v18  ;;  %20223 = vmatpush3.bf16.msra.mxu0 %v22296_v22  ;;  %v22342_v18 = vld [vmem:[%s23561_s21 + $0x1558] sm:$0xff]   ;;  %v22346_v22 = vld [vmem:[%s23561_s21 + $0x1560] sm:$0xff]  }
 0x2c7   : > { %20245 = vmatpush3.bf16.msra.mxu1 %v22297_v23  ;;  %20224 = vmatprep.subr.bf16.mxu0 %v22298_v24  ;;  %v22347_v23 = vld [vmem:[%s23561_s21 + $0x15e0] sm:$0xff]  }
 0x2c8   : > { %20246 = vmatprep.subr.bf16.mxu1 %v22299_v25  ;;  %15186 = vmatprep.mubr.bf16.mxu0 %v17656_v3  ;;  %v22348_v25 = vld [vmem:[%s23561_s21 + $0x1520] sm:$0xff]   ;;  %v22377_v3 = vld [vmem:[%s23561_s21 + $0x1690] sm:$0xff]  }
 0x2c9   : > { %15226 = vmatprep.mubr.bf16.mxu1 %v17658_v5  ;;  %v22379_v5 = vld [vmem:[%s23561_s21 + $0x16d8] sm:$0xff]  }
 0x2ca   : > { %20225 = vmatpush3.bf16.msra.mxu0 %v22300_v26 }
 0x2cb   : > { %20247 = vmatpush3.bf16.msra.mxu1 %v22301_v27  ;;  %20226 = vmatprep.subr.bf16.mxu0 %v22302_v28  ;;  %v22349_v27 = vld [vmem:[%s23561_s21 + $0x15a0] sm:$0xff]  }
 0x2cc   : > { %20248 = vmatprep.subr.bf16.mxu1 %v22303_v29 }
 0x2ce   : > { %20227 = vmatpush3.bf16.msra.mxu0 %v22304_v30 }
 0x2cf   : > { %20249 = vmatpush3.bf16.msra.mxu1 %v22305_v31  ;;  %20228 = vmatprep.subr.bf16.mxu0 %v22306_v32  ;;  %v22350_v31 = vld [vmem:[%s23561_s21 + $0x1568] sm:$0xff]  }
 0x2d0   : > { %20250 = vmatprep.subr.bf16.mxu1 %v22307_v33  ;;  %v22351_v33 = vld [vmem:[%s23561_s21 + $0x15e8] sm:$0xff]  }
 0x2d2   : > { %20229 = vmatpush3.bf16.msra.mxu0 %v22308_v34 }
 0x2d3   : > { %20251 = vmatpush3.bf16.msra.mxu1 %v22309_v35  ;;  %20230 = vmatprep.subr.bf16.mxu0 %v22310_v36 }
 0x2d4   : > { %20252 = vmatprep.subr.bf16.mxu1 %v22311_v37  ;;  %v22352_v37 = vld [vmem:[%s23561_s21 + $0x1528] sm:$0xff]  }
 0x2d6   : > { %20231 = vmatpush3.bf16.msra.mxu0 %v22312_v38  ;;  %v22353_v38 = vld [vmem:[%s23561_s21 + $0x15a8] sm:$0xff]  }
 0x2d7   : > { %20253 = vmatpush3.bf16.msra.mxu1 %v22313_v40  ;;  %20232 = vmatprep.subr.bf16.mxu0 %v22314_v46  ;;  %v22358_v46 = vld [vmem:[%s23561_s21 + $0x1578] sm:$0xff]  }
 0x2d8   : > { %v19930_v39 = vpop.f32.mrb[52].mxu0  ;;  %20254 = vmatprep.subr.bf16.mxu1 %v22315_v48  ;;  %v22360_v48 = vld [vmem:[%s23561_s21 + $0x1538] sm:$0xff]  }
 0x2d9   : > { %v19952_v41 = vpop.f32.mrb[52].mxu1  ;;  %v19931_v42 = vpop.f32.mrb[53].mxu0 }
 0x2da   : > { %v19953_v43 = vpop.f32.mrb[53].mxu1  ;;  %v19932_v44 = vadd.f32 %v19931_v42, %v19930_v39  ;;  %v19933_v47 = vpop.f32.mrb[54].mxu0  ;;  %20233 = vmatpush3.bf16.msra.mxu0 %v22316_v51  ;;  %v22354_v42 = vld [vmem:[%s23561_s21 + $0x1570] sm:$0xff]   ;;  %v269_v51 = vld [vmem:[%s23579_s28 + $0x158] sm:$0x77] }
 0x2db   : > { %v19954_v45 = vadd.f32 %v19953_v43, %v19952_v41  ;;  %v19955_v49 = vpop.f32.mrb[54].mxu1  ;;  %v19934_v52 = vpop.f32.mrb[55].mxu0  ;;  %20255 = vmatpush3.bf16.msra.mxu1 %v22317_v53  ;;  %20234 = vmatprep.subr.bf16.mxu0 %v22318_v56  ;;  %v22355_v43 = vld [vmem:[%s23561_s21 + $0x15f0] sm:$0xff]   ;;  %v22359_v47 = vld [vmem:[%s23561_s21 + $0x15f8] sm:$0xff]   ;;  %v17662_v56 = vcombine.high %v269_v51, %v269_v51 }
 0x2dc   : > { %v14629_v50 = vadd.f32 %v19932_v44, %v24290_v6  ;;  %v19956_v54 = vpop.f32.mrb[55].mxu1  ;;  %20256 = vmatprep.subr.bf16.mxu1 %v22319_v57  ;;  %v22330_v6 = vld [vmem:[%s23561_s21 + $0x1540] sm:$0xff]   ;;  %v22356_v44 = vld [vmem:[%s23561_s21 + $0x1530] sm:$0xff]   ;;  %v22361_v49 = vld [vmem:[%s23561_s21 + $0x15b8] sm:$0xff]  }
 0x2dd   : > { %v17661_v54 = vcombine.low %v269_v51, %v269_v51  ;;  %v22367_v57 = vld [vmem:[%s23561_s21 + $0x16c0] sm:$0xff]   ;;  %v22411_v51 = vld [vmem:[%s23561_s21 + $0x17d0] sm:$0xff]  }
 0x2de   : > { %v24326_v55 = vadd.f32 %v19954_v45, %v14629_v50  ;;  %20235 = vmatpush3.bf16.msra.mxu0 %v22320_v58  ;;  %v22357_v45 = vld [vmem:[%s23561_s21 + $0x15b0] sm:$0xff]   ;;  %v22368_v58 = vld [vmem:[%s23561_s21 + $0x1600] sm:$0xff]  }
 0x2df   : > { %20257 = vmatpush3.bf16.msra.mxu1 %v22321_v59  ;;  %20236 = vmatprep.subr.bf16.mxu0 %v22322_v60  ;;  %v268_v50 = vld [vmem:[%s23579_s28 + $0x150] sm:$0x77]  ;;  %v22369_v59 = vld [vmem:[%s23561_s21 + $0x1680] sm:$0xff]   ;;  %v22370_v60 = vld [vmem:[%s23561_s21 + $0x1648] sm:$0xff]  }
 0x2e0   : > { %20258 = vmatprep.subr.bf16.mxu1 %v22323_v61  ;;  %v17659_v52 = vcombine.low %v268_v50, %v268_v50  ;;  %v17660_v53 = vcombine.high %v268_v50, %v268_v50  ;;  %v22371_v61 = vld [vmem:[%s23561_s21 + $0x16c8] sm:$0xff]   ;;  %v22410_v50 = vld [vmem:[%s23561_s21 + $0x1750] sm:$0xff]  }
 0x2e2   : > { %20237 = vmatpush3.bf16.msra.mxu0 %v22324_v62  ;;  %v22372_v62 = vld [vmem:[%s23561_s21 + $0x1608] sm:$0xff]  }
 0x2e3   : > { %20259 = vmatpush3.bf16.msra.mxu1 %v22325_v63  ;;  %20266 = vmatprep.subr.bf16.mxu0 %v22330_v6  ;;  %v22373_v63 = vld [vmem:[%s23561_s21 + $0x1688] sm:$0xff]   ;;  %v22380_v6 = vld [vmem:[%s23561_s21 + $0x1618] sm:$0xff]  }
 0x2e4   : > { %20288 = vmatprep.subr.bf16.mxu1 %v22331_v7  ;;  %v22381_v7 = vld [vmem:[%s23561_s21 + $0x1698] sm:$0xff]  }
 0x2e5   : > { %15187 = vmatmul.mubr.bf16.vlgmr.msra.gmra.mrb[80].mxu0 %v17655_v2  ;;  %v22376_v2 = vld [vmem:[%s23561_s21 + $0x1610] sm:$0xff]  }
 0x2e6   : > { %15227 = vmatmul.mubr.bf16.vlgmr.msra.gmra.mrb[80].mxu1 %v17657_v4  ;;  %20267 = vmatpush3.bf16.msra.mxu0 %v22332_v8  ;;  %v22378_v4 = vld [vmem:[%s23561_s21 + $0x1658] sm:$0xff]   ;;  %v22382_v8 = vld [vmem:[%s23561_s21 + $0x1660] sm:$0xff]  }
 0x2e7   : > { %20289 = vmatpush3.bf16.msra.mxu1 %v22333_v9  ;;  %20268 = vmatprep.subr.bf16.mxu0 %v22334_v10  ;;  %v22383_v9 = vld [vmem:[%s23561_s21 + $0x16e0] sm:$0xff]  }
 0x2e8   : > { %20290 = vmatprep.subr.bf16.mxu1 %v22335_v11  ;;  %15266 = vmatprep.mubr.bf16.mxu0 %v17660_v53  ;;  %v22384_v11 = vld [vmem:[%s23561_s21 + $0x1620] sm:$0xff]   ;;  %v22413_v53 = vld [vmem:[%s23561_s21 + $0x1790] sm:$0xff]  }
 0x2e9   : > { %15306 = vmatprep.mubr.bf16.mxu1 %v17662_v56  ;;  %v22416_v56 = vld [vmem:[%s23561_s21 + $0x1718] sm:$0xff]  }
 0x2ea   : > { %20269 = vmatpush3.bf16.msra.mxu0 %v22336_v12 }
 0x2eb   : > { %20291 = vmatpush3.bf16.msra.mxu1 %v22337_v13  ;;  %20270 = vmatprep.subr.bf16.mxu0 %v22338_v14  ;;  %v22385_v13 = vld [vmem:[%s23561_s21 + $0x16a0] sm:$0xff]  }
 0x2ec   : > { %20292 = vmatprep.subr.bf16.mxu1 %v22339_v15 }
 0x2ee   : > { %20271 = vmatpush3.bf16.msra.mxu0 %v22340_v16  ;;  %v22386_v16 = vld [vmem:[%s23561_s21 + $0x1668] sm:$0xff]  }
 0x2ef   : > { %20293 = vmatpush3.bf16.msra.mxu1 %v22341_v17  ;;  %20272 = vmatprep.subr.bf16.mxu0 %v22342_v18 }
 0x2f0   : > { %20294 = vmatprep.subr.bf16.mxu1 %v22343_v19  ;;  %v22387_v19 = vld [vmem:[%s23561_s21 + $0x16e8] sm:$0xff]  }
 0x2f2   : > { %20273 = vmatpush3.bf16.msra.mxu0 %v22344_v20 }
 0x2f3   : > { %20295 = vmatpush3.bf16.msra.mxu1 %v22345_v21  ;;  %20274 = vmatprep.subr.bf16.mxu0 %v22346_v22  ;;  %v22388_v22 = vld [vmem:[%s23561_s21 + $0x1628] sm:$0xff]  }
 0x2f4   : > { %20296 = vmatprep.subr.bf16.mxu1 %v22347_v23 }
 0x2f6   : > { %20275 = vmatpush3.bf16.msra.mxu0 %v22348_v25 }
 0x2f7   : > { %20297 = vmatpush3.bf16.msra.mxu1 %v22349_v27  ;;  %20276 = vmatprep.subr.bf16.mxu0 %v22350_v31  ;;  %v22390_v27 = vld [vmem:[%s23561_s21 + $0x1670] sm:$0xff]  }
 0x2f8   : > { %v19974_v24 = vpop.f32.mrb[56].mxu0  ;;  %20298 = vmatprep.subr.bf16.mxu1 %v22351_v33  ;;  %v22393_v31 = vld [vmem:[%s23561_s21 + $0x16b0] sm:$0xff]   ;;  %v22395_v33 = vld [vmem:[%s23561_s21 + $0x16f8] sm:$0xff]  }
 0x2f9   : > { %v19996_v26 = vpop.f32.mrb[56].mxu1  ;;  %v19975_v28 = vpop.f32.mrb[57].mxu0 }
 0x2fa   : > { %v19976_v29 = vadd.f32 %v19975_v28, %v19974_v24  ;;  %v19997_v30 = vpop.f32.mrb[57].mxu1  ;;  %v19977_v34 = vpop.f32.mrb[58].mxu0  ;;  %20277 = vmatpush3.bf16.msra.mxu0 %v22352_v37  ;;  %v22389_v24 = vld [vmem:[%s23561_s21 + $0x16a8] sm:$0xff]  }
 0x2fb   : > { %v19998_v32 = vadd.f32 %v19997_v30, %v19996_v26  ;;  %v19999_v36 = vpop.f32.mrb[58].mxu1  ;;  %v19978_v39 = vpop.f32.mrb[59].mxu0  ;;  %20299 = vmatpush3.bf16.msra.mxu1 %v22353_v38  ;;  %20278 = vmatprep.subr.bf16.mxu0 %v22354_v42  ;;  %v22392_v30 = vld [vmem:[%s23561_s21 + $0x1630] sm:$0xff]   ;;  %v22396_v34 = vld [vmem:[%s23561_s21 + $0x1638] sm:$0xff]   ;;  %v22402_v42 = vld [vmem:[%s23561_s21 + $0x1740] sm:$0xff]  }
 0x2fc   : > { %v14709_v35 = vadd.f32 %v19976_v29, %v24326_v55  ;;  %v20000_v41 = vpop.f32.mrb[59].mxu1  ;;  %20300 = vmatprep.subr.bf16.mxu1 %v22355_v43  ;;  %v22366_v55 = vld [vmem:[%s23561_s21 + $0x1640] sm:$0xff]   ;;  %v22391_v29 = vld [vmem:[%s23561_s21 + $0x16f0] sm:$0xff]   ;;  %v271_v39 = vld [vmem:[%s23579_s28 + $0x168] sm:$0x77] }
 0x2fd   : > { %v270_v36 = vld [vmem:[%s23579_s28 + $0x160] sm:$0x77]  ;;  %v17666_v41 = vcombine.high %v271_v39, %v271_v39 }
 0x2fe   : > { %v24363_v40 = vadd.f32 %v19998_v32, %v14709_v35  ;;  %20279 = vmatpush3.bf16.msra.mxu0 %v22356_v44  ;;  %v22394_v32 = vld [vmem:[%s23561_s21 + $0x1678] sm:$0xff]   ;;  %v17663_v37 = vcombine.low %v270_v36, %v270_v36  ;;  %v17664_v38 = vcombine.high %v270_v36, %v270_v36  ;;  %v22403_v43 = vld [vmem:[%s23561_s21 + $0x17c0] sm:$0xff]   ;;  %v22446_v36 = vld [vmem:[%s23561_s21 + $0x1850] sm:$0xff]  }
 0x2ff   : > { %20301 = vmatpush3.bf16.msra.mxu1 %v22357_v45  ;;  %20280 = vmatprep.subr.bf16.mxu0 %v22358_v46  ;;  %v22397_v35 = vld [vmem:[%s23561_s21 + $0x16b8] sm:$0xff]   ;;  %v22404_v44 = vld [vmem:[%s23561_s21 + $0x1700] sm:$0xff]   ;;  %v22406_v46 = vld [vmem:[%s23561_s21 + $0x1748] sm:$0xff]  }
 0x300   : > { %20302 = vmatprep.subr.bf16.mxu1 %v22359_v47  ;;  %v22405_v45 = vld [vmem:[%s23561_s21 + $0x1780] sm:$0xff]   ;;  %v22407_v47 = vld [vmem:[%s23561_s21 + $0x17c8] sm:$0xff]  }
 0x302   : > { %20281 = vmatpush3.bf16.msra.mxu0 %v22360_v48  ;;  %v22408_v48 = vld [vmem:[%s23561_s21 + $0x1708] sm:$0xff]  }
 0x303   : > { %20303 = vmatpush3.bf16.msra.mxu1 %v22361_v49  ;;  %20310 = vmatprep.subr.bf16.mxu0 %v22366_v55  ;;  %v22409_v49 = vld [vmem:[%s23561_s21 + $0x1788] sm:$0xff]   ;;  %v22415_v55 = vld [vmem:[%s23561_s21 + $0x17d8] sm:$0xff]  }
 0x304   : > { %20332 = vmatprep.subr.bf16.mxu1 %v22367_v57  ;;  %v22417_v57 = vld [vmem:[%s23561_s21 + $0x1798] sm:$0xff]  }
 0x305   : > { %15267 = vmatmul.mubr.bf16.vlgmr.msra.gmra.mrb[84].mxu0 %v17659_v52  ;;  %v22412_v52 = vld [vmem:[%s23561_s21 + $0x1710] sm:$0xff]  }
 0x306   : > { %15307 = vmatmul.mubr.bf16.vlgmr.msra.gmra.mrb[84].mxu1 %v17661_v54  ;;  %20311 = vmatpush3.bf16.msra.mxu0 %v22368_v58  ;;  %v22414_v54 = vld [vmem:[%s23561_s21 + $0x1758] sm:$0xff]   ;;  %v22418_v58 = vld [vmem:[%s23561_s21 + $0x1760] sm:$0xff]  }
 0x307   : > { %20333 = vmatpush3.bf16.msra.mxu1 %v22369_v59  ;;  %20312 = vmatprep.subr.bf16.mxu0 %v22370_v60  ;;  %v22419_v59 = vld [vmem:[%s23561_s21 + $0x17e0] sm:$0xff]  }
 0x308   : > { %20334 = vmatprep.subr.bf16.mxu1 %v22371_v61  ;;  %15346 = vmatprep.mubr.bf16.mxu0 %v17664_v38  ;;  %v22420_v61 = vld [vmem:[%s23561_s21 + $0x1720] sm:$0xff]   ;;  %v22448_v38 = vld [vmem:[%s23561_s21 + $0x1810] sm:$0xff]  }
 0x309   : > { %15386 = vmatprep.mubr.bf16.mxu1 %v17666_v41  ;;  %v22451_v41 = vld [vmem:[%s23561_s21 + $0x18d8] sm:$0xff]  }
 0x30a   : > { %20313 = vmatpush3.bf16.msra.mxu0 %v22372_v62 }
 0x30b   : > { %20335 = vmatpush3.bf16.msra.mxu1 %v22373_v63  ;;  %20314 = vmatprep.subr.bf16.mxu0 %v22374_v0  ;;  %v22421_v63 = vld [vmem:[%s23561_s21 + $0x17a0] sm:$0xff]  }
 0x30c   : > { %20336 = vmatprep.subr.bf16.mxu1 %v22375_v1 }
 0x30e   : > { %20315 = vmatpush3.bf16.msra.mxu0 %v22376_v2  ;;  %v22422_v2 = vld [vmem:[%s23561_s21 + $0x1768] sm:$0xff]  }
 0x30f   : > { %20337 = vmatpush3.bf16.msra.mxu1 %v22377_v3  ;;  %20316 = vmatprep.subr.bf16.mxu0 %v22378_v4 }
 0x310   : > { %20338 = vmatprep.subr.bf16.mxu1 %v22379_v5  ;;  %v22423_v5 = vld [vmem:[%s23561_s21 + $0x17e8] sm:$0xff]  }
 0x312   : > { %20317 = vmatpush3.bf16.msra.mxu0 %v22380_v6 }
 0x313   : > { %20339 = vmatpush3.bf16.msra.mxu1 %v22381_v7  ;;  %20318 = vmatprep.subr.bf16.mxu0 %v22382_v8  ;;  %v22424_v8 = vld [vmem:[%s23561_s21 + $0x1728] sm:$0xff]  }
 0x314   : > { %20340 = vmatprep.subr.bf16.mxu1 %v22383_v9 }
 0x316   : > { %20319 = vmatpush3.bf16.msra.mxu0 %v22384_v11 }
 0x317   : > { %20341 = vmatpush3.bf16.msra.mxu1 %v22385_v13  ;;  %20320 = vmatprep.subr.bf16.mxu0 %v22386_v16  ;;  %v22426_v13 = vld [vmem:[%s23561_s21 + $0x1770] sm:$0xff]  }
 0x318   : > { %v20018_v10 = vpop.f32.mrb[60].mxu0  ;;  %20342 = vmatprep.subr.bf16.mxu1 %v22387_v19  ;;  %v22428_v16 = vld [vmem:[%s23561_s21 + $0x1730] sm:$0xff]   ;;  %v22431_v19 = vld [vmem:[%s23561_s21 + $0x17f8] sm:$0xff]  }
 0x319   : > { %v20040_v12 = vpop.f32.mrb[60].mxu1  ;;  %v20019_v14 = vpop.f32.mrb[61].mxu0 }
 0x31a   : > { %v20041_v15 = vpop.f32.mrb[61].mxu1  ;;  %v20020_v17 = vadd.f32 %v20019_v14, %v20018_v10  ;;  %v20021_v20 = vpop.f32.mrb[62].mxu0  ;;  %20321 = vmatpush3.bf16.msra.mxu0 %v22388_v22  ;;  %v22425_v10 = vld [vmem:[%s23561_s21 + $0x17a8] sm:$0xff]   ;;  %v272_v22 = vld [vmem:[%s23579_s28 + $0x170] sm:$0x77] }
 0x31b   : > { %v20042_v18 = vadd.f32 %v20041_v15, %v20040_v12  ;;  %v20043_v21 = vpop.f32.mrb[62].mxu1  ;;  %v20022_v25 = vpop.f32.mrb[63].mxu0  ;;  %20343 = vmatpush3.bf16.msra.mxu1 %v22389_v24  ;;  %20322 = vmatprep.subr.bf16.mxu0 %v22390_v27  ;;  %v22427_v15 = vld [vmem:[%s23561_s21 + $0x17f0] sm:$0xff]   ;;  %v22432_v20 = vld [vmem:[%s23561_s21 + $0x1738] sm:$0xff]   ;;  %v17667_v24 = vcombine.low %v272_v22, %v272_v22 }
 0x31c   : > { %v14789_v23 = vadd.f32 %v20020_v17, %v24363_v40  ;;  %v20044_v26 = vpop.f32.mrb[63].mxu1  ;;  %20344 = vmatprep.subr.bf16.mxu1 %v22391_v29  ;;  %v17665_v40 = vcombine.low %v271_v39, %v271_v39  ;;  %v22429_v17 = vld [vmem:[%s23561_s21 + $0x17b0] sm:$0xff]   ;;  %v22433_v21 = vld [vmem:[%s23561_s21 + $0x17b8] sm:$0xff]   ;;  %v17668_v25 = vcombine.high %v272_v22, %v272_v22  ;;  %v22439_v29 = vld [vmem:[%s23561_s21 + $0x18c0] sm:$0xff]  }
 0x31d   : > { %v22449_v39 = vld [vmem:[%s23561_s21 + $0x1890] sm:$0xff]  }
 0x31e   : > { %v24401_v28 = vadd.f32 %v20042_v18, %v14789_v23  ;;  %20323 = vmatpush3.bf16.msra.mxu0 %v22392_v30  ;;  %v22430_v18 = vld [vmem:[%s23561_s21 + $0x1778] sm:$0xff]   ;;  %v22440_v30 = vld [vmem:[%s23561_s21 + $0x1800] sm:$0xff]   ;;  %v22482_v22 = vld [vmem:[%s23561_s21 + $0x1950] sm:$0xff]  }
 0x31f   : > { %20345 = vmatpush3.bf16.msra.mxu1 %v22393_v31  ;;  %20324 = vmatprep.subr.bf16.mxu0 %v22394_v32  ;;  %v273_v23 = vld [vmem:[%s23579_s28 + $0x178] sm:$0x77]  ;;  %v22441_v31 = vld [vmem:[%s23561_s21 + $0x1880] sm:$0xff]   ;;  %v22442_v32 = vld [vmem:[%s23561_s21 + $0x1848] sm:$0xff]  }
 0x320   : > { %20346 = vmatprep.subr.bf16.mxu1 %v22395_v33  ;;  %v17669_v26 = vcombine.low %v273_v23, %v273_v23  ;;  %v17670_v27 = vcombine.high %v273_v23, %v273_v23  ;;  %v22443_v33 = vld [vmem:[%s23561_s21 + $0x18c8] sm:$0xff]   ;;  %v22483_v23 = vld [vmem:[%s23561_s21 + $0x19d0] sm:$0xff]  }
 0x322   : > { %20325 = vmatpush3.bf16.msra.mxu0 %v22396_v34  ;;  %v22444_v34 = vld [vmem:[%s23561_s21 + $0x1808] sm:$0xff]  }
 0x323   : > { %20347 = vmatpush3.bf16.msra.mxu1 %v22397_v35  ;;  %20354 = vmatprep.subr.bf16.mxu0 %v22402_v42  ;;  %v22445_v35 = vld [vmem:[%s23561_s21 + $0x1888] sm:$0xff]   ;;  %v22452_v42 = vld [vmem:[%s23561_s21 + $0x1818] sm:$0xff]  }
 0x324   : > { %20376 = vmatprep.subr.bf16.mxu1 %v22403_v43  ;;  %v22453_v43 = vld [vmem:[%s23561_s21 + $0x1898] sm:$0xff]  }
 0x325   : > { %15347 = vmatmul.mubr.bf16.vlgmr.msra.gmra.mrb[88].mxu0 %v17663_v37  ;;  %v22447_v37 = vld [vmem:[%s23561_s21 + $0x18d0] sm:$0xff]  }
 0x326   : > { %15387 = vmatmul.mubr.bf16.vlgmr.msra.gmra.mrb[88].mxu1 %v17665_v40  ;;  %20355 = vmatpush3.bf16.msra.mxu0 %v22404_v44  ;;  %v22450_v40 = vld [vmem:[%s23561_s21 + $0x1858] sm:$0xff]   ;;  %v22454_v44 = vld [vmem:[%s23561_s21 + $0x1860] sm:$0xff]  }
 0x327   : > { %20377 = vmatpush3.bf16.msra.mxu1 %v22405_v45  ;;  %20356 = vmatprep.subr.bf16.mxu0 %v22406_v46  ;;  %v22455_v45 = vld [vmem:[%s23561_s21 + $0x18e0] sm:$0xff]  }
 0x328   : > { %20378 = vmatprep.subr.bf16.mxu1 %v22407_v47  ;;  %15426 = vmatprep.mubr.bf16.mxu0 %v17668_v25  ;;  %v22456_v46 = vld [vmem:[%s23561_s21 + $0x1820] sm:$0xff]   ;;  %v22485_v25 = vld [vmem:[%s23561_s21 + $0x1990] sm:$0xff]  }
 0x329   : > { %15466 = vmatprep.mubr.bf16.mxu1 %v17670_v27  ;;  %v22487_v27 = vld [vmem:[%s23561_s21 + $0x19d8] sm:$0xff]  }
 0x32a   : > { %20357 = vmatpush3.bf16.msra.mxu0 %v22408_v48  ;;  %v22457_v48 = vld [vmem:[%s23561_s21 + $0x18a0] sm:$0xff]  }
 0x32b   : > { %20379 = vmatpush3.bf16.msra.mxu1 %v22409_v49  ;;  %20358 = vmatprep.subr.bf16.mxu0 %v22410_v50 }
 0x32c   : > { %20380 = vmatprep.subr.bf16.mxu1 %v22411_v51 }
 0x32e   : > { %20359 = vmatpush3.bf16.msra.mxu0 %v22412_v52 }
 0x32f   : > { %20381 = vmatpush3.bf16.msra.mxu1 %v22413_v53  ;;  %20360 = vmatprep.subr.bf16.mxu0 %v22414_v54  ;;  %v22458_v54 = vld [vmem:[%s23561_s21 + $0x1868] sm:$0xff]  }
 0x330   : > { %20382 = vmatprep.subr.bf16.mxu1 %v22415_v55 }
 0x332   : > { %20361 = vmatpush3.bf16.msra.mxu0 %v22416_v56  ;;  %v22459_v56 = vld [vmem:[%s23561_s21 + $0x18e8] sm:$0xff]  }
 0x333   : > { %20383 = vmatpush3.bf16.msra.mxu1 %v22417_v57  ;;  %20362 = vmatprep.subr.bf16.mxu0 %v22418_v58 }
 0x334   : > { %20384 = vmatprep.subr.bf16.mxu1 %v22419_v59  ;;  %v22460_v59 = vld [vmem:[%s23561_s21 + $0x1828] sm:$0xff]  }
 0x336   : > { %20363 = vmatpush3.bf16.msra.mxu0 %v22420_v61  ;;  %v22461_v61 = vld [vmem:[%s23561_s21 + $0x18a8] sm:$0xff]  }
 0x337   : > { %20385 = vmatpush3.bf16.msra.mxu1 %v22421_v63  ;;  %20364 = vmatprep.subr.bf16.mxu0 %v22422_v2  ;;  %v22464_v2 = vld [vmem:[%s23561_s21 + $0x1830] sm:$0xff]  }
 0x338   : > { %v20062_v60 = vpop.f32.mrb[64].mxu0  ;;  %20386 = vmatprep.subr.bf16.mxu1 %v22423_v5  ;;  %v22467_v5 = vld [vmem:[%s23561_s21 + $0x18f8] sm:$0xff]  }
 0x339   : > { %v20084_v62 = vpop.f32.mrb[64].mxu1  ;;  %v20063_v0 = vpop.f32.mrb[65].mxu0 }
 0x33a   : > { %v20085_v1 = vpop.f32.mrb[65].mxu1  ;;  %v20064_v3 = vadd.f32 %v20063_v0, %v20062_v60  ;;  %v20065_v6 = vpop.f32.mrb[66].mxu0  ;;  %20365 = vmatpush3.bf16.msra.mxu0 %v22424_v8  ;;  %v22462_v0 = vld [vmem:[%s23561_s21 + $0x1870] sm:$0xff]   ;;  %v274_v8 = vld [vmem:[%s23579_s28 + $0x180] sm:$0x77] }
 0x33b   : > { %v20086_v4 = vadd.f32 %v20085_v1, %v20084_v62  ;;  %v20087_v7 = vpop.f32.mrb[66].mxu1  ;;  %v20066_v11 = vpop.f32.mrb[67].mxu0  ;;  %20387 = vmatpush3.bf16.msra.mxu1 %v22425_v10  ;;  %20366 = vmatprep.subr.bf16.mxu0 %v22426_v13  ;;  %v22463_v1 = vld [vmem:[%s23561_s21 + $0x18f0] sm:$0xff]   ;;  %v22468_v6 = vld [vmem:[%s23561_s21 + $0x1838] sm:$0xff]   ;;  %v17671_v10 = vcombine.low %v274_v8, %v274_v8 }
 0x33c   : > { %v14869_v9 = vadd.f32 %v20064_v3, %v24401_v28  ;;  %v20088_v12 = vpop.f32.mrb[67].mxu1  ;;  %20388 = vmatprep.subr.bf16.mxu1 %v22427_v15  ;;  %v22438_v28 = vld [vmem:[%s23561_s21 + $0x1840] sm:$0xff]   ;;  %v22465_v3 = vld [vmem:[%s23561_s21 + $0x18b0] sm:$0xff]   ;;  %v22469_v7 = vld [vmem:[%s23561_s21 + $0x18b8] sm:$0xff]   ;;  %v17672_v11 = vcombine.high %v274_v8, %v274_v8 }
 0x33d   : > { %v22475_v15 = vld [vmem:[%s23561_s21 + $0x19c0] sm:$0xff]   ;;  %v22518_v8 = vld [vmem:[%s23561_s21 + $0x1a50] sm:$0xff]  }
 0x33e   : > { %v24438_v14 = vadd.f32 %v20086_v4, %v14869_v9  ;;  %20367 = vmatpush3.bf16.msra.mxu0 %v22428_v16  ;;  %v22466_v4 = vld [vmem:[%s23561_s21 + $0x1878] sm:$0xff]   ;;  %v275_v9 = vld [vmem:[%s23579_s28 + $0x188] sm:$0x77]  ;;  %v22476_v16 = vld [vmem:[%s23561_s21 + $0x1900] sm:$0xff]  }
 0x33f   : > { %20389 = vmatpush3.bf16.msra.mxu1 %v22429_v17  ;;  %20368 = vmatprep.subr.bf16.mxu0 %v22430_v18  ;;  %v17673_v12 = vcombine.low %v275_v9, %v275_v9  ;;  %v17674_v13 = vcombine.high %v275_v9, %v275_v9  ;;  %v22477_v17 = vld [vmem:[%s23561_s21 + $0x1980] sm:$0xff]   ;;  %v22478_v18 = vld [vmem:[%s23561_s21 + $0x1948] sm:$0xff]   ;;  %v22519_v9 = vld [vmem:[%s23561_s21 + $0x1ad0] sm:$0xff]  }
 0x340   : > { %20390 = vmatprep.subr.bf16.mxu1 %v22431_v19  ;;  %v22479_v19 = vld [vmem:[%s23561_s21 + $0x19c8] sm:$0xff]  }
 0x342   : > { %20369 = vmatpush3.bf16.msra.mxu0 %v22432_v20  ;;  %v22480_v20 = vld [vmem:[%s23561_s21 + $0x1908] sm:$0xff]  }
 0x343   : > { %20391 = vmatpush3.bf16.msra.mxu1 %v22433_v21  ;;  %20398 = vmatprep.subr.bf16.mxu0 %v22438_v28  ;;  %v22481_v21 = vld [vmem:[%s23561_s21 + $0x1988] sm:$0xff]   ;;  %v22488_v28 = vld [vmem:[%s23561_s21 + $0x1918] sm:$0xff]  }
 0x344   : > { %20420 = vmatprep.subr.bf16.mxu1 %v22439_v29  ;;  %v22489_v29 = vld [vmem:[%s23561_s21 + $0x1998] sm:$0xff]  }
 0x345   : > { %15427 = vmatmul.mubr.bf16.vlgmr.msra.gmra.mrb[92].mxu0 %v17667_v24  ;;  %v22484_v24 = vld [vmem:[%s23561_s21 + $0x1910] sm:$0xff]  }
 0x346   : > { %15467 = vmatmul.mubr.bf16.vlgmr.msra.gmra.mrb[92].mxu1 %v17669_v26  ;;  %20399 = vmatpush3.bf16.msra.mxu0 %v22440_v30  ;;  %v22486_v26 = vld [vmem:[%s23561_s21 + $0x1958] sm:$0xff]   ;;  %v22490_v30 = vld [vmem:[%s23561_s21 + $0x1960] sm:$0xff]  }
 0x347   : > { %20421 = vmatpush3.bf16.msra.mxu1 %v22441_v31  ;;  %20400 = vmatprep.subr.bf16.mxu0 %v22442_v32  ;;  %v22491_v31 = vld [vmem:[%s23561_s21 + $0x19e0] sm:$0xff]  }
 0x348   : > { %20422 = vmatprep.subr.bf16.mxu1 %v22443_v33  ;;  %15506 = vmatprep.mubr.bf16.mxu0 %v17672_v11  ;;  %v22492_v32 = vld [vmem:[%s23561_s21 + $0x1920] sm:$0xff]   ;;  %v22521_v11 = vld [vmem:[%s23561_s21 + $0x1a90] sm:$0xff]  }
 0x349   : > { %15546 = vmatprep.mubr.bf16.mxu1 %v17674_v13  ;;  %v22523_v13 = vld [vmem:[%s23561_s21 + $0x1ad8] sm:$0xff]  }
 0x34a   : > { %20401 = vmatpush3.bf16.msra.mxu0 %v22444_v34  ;;  %v22493_v34 = vld [vmem:[%s23561_s21 + $0x19a0] sm:$0xff]  }
 0x34b   : > { %20423 = vmatpush3.bf16.msra.mxu1 %v22445_v35  ;;  %20402 = vmatprep.subr.bf16.mxu0 %v22446_v36 }
 0x34c   : > { %20424 = vmatprep.subr.bf16.mxu1 %v22447_v37 }
 0x34e   : > { %20403 = vmatpush3.bf16.msra.mxu0 %v22448_v38 }
 0x34f   : > { %20425 = vmatpush3.bf16.msra.mxu1 %v22449_v39  ;;  %20404 = vmatprep.subr.bf16.mxu0 %v22450_v40  ;;  %v22494_v40 = vld [vmem:[%s23561_s21 + $0x1968] sm:$0xff]  }
 0x350   : > { %20426 = vmatprep.subr.bf16.mxu1 %v22451_v41 }
 0x352   : > { %20405 = vmatpush3.bf16.msra.mxu0 %v22452_v42  ;;  %v22495_v42 = vld [vmem:[%s23561_s21 + $0x19e8] sm:$0xff]  }
 0x353   : > { %20427 = vmatpush3.bf16.msra.mxu1 %v22453_v43  ;;  %20406 = vmatprep.subr.bf16.mxu0 %v22454_v44 }
 0x354   : > { %20428 = vmatprep.subr.bf16.mxu1 %v22455_v45  ;;  %v22496_v45 = vld [vmem:[%s23561_s21 + $0x1928] sm:$0xff]  }
 0x356   : > { %20407 = vmatpush3.bf16.msra.mxu0 %v22456_v46 }
 0x357   : > { %20429 = vmatpush3.bf16.msra.mxu1 %v22457_v48  ;;  %20408 = vmatprep.subr.bf16.mxu0 %v22458_v54  ;;  %v22502_v54 = vld [vmem:[%s23561_s21 + $0x1978] sm:$0xff]  }
 0x358   : > { %v20106_v47 = vpop.f32.mrb[68].mxu0  ;;  %20430 = vmatprep.subr.bf16.mxu1 %v22459_v56  ;;  %v22504_v56 = vld [vmem:[%s23561_s21 + $0x1938] sm:$0xff]  }
 0x359   : > { %v20128_v49 = vpop.f32.mrb[68].mxu1  ;;  %v20107_v50 = vpop.f32.mrb[69].mxu0 }
 0x35a   : > { %v20129_v51 = vpop.f32.mrb[69].mxu1  ;;  %v20108_v52 = vadd.f32 %v20107_v50, %v20106_v47  ;;  %v20109_v55 = vpop.f32.mrb[70].mxu0  ;;  %20409 = vmatpush3.bf16.msra.mxu0 %v22460_v59  ;;  %v22497_v47 = vld [vmem:[%s23561_s21 + $0x19a8] sm:$0xff]   ;;  %v22498_v50 = vld [vmem:[%s23561_s21 + $0x1970] sm:$0xff]   ;;  %v277_v59 = vld [vmem:[%s23579_s28 + $0x198] sm:$0x77] }
 0x35b   : > { %v20130_v53 = vadd.f32 %v20129_v51, %v20128_v49  ;;  %v20131_v57 = vpop.f32.mrb[70].mxu1  ;;  %v20110_v60 = vpop.f32.mrb[71].mxu0  ;;  %20431 = vmatpush3.bf16.msra.mxu1 %v22461_v61  ;;  %20410 = vmatprep.subr.bf16.mxu0 %v22462_v0  ;;  %v22499_v51 = vld [vmem:[%s23561_s21 + $0x19f0] sm:$0xff]   ;;  %v22503_v55 = vld [vmem:[%s23561_s21 + $0x19f8] sm:$0xff]   ;;  %v22510_v0 = vld [vmem:[%s23561_s21 + $0x1a40] sm:$0xff]  }
 0x35c   : > { %v14949_v58 = vadd.f32 %v20108_v52, %v24438_v14  ;;  %v20132_v62 = vpop.f32.mrb[71].mxu1  ;;  %20432 = vmatprep.subr.bf16.mxu1 %v22463_v1  ;;  %v22474_v14 = vld [vmem:[%s23561_s21 + $0x1940] sm:$0xff]   ;;  %v22500_v52 = vld [vmem:[%s23561_s21 + $0x1930] sm:$0xff]   ;;  %v22505_v57 = vld [vmem:[%s23561_s21 + $0x19b8] sm:$0xff]  }
 0x35d   : > { %v17677_v62 = vcombine.low %v277_v59, %v277_v59  ;;  %v22511_v1 = vld [vmem:[%s23561_s21 + $0x1ac0] sm:$0xff]  }
 0x35e   : > { %v24474_v63 = vadd.f32 %v20130_v53, %v14949_v58  ;;  %20411 = vmatpush3.bf16.msra.mxu0 %v22464_v2  ;;  %v22501_v53 = vld [vmem:[%s23561_s21 + $0x19b0] sm:$0xff]   ;;  %v22512_v2 = vld [vmem:[%s23561_s21 + $0x1a00] sm:$0xff]  }
 0x35f   : > { %20433 = vmatpush3.bf16.msra.mxu1 %v22465_v3  ;;  %20412 = vmatprep.subr.bf16.mxu0 %v22466_v4  ;;  %v276_v58 = vld [vmem:[%s23579_s28 + $0x190] sm:$0x77]  ;;  %v22513_v3 = vld [vmem:[%s23561_s21 + $0x1a80] sm:$0xff]   ;;  %v22514_v4 = vld [vmem:[%s23561_s21 + $0x1a48] sm:$0xff]  }
 0x360   : > { %20434 = vmatprep.subr.bf16.mxu1 %v22467_v5  ;;  %v17675_v60 = vcombine.low %v276_v58, %v276_v58  ;;  %v17676_v61 = vcombine.high %v276_v58, %v276_v58  ;;  %v22515_v5 = vld [vmem:[%s23561_s21 + $0x1ac8] sm:$0xff]   ;;  %v22554_v58 = vld [vmem:[%s23561_s21 + $0x1b50] sm:$0xff]  }
 0x362   : > { %20413 = vmatpush3.bf16.msra.mxu0 %v22468_v6  ;;  %v22516_v6 = vld [vmem:[%s23561_s21 + $0x1a08] sm:$0xff]  }
 0x363   : > { %20435 = vmatpush3.bf16.msra.mxu1 %v22469_v7  ;;  %20442 = vmatprep.subr.bf16.mxu0 %v22474_v14  ;;  %v22517_v7 = vld [vmem:[%s23561_s21 + $0x1a88] sm:$0xff]   ;;  %v22524_v14 = vld [vmem:[%s23561_s21 + $0x1a18] sm:$0xff]  }
 0x364   : > { %20464 = vmatprep.subr.bf16.mxu1 %v22475_v15  ;;  %v22525_v15 = vld [vmem:[%s23561_s21 + $0x1a98] sm:$0xff]  }
 0x365   : > { %15507 = vmatmul.mubr.bf16.vlgmr.msra.gmra.mrb[96].mxu0 %v17671_v10  ;;  %v22520_v10 = vld [vmem:[%s23561_s21 + $0x1a10] sm:$0xff]  }
 0x366   : > { %15547 = vmatmul.mubr.bf16.vlgmr.msra.gmra.mrb[96].mxu1 %v17673_v12  ;;  %20443 = vmatpush3.bf16.msra.mxu0 %v22476_v16  ;;  %v22522_v12 = vld [vmem:[%s23561_s21 + $0x1a58] sm:$0xff]   ;;  %v22526_v16 = vld [vmem:[%s23561_s21 + $0x1a60] sm:$0xff]  }
 0x367   : > { %20465 = vmatpush3.bf16.msra.mxu1 %v22477_v17  ;;  %20444 = vmatprep.subr.bf16.mxu0 %v22478_v18  ;;  %v22527_v17 = vld [vmem:[%s23561_s21 + $0x1ae0] sm:$0xff]  }
 0x368   : > { %20466 = vmatprep.subr.bf16.mxu1 %v22479_v19  ;;  %15586 = vmatprep.mubr.bf16.mxu0 %v17676_v61  ;;  %v22528_v19 = vld [vmem:[%s23561_s21 + $0x1a20] sm:$0xff]   ;;  %v22557_v61 = vld [vmem:[%s23561_s21 + $0x1b90] sm:$0xff]  }
 0x36a   : > { %20445 = vmatpush3.bf16.msra.mxu0 %v22480_v20 }
 0x36b   : > { %20467 = vmatpush3.bf16.msra.mxu1 %v22481_v21  ;;  %20446 = vmatprep.subr.bf16.mxu0 %v22482_v22  ;;  %v22529_v21 = vld [vmem:[%s23561_s21 + $0x1aa0] sm:$0xff]  }
 0x36c   : > { %20468 = vmatprep.subr.bf16.mxu1 %v22483_v23 }
 0x36e   : > { %20447 = vmatpush3.bf16.msra.mxu0 %v22484_v24 }
 0x36f   : > { %20469 = vmatpush3.bf16.msra.mxu1 %v22485_v25  ;;  %20448 = vmatprep.subr.bf16.mxu0 %v22486_v26  ;;  %v22530_v25 = vld [vmem:[%s23561_s21 + $0x1a68] sm:$0xff]  }
 0x370   : > { %20470 = vmatprep.subr.bf16.mxu1 %v22487_v27  ;;  %v22531_v27 = vld [vmem:[%s23561_s21 + $0x1ae8] sm:$0xff]  }
 0x372   : > { %20449 = vmatpush3.bf16.msra.mxu0 %v22488_v28 }
 0x373   : > { %20471 = vmatpush3.bf16.msra.mxu1 %v22489_v29  ;;  %20450 = vmatprep.subr.bf16.mxu0 %v22490_v30 }
 0x374   : > { %20472 = vmatprep.subr.bf16.mxu1 %v22491_v31  ;;  %v22532_v31 = vld [vmem:[%s23561_s21 + $0x1a28] sm:$0xff]  }
 0x376   : > { %20451 = vmatpush3.bf16.msra.mxu0 %v22492_v32  ;;  %v22533_v32 = vld [vmem:[%s23561_s21 + $0x1aa8] sm:$0xff]  }
 0x377   : > { %20473 = vmatpush3.bf16.msra.mxu1 %v22493_v34  ;;  %20452 = vmatprep.subr.bf16.mxu0 %v22494_v40  ;;  %v22538_v40 = vld [vmem:[%s23561_s21 + $0x1a78] sm:$0xff]  }
 0x378   : > { %v20150_v33 = vpop.f32.mrb[72].mxu0  ;;  %20474 = vmatprep.subr.bf16.mxu1 %v22495_v42  ;;  %v22540_v42 = vld [vmem:[%s23561_s21 + $0x1a38] sm:$0xff]  }
 0x379   : > { %v20172_v35 = vpop.f32.mrb[72].mxu1  ;;  %v20151_v36 = vpop.f32.mrb[73].mxu0 }
 0x37a   : > { %v20173_v37 = vpop.f32.mrb[73].mxu1  ;;  %v20152_v38 = vadd.f32 %v20151_v36, %v20150_v33  ;;  %v20153_v41 = vpop.f32.mrb[74].mxu0  ;;  %20453 = vmatpush3.bf16.msra.mxu0 %v22496_v45  ;;  %v22534_v36 = vld [vmem:[%s23561_s21 + $0x1a70] sm:$0xff]   ;;  %v279_v45 = vld [vmem:[%s23579_s28 + $0x1a8] sm:$0x77] }
 0x37b   : > { %v20174_v39 = vadd.f32 %v20173_v37, %v20172_v35  ;;  %v20175_v43 = vpop.f32.mrb[74].mxu1  ;;  %v20154_v46 = vpop.f32.mrb[75].mxu0  ;;  %20475 = vmatpush3.bf16.msra.mxu1 %v22497_v47  ;;  %20454 = vmatprep.subr.bf16.mxu0 %v22498_v50  ;;  %v22535_v37 = vld [vmem:[%s23561_s21 + $0x1af0] sm:$0xff]   ;;  %v22539_v41 = vld [vmem:[%s23561_s21 + $0x1af8] sm:$0xff]   ;;  %v17682_v50 = vcombine.high %v279_v45, %v279_v45 }
 0x37c   : > { %v15029_v44 = vadd.f32 %v20152_v38, %v24474_v63  ;;  %v20176_v48 = vpop.f32.mrb[75].mxu1  ;;  %20476 = vmatprep.subr.bf16.mxu1 %v22499_v51  ;;  %v17678_v63 = vcombine.high %v277_v59, %v277_v59  ;;  %v22536_v38 = vld [vmem:[%s23561_s21 + $0x1a30] sm:$0xff]   ;;  %v22541_v43 = vld [vmem:[%s23561_s21 + $0x1ab8] sm:$0xff]   ;;  %v22547_v51 = vld [vmem:[%s23561_s21 + $0x1bc0] sm:$0xff]  }
 0x37d   : > { %v17681_v48 = vcombine.low %v279_v45, %v279_v45  ;;  %v22555_v59 = vld [vmem:[%s23561_s21 + $0x1bd0] sm:$0xff]  }
 0x37e   : > { %v24511_v49 = vadd.f32 %v20174_v39, %v15029_v44  ;;  %20455 = vmatpush3.bf16.msra.mxu0 %v22500_v52  ;;  %15626 = vmatprep.mubr.bf16.mxu1 %v17678_v63  ;;  %v22537_v39 = vld [vmem:[%s23561_s21 + $0x1ab0] sm:$0xff]   ;;  %v278_v44 = vld [vmem:[%s23579_s28 + $0x1a0] sm:$0x77]  ;;  %v22559_v63 = vld [vmem:[%s23561_s21 + $0x1bd8] sm:$0xff]  }
 0x37f   : > { %20477 = vmatpush3.bf16.msra.mxu1 %v22501_v53  ;;  %20456 = vmatprep.subr.bf16.mxu0 %v22502_v54  ;;  %v17679_v46 = vcombine.low %v278_v44, %v278_v44  ;;  %v17680_v47 = vcombine.high %v278_v44, %v278_v44  ;;  %v22548_v52 = vld [vmem:[%s23561_s21 + $0x1b00] sm:$0xff]   ;;  %v22550_v54 = vld [vmem:[%s23561_s21 + $0x1b48] sm:$0xff]   ;;  %v22590_v44 = vld [vmem:[%s23561_s21 + $0x1c50] sm:$0xff]  }
 0x380   : > { %20478 = vmatprep.subr.bf16.mxu1 %v22503_v55  ;;  %v22549_v53 = vld [vmem:[%s23561_s21 + $0x1b80] sm:$0xff]   ;;  %v22551_v55 = vld [vmem:[%s23561_s21 + $0x1bc8] sm:$0xff]   ;;  %v22591_v45 = vld [vmem:[%s23561_s21 + $0x1cd0] sm:$0xff]  }
 0x382   : > { %20457 = vmatpush3.bf16.msra.mxu0 %v22504_v56  ;;  %v22552_v56 = vld [vmem:[%s23561_s21 + $0x1b08] sm:$0xff]  }
 0x383   : > { %20479 = vmatpush3.bf16.msra.mxu1 %v22505_v57  ;;  %20486 = vmatprep.subr.bf16.mxu0 %v22510_v0  ;;  %v22553_v57 = vld [vmem:[%s23561_s21 + $0x1b88] sm:$0xff]   ;;  %v22560_v0 = vld [vmem:[%s23561_s21 + $0x1b18] sm:$0xff]  }
 0x384   : > { %20508 = vmatprep.subr.bf16.mxu1 %v22511_v1  ;;  %v22561_v1 = vld [vmem:[%s23561_s21 + $0x1b98] sm:$0xff]  }
 0x385   : > { %15587 = vmatmul.mubr.bf16.vlgmr.msra.gmra.mrb[100].mxu0 %v17675_v60  ;;  %v22556_v60 = vld [vmem:[%s23561_s21 + $0x1b10] sm:$0xff]  }
 0x386   : > { %15627 = vmatmul.mubr.bf16.vlgmr.msra.gmra.mrb[100].mxu1 %v17677_v62  ;;  %20487 = vmatpush3.bf16.msra.mxu0 %v22512_v2  ;;  %v22558_v62 = vld [vmem:[%s23561_s21 + $0x1b58] sm:$0xff]   ;;  %v22562_v2 = vld [vmem:[%s23561_s21 + $0x1b60] sm:$0xff]  }
 0x387   : > { %20509 = vmatpush3.bf16.msra.mxu1 %v22513_v3  ;;  %20488 = vmatprep.subr.bf16.mxu0 %v22514_v4  ;;  %v22563_v3 = vld [vmem:[%s23561_s21 + $0x1be0] sm:$0xff]  }
 0x388   : > { %20510 = vmatprep.subr.bf16.mxu1 %v22515_v5  ;;  %15666 = vmatprep.mubr.bf16.mxu0 %v17680_v47  ;;  %v22564_v5 = vld [vmem:[%s23561_s21 + $0x1b20] sm:$0xff]   ;;  %v22593_v47 = vld [vmem:[%s23561_s21 + $0x1c90] sm:$0xff]  }
 0x389   : > { %15706 = vmatprep.mubr.bf16.mxu1 %v17682_v50  ;;  %v22596_v50 = vld [vmem:[%s23561_s21 + $0x1c18] sm:$0xff]  }
 0x38a   : > { %20489 = vmatpush3.bf16.msra.mxu0 %v22516_v6 }
 0x38b   : > { %20511 = vmatpush3.bf16.msra.mxu1 %v22517_v7  ;;  %20490 = vmatprep.subr.bf16.mxu0 %v22518_v8  ;;  %v22565_v7 = vld [vmem:[%s23561_s21 + $0x1ba0] sm:$0xff]  }
 0x38c   : > { %20512 = vmatprep.subr.bf16.mxu1 %v22519_v9 }
 0x38e   : > { %20491 = vmatpush3.bf16.msra.mxu0 %v22520_v10  ;;  %v22566_v10 = vld [vmem:[%s23561_s21 + $0x1b68] sm:$0xff]  }
 0x38f   : > { %20513 = vmatpush3.bf16.msra.mxu1 %v22521_v11  ;;  %20492 = vmatprep.subr.bf16.mxu0 %v22522_v12 }
 0x390   : > { %20514 = vmatprep.subr.bf16.mxu1 %v22523_v13  ;;  %v22567_v13 = vld [vmem:[%s23561_s21 + $0x1be8] sm:$0xff]  }
 0x392   : > { %20493 = vmatpush3.bf16.msra.mxu0 %v22524_v14 }
 0x393   : > { %20515 = vmatpush3.bf16.msra.mxu1 %v22525_v15  ;;  %20494 = vmatprep.subr.bf16.mxu0 %v22526_v16  ;;  %v22568_v16 = vld [vmem:[%s23561_s21 + $0x1b28] sm:$0xff]  }
 0x394   : > { %20516 = vmatprep.subr.bf16.mxu1 %v22527_v17 }
 0x396   : > { %20495 = vmatpush3.bf16.msra.mxu0 %v22528_v19 }
 0x397   : > { %20517 = vmatpush3.bf16.msra.mxu1 %v22529_v21  ;;  %20496 = vmatprep.subr.bf16.mxu0 %v22530_v25  ;;  %v22570_v21 = vld [vmem:[%s23561_s21 + $0x1b70] sm:$0xff]  }
 0x398   : > { %v20194_v18 = vpop.f32.mrb[76].mxu0  ;;  %20518 = vmatprep.subr.bf16.mxu1 %v22531_v27  ;;  %v22573_v25 = vld [vmem:[%s23561_s21 + $0x1bb0] sm:$0xff]   ;;  %v22575_v27 = vld [vmem:[%s23561_s21 + $0x1bf8] sm:$0xff]  }
 0x399   : > { %v20216_v20 = vpop.f32.mrb[76].mxu1  ;;  %v20195_v22 = vpop.f32.mrb[77].mxu0 }
 0x39a   : > { %v20196_v23 = vadd.f32 %v20195_v22, %v20194_v18  ;;  %v20217_v24 = vpop.f32.mrb[77].mxu1  ;;  %v20197_v28 = vpop.f32.mrb[78].mxu0  ;;  %20497 = vmatpush3.bf16.msra.mxu0 %v22532_v31  ;;  %v22569_v18 = vld [vmem:[%s23561_s21 + $0x1ba8] sm:$0xff]  }
 0x39b   : > { %v20218_v26 = vadd.f32 %v20217_v24, %v20216_v20  ;;  %v20219_v30 = vpop.f32.mrb[78].mxu1  ;;  %v20198_v33 = vpop.f32.mrb[79].mxu0  ;;  %20519 = vmatpush3.bf16.msra.mxu1 %v22533_v32  ;;  %20498 = vmatprep.subr.bf16.mxu0 %v22534_v36  ;;  %v22572_v24 = vld [vmem:[%s23561_s21 + $0x1b30] sm:$0xff]   ;;  %v22576_v28 = vld [vmem:[%s23561_s21 + $0x1b38] sm:$0xff]   ;;  %v22582_v36 = vld [vmem:[%s23561_s21 + $0x1c40] sm:$0xff]  }
 0x39c   : > { %v15109_v29 = vadd.f32 %v20196_v23, %v24511_v49  ;;  %v20220_v35 = vpop.f32.mrb[79].mxu1  ;;  %20520 = vmatprep.subr.bf16.mxu1 %v22535_v37  ;;  %v22546_v49 = vld [vmem:[%s23561_s21 + $0x1b40] sm:$0xff]   ;;  %v22571_v23 = vld [vmem:[%s23561_s21 + $0x1bf0] sm:$0xff]   ;;  %v281_v33 = vld [vmem:[%s23579_s28 + $0x1b8] sm:$0x77] }
 0x39d   : > { %v280_v30 = vld [vmem:[%s23579_s28 + $0x1b0] sm:$0x77]  ;;  %v17686_v35 = vcombine.high %v281_v33, %v281_v33  ;;  %v22583_v37 = vld [vmem:[%s23561_s21 + $0x1cc0] sm:$0xff]  }
 0x39e   : > { %v24548_v34 = vadd.f32 %v20218_v26, %v15109_v29  ;;  %20499 = vmatpush3.bf16.msra.mxu0 %v22536_v38  ;;  %v22574_v26 = vld [vmem:[%s23561_s21 + $0x1b78] sm:$0xff]   ;;  %v17683_v31 = vcombine.low %v280_v30, %v280_v30  ;;  %v17684_v32 = vcombine.high %v280_v30, %v280_v30  ;;  %v22584_v38 = vld [vmem:[%s23561_s21 + $0x1c00] sm:$0xff]   ;;  %v22626_v30 = vld [vmem:[%s23561_s21 + $0x1d50] sm:$0xff]  }
 0x39f   : > { %20521 = vmatpush3.bf16.msra.mxu1 %v22537_v39  ;;  %20500 = vmatprep.subr.bf16.mxu0 %v22538_v40  ;;  %v22577_v29 = vld [vmem:[%s23561_s21 + $0x1bb8] sm:$0xff]   ;;  %v22585_v39 = vld [vmem:[%s23561_s21 + $0x1c80] sm:$0xff]   ;;  %v22586_v40 = vld [vmem:[%s23561_s21 + $0x1c48] sm:$0xff]  }
 0x3a0   : > { %20522 = vmatprep.subr.bf16.mxu1 %v22539_v41  ;;  %v22587_v41 = vld [vmem:[%s23561_s21 + $0x1cc8] sm:$0xff]  }
 0x3a2   : > { %20501 = vmatpush3.bf16.msra.mxu0 %v22540_v42  ;;  %v22588_v42 = vld [vmem:[%s23561_s21 + $0x1c08] sm:$0xff]  }
 0x3a3   : > { %20523 = vmatpush3.bf16.msra.mxu1 %v22541_v43  ;;  %20530 = vmatprep.subr.bf16.mxu0 %v22546_v49  ;;  %v22589_v43 = vld [vmem:[%s23561_s21 + $0x1c88] sm:$0xff]   ;;  %v22595_v49 = vld [vmem:[%s23561_s21 + $0x1cd8] sm:$0xff]  }
 0x3a4   : > { %20552 = vmatprep.subr.bf16.mxu1 %v22547_v51  ;;  %v22597_v51 = vld [vmem:[%s23561_s21 + $0x1c98] sm:$0xff]  }
 0x3a5   : > { %15667 = vmatmul.mubr.bf16.vlgmr.msra.gmra.mrb[104].mxu0 %v17679_v46  ;;  %v22592_v46 = vld [vmem:[%s23561_s21 + $0x1c10] sm:$0xff]  }
 0x3a6   : > { %15707 = vmatmul.mubr.bf16.vlgmr.msra.gmra.mrb[104].mxu1 %v17681_v48  ;;  %20531 = vmatpush3.bf16.msra.mxu0 %v22548_v52  ;;  %v22594_v48 = vld [vmem:[%s23561_s21 + $0x1c58] sm:$0xff]   ;;  %v22598_v52 = vld [vmem:[%s23561_s21 + $0x1c60] sm:$0xff]  }
 0x3a7   : > { %20553 = vmatpush3.bf16.msra.mxu1 %v22549_v53  ;;  %20532 = vmatprep.subr.bf16.mxu0 %v22550_v54  ;;  %v22599_v53 = vld [vmem:[%s23561_s21 + $0x1ce0] sm:$0xff]  }
 0x3a8   : > { %20554 = vmatprep.subr.bf16.mxu1 %v22551_v55  ;;  %15746 = vmatprep.mubr.bf16.mxu0 %v17684_v32  ;;  %v22600_v55 = vld [vmem:[%s23561_s21 + $0x1c20] sm:$0xff]   ;;  %v22628_v32 = vld [vmem:[%s23561_s21 + $0x1d10] sm:$0xff]  }
 0x3a9   : > { %15786 = vmatprep.mubr.bf16.mxu1 %v17686_v35  ;;  %v22631_v35 = vld [vmem:[%s23561_s21 + $0x1dd8] sm:$0xff]  }
 0x3aa   : > { %20533 = vmatpush3.bf16.msra.mxu0 %v22552_v56 }
 0x3ab   : > { %20555 = vmatpush3.bf16.msra.mxu1 %v22553_v57  ;;  %20534 = vmatprep.subr.bf16.mxu0 %v22554_v58  ;;  %v22601_v57 = vld [vmem:[%s23561_s21 + $0x1ca0] sm:$0xff]  }
 0x3ac   : > { %20556 = vmatprep.subr.bf16.mxu1 %v22555_v59 }
 0x3ae   : > { %20535 = vmatpush3.bf16.msra.mxu0 %v22556_v60  ;;  %v22602_v60 = vld [vmem:[%s23561_s21 + $0x1c68] sm:$0xff]  }
 0x3af   : > { %20557 = vmatpush3.bf16.msra.mxu1 %v22557_v61  ;;  %20536 = vmatprep.subr.bf16.mxu0 %v22558_v62 }
 0x3b0   : > { %20558 = vmatprep.subr.bf16.mxu1 %v22559_v63  ;;  %v22603_v63 = vld [vmem:[%s23561_s21 + $0x1ce8] sm:$0xff]  }
 0x3b2   : > { %20537 = vmatpush3.bf16.msra.mxu0 %v22560_v0 }
 0x3b3   : > { %20559 = vmatpush3.bf16.msra.mxu1 %v22561_v1  ;;  %20538 = vmatprep.subr.bf16.mxu0 %v22562_v2  ;;  %v22604_v2 = vld [vmem:[%s23561_s21 + $0x1c28] sm:$0xff]  }
 0x3b4   : > { %20560 = vmatprep.subr.bf16.mxu1 %v22563_v3 }
 0x3b6   : > { %20539 = vmatpush3.bf16.msra.mxu0 %v22564_v5 }
 0x3b7   : > { %20561 = vmatpush3.bf16.msra.mxu1 %v22565_v7  ;;  %20540 = vmatprep.subr.bf16.mxu0 %v22566_v10  ;;  %v22606_v7 = vld [vmem:[%s23561_s21 + $0x1c70] sm:$0xff]  }
 0x3b8   : > { %v20238_v4 = vpop.f32.mrb[80].mxu0  ;;  %20562 = vmatprep.subr.bf16.mxu1 %v22567_v13  ;;  %v22608_v10 = vld [vmem:[%s23561_s21 + $0x1c30] sm:$0xff]   ;;  %v22611_v13 = vld [vmem:[%s23561_s21 + $0x1cf8] sm:$0xff]  }
 0x3b9   : > { %v20260_v6 = vpop.f32.mrb[80].mxu1  ;;  %v20239_v8 = vpop.f32.mrb[81].mxu0 }
 0x3ba   : > { %v20261_v9 = vpop.f32.mrb[81].mxu1  ;;  %v20240_v11 = vadd.f32 %v20239_v8, %v20238_v4  ;;  %v20241_v14 = vpop.f32.mrb[82].mxu0  ;;  %20541 = vmatpush3.bf16.msra.mxu0 %v22568_v16  ;;  %v22605_v4 = vld [vmem:[%s23561_s21 + $0x1ca8] sm:$0xff]   ;;  %v282_v16 = vld [vmem:[%s23579_s28 + $0x1c0] sm:$0x77] }
 0x3bb   : > { %v20262_v12 = vadd.f32 %v20261_v9, %v20260_v6  ;;  %v20263_v15 = vpop.f32.mrb[82].mxu1  ;;  %v20242_v19 = vpop.f32.mrb[83].mxu0  ;;  %20563 = vmatpush3.bf16.msra.mxu1 %v22569_v18  ;;  %20542 = vmatprep.subr.bf16.mxu0 %v22570_v21  ;;  %v22607_v9 = vld [vmem:[%s23561_s21 + $0x1cf0] sm:$0xff]   ;;  %v22612_v14 = vld [vmem:[%s23561_s21 + $0x1c38] sm:$0xff]   ;;  %v17687_v18 = vcombine.low %v282_v16, %v282_v16 }
 0x3bc   : > { %v15189_v17 = vadd.f32 %v20240_v11, %v24548_v34  ;;  %v20264_v20 = vpop.f32.mrb[83].mxu1  ;;  %20564 = vmatprep.subr.bf16.mxu1 %v22571_v23  ;;  %v17685_v34 = vcombine.low %v281_v33, %v281_v33  ;;  %v22609_v11 = vld [vmem:[%s23561_s21 + $0x1cb0] sm:$0xff]   ;;  %v22613_v15 = vld [vmem:[%s23561_s21 + $0x1cb8] sm:$0xff]   ;;  %v17688_v19 = vcombine.high %v282_v16, %v282_v16  ;;  %v22619_v23 = vld [vmem:[%s23561_s21 + $0x1dc0] sm:$0xff]  }
 0x3bd   : > { %v22629_v33 = vld [vmem:[%s23561_s21 + $0x1d90] sm:$0xff]  }
 0x3be   : > { %v24586_v22 = vadd.f32 %v20262_v12, %v15189_v17  ;;  %20543 = vmatpush3.bf16.msra.mxu0 %v22572_v24  ;;  %v22610_v12 = vld [vmem:[%s23561_s21 + $0x1c78] sm:$0xff]   ;;  %v283_v17 = vld [vmem:[%s23579_s28 + $0x1c8] sm:$0x77]  ;;  %v22620_v24 = vld [vmem:[%s23561_s21 + $0x1d00] sm:$0xff]  }
 0x3bf   : > { %20565 = vmatpush3.bf16.msra.mxu1 %v22573_v25  ;;  %20544 = vmatprep.subr.bf16.mxu0 %v22574_v26  ;;  %v17689_v20 = vcombine.low %v283_v17, %v283_v17  ;;  %v17690_v21 = vcombine.high %v283_v17, %v283_v17  ;;  %v22621_v25 = vld [vmem:[%s23561_s21 + $0x1d80] sm:$0xff]   ;;  %v22622_v26 = vld [vmem:[%s23561_s21 + $0x1d48] sm:$0xff]   ;;  %v22662_v16 = vld [vmem:[%s23561_s21 + $0x1e50] sm:$0xff]  }
 0x3c0   : > { %20566 = vmatprep.subr.bf16.mxu1 %v22575_v27  ;;  %v22623_v27 = vld [vmem:[%s23561_s21 + $0x1dc8] sm:$0xff]   ;;  %v22663_v17 = vld [vmem:[%s23561_s21 + $0x1ed0] sm:$0xff]  }
 0x3c2   : > { %20545 = vmatpush3.bf16.msra.mxu0 %v22576_v28  ;;  %v22624_v28 = vld [vmem:[%s23561_s21 + $0x1d08] sm:$0xff]  }
 0x3c3   : > { %20567 = vmatpush3.bf16.msra.mxu1 %v22577_v29  ;;  %20574 = vmatprep.subr.bf16.mxu0 %v22582_v36  ;;  %v22625_v29 = vld [vmem:[%s23561_s21 + $0x1d88] sm:$0xff]   ;;  %v22632_v36 = vld [vmem:[%s23561_s21 + $0x1d18] sm:$0xff]  }
 0x3c4   : > { %20596 = vmatprep.subr.bf16.mxu1 %v22583_v37  ;;  %v22633_v37 = vld [vmem:[%s23561_s21 + $0x1d98] sm:$0xff]  }
 0x3c5   : > { %15747 = vmatmul.mubr.bf16.vlgmr.msra.gmra.mrb[108].mxu0 %v17683_v31  ;;  %v22627_v31 = vld [vmem:[%s23561_s21 + $0x1dd0] sm:$0xff]  }
 0x3c6   : > { %15787 = vmatmul.mubr.bf16.vlgmr.msra.gmra.mrb[108].mxu1 %v17685_v34  ;;  %20575 = vmatpush3.bf16.msra.mxu0 %v22584_v38  ;;  %v22630_v34 = vld [vmem:[%s23561_s21 + $0x1d58] sm:$0xff]   ;;  %v22634_v38 = vld [vmem:[%s23561_s21 + $0x1d60] sm:$0xff]  }
 0x3c7   : > { %20597 = vmatpush3.bf16.msra.mxu1 %v22585_v39  ;;  %20576 = vmatprep.subr.bf16.mxu0 %v22586_v40  ;;  %v22635_v39 = vld [vmem:[%s23561_s21 + $0x1de0] sm:$0xff]  }
 0x3c8   : > { %20598 = vmatprep.subr.bf16.mxu1 %v22587_v41  ;;  %15826 = vmatprep.mubr.bf16.mxu0 %v17688_v19  ;;  %v22636_v40 = vld [vmem:[%s23561_s21 + $0x1d20] sm:$0xff]   ;;  %v22665_v19 = vld [vmem:[%s23561_s21 + $0x1e90] sm:$0xff]  }
 0x3c9   : > { %15866 = vmatprep.mubr.bf16.mxu1 %v17690_v21  ;;  %v22667_v21 = vld [vmem:[%s23561_s21 + $0x1ed8] sm:$0xff]  }
 0x3ca   : > { %20577 = vmatpush3.bf16.msra.mxu0 %v22588_v42  ;;  %v22637_v42 = vld [vmem:[%s23561_s21 + $0x1da0] sm:$0xff]  }
 0x3cb   : > { %20599 = vmatpush3.bf16.msra.mxu1 %v22589_v43  ;;  %20578 = vmatprep.subr.bf16.mxu0 %v22590_v44 }
 0x3cc   : > { %20600 = vmatprep.subr.bf16.mxu1 %v22591_v45 }
 0x3ce   : > { %20579 = vmatpush3.bf16.msra.mxu0 %v22592_v46 }
 0x3cf   : > { %20601 = vmatpush3.bf16.msra.mxu1 %v22593_v47  ;;  %20580 = vmatprep.subr.bf16.mxu0 %v22594_v48  ;;  %v22638_v48 = vld [vmem:[%s23561_s21 + $0x1d68] sm:$0xff]  }
 0x3d0   : > { %20602 = vmatprep.subr.bf16.mxu1 %v22595_v49 }
 0x3d2   : > { %20581 = vmatpush3.bf16.msra.mxu0 %v22596_v50  ;;  %v22639_v50 = vld [vmem:[%s23561_s21 + $0x1de8] sm:$0xff]  }
 0x3d3   : > { %20603 = vmatpush3.bf16.msra.mxu1 %v22597_v51  ;;  %20582 = vmatprep.subr.bf16.mxu0 %v22598_v52 }
 0x3d4   : > { %20604 = vmatprep.subr.bf16.mxu1 %v22599_v53  ;;  %v22640_v53 = vld [vmem:[%s23561_s21 + $0x1d28] sm:$0xff]  }
 0x3d6   : > { %20583 = vmatpush3.bf16.msra.mxu0 %v22600_v55  ;;  %v22641_v55 = vld [vmem:[%s23561_s21 + $0x1da8] sm:$0xff]  }
 0x3d7   : > { %20605 = vmatpush3.bf16.msra.mxu1 %v22601_v57  ;;  %20584 = vmatprep.subr.bf16.mxu0 %v22602_v60  ;;  %v22644_v60 = vld [vmem:[%s23561_s21 + $0x1d30] sm:$0xff]  }
 0x3d8   : > { %v20282_v54 = vpop.f32.mrb[84].mxu0  ;;  %20606 = vmatprep.subr.bf16.mxu1 %v22603_v63  ;;  %v22647_v63 = vld [vmem:[%s23561_s21 + $0x1df8] sm:$0xff]  }
 0x3d9   : > { %v20304_v56 = vpop.f32.mrb[84].mxu1  ;;  %v20283_v58 = vpop.f32.mrb[85].mxu0 }
 0x3da   : > { %v20305_v59 = vpop.f32.mrb[85].mxu1  ;;  %v20284_v61 = vadd.f32 %v20283_v58, %v20282_v54  ;;  %v20285_v0 = vpop.f32.mrb[86].mxu0  ;;  %20585 = vmatpush3.bf16.msra.mxu0 %v22604_v2  ;;  %v22642_v58 = vld [vmem:[%s23561_s21 + $0x1d70] sm:$0xff]  }
 0x3db   : > { %v20306_v62 = vadd.f32 %v20305_v59, %v20304_v56  ;;  %v20307_v1 = vpop.f32.mrb[86].mxu1  ;;  %v20286_v5 = vpop.f32.mrb[87].mxu0  ;;  %20607 = vmatpush3.bf16.msra.mxu1 %v22605_v4  ;;  %20586 = vmatprep.subr.bf16.mxu0 %v22606_v7  ;;  %v22643_v59 = vld [vmem:[%s23561_s21 + $0x1df0] sm:$0xff]   ;;  %v22648_v0 = vld [vmem:[%s23561_s21 + $0x1d38] sm:$0xff]  }
 0x3dc   : > { %v15269_v3 = vadd.f32 %v20284_v61, %v24586_v22  ;;  %v20308_v6 = vpop.f32.mrb[87].mxu1  ;;  %20608 = vmatprep.subr.bf16.mxu1 %v22607_v9  ;;  %v22618_v22 = vld [vmem:[%s23561_s21 + $0x1d40] sm:$0xff]   ;;  %v22645_v61 = vld [vmem:[%s23561_s21 + $0x1db0] sm:$0xff]   ;;  %v22649_v1 = vld [vmem:[%s23561_s21 + $0x1db8] sm:$0xff]  }
 0x3dd   : > { %v284_v2 = vld [vmem:[%s23579_s28 + $0x1d0] sm:$0x77]  ;;  %v22655_v9 = vld [vmem:[%s23561_s21 + $0x1ec0] sm:$0xff]  }
 0x3de   : > { %v24623_v8 = vadd.f32 %v20306_v62, %v15269_v3  ;;  %20587 = vmatpush3.bf16.msra.mxu0 %v22608_v10  ;;  %v22646_v62 = vld [vmem:[%s23561_s21 + $0x1d78] sm:$0xff]   ;;  %v17691_v4 = vcombine.low %v284_v2, %v284_v2  ;;  %v17692_v5 = vcombine.high %v284_v2, %v284_v2  ;;  %v22656_v10 = vld [vmem:[%s23561_s21 + $0x1e00] sm:$0xff]   ;;  %v22698_v2 = vld [vmem:[%s23561_s21 + $0x1f50] sm:$0xff]  }
 0x3df   : > { %20609 = vmatpush3.bf16.msra.mxu1 %v22609_v11  ;;  %20588 = vmatprep.subr.bf16.mxu0 %v22610_v12  ;;  %v285_v3 = vld [vmem:[%s23579_s28 + $0x1d8] sm:$0x77]  ;;  %v22657_v11 = vld [vmem:[%s23561_s21 + $0x1e80] sm:$0xff]   ;;  %v22658_v12 = vld [vmem:[%s23561_s21 + $0x1e48] sm:$0xff]  }
 0x3e0   : > { %20610 = vmatprep.subr.bf16.mxu1 %v22611_v13  ;;  %v17693_v6 = vcombine.low %v285_v3, %v285_v3  ;;  %v17694_v7 = vcombine.high %v285_v3, %v285_v3  ;;  %v22659_v13 = vld [vmem:[%s23561_s21 + $0x1ec8] sm:$0xff]   ;;  %v22699_v3 = vld [vmem:[%s23561_s21 + $0x1fd0] sm:$0xff]  }
 0x3e2   : > { %20589 = vmatpush3.bf16.msra.mxu0 %v22612_v14  ;;  %v22660_v14 = vld [vmem:[%s23561_s21 + $0x1e08] sm:$0xff]  }
 0x3e3   : > { %20611 = vmatpush3.bf16.msra.mxu1 %v22613_v15  ;;  %20618 = vmatprep.subr.bf16.mxu0 %v22618_v22  ;;  %v22661_v15 = vld [vmem:[%s23561_s21 + $0x1e88] sm:$0xff]   ;;  %v22668_v22 = vld [vmem:[%s23561_s21 + $0x1e18] sm:$0xff]  }
 0x3e4   : > { %20640 = vmatprep.subr.bf16.mxu1 %v22619_v23  ;;  %v22669_v23 = vld [vmem:[%s23561_s21 + $0x1e98] sm:$0xff]  }
 0x3e5   : > { %15827 = vmatmul.mubr.bf16.vlgmr.msra.gmra.mrb[112].mxu0 %v17687_v18  ;;  %v22664_v18 = vld [vmem:[%s23561_s21 + $0x1e10] sm:$0xff]  }
 0x3e6   : > { %15867 = vmatmul.mubr.bf16.vlgmr.msra.gmra.mrb[112].mxu1 %v17689_v20  ;;  %20619 = vmatpush3.bf16.msra.mxu0 %v22620_v24  ;;  %v22666_v20 = vld [vmem:[%s23561_s21 + $0x1e58] sm:$0xff]   ;;  %v22670_v24 = vld [vmem:[%s23561_s21 + $0x1e60] sm:$0xff]  }
 0x3e7   : > { %20641 = vmatpush3.bf16.msra.mxu1 %v22621_v25  ;;  %20620 = vmatprep.subr.bf16.mxu0 %v22622_v26  ;;  %v22671_v25 = vld [vmem:[%s23561_s21 + $0x1ee0] sm:$0xff]  }
 0x3e8   : > { %20642 = vmatprep.subr.bf16.mxu1 %v22623_v27  ;;  %15906 = vmatprep.mubr.bf16.mxu0 %v17692_v5  ;;  %v22672_v27 = vld [vmem:[%s23561_s21 + $0x1e20] sm:$0xff]   ;;  %v22701_v5 = vld [vmem:[%s23561_s21 + $0x1f90] sm:$0xff]  }
 0x3e9   : > { %15946 = vmatprep.mubr.bf16.mxu1 %v17694_v7  ;;  %v22703_v7 = vld [vmem:[%s23561_s21 + $0x1fd8] sm:$0xff]  }
 0x3ea   : > { %20621 = vmatpush3.bf16.msra.mxu0 %v22624_v28 }
 0x3eb   : > { %20643 = vmatpush3.bf16.msra.mxu1 %v22625_v29  ;;  %20622 = vmatprep.subr.bf16.mxu0 %v22626_v30  ;;  %v22673_v29 = vld [vmem:[%s23561_s21 + $0x1ea0] sm:$0xff]  }
 0x3ec   : > { %20644 = vmatprep.subr.bf16.mxu1 %v22627_v31 }
 0x3ee   : > { %20623 = vmatpush3.bf16.msra.mxu0 %v22628_v32 }
 0x3ef   : > { %20645 = vmatpush3.bf16.msra.mxu1 %v22629_v33  ;;  %20624 = vmatprep.subr.bf16.mxu0 %v22630_v34  ;;  %v22674_v33 = vld [vmem:[%s23561_s21 + $0x1e68] sm:$0xff]  }
 0x3f0   : > { %20646 = vmatprep.subr.bf16.mxu1 %v22631_v35  ;;  %v22675_v35 = vld [vmem:[%s23561_s21 + $0x1ee8] sm:$0xff]  }
 0x3f2   : > { %20625 = vmatpush3.bf16.msra.mxu0 %v22632_v36 }
 0x3f3   : > { %20647 = vmatpush3.bf16.msra.mxu1 %v22633_v37  ;;  %20626 = vmatprep.subr.bf16.mxu0 %v22634_v38 }
 0x3f4   : > { %20648 = vmatprep.subr.bf16.mxu1 %v22635_v39  ;;  %v22676_v39 = vld [vmem:[%s23561_s21 + $0x1e28] sm:$0xff]  }
 0x3f6   : > { %20627 = vmatpush3.bf16.msra.mxu0 %v22636_v40  ;;  %v22677_v40 = vld [vmem:[%s23561_s21 + $0x1ea8] sm:$0xff]  }
 0x3f7   : > { %20649 = vmatpush3.bf16.msra.mxu1 %v22637_v42  ;;  %20628 = vmatprep.subr.bf16.mxu0 %v22638_v48  ;;  %v22682_v48 = vld [vmem:[%s23561_s21 + $0x1e78] sm:$0xff]  }
 0x3f8   : > { %v20326_v41 = vpop.f32.mrb[88].mxu0  ;;  %20650 = vmatprep.subr.bf16.mxu1 %v22639_v50  ;;  %v22684_v50 = vld [vmem:[%s23561_s21 + $0x1e38] sm:$0xff]  }
 0x3f9   : > { %v20348_v43 = vpop.f32.mrb[88].mxu1  ;;  %v20327_v44 = vpop.f32.mrb[89].mxu0 }
 0x3fa   : > { %v20349_v45 = vpop.f32.mrb[89].mxu1  ;;  %v20328_v46 = vadd.f32 %v20327_v44, %v20326_v41  ;;  %v20329_v49 = vpop.f32.mrb[90].mxu0  ;;  %20629 = vmatpush3.bf16.msra.mxu0 %v22640_v53  ;;  %v22678_v44 = vld [vmem:[%s23561_s21 + $0x1e70] sm:$0xff]   ;;  %v287_v53 = vld [vmem:[%s23579_s28 + $0x1e8] sm:$0x77] }
 0x3fb   : > { %v20350_v47 = vadd.f32 %v20349_v45, %v20348_v43  ;;  %v20351_v51 = vpop.f32.mrb[90].mxu1  ;;  %v20330_v54 = vpop.f32.mrb[91].mxu0  ;;  %20651 = vmatpush3.bf16.msra.mxu1 %v22641_v55  ;;  %20630 = vmatprep.subr.bf16.mxu0 %v22642_v58  ;;  %v22679_v45 = vld [vmem:[%s23561_s21 + $0x1ef0] sm:$0xff]   ;;  %v22683_v49 = vld [vmem:[%s23561_s21 + $0x1ef8] sm:$0xff]   ;;  %v17698_v58 = vcombine.high %v287_v53, %v287_v53 }
 0x3fc   : > { %v15349_v52 = vadd.f32 %v20328_v46, %v24623_v8  ;;  %v20352_v56 = vpop.f32.mrb[91].mxu1  ;;  %20652 = vmatprep.subr.bf16.mxu1 %v22643_v59  ;;  %v22654_v8 = vld [vmem:[%s23561_s21 + $0x1e40] sm:$0xff]   ;;  %v22680_v46 = vld [vmem:[%s23561_s21 + $0x1e30] sm:$0xff]   ;;  %v22685_v51 = vld [vmem:[%s23561_s21 + $0x1eb8] sm:$0xff]  }
 0x3fd   : > { %v17697_v56 = vcombine.low %v287_v53, %v287_v53  ;;  %v22691_v59 = vld [vmem:[%s23561_s21 + $0x1fc0] sm:$0xff]   ;;  %v22735_v53 = vld [vmem:[%s23561_s21 + $0x20d0] sm:$0xff]  }
 0x3fe   : > { %v24659_v57 = vadd.f32 %v20350_v47, %v15349_v52  ;;  %20631 = vmatpush3.bf16.msra.mxu0 %v22644_v60  ;;  %v22681_v47 = vld [vmem:[%s23561_s21 + $0x1eb0] sm:$0xff]   ;;  %v286_v52 = vld [vmem:[%s23579_s28 + $0x1e0] sm:$0x77] }
 0x3ff   : > { %20653 = vmatpush3.bf16.msra.mxu1 %v22645_v61  ;;  %20632 = vmatprep.subr.bf16.mxu0 %v22646_v62  ;;  %v17695_v54 = vcombine.low %v286_v52, %v286_v52  ;;  %v17696_v55 = vcombine.high %v286_v52, %v286_v52  ;;  %v22692_v60 = vld [vmem:[%s23561_s21 + $0x1f00] sm:$0xff]   ;;  %v22694_v62 = vld [vmem:[%s23561_s21 + $0x1f48] sm:$0xff]   ;;  %v22734_v52 = vld [vmem:[%s23561_s21 + $0x2050] sm:$0xff]  }
 0x400   : > { %20654 = vmatprep.subr.bf16.mxu1 %v22647_v63  ;;  %v22693_v61 = vld [vmem:[%s23561_s21 + $0x1f80] sm:$0xff]   ;;  %v22695_v63 = vld [vmem:[%s23561_s21 + $0x1fc8] sm:$0xff]  }
 0x402   : > { %20633 = vmatpush3.bf16.msra.mxu0 %v22648_v0  ;;  %v22696_v0 = vld [vmem:[%s23561_s21 + $0x1f08] sm:$0xff]  }
 0x403   : > { %20655 = vmatpush3.bf16.msra.mxu1 %v22649_v1  ;;  %20662 = vmatprep.subr.bf16.mxu0 %v22654_v8  ;;  %v22697_v1 = vld [vmem:[%s23561_s21 + $0x1f88] sm:$0xff]   ;;  %v22704_v8 = vld [vmem:[%s23561_s21 + $0x1f18] sm:$0xff]  }
 0x404   : > { %20684 = vmatprep.subr.bf16.mxu1 %v22655_v9  ;;  %v22705_v9 = vld [vmem:[%s23561_s21 + $0x1f98] sm:$0xff]  }
 0x405   : > { %15907 = vmatmul.mubr.bf16.vlgmr.msra.gmra.mrb[116].mxu0 %v17691_v4  ;;  %v22700_v4 = vld [vmem:[%s23561_s21 + $0x1f10] sm:$0xff]  }
 0x406   : > { %15947 = vmatmul.mubr.bf16.vlgmr.msra.gmra.mrb[116].mxu1 %v17693_v6  ;;  %20663 = vmatpush3.bf16.msra.mxu0 %v22656_v10  ;;  %v22702_v6 = vld [vmem:[%s23561_s21 + $0x1f58] sm:$0xff]   ;;  %v22706_v10 = vld [vmem:[%s23561_s21 + $0x1f60] sm:$0xff]  }
 0x407   : > { %20685 = vmatpush3.bf16.msra.mxu1 %v22657_v11  ;;  %20664 = vmatprep.subr.bf16.mxu0 %v22658_v12  ;;  %v22707_v11 = vld [vmem:[%s23561_s21 + $0x1fe0] sm:$0xff]  }
 0x408   : > { %20686 = vmatprep.subr.bf16.mxu1 %v22659_v13  ;;  %15986 = vmatprep.mubr.bf16.mxu0 %v17696_v55  ;;  %v22708_v13 = vld [vmem:[%s23561_s21 + $0x1f20] sm:$0xff]   ;;  %v22737_v55 = vld [vmem:[%s23561_s21 + $0x2090] sm:$0xff]  }
 0x409   : > { %16026 = vmatprep.mubr.bf16.mxu1 %v17698_v58  ;;  %v22740_v58 = vld [vmem:[%s23561_s21 + $0x2018] sm:$0xff]  }
 0x40a   : > { %20665 = vmatpush3.bf16.msra.mxu0 %v22660_v14 }
 0x40b   : > { %20687 = vmatpush3.bf16.msra.mxu1 %v22661_v15  ;;  %20666 = vmatprep.subr.bf16.mxu0 %v22662_v16  ;;  %v22709_v15 = vld [vmem:[%s23561_s21 + $0x1fa0] sm:$0xff]  }
 0x40c   : > { %20688 = vmatprep.subr.bf16.mxu1 %v22663_v17 }
 0x40e   : > { %20667 = vmatpush3.bf16.msra.mxu0 %v22664_v18  ;;  %v22710_v18 = vld [vmem:[%s23561_s21 + $0x1f68] sm:$0xff]  }
 0x40f   : > { %20689 = vmatpush3.bf16.msra.mxu1 %v22665_v19  ;;  %20668 = vmatprep.subr.bf16.mxu0 %v22666_v20 }
 0x410   : > { %20690 = vmatprep.subr.bf16.mxu1 %v22667_v21  ;;  %v22711_v21 = vld [vmem:[%s23561_s21 + $0x1fe8] sm:$0xff]  }
 0x412   : > { %20669 = vmatpush3.bf16.msra.mxu0 %v22668_v22 }
 0x413   : > { %20691 = vmatpush3.bf16.msra.mxu1 %v22669_v23  ;;  %20670 = vmatprep.subr.bf16.mxu0 %v22670_v24  ;;  %v22712_v24 = vld [vmem:[%s23561_s21 + $0x1f28] sm:$0xff]  }
 0x414   : > { %20692 = vmatprep.subr.bf16.mxu1 %v22671_v25 }
 0x416   : > { %20671 = vmatpush3.bf16.msra.mxu0 %v22672_v27 }
 0x417   : > { %20693 = vmatpush3.bf16.msra.mxu1 %v22673_v29  ;;  %20672 = vmatprep.subr.bf16.mxu0 %v22674_v33  ;;  %v22714_v29 = vld [vmem:[%s23561_s21 + $0x1f70] sm:$0xff]  }
 0x418   : > { %v20370_v26 = vpop.f32.mrb[92].mxu0  ;;  %20694 = vmatprep.subr.bf16.mxu1 %v22675_v35  ;;  %v22717_v33 = vld [vmem:[%s23561_s21 + $0x1fb0] sm:$0xff]   ;;  %v22719_v35 = vld [vmem:[%s23561_s21 + $0x1ff8] sm:$0xff]  }
 0x419   : > { %v20392_v28 = vpop.f32.mrb[92].mxu1  ;;  %v20371_v30 = vpop.f32.mrb[93].mxu0 }
 0x41a   : > { %v20372_v31 = vadd.f32 %v20371_v30, %v20370_v26  ;;  %v20393_v32 = vpop.f32.mrb[93].mxu1  ;;  %v20373_v36 = vpop.f32.mrb[94].mxu0  ;;  %20673 = vmatpush3.bf16.msra.mxu0 %v22676_v39  ;;  %v22713_v26 = vld [vmem:[%s23561_s21 + $0x1fa8] sm:$0xff]  }
 0x41b   : > { %v20394_v34 = vadd.f32 %v20393_v32, %v20392_v28  ;;  %v20395_v38 = vpop.f32.mrb[94].mxu1  ;;  %v20374_v41 = vpop.f32.mrb[95].mxu0  ;;  %20695 = vmatpush3.bf16.msra.mxu1 %v22677_v40  ;;  %20674 = vmatprep.subr.bf16.mxu0 %v22678_v44  ;;  %v22716_v32 = vld [vmem:[%s23561_s21 + $0x1f30] sm:$0xff]   ;;  %v22720_v36 = vld [vmem:[%s23561_s21 + $0x1f38] sm:$0xff]   ;;  %v22726_v44 = vld [vmem:[%s23561_s21 + $0x2040] sm:$0xff]  }
 0x41c   : > { %v15429_v37 = vadd.f32 %v20372_v31, %v24659_v57  ;;  %v20396_v43 = vpop.f32.mrb[95].mxu1  ;;  %20696 = vmatprep.subr.bf16.mxu1 %v22679_v45  ;;  %v22690_v57 = vld [vmem:[%s23561_s21 + $0x1f40] sm:$0xff]   ;;  %v22715_v31 = vld [vmem:[%s23561_s21 + $0x1ff0] sm:$0xff]   ;;  %v289_v41 = vld [vmem:[%s23579_s28 + $0x1f8] sm:$0x77] }
 0x41d   : > { %v288_v38 = vld [vmem:[%s23579_s28 + $0x1f0] sm:$0x77]  ;;  %v17702_v43 = vcombine.high %v289_v41, %v289_v41  ;;  %v22727_v45 = vld [vmem:[%s23561_s21 + $0x20c0] sm:$0xff]  }
 0x41e   : > { %v24696_v42 = vadd.f32 %v20394_v34, %v15429_v37  ;;  %20675 = vmatpush3.bf16.msra.mxu0 %v22680_v46  ;;  %v22718_v34 = vld [vmem:[%s23561_s21 + $0x1f78] sm:$0xff]   ;;  %v17699_v39 = vcombine.low %v288_v38, %v288_v38  ;;  %v17700_v40 = vcombine.high %v288_v38, %v288_v38  ;;  %v22728_v46 = vld [vmem:[%s23561_s21 + $0x2000] sm:$0xff]   ;;  %v22770_v38 = vld [vmem:[%s23561_s21 + $0x2150] sm:$0xff]  }
 0x41f   : > { %20697 = vmatpush3.bf16.msra.mxu1 %v22681_v47  ;;  %20676 = vmatprep.subr.bf16.mxu0 %v22682_v48  ;;  %v22721_v37 = vld [vmem:[%s23561_s21 + $0x1fb8] sm:$0xff]   ;;  %v22729_v47 = vld [vmem:[%s23561_s21 + $0x2080] sm:$0xff]   ;;  %v22730_v48 = vld [vmem:[%s23561_s21 + $0x2048] sm:$0xff]  }
 0x420   : > { %20698 = vmatprep.subr.bf16.mxu1 %v22683_v49  ;;  %v22731_v49 = vld [vmem:[%s23561_s21 + $0x20c8] sm:$0xff]  }
 0x422   : > { %20677 = vmatpush3.bf16.msra.mxu0 %v22684_v50  ;;  %v22732_v50 = vld [vmem:[%s23561_s21 + $0x2008] sm:$0xff]  }
 0x423   : > { %20699 = vmatpush3.bf16.msra.mxu1 %v22685_v51  ;;  %20706 = vmatprep.subr.bf16.mxu0 %v22690_v57  ;;  %v22733_v51 = vld [vmem:[%s23561_s21 + $0x2088] sm:$0xff]   ;;  %v22739_v57 = vld [vmem:[%s23561_s21 + $0x20d8] sm:$0xff]  }
 0x424   : > { %20728 = vmatprep.subr.bf16.mxu1 %v22691_v59  ;;  %v22741_v59 = vld [vmem:[%s23561_s21 + $0x2098] sm:$0xff]  }
 0x425   : > { %15987 = vmatmul.mubr.bf16.vlgmr.msra.gmra.mrb[120].mxu0 %v17695_v54  ;;  %v22736_v54 = vld [vmem:[%s23561_s21 + $0x2010] sm:$0xff]  }
 0x426   : > { %16027 = vmatmul.mubr.bf16.vlgmr.msra.gmra.mrb[120].mxu1 %v17697_v56  ;;  %20707 = vmatpush3.bf16.msra.mxu0 %v22692_v60  ;;  %v22738_v56 = vld [vmem:[%s23561_s21 + $0x2058] sm:$0xff]   ;;  %v22742_v60 = vld [vmem:[%s23561_s21 + $0x2060] sm:$0xff]  }
 0x427   : > { %20729 = vmatpush3.bf16.msra.mxu1 %v22693_v61  ;;  %20708 = vmatprep.subr.bf16.mxu0 %v22694_v62  ;;  %v22743_v61 = vld [vmem:[%s23561_s21 + $0x20e0] sm:$0xff]  }
 0x428   : > { %20730 = vmatprep.subr.bf16.mxu1 %v22695_v63  ;;  %16066 = vmatprep.mubr.bf16.mxu0 %v17700_v40  ;;  %v22744_v63 = vld [vmem:[%s23561_s21 + $0x2020] sm:$0xff]   ;;  %v22772_v40 = vld [vmem:[%s23561_s21 + $0x2110] sm:$0xff]  }
 0x429   : > { %16106 = vmatprep.mubr.bf16.mxu1 %v17702_v43  ;;  %v22775_v43 = vld [vmem:[%s23561_s21 + $0x21d8] sm:$0xff]  }
 0x42a   : > { %20709 = vmatpush3.bf16.msra.mxu0 %v22696_v0 }
 0x42b   : > { %20731 = vmatpush3.bf16.msra.mxu1 %v22697_v1  ;;  %20710 = vmatprep.subr.bf16.mxu0 %v22698_v2  ;;  %v22745_v1 = vld [vmem:[%s23561_s21 + $0x20a0] sm:$0xff]  }
 0x42c   : > { %20732 = vmatprep.subr.bf16.mxu1 %v22699_v3 }
 0x42e   : > { %20711 = vmatpush3.bf16.msra.mxu0 %v22700_v4  ;;  %v22746_v4 = vld [vmem:[%s23561_s21 + $0x2068] sm:$0xff]  }
 0x42f   : > { %20733 = vmatpush3.bf16.msra.mxu1 %v22701_v5  ;;  %20712 = vmatprep.subr.bf16.mxu0 %v22702_v6 }
 0x430   : > { %20734 = vmatprep.subr.bf16.mxu1 %v22703_v7  ;;  %v22747_v7 = vld [vmem:[%s23561_s21 + $0x20e8] sm:$0xff]  }
 0x432   : > { %20713 = vmatpush3.bf16.msra.mxu0 %v22704_v8 }
 0x433   : > { %20735 = vmatpush3.bf16.msra.mxu1 %v22705_v9  ;;  %20714 = vmatprep.subr.bf16.mxu0 %v22706_v10  ;;  %v22748_v10 = vld [vmem:[%s23561_s21 + $0x2028] sm:$0xff]  }
 0x434   : > { %20736 = vmatprep.subr.bf16.mxu1 %v22707_v11 }
 0x436   : > { %20715 = vmatpush3.bf16.msra.mxu0 %v22708_v13 }
 0x437   : > { %20737 = vmatpush3.bf16.msra.mxu1 %v22709_v15  ;;  %20716 = vmatprep.subr.bf16.mxu0 %v22710_v18  ;;  %v22750_v15 = vld [vmem:[%s23561_s21 + $0x2070] sm:$0xff]  }
 0x438   : > { %v20414_v12 = vpop.f32.mrb[96].mxu0  ;;  %20738 = vmatprep.subr.bf16.mxu1 %v22711_v21  ;;  %v22752_v18 = vld [vmem:[%s23561_s21 + $0x2030] sm:$0xff]   ;;  %v22755_v21 = vld [vmem:[%s23561_s21 + $0x20f8] sm:$0xff]  }
 0x439   : > { %v20436_v14 = vpop.f32.mrb[96].mxu1  ;;  %v20415_v16 = vpop.f32.mrb[97].mxu0 }
 0x43a   : > { %v20437_v17 = vpop.f32.mrb[97].mxu1  ;;  %v20416_v19 = vadd.f32 %v20415_v16, %v20414_v12  ;;  %v20417_v22 = vpop.f32.mrb[98].mxu0  ;;  %20717 = vmatpush3.bf16.msra.mxu0 %v22712_v24  ;;  %v22749_v12 = vld [vmem:[%s23561_s21 + $0x20a8] sm:$0xff]   ;;  %v290_v24 = vld [vmem:[%s23579_s28 + $0x200] sm:$0x77] }
 0x43b   : > { %v20438_v20 = vadd.f32 %v20437_v17, %v20436_v14  ;;  %v20439_v23 = vpop.f32.mrb[98].mxu1  ;;  %v20418_v27 = vpop.f32.mrb[99].mxu0  ;;  %20739 = vmatpush3.bf16.msra.mxu1 %v22713_v26  ;;  %20718 = vmatprep.subr.bf16.mxu0 %v22714_v29  ;;  %v22751_v17 = vld [vmem:[%s23561_s21 + $0x20f0] sm:$0xff]   ;;  %v22756_v22 = vld [vmem:[%s23561_s21 + $0x2038] sm:$0xff]   ;;  %v17703_v26 = vcombine.low %v290_v24, %v290_v24 }
 0x43c   : > { %v15509_v25 = vadd.f32 %v20416_v19, %v24696_v42  ;;  %v20440_v28 = vpop.f32.mrb[99].mxu1  ;;  %20740 = vmatprep.subr.bf16.mxu1 %v22715_v31  ;;  %v17701_v42 = vcombine.low %v289_v41, %v289_v41  ;;  %v22753_v19 = vld [vmem:[%s23561_s21 + $0x20b0] sm:$0xff]   ;;  %v22757_v23 = vld [vmem:[%s23561_s21 + $0x20b8] sm:$0xff]   ;;  %v17704_v27 = vcombine.high %v290_v24, %v290_v24  ;;  %v22763_v31 = vld [vmem:[%s23561_s21 + $0x21c0] sm:$0xff]  }
 0x43d   : > { %v22773_v41 = vld [vmem:[%s23561_s21 + $0x2190] sm:$0xff]  }
 0x43e   : > { %v24734_v30 = vadd.f32 %v20438_v20, %v15509_v25  ;;  %20719 = vmatpush3.bf16.msra.mxu0 %v22716_v32  ;;  %v22754_v20 = vld [vmem:[%s23561_s21 + $0x2078] sm:$0xff]   ;;  %v291_v25 = vld [vmem:[%s23579_s28 + $0x208] sm:$0x77]  ;;  %v22764_v32 = vld [vmem:[%s23561_s21 + $0x2100] sm:$0xff]  }
 0x43f   : > { %20741 = vmatpush3.bf16.msra.mxu1 %v22717_v33  ;;  %20720 = vmatprep.subr.bf16.mxu0 %v22718_v34  ;;  %v17705_v28 = vcombine.low %v291_v25, %v291_v25  ;;  %v17706_v29 = vcombine.high %v291_v25, %v291_v25  ;;  %v22765_v33 = vld [vmem:[%s23561_s21 + $0x2180] sm:$0xff]   ;;  %v22766_v34 = vld [vmem:[%s23561_s21 + $0x2148] sm:$0xff]   ;;  %v22806_v24 = vld [vmem:[%s23561_s21 + $0x2250] sm:$0xff]  }
 0x440   : > { %20742 = vmatprep.subr.bf16.mxu1 %v22719_v35  ;;  %v22767_v35 = vld [vmem:[%s23561_s21 + $0x21c8] sm:$0xff]   ;;  %v22807_v25 = vld [vmem:[%s23561_s21 + $0x22d0] sm:$0xff]  }
 0x442   : > { %20721 = vmatpush3.bf16.msra.mxu0 %v22720_v36  ;;  %v22768_v36 = vld [vmem:[%s23561_s21 + $0x2108] sm:$0xff]  }
 0x443   : > { %20743 = vmatpush3.bf16.msra.mxu1 %v22721_v37  ;;  %20750 = vmatprep.subr.bf16.mxu0 %v22726_v44  ;;  %v22769_v37 = vld [vmem:[%s23561_s21 + $0x2188] sm:$0xff]   ;;  %v22776_v44 = vld [vmem:[%s23561_s21 + $0x2118] sm:$0xff]  }
 0x444   : > { %20772 = vmatprep.subr.bf16.mxu1 %v22727_v45  ;;  %v22777_v45 = vld [vmem:[%s23561_s21 + $0x2198] sm:$0xff]  }
 0x445   : > { %16067 = vmatmul.mubr.bf16.vlgmr.msra.gmra.mrb[124].mxu0 %v17699_v39  ;;  %v22771_v39 = vld [vmem:[%s23561_s21 + $0x21d0] sm:$0xff]  }
 0x446   : > { %16107 = vmatmul.mubr.bf16.vlgmr.msra.gmra.mrb[124].mxu1 %v17701_v42  ;;  %20751 = vmatpush3.bf16.msra.mxu0 %v22728_v46  ;;  %v22774_v42 = vld [vmem:[%s23561_s21 + $0x2158] sm:$0xff]   ;;  %v22778_v46 = vld [vmem:[%s23561_s21 + $0x2160] sm:$0xff]  }
 0x447   : > { %20773 = vmatpush3.bf16.msra.mxu1 %v22729_v47  ;;  %20752 = vmatprep.subr.bf16.mxu0 %v22730_v48  ;;  %v22779_v47 = vld [vmem:[%s23561_s21 + $0x21e0] sm:$0xff]  }
 0x448   : > { %20774 = vmatprep.subr.bf16.mxu1 %v22731_v49  ;;  %16146 = vmatprep.mubr.bf16.mxu0 %v17704_v27  ;;  %v22780_v48 = vld [vmem:[%s23561_s21 + $0x2120] sm:$0xff]   ;;  %v22809_v27 = vld [vmem:[%s23561_s21 + $0x2290] sm:$0xff]  }
 0x449   : > { %16186 = vmatprep.mubr.bf16.mxu1 %v17706_v29  ;;  %v22811_v29 = vld [vmem:[%s23561_s21 + $0x22d8] sm:$0xff]  }
 0x44a   : > { %20753 = vmatpush3.bf16.msra.mxu0 %v22732_v50  ;;  %v22781_v50 = vld [vmem:[%s23561_s21 + $0x21a0] sm:$0xff]  }
 0x44b   : > { %20775 = vmatpush3.bf16.msra.mxu1 %v22733_v51  ;;  %20754 = vmatprep.subr.bf16.mxu0 %v22734_v52 }
 0x44c   : > { %20776 = vmatprep.subr.bf16.mxu1 %v22735_v53 }
 0x44e   : > { %20755 = vmatpush3.bf16.msra.mxu0 %v22736_v54 }
 0x44f   : > { %20777 = vmatpush3.bf16.msra.mxu1 %v22737_v55  ;;  %20756 = vmatprep.subr.bf16.mxu0 %v22738_v56  ;;  %v22782_v56 = vld [vmem:[%s23561_s21 + $0x2168] sm:$0xff]  }
 0x450   : > { %20778 = vmatprep.subr.bf16.mxu1 %v22739_v57 }
 0x452   : > { %20757 = vmatpush3.bf16.msra.mxu0 %v22740_v58  ;;  %v22783_v58 = vld [vmem:[%s23561_s21 + $0x21e8] sm:$0xff]  }
 0x453   : > { %20779 = vmatpush3.bf16.msra.mxu1 %v22741_v59  ;;  %20758 = vmatprep.subr.bf16.mxu0 %v22742_v60 }
 0x454   : > { %20780 = vmatprep.subr.bf16.mxu1 %v22743_v61  ;;  %v22784_v61 = vld [vmem:[%s23561_s21 + $0x2128] sm:$0xff]  }
 0x456   : > { %20759 = vmatpush3.bf16.msra.mxu0 %v22744_v63  ;;  %v22785_v63 = vld [vmem:[%s23561_s21 + $0x21a8] sm:$0xff]  }
 0x457   : > { %20781 = vmatpush3.bf16.msra.mxu1 %v22745_v1  ;;  %20760 = vmatprep.subr.bf16.mxu0 %v22746_v4  ;;  %v22788_v4 = vld [vmem:[%s23561_s21 + $0x2130] sm:$0xff]  }
 0x458   : > { %v20458_v62 = vpop.f32.mrb[100].mxu0  ;;  %20782 = vmatprep.subr.bf16.mxu1 %v22747_v7  ;;  %v22791_v7 = vld [vmem:[%s23561_s21 + $0x21f8] sm:$0xff]  }
 0x459   : > { %v20480_v0 = vpop.f32.mrb[100].mxu1  ;;  %v20459_v2 = vpop.f32.mrb[101].mxu0 }
 0x45a   : > { %v20481_v3 = vpop.f32.mrb[101].mxu1  ;;  %v20460_v5 = vadd.f32 %v20459_v2, %v20458_v62  ;;  %v20461_v8 = vpop.f32.mrb[102].mxu0  ;;  %20761 = vmatpush3.bf16.msra.mxu0 %v22748_v10  ;;  %v22786_v2 = vld [vmem:[%s23561_s21 + $0x2170] sm:$0xff]  }
 0x45b   : > { %v20482_v6 = vadd.f32 %v20481_v3, %v20480_v0  ;;  %v20483_v9 = vpop.f32.mrb[102].mxu1  ;;  %v20462_v13 = vpop.f32.mrb[103].mxu0  ;;  %20783 = vmatpush3.bf16.msra.mxu1 %v22749_v12  ;;  %20762 = vmatprep.subr.bf16.mxu0 %v22750_v15  ;;  %v22787_v3 = vld [vmem:[%s23561_s21 + $0x21f0] sm:$0xff]   ;;  %v22792_v8 = vld [vmem:[%s23561_s21 + $0x2138] sm:$0xff]  }
 0x45c   : > { %v15589_v11 = vadd.f32 %v20460_v5, %v24734_v30  ;;  %v20484_v14 = vpop.f32.mrb[103].mxu1  ;;  %20784 = vmatprep.subr.bf16.mxu1 %v22751_v17  ;;  %v22762_v30 = vld [vmem:[%s23561_s21 + $0x2140] sm:$0xff]   ;;  %v22789_v5 = vld [vmem:[%s23561_s21 + $0x21b0] sm:$0xff]   ;;  %v22793_v9 = vld [vmem:[%s23561_s21 + $0x21b8] sm:$0xff]  }
 0x45d   : > { %v292_v10 = vld [vmem:[%s23579_s28 + $0x210] sm:$0x77]  ;;  %v22799_v17 = vld [vmem:[%s23561_s21 + $0x22c0] sm:$0xff]  }
 0x45e   : > { %v24771_v16 = vadd.f32 %v20482_v6, %v15589_v11  ;;  %20763 = vmatpush3.bf16.msra.mxu0 %v22752_v18  ;;  %v22790_v6 = vld [vmem:[%s23561_s21 + $0x2178] sm:$0xff]   ;;  %v17707_v12 = vcombine.low %v292_v10, %v292_v10  ;;  %v17708_v13 = vcombine.high %v292_v10, %v292_v10  ;;  %v22800_v18 = vld [vmem:[%s23561_s21 + $0x2200] sm:$0xff]   ;;  %v22842_v10 = vld [vmem:[%s23561_s21 + $0x2350] sm:$0xff]  }
 0x45f   : > { %20785 = vmatpush3.bf16.msra.mxu1 %v22753_v19  ;;  %20764 = vmatprep.subr.bf16.mxu0 %v22754_v20  ;;  %v293_v11 = vld [vmem:[%s23579_s28 + $0x218] sm:$0x77]  ;;  %v22801_v19 = vld [vmem:[%s23561_s21 + $0x2280] sm:$0xff]   ;;  %v22802_v20 = vld [vmem:[%s23561_s21 + $0x2248] sm:$0xff]  }
 0x460   : > { %20786 = vmatprep.subr.bf16.mxu1 %v22755_v21  ;;  %v17709_v14 = vcombine.low %v293_v11, %v293_v11  ;;  %v17710_v15 = vcombine.high %v293_v11, %v293_v11  ;;  %v22803_v21 = vld [vmem:[%s23561_s21 + $0x22c8] sm:$0xff]   ;;  %v22843_v11 = vld [vmem:[%s23561_s21 + $0x23d0] sm:$0xff]  }
 0x462   : > { %20765 = vmatpush3.bf16.msra.mxu0 %v22756_v22  ;;  %v22804_v22 = vld [vmem:[%s23561_s21 + $0x2208] sm:$0xff]  }
 0x463   : > { %20787 = vmatpush3.bf16.msra.mxu1 %v22757_v23  ;;  %20794 = vmatprep.subr.bf16.mxu0 %v22762_v30  ;;  %v22805_v23 = vld [vmem:[%s23561_s21 + $0x2288] sm:$0xff]   ;;  %v22812_v30 = vld [vmem:[%s23561_s21 + $0x2218] sm:$0xff]  }
 0x464   : > { %20816 = vmatprep.subr.bf16.mxu1 %v22763_v31  ;;  %v22813_v31 = vld [vmem:[%s23561_s21 + $0x2298] sm:$0xff]  }
 0x465   : > { %16147 = vmatmul.mubr.bf16.vlgmr.msra.gmra.mrb[128].mxu0 %v17703_v26  ;;  %v22808_v26 = vld [vmem:[%s23561_s21 + $0x2210] sm:$0xff]  }
 0x466   : > { %16187 = vmatmul.mubr.bf16.vlgmr.msra.gmra.mrb[128].mxu1 %v17705_v28  ;;  %20795 = vmatpush3.bf16.msra.mxu0 %v22764_v32  ;;  %v22810_v28 = vld [vmem:[%s23561_s21 + $0x2258] sm:$0xff]   ;;  %v22814_v32 = vld [vmem:[%s23561_s21 + $0x2260] sm:$0xff]  }
 0x467   : > { %20817 = vmatpush3.bf16.msra.mxu1 %v22765_v33  ;;  %20796 = vmatprep.subr.bf16.mxu0 %v22766_v34  ;;  %v22815_v33 = vld [vmem:[%s23561_s21 + $0x22e0] sm:$0xff]  }
 0x468   : > { %20818 = vmatprep.subr.bf16.mxu1 %v22767_v35  ;;  %16226 = vmatprep.mubr.bf16.mxu0 %v17708_v13  ;;  %v22816_v34 = vld [vmem:[%s23561_s21 + $0x2220] sm:$0xff]   ;;  %v22845_v13 = vld [vmem:[%s23561_s21 + $0x2390] sm:$0xff]  }
 0x469   : > { %16266 = vmatprep.mubr.bf16.mxu1 %v17710_v15  ;;  %v22847_v15 = vld [vmem:[%s23561_s21 + $0x23d8] sm:$0xff]  }
 0x46a   : > { %20797 = vmatpush3.bf16.msra.mxu0 %v22768_v36  ;;  %v22817_v36 = vld [vmem:[%s23561_s21 + $0x22a0] sm:$0xff]  }
 0x46b   : > { %20819 = vmatpush3.bf16.msra.mxu1 %v22769_v37  ;;  %20798 = vmatprep.subr.bf16.mxu0 %v22770_v38 }
 0x46c   : > { %20820 = vmatprep.subr.bf16.mxu1 %v22771_v39 }
 0x46e   : > { %20799 = vmatpush3.bf16.msra.mxu0 %v22772_v40 }
 0x46f   : > { %20821 = vmatpush3.bf16.msra.mxu1 %v22773_v41  ;;  %20800 = vmatprep.subr.bf16.mxu0 %v22774_v42  ;;  %v22818_v42 = vld [vmem:[%s23561_s21 + $0x2268] sm:$0xff]  }
 0x470   : > { %20822 = vmatprep.subr.bf16.mxu1 %v22775_v43 }
 0x472   : > { %20801 = vmatpush3.bf16.msra.mxu0 %v22776_v44  ;;  %v22819_v44 = vld [vmem:[%s23561_s21 + $0x22e8] sm:$0xff]  }
 0x473   : > { %20823 = vmatpush3.bf16.msra.mxu1 %v22777_v45  ;;  %20802 = vmatprep.subr.bf16.mxu0 %v22778_v46 }
 0x474   : > { %20824 = vmatprep.subr.bf16.mxu1 %v22779_v47  ;;  %v22820_v47 = vld [vmem:[%s23561_s21 + $0x2228] sm:$0xff]  }
 0x476   : > { %20803 = vmatpush3.bf16.msra.mxu0 %v22780_v48 }
 0x477   : > { %20825 = vmatpush3.bf16.msra.mxu1 %v22781_v50  ;;  %20804 = vmatprep.subr.bf16.mxu0 %v22782_v56  ;;  %v22826_v56 = vld [vmem:[%s23561_s21 + $0x2278] sm:$0xff]  }
 0x478   : > { %v20502_v49 = vpop.f32.mrb[104].mxu0  ;;  %20826 = vmatprep.subr.bf16.mxu1 %v22783_v58  ;;  %v22828_v58 = vld [vmem:[%s23561_s21 + $0x2238] sm:$0xff]  }
 0x479   : > { %v20524_v51 = vpop.f32.mrb[104].mxu1  ;;  %v20503_v52 = vpop.f32.mrb[105].mxu0 }
 0x47a   : > { %v20525_v53 = vpop.f32.mrb[105].mxu1  ;;  %v20504_v54 = vadd.f32 %v20503_v52, %v20502_v49  ;;  %v20505_v57 = vpop.f32.mrb[106].mxu0  ;;  %20805 = vmatpush3.bf16.msra.mxu0 %v22784_v61  ;;  %v22821_v49 = vld [vmem:[%s23561_s21 + $0x22a8] sm:$0xff]   ;;  %v22822_v52 = vld [vmem:[%s23561_s21 + $0x2270] sm:$0xff]  }
 0x47b   : > { %v20526_v55 = vadd.f32 %v20525_v53, %v20524_v51  ;;  %v20527_v59 = vpop.f32.mrb[106].mxu1  ;;  %v20506_v62 = vpop.f32.mrb[107].mxu0  ;;  %20827 = vmatpush3.bf16.msra.mxu1 %v22785_v63  ;;  %20806 = vmatprep.subr.bf16.mxu0 %v22786_v2  ;;  %v22823_v53 = vld [vmem:[%s23561_s21 + $0x22f0] sm:$0xff]   ;;  %v22827_v57 = vld [vmem:[%s23561_s21 + $0x22f8] sm:$0xff]   ;;  %v295_v61 = vld [vmem:[%s23579_s28 + $0x228] sm:$0x77] }
 0x47c   : > { %v15669_v60 = vadd.f32 %v20504_v54, %v24771_v16  ;;  %v20528_v0 = vpop.f32.mrb[107].mxu1  ;;  %20828 = vmatprep.subr.bf16.mxu1 %v22787_v3  ;;  %v22798_v16 = vld [vmem:[%s23561_s21 + $0x2240] sm:$0xff]   ;;  %v22824_v54 = vld [vmem:[%s23561_s21 + $0x2230] sm:$0xff]   ;;  %v22829_v59 = vld [vmem:[%s23561_s21 + $0x22b8] sm:$0xff]  }
 0x47d   : > { %v17713_v0 = vcombine.low %v295_v61, %v295_v61  ;;  %v22834_v2 = vld [vmem:[%s23561_s21 + $0x2340] sm:$0xff]  }
 0x47e   : > { %v24807_v1 = vadd.f32 %v20526_v55, %v15669_v60  ;;  %20807 = vmatpush3.bf16.msra.mxu0 %v22788_v4  ;;  %v22825_v55 = vld [vmem:[%s23561_s21 + $0x22b0] sm:$0xff]   ;;  %v294_v60 = vld [vmem:[%s23579_s28 + $0x220] sm:$0x77] }
 0x47f   : > { %20829 = vmatpush3.bf16.msra.mxu1 %v22789_v5  ;;  %20808 = vmatprep.subr.bf16.mxu0 %v22790_v6  ;;  %v17711_v62 = vcombine.low %v294_v60, %v294_v60  ;;  %v17712_v63 = vcombine.high %v294_v60, %v294_v60  ;;  %v22835_v3 = vld [vmem:[%s23561_s21 + $0x23c0] sm:$0xff]   ;;  %v22838_v6 = vld [vmem:[%s23561_s21 + $0x2348] sm:$0xff]   ;;  %v22878_v60 = vld [vmem:[%s23561_s21 + $0x2450] sm:$0xff]  }
 0x480   : > { %20830 = vmatprep.subr.bf16.mxu1 %v22791_v7  ;;  %v22836_v4 = vld [vmem:[%s23561_s21 + $0x2300] sm:$0xff]   ;;  %v22839_v7 = vld [vmem:[%s23561_s21 + $0x23c8] sm:$0xff]  }
 0x481   : > { %v22837_v5 = vld [vmem:[%s23561_s21 + $0x2380] sm:$0xff]  }
 0x482   : > { %20809 = vmatpush3.bf16.msra.mxu0 %v22792_v8  ;;  %v22840_v8 = vld [vmem:[%s23561_s21 + $0x2308] sm:$0xff]  }
 0x483   : > { %20831 = vmatpush3.bf16.msra.mxu1 %v22793_v9  ;;  %20838 = vmatprep.subr.bf16.mxu0 %v22798_v16  ;;  %v22841_v9 = vld [vmem:[%s23561_s21 + $0x2388] sm:$0xff]   ;;  %v22848_v16 = vld [vmem:[%s23561_s21 + $0x2318] sm:$0xff]  }
 0x484   : > { %20860 = vmatprep.subr.bf16.mxu1 %v22799_v17  ;;  %v22849_v17 = vld [vmem:[%s23561_s21 + $0x2398] sm:$0xff]  }
 0x485   : > { %16227 = vmatmul.mubr.bf16.vlgmr.msra.gmra.mrb[132].mxu0 %v17707_v12  ;;  %v22844_v12 = vld [vmem:[%s23561_s21 + $0x2310] sm:$0xff]  }
 0x486   : > { %16267 = vmatmul.mubr.bf16.vlgmr.msra.gmra.mrb[132].mxu1 %v17709_v14  ;;  %20839 = vmatpush3.bf16.msra.mxu0 %v22800_v18  ;;  %v22846_v14 = vld [vmem:[%s23561_s21 + $0x2358] sm:$0xff]   ;;  %v22850_v18 = vld [vmem:[%s23561_s21 + $0x2360] sm:$0xff]  }
 0x487   : > { %20861 = vmatpush3.bf16.msra.mxu1 %v22801_v19  ;;  %20840 = vmatprep.subr.bf16.mxu0 %v22802_v20  ;;  %v22851_v19 = vld [vmem:[%s23561_s21 + $0x23e0] sm:$0xff]  }
 0x488   : > { %20862 = vmatprep.subr.bf16.mxu1 %v22803_v21  ;;  %16306 = vmatprep.mubr.bf16.mxu0 %v17712_v63  ;;  %v22852_v21 = vld [vmem:[%s23561_s21 + $0x2320] sm:$0xff]   ;;  %v22881_v63 = vld [vmem:[%s23561_s21 + $0x2490] sm:$0xff]  }
 0x48a   : > { %20841 = vmatpush3.bf16.msra.mxu0 %v22804_v22 }
 0x48b   : > { %20863 = vmatpush3.bf16.msra.mxu1 %v22805_v23  ;;  %20842 = vmatprep.subr.bf16.mxu0 %v22806_v24  ;;  %v22853_v23 = vld [vmem:[%s23561_s21 + $0x23a0] sm:$0xff]  }
 0x48c   : > { %20864 = vmatprep.subr.bf16.mxu1 %v22807_v25 }
 0x48e   : > { %20843 = vmatpush3.bf16.msra.mxu0 %v22808_v26 }
 0x48f   : > { %20865 = vmatpush3.bf16.msra.mxu1 %v22809_v27  ;;  %20844 = vmatprep.subr.bf16.mxu0 %v22810_v28  ;;  %v22854_v27 = vld [vmem:[%s23561_s21 + $0x2368] sm:$0xff]  }
 0x490   : > { %20866 = vmatprep.subr.bf16.mxu1 %v22811_v29  ;;  %v22855_v29 = vld [vmem:[%s23561_s21 + $0x23e8] sm:$0xff]  }
 0x492   : > { %20845 = vmatpush3.bf16.msra.mxu0 %v22812_v30 }
 0x493   : > { %20867 = vmatpush3.bf16.msra.mxu1 %v22813_v31  ;;  %20846 = vmatprep.subr.bf16.mxu0 %v22814_v32 }
 0x494   : > { %20868 = vmatprep.subr.bf16.mxu1 %v22815_v33  ;;  %v22856_v33 = vld [vmem:[%s23561_s21 + $0x2328] sm:$0xff]  }
 0x496   : > { %20847 = vmatpush3.bf16.msra.mxu0 %v22816_v34  ;;  %v22857_v34 = vld [vmem:[%s23561_s21 + $0x23a8] sm:$0xff]  }
 0x497   : > { %20869 = vmatpush3.bf16.msra.mxu1 %v22817_v36  ;;  %20848 = vmatprep.subr.bf16.mxu0 %v22818_v42  ;;  %v22862_v42 = vld [vmem:[%s23561_s21 + $0x2378] sm:$0xff]  }
 0x498   : > { %v20546_v35 = vpop.f32.mrb[108].mxu0  ;;  %20870 = vmatprep.subr.bf16.mxu1 %v22819_v44  ;;  %v22864_v44 = vld [vmem:[%s23561_s21 + $0x2338] sm:$0xff]  }
 0x499   : > { %v20568_v37 = vpop.f32.mrb[108].mxu1  ;;  %v20547_v38 = vpop.f32.mrb[109].mxu0 }
 0x49a   : > { %v20569_v39 = vpop.f32.mrb[109].mxu1  ;;  %v20548_v40 = vadd.f32 %v20547_v38, %v20546_v35  ;;  %v20549_v43 = vpop.f32.mrb[110].mxu0  ;;  %20849 = vmatpush3.bf16.msra.mxu0 %v22820_v47  ;;  %v22858_v38 = vld [vmem:[%s23561_s21 + $0x2370] sm:$0xff]   ;;  %v297_v47 = vld [vmem:[%s23579_s28 + $0x238] sm:$0x77] }
 0x49b   : > { %v20570_v41 = vadd.f32 %v20569_v39, %v20568_v37  ;;  %v20571_v45 = vpop.f32.mrb[110].mxu1  ;;  %v20550_v48 = vpop.f32.mrb[111].mxu0  ;;  %20871 = vmatpush3.bf16.msra.mxu1 %v22821_v49  ;;  %20850 = vmatprep.subr.bf16.mxu0 %v22822_v52  ;;  %v22859_v39 = vld [vmem:[%s23561_s21 + $0x23f0] sm:$0xff]   ;;  %v22863_v43 = vld [vmem:[%s23561_s21 + $0x23f8] sm:$0xff]   ;;  %v17718_v52 = vcombine.high %v297_v47, %v297_v47 }
 0x49c   : > { %v15749_v46 = vadd.f32 %v20548_v40, %v24807_v1  ;;  %v20572_v50 = vpop.f32.mrb[111].mxu1  ;;  %20872 = vmatprep.subr.bf16.mxu1 %v22823_v53  ;;  %v17714_v1 = vcombine.high %v295_v61, %v295_v61  ;;  %v22860_v40 = vld [vmem:[%s23561_s21 + $0x2330] sm:$0xff]   ;;  %v22865_v45 = vld [vmem:[%s23561_s21 + $0x23b8] sm:$0xff]   ;;  %v22871_v53 = vld [vmem:[%s23561_s21 + $0x24c0] sm:$0xff]  }
 0x49d   : > { %v17717_v50 = vcombine.low %v297_v47, %v297_v47  ;;  %v22879_v61 = vld [vmem:[%s23561_s21 + $0x24d0] sm:$0xff]  }
 0x49e   : > { %v24844_v51 = vadd.f32 %v20570_v41, %v15749_v46  ;;  %20851 = vmatpush3.bf16.msra.mxu0 %v22824_v54  ;;  %16346 = vmatprep.mubr.bf16.mxu1 %v17714_v1  ;;  %v22861_v41 = vld [vmem:[%s23561_s21 + $0x23b0] sm:$0xff]   ;;  %v22872_v54 = vld [vmem:[%s23561_s21 + $0x2400] sm:$0xff]   ;;  %v22883_v1 = vld [vmem:[%s23561_s21 + $0x24d8] sm:$0xff]  }
 0x49f   : > { %20873 = vmatpush3.bf16.msra.mxu1 %v22825_v55  ;;  %20852 = vmatprep.subr.bf16.mxu0 %v22826_v56  ;;  %v296_v46 = vld [vmem:[%s23579_s28 + $0x230] sm:$0x77]  ;;  %v22873_v55 = vld [vmem:[%s23561_s21 + $0x2480] sm:$0xff]   ;;  %v22874_v56 = vld [vmem:[%s23561_s21 + $0x2448] sm:$0xff]  }
 0x4a0   : > { %20874 = vmatprep.subr.bf16.mxu1 %v22827_v57  ;;  %v17715_v48 = vcombine.low %v296_v46, %v296_v46  ;;  %v17716_v49 = vcombine.high %v296_v46, %v296_v46  ;;  %v22875_v57 = vld [vmem:[%s23561_s21 + $0x24c8] sm:$0xff]   ;;  %v22914_v46 = vld [vmem:[%s23561_s21 + $0x2550] sm:$0xff]  }
 0x4a1   : > { %v22915_v47 = vld [vmem:[%s23561_s21 + $0x25d0] sm:$0xff]  }
 0x4a2   : > { %20853 = vmatpush3.bf16.msra.mxu0 %v22828_v58  ;;  %v22876_v58 = vld [vmem:[%s23561_s21 + $0x2408] sm:$0xff]  }
 0x4a3   : > { %20875 = vmatpush3.bf16.msra.mxu1 %v22829_v59  ;;  %20882 = vmatprep.subr.bf16.mxu0 %v22834_v2  ;;  %v22877_v59 = vld [vmem:[%s23561_s21 + $0x2488] sm:$0xff]   ;;  %v22884_v2 = vld [vmem:[%s23561_s21 + $0x2418] sm:$0xff]  }
 0x4a4   : > { %20904 = vmatprep.subr.bf16.mxu1 %v22835_v3  ;;  %v22885_v3 = vld [vmem:[%s23561_s21 + $0x2498] sm:$0xff]  }
 0x4a5   : > { %16307 = vmatmul.mubr.bf16.vlgmr.msra.gmra.mrb[136].mxu0 %v17711_v62  ;;  %v22880_v62 = vld [vmem:[%s23561_s21 + $0x2410] sm:$0xff]  }
 0x4a6   : > { %16347 = vmatmul.mubr.bf16.vlgmr.msra.gmra.mrb[136].mxu1 %v17713_v0  ;;  %20883 = vmatpush3.bf16.msra.mxu0 %v22836_v4  ;;  %v22882_v0 = vld [vmem:[%s23561_s21 + $0x2458] sm:$0xff]   ;;  %v22886_v4 = vld [vmem:[%s23561_s21 + $0x2460] sm:$0xff]  }
 0x4a7   : > { %20905 = vmatpush3.bf16.msra.mxu1 %v22837_v5  ;;  %20884 = vmatprep.subr.bf16.mxu0 %v22838_v6  ;;  %v22887_v5 = vld [vmem:[%s23561_s21 + $0x24e0] sm:$0xff]  }
 0x4a8   : > { %20906 = vmatprep.subr.bf16.mxu1 %v22839_v7  ;;  %16386 = vmatprep.mubr.bf16.mxu0 %v17716_v49  ;;  %v22888_v7 = vld [vmem:[%s23561_s21 + $0x2420] sm:$0xff]   ;;  %v22917_v49 = vld [vmem:[%s23561_s21 + $0x2590] sm:$0xff]  }
 0x4a9   : > { %16426 = vmatprep.mubr.bf16.mxu1 %v17718_v52  ;;  %v22920_v52 = vld [vmem:[%s23561_s21 + $0x2518] sm:$0xff]  }
 0x4aa   : > { %20885 = vmatpush3.bf16.msra.mxu0 %v22840_v8 }
 0x4ab   : > { %20907 = vmatpush3.bf16.msra.mxu1 %v22841_v9  ;;  %20886 = vmatprep.subr.bf16.mxu0 %v22842_v10  ;;  %v22889_v9 = vld [vmem:[%s23561_s21 + $0x24a0] sm:$0xff]  }
 0x4ac   : > { %20908 = vmatprep.subr.bf16.mxu1 %v22843_v11 }
 0x4ae   : > { %20887 = vmatpush3.bf16.msra.mxu0 %v22844_v12  ;;  %v22890_v12 = vld [vmem:[%s23561_s21 + $0x2468] sm:$0xff]  }
 0x4af   : > { %20909 = vmatpush3.bf16.msra.mxu1 %v22845_v13  ;;  %20888 = vmatprep.subr.bf16.mxu0 %v22846_v14 }
 0x4b0   : > { %20910 = vmatprep.subr.bf16.mxu1 %v22847_v15  ;;  %v22891_v15 = vld [vmem:[%s23561_s21 + $0x24e8] sm:$0xff]  }
 0x4b2   : > { %20889 = vmatpush3.bf16.msra.mxu0 %v22848_v16 }
 0x4b3   : > { %20911 = vmatpush3.bf16.msra.mxu1 %v22849_v17  ;;  %20890 = vmatprep.subr.bf16.mxu0 %v22850_v18  ;;  %v22892_v18 = vld [vmem:[%s23561_s21 + $0x2428] sm:$0xff]  }
 0x4b4   : > { %20912 = vmatprep.subr.bf16.mxu1 %v22851_v19 }
 0x4b6   : > { %20891 = vmatpush3.bf16.msra.mxu0 %v22852_v21 }
 0x4b7   : > { %20913 = vmatpush3.bf16.msra.mxu1 %v22853_v23  ;;  %20892 = vmatprep.subr.bf16.mxu0 %v22854_v27  ;;  %v22894_v23 = vld [vmem:[%s23561_s21 + $0x2470] sm:$0xff]  }
 0x4b8   : > { %v20590_v20 = vpop.f32.mrb[112].mxu0  ;;  %20914 = vmatprep.subr.bf16.mxu1 %v22855_v29  ;;  %v22897_v27 = vld [vmem:[%s23561_s21 + $0x24b0] sm:$0xff]   ;;  %v22899_v29 = vld [vmem:[%s23561_s21 + $0x24f8] sm:$0xff]  }
 0x4b9   : > { %v20612_v22 = vpop.f32.mrb[112].mxu1  ;;  %v20591_v24 = vpop.f32.mrb[113].mxu0 }
 0x4ba   : > { %v20592_v25 = vadd.f32 %v20591_v24, %v20590_v20  ;;  %v20613_v26 = vpop.f32.mrb[113].mxu1  ;;  %v20593_v30 = vpop.f32.mrb[114].mxu0  ;;  %20893 = vmatpush3.bf16.msra.mxu0 %v22856_v33  ;;  %v22893_v20 = vld [vmem:[%s23561_s21 + $0x24a8] sm:$0xff]  }
 0x4bb   : > { %v20614_v28 = vadd.f32 %v20613_v26, %v20612_v22  ;;  %v20615_v32 = vpop.f32.mrb[114].mxu1  ;;  %v20594_v35 = vpop.f32.mrb[115].mxu0  ;;  %20915 = vmatpush3.bf16.msra.mxu1 %v22857_v34  ;;  %20894 = vmatprep.subr.bf16.mxu0 %v22858_v38  ;;  %v22896_v26 = vld [vmem:[%s23561_s21 + $0x2430] sm:$0xff]   ;;  %v22900_v30 = vld [vmem:[%s23561_s21 + $0x2438] sm:$0xff]   ;;  %v22906_v38 = vld [vmem:[%s23561_s21 + $0x2540] sm:$0xff]  }
 0x4bc   : > { %v15829_v31 = vadd.f32 %v20592_v25, %v24844_v51  ;;  %v20616_v37 = vpop.f32.mrb[115].mxu1  ;;  %20916 = vmatprep.subr.bf16.mxu1 %v22859_v39  ;;  %v22870_v51 = vld [vmem:[%s23561_s21 + $0x2440] sm:$0xff]   ;;  %v22895_v25 = vld [vmem:[%s23561_s21 + $0x24f0] sm:$0xff]   ;;  %v299_v35 = vld [vmem:[%s23579_s28 + $0x248] sm:$0x77] }
 0x4bd   : > { %v298_v32 = vld [vmem:[%s23579_s28 + $0x240] sm:$0x77]  ;;  %v17722_v37 = vcombine.high %v299_v35, %v299_v35 }
 0x4be   : > { %v24881_v36 = vadd.f32 %v20614_v28, %v15829_v31  ;;  %20895 = vmatpush3.bf16.msra.mxu0 %v22860_v40  ;;  %v22898_v28 = vld [vmem:[%s23561_s21 + $0x2478] sm:$0xff]   ;;  %v17719_v33 = vcombine.low %v298_v32, %v298_v32  ;;  %v17720_v34 = vcombine.high %v298_v32, %v298_v32  ;;  %v22907_v39 = vld [vmem:[%s23561_s21 + $0x25c0] sm:$0xff]   ;;  %v22950_v32 = vld [vmem:[%s23561_s21 + $0x2650] sm:$0xff]  }
 0x4bf   : > { %20917 = vmatpush3.bf16.msra.mxu1 %v22861_v41  ;;  %20896 = vmatprep.subr.bf16.mxu0 %v22862_v42  ;;  %v22901_v31 = vld [vmem:[%s23561_s21 + $0x24b8] sm:$0xff]   ;;  %v22908_v40 = vld [vmem:[%s23561_s21 + $0x2500] sm:$0xff]   ;;  %v22910_v42 = vld [vmem:[%s23561_s21 + $0x2548] sm:$0xff]  }
 0x4c0   : > { %20918 = vmatprep.subr.bf16.mxu1 %v22863_v43  ;;  %v22909_v41 = vld [vmem:[%s23561_s21 + $0x2580] sm:$0xff]   ;;  %v22911_v43 = vld [vmem:[%s23561_s21 + $0x25c8] sm:$0xff]  }
 0x4c2   : > { %20897 = vmatpush3.bf16.msra.mxu0 %v22864_v44  ;;  %v22912_v44 = vld [vmem:[%s23561_s21 + $0x2508] sm:$0xff]  }
 0x4c3   : > { %20919 = vmatpush3.bf16.msra.mxu1 %v22865_v45  ;;  %20926 = vmatprep.subr.bf16.mxu0 %v22870_v51  ;;  %v22913_v45 = vld [vmem:[%s23561_s21 + $0x2588] sm:$0xff]   ;;  %v22919_v51 = vld [vmem:[%s23561_s21 + $0x25d8] sm:$0xff]  }
 0x4c4   : > { %20948 = vmatprep.subr.bf16.mxu1 %v22871_v53  ;;  %v22921_v53 = vld [vmem:[%s23561_s21 + $0x2598] sm:$0xff]  }
 0x4c5   : > { %16387 = vmatmul.mubr.bf16.vlgmr.msra.gmra.mrb[140].mxu0 %v17715_v48  ;;  %v22916_v48 = vld [vmem:[%s23561_s21 + $0x2510] sm:$0xff]  }
 0x4c6   : > { %16427 = vmatmul.mubr.bf16.vlgmr.msra.gmra.mrb[140].mxu1 %v17717_v50  ;;  %20927 = vmatpush3.bf16.msra.mxu0 %v22872_v54  ;;  %v22918_v50 = vld [vmem:[%s23561_s21 + $0x2558] sm:$0xff]   ;;  %v22922_v54 = vld [vmem:[%s23561_s21 + $0x2560] sm:$0xff]  }
 0x4c7   : > { %20949 = vmatpush3.bf16.msra.mxu1 %v22873_v55  ;;  %20928 = vmatprep.subr.bf16.mxu0 %v22874_v56  ;;  %v22923_v55 = vld [vmem:[%s23561_s21 + $0x25e0] sm:$0xff]  }
 0x4c8   : > { %20950 = vmatprep.subr.bf16.mxu1 %v22875_v57  ;;  %16466 = vmatprep.mubr.bf16.mxu0 %v17720_v34  ;;  %v22924_v57 = vld [vmem:[%s23561_s21 + $0x2520] sm:$0xff]   ;;  %v22952_v34 = vld [vmem:[%s23561_s21 + $0x2610] sm:$0xff]  }
 0x4c9   : > { %16506 = vmatprep.mubr.bf16.mxu1 %v17722_v37  ;;  %v22955_v37 = vld [vmem:[%s23561_s21 + $0x26d8] sm:$0xff]  }
 0x4ca   : > { %20929 = vmatpush3.bf16.msra.mxu0 %v22876_v58 }
 0x4cb   : > { %20951 = vmatpush3.bf16.msra.mxu1 %v22877_v59  ;;  %20930 = vmatprep.subr.bf16.mxu0 %v22878_v60  ;;  %v22925_v59 = vld [vmem:[%s23561_s21 + $0x25a0] sm:$0xff]  }
 0x4cc   : > { %20952 = vmatprep.subr.bf16.mxu1 %v22879_v61 }
 0x4ce   : > { %20931 = vmatpush3.bf16.msra.mxu0 %v22880_v62  ;;  %v22926_v62 = vld [vmem:[%s23561_s21 + $0x2568] sm:$0xff]  }
 0x4cf   : > { %20953 = vmatpush3.bf16.msra.mxu1 %v22881_v63  ;;  %20932 = vmatprep.subr.bf16.mxu0 %v22882_v0 }
 0x4d0   : > { %20954 = vmatprep.subr.bf16.mxu1 %v22883_v1  ;;  %v22927_v1 = vld [vmem:[%s23561_s21 + $0x25e8] sm:$0xff]  }
 0x4d2   : > { %20933 = vmatpush3.bf16.msra.mxu0 %v22884_v2 }
 0x4d3   : > { %20955 = vmatpush3.bf16.msra.mxu1 %v22885_v3  ;;  %20934 = vmatprep.subr.bf16.mxu0 %v22886_v4  ;;  %v22928_v4 = vld [vmem:[%s23561_s21 + $0x2528] sm:$0xff]  }
 0x4d4   : > { %20956 = vmatprep.subr.bf16.mxu1 %v22887_v5 }
 0x4d6   : > { %20935 = vmatpush3.bf16.msra.mxu0 %v22888_v7 }
 0x4d7   : > { %20957 = vmatpush3.bf16.msra.mxu1 %v22889_v9  ;;  %20936 = vmatprep.subr.bf16.mxu0 %v22890_v12  ;;  %v22930_v9 = vld [vmem:[%s23561_s21 + $0x2570] sm:$0xff]  }
 0x4d8   : > { %v20634_v6 = vpop.f32.mrb[116].mxu0  ;;  %20958 = vmatprep.subr.bf16.mxu1 %v22891_v15  ;;  %v22932_v12 = vld [vmem:[%s23561_s21 + $0x2530] sm:$0xff]   ;;  %v22935_v15 = vld [vmem:[%s23561_s21 + $0x25f8] sm:$0xff]  }
 0x4d9   : > { %v20656_v8 = vpop.f32.mrb[116].mxu1  ;;  %v20635_v10 = vpop.f32.mrb[117].mxu0 }
 0x4da   : > { %v20657_v11 = vpop.f32.mrb[117].mxu1  ;;  %v20636_v13 = vadd.f32 %v20635_v10, %v20634_v6  ;;  %v20637_v16 = vpop.f32.mrb[118].mxu0  ;;  %20937 = vmatpush3.bf16.msra.mxu0 %v22892_v18  ;;  %v22929_v6 = vld [vmem:[%s23561_s21 + $0x25a8] sm:$0xff]   ;;  %v300_v18 = vld [vmem:[%s23579_s28 + $0x250] sm:$0x77] }
 0x4db   : > { %v20658_v14 = vadd.f32 %v20657_v11, %v20656_v8  ;;  %v20659_v17 = vpop.f32.mrb[118].mxu1  ;;  %v20638_v21 = vpop.f32.mrb[119].mxu0  ;;  %20959 = vmatpush3.bf16.msra.mxu1 %v22893_v20  ;;  %20938 = vmatprep.subr.bf16.mxu0 %v22894_v23  ;;  %v22931_v11 = vld [vmem:[%s23561_s21 + $0x25f0] sm:$0xff]   ;;  %v22936_v16 = vld [vmem:[%s23561_s21 + $0x2538] sm:$0xff]   ;;  %v17723_v20 = vcombine.low %v300_v18, %v300_v18 }
 0x4dc   : > { %v15909_v19 = vadd.f32 %v20636_v13, %v24881_v36  ;;  %v20660_v22 = vpop.f32.mrb[119].mxu1  ;;  %20960 = vmatprep.subr.bf16.mxu1 %v22895_v25  ;;  %v17721_v36 = vcombine.low %v299_v35, %v299_v35  ;;  %v22933_v13 = vld [vmem:[%s23561_s21 + $0x25b0] sm:$0xff]   ;;  %v22937_v17 = vld [vmem:[%s23561_s21 + $0x25b8] sm:$0xff]   ;;  %v17724_v21 = vcombine.high %v300_v18, %v300_v18  ;;  %v22943_v25 = vld [vmem:[%s23561_s21 + $0x26c0] sm:$0xff]  }
 0x4dd   : > { %v22953_v35 = vld [vmem:[%s23561_s21 + $0x2690] sm:$0xff]  }
 0x4de   : > { %v24919_v24 = vadd.f32 %v20658_v14, %v15909_v19  ;;  %20939 = vmatpush3.bf16.msra.mxu0 %v22896_v26  ;;  %v22934_v14 = vld [vmem:[%s23561_s21 + $0x2578] sm:$0xff]   ;;  %v22944_v26 = vld [vmem:[%s23561_s21 + $0x2600] sm:$0xff]   ;;  %v22986_v18 = vld [vmem:[%s23561_s21 + $0x2750] sm:$0xff]  }
 0x4df   : > { %20961 = vmatpush3.bf16.msra.mxu1 %v22897_v27  ;;  %20940 = vmatprep.subr.bf16.mxu0 %v22898_v28  ;;  %v301_v19 = vld [vmem:[%s23579_s28 + $0x258] sm:$0x77]  ;;  %v22945_v27 = vld [vmem:[%s23561_s21 + $0x2680] sm:$0xff]   ;;  %v22946_v28 = vld [vmem:[%s23561_s21 + $0x2648] sm:$0xff]  }
 0x4e0   : > { %20962 = vmatprep.subr.bf16.mxu1 %v22899_v29  ;;  %v17725_v22 = vcombine.low %v301_v19, %v301_v19  ;;  %v17726_v23 = vcombine.high %v301_v19, %v301_v19  ;;  %v22947_v29 = vld [vmem:[%s23561_s21 + $0x26c8] sm:$0xff]   ;;  %v22987_v19 = vld [vmem:[%s23561_s21 + $0x27d0] sm:$0xff]  }
 0x4e2   : > { %20941 = vmatpush3.bf16.msra.mxu0 %v22900_v30  ;;  %v22948_v30 = vld [vmem:[%s23561_s21 + $0x2608] sm:$0xff]  }
 0x4e3   : > { %20963 = vmatpush3.bf16.msra.mxu1 %v22901_v31  ;;  %20970 = vmatprep.subr.bf16.mxu0 %v22906_v38  ;;  %v22949_v31 = vld [vmem:[%s23561_s21 + $0x2688] sm:$0xff]   ;;  %v22956_v38 = vld [vmem:[%s23561_s21 + $0x2618] sm:$0xff]  }
 0x4e4   : > { %20992 = vmatprep.subr.bf16.mxu1 %v22907_v39  ;;  %v22957_v39 = vld [vmem:[%s23561_s21 + $0x2698] sm:$0xff]  }
 0x4e5   : > { %16467 = vmatmul.mubr.bf16.vlgmr.msra.gmra.mrb[144].mxu0 %v17719_v33  ;;  %v22951_v33 = vld [vmem:[%s23561_s21 + $0x26d0] sm:$0xff]  }
 0x4e6   : > { %16507 = vmatmul.mubr.bf16.vlgmr.msra.gmra.mrb[144].mxu1 %v17721_v36  ;;  %20971 = vmatpush3.bf16.msra.mxu0 %v22908_v40  ;;  %v22954_v36 = vld [vmem:[%s23561_s21 + $0x2658] sm:$0xff]   ;;  %v22958_v40 = vld [vmem:[%s23561_s21 + $0x2660] sm:$0xff]  }
 0x4e7   : > { %20993 = vmatpush3.bf16.msra.mxu1 %v22909_v41  ;;  %20972 = vmatprep.subr.bf16.mxu0 %v22910_v42  ;;  %v22959_v41 = vld [vmem:[%s23561_s21 + $0x26e0] sm:$0xff]  }
 0x4e8   : > { %20994 = vmatprep.subr.bf16.mxu1 %v22911_v43  ;;  %16546 = vmatprep.mubr.bf16.mxu0 %v17724_v21  ;;  %v22960_v42 = vld [vmem:[%s23561_s21 + $0x2620] sm:$0xff]   ;;  %v22989_v21 = vld [vmem:[%s23561_s21 + $0x2790] sm:$0xff]  }
 0x4e9   : > { %16586 = vmatprep.mubr.bf16.mxu1 %v17726_v23  ;;  %v22991_v23 = vld [vmem:[%s23561_s21 + $0x27d8] sm:$0xff]  }
 0x4ea   : > { %20973 = vmatpush3.bf16.msra.mxu0 %v22912_v44  ;;  %v22961_v44 = vld [vmem:[%s23561_s21 + $0x26a0] sm:$0xff]  }
 0x4eb   : > { %20995 = vmatpush3.bf16.msra.mxu1 %v22913_v45  ;;  %20974 = vmatprep.subr.bf16.mxu0 %v22914_v46 }
 0x4ec   : > { %20996 = vmatprep.subr.bf16.mxu1 %v22915_v47 }
 0x4ee   : > { %20975 = vmatpush3.bf16.msra.mxu0 %v22916_v48 }
 0x4ef   : > { %20997 = vmatpush3.bf16.msra.mxu1 %v22917_v49  ;;  %20976 = vmatprep.subr.bf16.mxu0 %v22918_v50  ;;  %v22962_v50 = vld [vmem:[%s23561_s21 + $0x2668] sm:$0xff]  }
 0x4f0   : > { %20998 = vmatprep.subr.bf16.mxu1 %v22919_v51 }
 0x4f2   : > { %20977 = vmatpush3.bf16.msra.mxu0 %v22920_v52  ;;  %v22963_v52 = vld [vmem:[%s23561_s21 + $0x26e8] sm:$0xff]  }
 0x4f3   : > { %20999 = vmatpush3.bf16.msra.mxu1 %v22921_v53  ;;  %20978 = vmatprep.subr.bf16.mxu0 %v22922_v54 }
 0x4f4   : > { %21000 = vmatprep.subr.bf16.mxu1 %v22923_v55  ;;  %v22964_v55 = vld [vmem:[%s23561_s21 + $0x2628] sm:$0xff]  }
 0x4f6   : > { %20979 = vmatpush3.bf16.msra.mxu0 %v22924_v57  ;;  %v22965_v57 = vld [vmem:[%s23561_s21 + $0x26a8] sm:$0xff]  }
 0x4f7   : > { %21001 = vmatpush3.bf16.msra.mxu1 %v22925_v59  ;;  %20980 = vmatprep.subr.bf16.mxu0 %v22926_v62  ;;  %v22968_v62 = vld [vmem:[%s23561_s21 + $0x2630] sm:$0xff]  }
 0x4f8   : > { %v20678_v56 = vpop.f32.mrb[120].mxu0  ;;  %21002 = vmatprep.subr.bf16.mxu1 %v22927_v1  ;;  %v22971_v1 = vld [vmem:[%s23561_s21 + $0x26f8] sm:$0xff]  }
 0x4f9   : > { %v20700_v58 = vpop.f32.mrb[120].mxu1  ;;  %v20679_v60 = vpop.f32.mrb[121].mxu0 }
 0x4fa   : > { %v20701_v61 = vpop.f32.mrb[121].mxu1  ;;  %v20680_v63 = vadd.f32 %v20679_v60, %v20678_v56  ;;  %v20681_v2 = vpop.f32.mrb[122].mxu0  ;;  %20981 = vmatpush3.bf16.msra.mxu0 %v22928_v4  ;;  %v22966_v60 = vld [vmem:[%s23561_s21 + $0x2670] sm:$0xff]   ;;  %v302_v4 = vld [vmem:[%s23579_s28 + $0x260] sm:$0x77] }
 0x4fb   : > { %v20702_v0 = vadd.f32 %v20701_v61, %v20700_v58  ;;  %v20703_v3 = vpop.f32.mrb[122].mxu1  ;;  %v20682_v7 = vpop.f32.mrb[123].mxu0  ;;  %21003 = vmatpush3.bf16.msra.mxu1 %v22929_v6  ;;  %20982 = vmatprep.subr.bf16.mxu0 %v22930_v9  ;;  %v22967_v61 = vld [vmem:[%s23561_s21 + $0x26f0] sm:$0xff]   ;;  %v22972_v2 = vld [vmem:[%s23561_s21 + $0x2638] sm:$0xff]   ;;  %v17727_v6 = vcombine.low %v302_v4, %v302_v4 }
 0x4fc   : > { %v15989_v5 = vadd.f32 %v20680_v63, %v24919_v24  ;;  %v20704_v8 = vpop.f32.mrb[123].mxu1  ;;  %21004 = vmatprep.subr.bf16.mxu1 %v22931_v11  ;;  %v22942_v24 = vld [vmem:[%s23561_s21 + $0x2640] sm:$0xff]   ;;  %v22969_v63 = vld [vmem:[%s23561_s21 + $0x26b0] sm:$0xff]   ;;  %v22973_v3 = vld [vmem:[%s23561_s21 + $0x26b8] sm:$0xff]   ;;  %v17728_v7 = vcombine.high %v302_v4, %v302_v4 }
 0x4fd   : > { %v22979_v11 = vld [vmem:[%s23561_s21 + $0x27c0] sm:$0xff]   ;;  %v23022_v4 = vld [vmem:[%s23561_s21 + $0x2850] sm:$0xff]  }
 0x4fe   : > { %v24956_v10 = vadd.f32 %v20702_v0, %v15989_v5  ;;  %20983 = vmatpush3.bf16.msra.mxu0 %v22932_v12  ;;  %v22970_v0 = vld [vmem:[%s23561_s21 + $0x2678] sm:$0xff]   ;;  %v303_v5 = vld [vmem:[%s23579_s28 + $0x268] sm:$0x77]  ;;  %v22980_v12 = vld [vmem:[%s23561_s21 + $0x2700] sm:$0xff]  }
 0x4ff   : > { %21005 = vmatpush3.bf16.msra.mxu1 %v22933_v13  ;;  %20984 = vmatprep.subr.bf16.mxu0 %v22934_v14  ;;  %v17729_v8 = vcombine.low %v303_v5, %v303_v5  ;;  %v17730_v9 = vcombine.high %v303_v5, %v303_v5  ;;  %v22981_v13 = vld [vmem:[%s23561_s21 + $0x2780] sm:$0xff]   ;;  %v22982_v14 = vld [vmem:[%s23561_s21 + $0x2748] sm:$0xff]   ;;  %v23023_v5 = vld [vmem:[%s23561_s21 + $0x28d0] sm:$0xff]  }
 0x500   : > { %21006 = vmatprep.subr.bf16.mxu1 %v22935_v15  ;;  %v22983_v15 = vld [vmem:[%s23561_s21 + $0x27c8] sm:$0xff]  }
 0x502   : > { %20985 = vmatpush3.bf16.msra.mxu0 %v22936_v16  ;;  %v22984_v16 = vld [vmem:[%s23561_s21 + $0x2708] sm:$0xff]  }
 0x503   : > { %21007 = vmatpush3.bf16.msra.mxu1 %v22937_v17  ;;  %21014 = vmatprep.subr.bf16.mxu0 %v22942_v24  ;;  %v22985_v17 = vld [vmem:[%s23561_s21 + $0x2788] sm:$0xff]   ;;  %v22992_v24 = vld [vmem:[%s23561_s21 + $0x2718] sm:$0xff]  }
 0x504   : > { %21036 = vmatprep.subr.bf16.mxu1 %v22943_v25  ;;  %v22993_v25 = vld [vmem:[%s23561_s21 + $0x2798] sm:$0xff]  }
 0x505   : > { %16547 = vmatmul.mubr.bf16.vlgmr.msra.gmra.mrb[148].mxu0 %v17723_v20  ;;  %v22988_v20 = vld [vmem:[%s23561_s21 + $0x2710] sm:$0xff]  }
 0x506   : > { %16587 = vmatmul.mubr.bf16.vlgmr.msra.gmra.mrb[148].mxu1 %v17725_v22  ;;  %21015 = vmatpush3.bf16.msra.mxu0 %v22944_v26  ;;  %v22990_v22 = vld [vmem:[%s23561_s21 + $0x2758] sm:$0xff]   ;;  %v22994_v26 = vld [vmem:[%s23561_s21 + $0x2760] sm:$0xff]  }
 0x507   : > { %21037 = vmatpush3.bf16.msra.mxu1 %v22945_v27  ;;  %21016 = vmatprep.subr.bf16.mxu0 %v22946_v28  ;;  %v22995_v27 = vld [vmem:[%s23561_s21 + $0x27e0] sm:$0xff]  }
 0x508   : > { %21038 = vmatprep.subr.bf16.mxu1 %v22947_v29  ;;  %16626 = vmatprep.mubr.bf16.mxu0 %v17728_v7  ;;  %v22996_v29 = vld [vmem:[%s23561_s21 + $0x2720] sm:$0xff]   ;;  %v23025_v7 = vld [vmem:[%s23561_s21 + $0x2890] sm:$0xff]  }
 0x509   : > { %16666 = vmatprep.mubr.bf16.mxu1 %v17730_v9  ;;  %v23027_v9 = vld [vmem:[%s23561_s21 + $0x28d8] sm:$0xff]  }
 0x50a   : > { %21017 = vmatpush3.bf16.msra.mxu0 %v22948_v30 }
 0x50b   : > { %21039 = vmatpush3.bf16.msra.mxu1 %v22949_v31  ;;  %21018 = vmatprep.subr.bf16.mxu0 %v22950_v32  ;;  %v22997_v31 = vld [vmem:[%s23561_s21 + $0x27a0] sm:$0xff]  }
 0x50c   : > { %21040 = vmatprep.subr.bf16.mxu1 %v22951_v33 }
 0x50e   : > { %21019 = vmatpush3.bf16.msra.mxu0 %v22952_v34 }
 0x50f   : > { %21041 = vmatpush3.bf16.msra.mxu1 %v22953_v35  ;;  %21020 = vmatprep.subr.bf16.mxu0 %v22954_v36  ;;  %v22998_v35 = vld [vmem:[%s23561_s21 + $0x2768] sm:$0xff]  }
 0x510   : > { %21042 = vmatprep.subr.bf16.mxu1 %v22955_v37  ;;  %v22999_v37 = vld [vmem:[%s23561_s21 + $0x27e8] sm:$0xff]  }
 0x512   : > { %21021 = vmatpush3.bf16.msra.mxu0 %v22956_v38 }
 0x513   : > { %21043 = vmatpush3.bf16.msra.mxu1 %v22957_v39  ;;  %21022 = vmatprep.subr.bf16.mxu0 %v22958_v40 }
 0x514   : > { %21044 = vmatprep.subr.bf16.mxu1 %v22959_v41  ;;  %v23000_v41 = vld [vmem:[%s23561_s21 + $0x2728] sm:$0xff]  }
 0x516   : > { %21023 = vmatpush3.bf16.msra.mxu0 %v22960_v42  ;;  %v23001_v42 = vld [vmem:[%s23561_s21 + $0x27a8] sm:$0xff]  }
 0x517   : > { %21045 = vmatpush3.bf16.msra.mxu1 %v22961_v44  ;;  %21024 = vmatprep.subr.bf16.mxu0 %v22962_v50  ;;  %v23006_v50 = vld [vmem:[%s23561_s21 + $0x2778] sm:$0xff]  }
 0x518   : > { %v20722_v43 = vpop.f32.mrb[124].mxu0  ;;  %21046 = vmatprep.subr.bf16.mxu1 %v22963_v52  ;;  %v23008_v52 = vld [vmem:[%s23561_s21 + $0x2738] sm:$0xff]  }
 0x519   : > { %v20744_v45 = vpop.f32.mrb[124].mxu1  ;;  %v20723_v46 = vpop.f32.mrb[125].mxu0 }
 0x51a   : > { %v20745_v47 = vpop.f32.mrb[125].mxu1  ;;  %v20724_v48 = vadd.f32 %v20723_v46, %v20722_v43  ;;  %v20725_v51 = vpop.f32.mrb[126].mxu0  ;;  %21025 = vmatpush3.bf16.msra.mxu0 %v22964_v55  ;;  %v23002_v46 = vld [vmem:[%s23561_s21 + $0x2770] sm:$0xff]   ;;  %v305_v55 = vld [vmem:[%s23579_s28 + $0x278] sm:$0x77] }
 0x51b   : > { %v20746_v49 = vadd.f32 %v20745_v47, %v20744_v45  ;;  %v20747_v53 = vpop.f32.mrb[126].mxu1  ;;  %v20726_v56 = vpop.f32.mrb[127].mxu0  ;;  %21047 = vmatpush3.bf16.msra.mxu1 %v22965_v57  ;;  %21026 = vmatprep.subr.bf16.mxu0 %v22966_v60  ;;  %v23003_v47 = vld [vmem:[%s23561_s21 + $0x27f0] sm:$0xff]   ;;  %v23007_v51 = vld [vmem:[%s23561_s21 + $0x27f8] sm:$0xff]   ;;  %v17734_v60 = vcombine.high %v305_v55, %v305_v55 }
 0x51c   : > { %v16069_v54 = vadd.f32 %v20724_v48, %v24956_v10  ;;  %v20748_v58 = vpop.f32.mrb[127].mxu1  ;;  %21048 = vmatprep.subr.bf16.mxu1 %v22967_v61  ;;  %v22978_v10 = vld [vmem:[%s23561_s21 + $0x2740] sm:$0xff]   ;;  %v23004_v48 = vld [vmem:[%s23561_s21 + $0x2730] sm:$0xff]   ;;  %v23009_v53 = vld [vmem:[%s23561_s21 + $0x27b8] sm:$0xff]  }
 0x51d   : > { %v17733_v58 = vcombine.low %v305_v55, %v305_v55  ;;  %v23015_v61 = vld [vmem:[%s23561_s21 + $0x28c0] sm:$0xff]   ;;  %v23059_v55 = vld [vmem:[%s23561_s21 + $0x29d0] sm:$0xff]  }
 0x51e   : > { %v24992_v59 = vadd.f32 %v20746_v49, %v16069_v54  ;;  %21027 = vmatpush3.bf16.msra.mxu0 %v22968_v62  ;;  %v23005_v49 = vld [vmem:[%s23561_s21 + $0x27b0] sm:$0xff]   ;;  %v23016_v62 = vld [vmem:[%s23561_s21 + $0x2800] sm:$0xff]  }
 0x51f   : > { %21049 = vmatpush3.bf16.msra.mxu1 %v22969_v63  ;;  %21028 = vmatprep.subr.bf16.mxu0 %v22970_v0  ;;  %v304_v54 = vld [vmem:[%s23579_s28 + $0x270] sm:$0x77]  ;;  %v23017_v63 = vld [vmem:[%s23561_s21 + $0x2880] sm:$0xff]   ;;  %v23018_v0 = vld [vmem:[%s23561_s21 + $0x2848] sm:$0xff]  }
 0x520   : > { %21050 = vmatprep.subr.bf16.mxu1 %v22971_v1  ;;  %v17731_v56 = vcombine.low %v304_v54, %v304_v54  ;;  %v17732_v57 = vcombine.high %v304_v54, %v304_v54  ;;  %v23019_v1 = vld [vmem:[%s23561_s21 + $0x28c8] sm:$0xff]   ;;  %v23058_v54 = vld [vmem:[%s23561_s21 + $0x2950] sm:$0xff]  }
 0x522   : > { %21029 = vmatpush3.bf16.msra.mxu0 %v22972_v2  ;;  %v23020_v2 = vld [vmem:[%s23561_s21 + $0x2808] sm:$0xff]  }
 0x523   : > { %21051 = vmatpush3.bf16.msra.mxu1 %v22973_v3  ;;  %21058 = vmatprep.subr.bf16.mxu0 %v22978_v10  ;;  %v23021_v3 = vld [vmem:[%s23561_s21 + $0x2888] sm:$0xff]   ;;  %v23028_v10 = vld [vmem:[%s23561_s21 + $0x2818] sm:$0xff]  }
 0x524   : > { %21080 = vmatprep.subr.bf16.mxu1 %v22979_v11  ;;  %v23029_v11 = vld [vmem:[%s23561_s21 + $0x2898] sm:$0xff]  }
 0x525   : > { %16627 = vmatmul.mubr.bf16.vlgmr.msra.gmra.mrb[152].mxu0 %v17727_v6  ;;  %v23024_v6 = vld [vmem:[%s23561_s21 + $0x2810] sm:$0xff]  }
 0x526   : > { %16667 = vmatmul.mubr.bf16.vlgmr.msra.gmra.mrb[152].mxu1 %v17729_v8  ;;  %21059 = vmatpush3.bf16.msra.mxu0 %v22980_v12  ;;  %v23026_v8 = vld [vmem:[%s23561_s21 + $0x2858] sm:$0xff]   ;;  %v23030_v12 = vld [vmem:[%s23561_s21 + $0x2860] sm:$0xff]  }
 0x527   : > { %21081 = vmatpush3.bf16.msra.mxu1 %v22981_v13  ;;  %21060 = vmatprep.subr.bf16.mxu0 %v22982_v14  ;;  %v23031_v13 = vld [vmem:[%s23561_s21 + $0x28e0] sm:$0xff]  }
 0x528   : > { %21082 = vmatprep.subr.bf16.mxu1 %v22983_v15  ;;  %16706 = vmatprep.mubr.bf16.mxu0 %v17732_v57  ;;  %v23032_v15 = vld [vmem:[%s23561_s21 + $0x2820] sm:$0xff]   ;;  %v23061_v57 = vld [vmem:[%s23561_s21 + $0x2990] sm:$0xff]  }
 0x529   : > { %16746 = vmatprep.mubr.bf16.mxu1 %v17734_v60  ;;  %v23064_v60 = vld [vmem:[%s23561_s21 + $0x2918] sm:$0xff]  }
 0x52a   : > { %21061 = vmatpush3.bf16.msra.mxu0 %v22984_v16 }
 0x52b   : > { %21083 = vmatpush3.bf16.msra.mxu1 %v22985_v17  ;;  %21062 = vmatprep.subr.bf16.mxu0 %v22986_v18  ;;  %v23033_v17 = vld [vmem:[%s23561_s21 + $0x28a0] sm:$0xff]  }
 0x52c   : > { %21084 = vmatprep.subr.bf16.mxu1 %v22987_v19 }
 0x52e   : > { %21063 = vmatpush3.bf16.msra.mxu0 %v22988_v20  ;;  %v23034_v20 = vld [vmem:[%s23561_s21 + $0x2868] sm:$0xff]  }
 0x52f   : > { %21085 = vmatpush3.bf16.msra.mxu1 %v22989_v21  ;;  %21064 = vmatprep.subr.bf16.mxu0 %v22990_v22 }
 0x530   : > { %21086 = vmatprep.subr.bf16.mxu1 %v22991_v23  ;;  %v23035_v23 = vld [vmem:[%s23561_s21 + $0x28e8] sm:$0xff]  }
 0x532   : > { %21065 = vmatpush3.bf16.msra.mxu0 %v22992_v24 }
 0x533   : > { %21087 = vmatpush3.bf16.msra.mxu1 %v22993_v25  ;;  %21066 = vmatprep.subr.bf16.mxu0 %v22994_v26  ;;  %v23036_v26 = vld [vmem:[%s23561_s21 + $0x2828] sm:$0xff]  }
 0x534   : > { %21088 = vmatprep.subr.bf16.mxu1 %v22995_v27 }
 0x536   : > { %21067 = vmatpush3.bf16.msra.mxu0 %v22996_v29 }
 0x537   : > { %21089 = vmatpush3.bf16.msra.mxu1 %v22997_v31  ;;  %21068 = vmatprep.subr.bf16.mxu0 %v22998_v35  ;;  %v23038_v31 = vld [vmem:[%s23561_s21 + $0x2870] sm:$0xff]  }
 0x538   : > { %v20766_v28 = vpop.f32.mrb[128].mxu0  ;;  %21090 = vmatprep.subr.bf16.mxu1 %v22999_v37  ;;  %v23041_v35 = vld [vmem:[%s23561_s21 + $0x28b0] sm:$0xff]   ;;  %v23043_v37 = vld [vmem:[%s23561_s21 + $0x28f8] sm:$0xff]  }
 0x539   : > { %v20788_v30 = vpop.f32.mrb[128].mxu1  ;;  %v20767_v32 = vpop.f32.mrb[129].mxu0 }
 0x53a   : > { %v20768_v33 = vadd.f32 %v20767_v32, %v20766_v28  ;;  %v20789_v34 = vpop.f32.mrb[129].mxu1  ;;  %v20769_v38 = vpop.f32.mrb[130].mxu0  ;;  %21069 = vmatpush3.bf16.msra.mxu0 %v23000_v41  ;;  %v23037_v28 = vld [vmem:[%s23561_s21 + $0x28a8] sm:$0xff]  }
 0x53b   : > { %v20790_v36 = vadd.f32 %v20789_v34, %v20788_v30  ;;  %v20791_v40 = vpop.f32.mrb[130].mxu1  ;;  %v20770_v43 = vpop.f32.mrb[131].mxu0  ;;  %21091 = vmatpush3.bf16.msra.mxu1 %v23001_v42  ;;  %21070 = vmatprep.subr.bf16.mxu0 %v23002_v46  ;;  %v23040_v34 = vld [vmem:[%s23561_s21 + $0x2830] sm:$0xff]   ;;  %v23044_v38 = vld [vmem:[%s23561_s21 + $0x2838] sm:$0xff]   ;;  %v23050_v46 = vld [vmem:[%s23561_s21 + $0x2940] sm:$0xff]  }
 0x53c   : > { %v16149_v39 = vadd.f32 %v20768_v33, %v24992_v59  ;;  %v20792_v45 = vpop.f32.mrb[131].mxu1  ;;  %21092 = vmatprep.subr.bf16.mxu1 %v23003_v47  ;;  %v23014_v59 = vld [vmem:[%s23561_s21 + $0x2840] sm:$0xff]   ;;  %v23039_v33 = vld [vmem:[%s23561_s21 + $0x28f0] sm:$0xff]   ;;  %v307_v43 = vld [vmem:[%s23579_s28 + $0x288] sm:$0x77] }
 0x53d   : > { %v306_v40 = vld [vmem:[%s23579_s28 + $0x280] sm:$0x77]  ;;  %v17738_v45 = vcombine.high %v307_v43, %v307_v43 }
 0x53e   : > { %v25029_v44 = vadd.f32 %v20790_v36, %v16149_v39  ;;  %21071 = vmatpush3.bf16.msra.mxu0 %v23004_v48  ;;  %v23042_v36 = vld [vmem:[%s23561_s21 + $0x2878] sm:$0xff]   ;;  %v17735_v41 = vcombine.low %v306_v40, %v306_v40  ;;  %v17736_v42 = vcombine.high %v306_v40, %v306_v40  ;;  %v23051_v47 = vld [vmem:[%s23561_s21 + $0x29c0] sm:$0xff]   ;;  %v23094_v40 = vld [vmem:[%s23561_s21 + $0x2a50] sm:$0xff]  }
 0x53f   : > { %21093 = vmatpush3.bf16.msra.mxu1 %v23005_v49  ;;  %21072 = vmatprep.subr.bf16.mxu0 %v23006_v50  ;;  %v23045_v39 = vld [vmem:[%s23561_s21 + $0x28b8] sm:$0xff]   ;;  %v23052_v48 = vld [vmem:[%s23561_s21 + $0x2900] sm:$0xff]   ;;  %v23054_v50 = vld [vmem:[%s23561_s21 + $0x2948] sm:$0xff]  }
 0x540   : > { %21094 = vmatprep.subr.bf16.mxu1 %v23007_v51  ;;  %v23053_v49 = vld [vmem:[%s23561_s21 + $0x2980] sm:$0xff]   ;;  %v23055_v51 = vld [vmem:[%s23561_s21 + $0x29c8] sm:$0xff]  }
 0x542   : > { %21073 = vmatpush3.bf16.msra.mxu0 %v23008_v52  ;;  %v23056_v52 = vld [vmem:[%s23561_s21 + $0x2908] sm:$0xff]  }
 0x543   : > { %21095 = vmatpush3.bf16.msra.mxu1 %v23009_v53  ;;  %21102 = vmatprep.subr.bf16.mxu0 %v23014_v59  ;;  %v23057_v53 = vld [vmem:[%s23561_s21 + $0x2988] sm:$0xff]   ;;  %v23063_v59 = vld [vmem:[%s23561_s21 + $0x29d8] sm:$0xff]  }
 0x544   : > { %21124 = vmatprep.subr.bf16.mxu1 %v23015_v61  ;;  %v23065_v61 = vld [vmem:[%s23561_s21 + $0x2998] sm:$0xff]  }
 0x545   : > { %16707 = vmatmul.mubr.bf16.vlgmr.msra.gmra.mrb[156].mxu0 %v17731_v56  ;;  %v23060_v56 = vld [vmem:[%s23561_s21 + $0x2910] sm:$0xff]  }
 0x546   : > { %16747 = vmatmul.mubr.bf16.vlgmr.msra.gmra.mrb[156].mxu1 %v17733_v58  ;;  %21103 = vmatpush3.bf16.msra.mxu0 %v23016_v62  ;;  %v23062_v58 = vld [vmem:[%s23561_s21 + $0x2958] sm:$0xff]   ;;  %v23066_v62 = vld [vmem:[%s23561_s21 + $0x2960] sm:$0xff]  }
 0x547   : > { %21125 = vmatpush3.bf16.msra.mxu1 %v23017_v63  ;;  %21104 = vmatprep.subr.bf16.mxu0 %v23018_v0  ;;  %v23067_v63 = vld [vmem:[%s23561_s21 + $0x29e0] sm:$0xff]  }
 0x548   : > { %21126 = vmatprep.subr.bf16.mxu1 %v23019_v1  ;;  %16786 = vmatprep.mubr.bf16.mxu0 %v17736_v42  ;;  %v23068_v1 = vld [vmem:[%s23561_s21 + $0x2920] sm:$0xff]   ;;  %v23096_v42 = vld [vmem:[%s23561_s21 + $0x2a10] sm:$0xff]  }
 0x549   : > { %16826 = vmatprep.mubr.bf16.mxu1 %v17738_v45  ;;  %v23099_v45 = vld [vmem:[%s23561_s21 + $0x2ad8] sm:$0xff]  }
 0x54a   : > { %21105 = vmatpush3.bf16.msra.mxu0 %v23020_v2 }
 0x54b   : > { %21127 = vmatpush3.bf16.msra.mxu1 %v23021_v3  ;;  %21106 = vmatprep.subr.bf16.mxu0 %v23022_v4  ;;  %v23069_v3 = vld [vmem:[%s23561_s21 + $0x29a0] sm:$0xff]  }
 0x54c   : > { %21128 = vmatprep.subr.bf16.mxu1 %v23023_v5 }
 0x54e   : > { %21107 = vmatpush3.bf16.msra.mxu0 %v23024_v6  ;;  %v23070_v6 = vld [vmem:[%s23561_s21 + $0x2968] sm:$0xff]  }
 0x54f   : > { %21129 = vmatpush3.bf16.msra.mxu1 %v23025_v7  ;;  %21108 = vmatprep.subr.bf16.mxu0 %v23026_v8 }
 0x550   : > { %21130 = vmatprep.subr.bf16.mxu1 %v23027_v9  ;;  %v23071_v9 = vld [vmem:[%s23561_s21 + $0x29e8] sm:$0xff]  }
 0x552   : > { %21109 = vmatpush3.bf16.msra.mxu0 %v23028_v10 }
 0x553   : > { %21131 = vmatpush3.bf16.msra.mxu1 %v23029_v11  ;;  %21110 = vmatprep.subr.bf16.mxu0 %v23030_v12  ;;  %v23072_v12 = vld [vmem:[%s23561_s21 + $0x2928] sm:$0xff]  }
 0x554   : > { %21132 = vmatprep.subr.bf16.mxu1 %v23031_v13 }
 0x556   : > { %21111 = vmatpush3.bf16.msra.mxu0 %v23032_v15 }
 0x557   : > { %21133 = vmatpush3.bf16.msra.mxu1 %v23033_v17  ;;  %21112 = vmatprep.subr.bf16.mxu0 %v23034_v20  ;;  %v23074_v17 = vld [vmem:[%s23561_s21 + $0x2970] sm:$0xff]  }
 0x558   : > { %v20810_v14 = vpop.f32.mrb[132].mxu0  ;;  %21134 = vmatprep.subr.bf16.mxu1 %v23035_v23  ;;  %v23076_v20 = vld [vmem:[%s23561_s21 + $0x2930] sm:$0xff]   ;;  %v23079_v23 = vld [vmem:[%s23561_s21 + $0x29f8] sm:$0xff]  }
 0x559   : > { %v20832_v16 = vpop.f32.mrb[132].mxu1  ;;  %v20811_v18 = vpop.f32.mrb[133].mxu0 }
 0x55a   : > { %v20833_v19 = vpop.f32.mrb[133].mxu1  ;;  %v20812_v21 = vadd.f32 %v20811_v18, %v20810_v14  ;;  %v20813_v24 = vpop.f32.mrb[134].mxu0  ;;  %21113 = vmatpush3.bf16.msra.mxu0 %v23036_v26  ;;  %v23073_v14 = vld [vmem:[%s23561_s21 + $0x29a8] sm:$0xff]   ;;  %v308_v26 = vld [vmem:[%s23579_s28 + $0x290] sm:$0x77] }
 0x55b   : > { %v20834_v22 = vadd.f32 %v20833_v19, %v20832_v16  ;;  %v20835_v25 = vpop.f32.mrb[134].mxu1  ;;  %v20814_v29 = vpop.f32.mrb[135].mxu0  ;;  %21135 = vmatpush3.bf16.msra.mxu1 %v23037_v28  ;;  %21114 = vmatprep.subr.bf16.mxu0 %v23038_v31  ;;  %v23075_v19 = vld [vmem:[%s23561_s21 + $0x29f0] sm:$0xff]   ;;  %v23080_v24 = vld [vmem:[%s23561_s21 + $0x2938] sm:$0xff]   ;;  %v17739_v28 = vcombine.low %v308_v26, %v308_v26 }
 0x55c   : > { %v16229_v27 = vadd.f32 %v20812_v21, %v25029_v44  ;;  %v20836_v30 = vpop.f32.mrb[135].mxu1  ;;  %21136 = vmatprep.subr.bf16.mxu1 %v23039_v33  ;;  %v17737_v44 = vcombine.low %v307_v43, %v307_v43  ;;  %v23077_v21 = vld [vmem:[%s23561_s21 + $0x29b0] sm:$0xff]   ;;  %v23081_v25 = vld [vmem:[%s23561_s21 + $0x29b8] sm:$0xff]   ;;  %v17740_v29 = vcombine.high %v308_v26, %v308_v26  ;;  %v23087_v33 = vld [vmem:[%s23561_s21 + $0x2ac0] sm:$0xff]  }
 0x55d   : > { %v23097_v43 = vld [vmem:[%s23561_s21 + $0x2a90] sm:$0xff]  }
 0x55e   : > { %v25067_v32 = vadd.f32 %v20834_v22, %v16229_v27  ;;  %21115 = vmatpush3.bf16.msra.mxu0 %v23040_v34  ;;  %v23078_v22 = vld [vmem:[%s23561_s21 + $0x2978] sm:$0xff]   ;;  %v23088_v34 = vld [vmem:[%s23561_s21 + $0x2a00] sm:$0xff]   ;;  %v23130_v26 = vld [vmem:[%s23561_s21 + $0x2b50] sm:$0xff]  }
 0x55f   : > { %21137 = vmatpush3.bf16.msra.mxu1 %v23041_v35  ;;  %21116 = vmatprep.subr.bf16.mxu0 %v23042_v36  ;;  %v309_v27 = vld [vmem:[%s23579_s28 + $0x298] sm:$0x77]  ;;  %v23089_v35 = vld [vmem:[%s23561_s21 + $0x2a80] sm:$0xff]   ;;  %v23090_v36 = vld [vmem:[%s23561_s21 + $0x2a48] sm:$0xff]  }
 0x560   : > { %21138 = vmatprep.subr.bf16.mxu1 %v23043_v37  ;;  %v17741_v30 = vcombine.low %v309_v27, %v309_v27  ;;  %v17742_v31 = vcombine.high %v309_v27, %v309_v27  ;;  %v23091_v37 = vld [vmem:[%s23561_s21 + $0x2ac8] sm:$0xff]   ;;  %v23131_v27 = vld [vmem:[%s23561_s21 + $0x2bd0] sm:$0xff]  }
 0x562   : > { %21117 = vmatpush3.bf16.msra.mxu0 %v23044_v38  ;;  %v23092_v38 = vld [vmem:[%s23561_s21 + $0x2a08] sm:$0xff]  }
 0x563   : > { %21139 = vmatpush3.bf16.msra.mxu1 %v23045_v39  ;;  %21146 = vmatprep.subr.bf16.mxu0 %v23050_v46  ;;  %v23093_v39 = vld [vmem:[%s23561_s21 + $0x2a88] sm:$0xff]   ;;  %v23100_v46 = vld [vmem:[%s23561_s21 + $0x2a18] sm:$0xff]  }
 0x564   : > { %21168 = vmatprep.subr.bf16.mxu1 %v23051_v47  ;;  %v23101_v47 = vld [vmem:[%s23561_s21 + $0x2a98] sm:$0xff]  }
 0x565   : > { %16787 = vmatmul.mubr.bf16.vlgmr.msra.gmra.mrb[160].mxu0 %v17735_v41  ;;  %v23095_v41 = vld [vmem:[%s23561_s21 + $0x2ad0] sm:$0xff]  }
 0x566   : > { %16827 = vmatmul.mubr.bf16.vlgmr.msra.gmra.mrb[160].mxu1 %v17737_v44  ;;  %21147 = vmatpush3.bf16.msra.mxu0 %v23052_v48  ;;  %v23098_v44 = vld [vmem:[%s23561_s21 + $0x2a58] sm:$0xff]   ;;  %v23102_v48 = vld [vmem:[%s23561_s21 + $0x2a60] sm:$0xff]  }
 0x567   : > { %21169 = vmatpush3.bf16.msra.mxu1 %v23053_v49  ;;  %21148 = vmatprep.subr.bf16.mxu0 %v23054_v50  ;;  %v23103_v49 = vld [vmem:[%s23561_s21 + $0x2ae0] sm:$0xff]  }
 0x568   : > { %21170 = vmatprep.subr.bf16.mxu1 %v23055_v51  ;;  %16866 = vmatprep.mubr.bf16.mxu0 %v17740_v29  ;;  %v23104_v50 = vld [vmem:[%s23561_s21 + $0x2a20] sm:$0xff]   ;;  %v23133_v29 = vld [vmem:[%s23561_s21 + $0x2b90] sm:$0xff]  }
 0x569   : > { %16906 = vmatprep.mubr.bf16.mxu1 %v17742_v31  ;;  %v23135_v31 = vld [vmem:[%s23561_s21 + $0x2bd8] sm:$0xff]  }
 0x56a   : > { %21149 = vmatpush3.bf16.msra.mxu0 %v23056_v52  ;;  %v23105_v52 = vld [vmem:[%s23561_s21 + $0x2aa0] sm:$0xff]  }
 0x56b   : > { %21171 = vmatpush3.bf16.msra.mxu1 %v23057_v53  ;;  %21150 = vmatprep.subr.bf16.mxu0 %v23058_v54 }
 0x56c   : > { %21172 = vmatprep.subr.bf16.mxu1 %v23059_v55 }
 0x56e   : > { %21151 = vmatpush3.bf16.msra.mxu0 %v23060_v56 }
 0x56f   : > { %21173 = vmatpush3.bf16.msra.mxu1 %v23061_v57  ;;  %21152 = vmatprep.subr.bf16.mxu0 %v23062_v58  ;;  %v23106_v58 = vld [vmem:[%s23561_s21 + $0x2a68] sm:$0xff]  }
 0x570   : > { %21174 = vmatprep.subr.bf16.mxu1 %v23063_v59 }
 0x572   : > { %21153 = vmatpush3.bf16.msra.mxu0 %v23064_v60  ;;  %v23107_v60 = vld [vmem:[%s23561_s21 + $0x2ae8] sm:$0xff]  }
 0x573   : > { %21175 = vmatpush3.bf16.msra.mxu1 %v23065_v61  ;;  %21154 = vmatprep.subr.bf16.mxu0 %v23066_v62 }
 0x574   : > { %21176 = vmatprep.subr.bf16.mxu1 %v23067_v63  ;;  %v23108_v63 = vld [vmem:[%s23561_s21 + $0x2a28] sm:$0xff]  }
 0x576   : > { %21155 = vmatpush3.bf16.msra.mxu0 %v23068_v1  ;;  %v23109_v1 = vld [vmem:[%s23561_s21 + $0x2aa8] sm:$0xff]  }
 0x577   : > { %21177 = vmatpush3.bf16.msra.mxu1 %v23069_v3  ;;  %21156 = vmatprep.subr.bf16.mxu0 %v23070_v6  ;;  %v23112_v6 = vld [vmem:[%s23561_s21 + $0x2a30] sm:$0xff]  }
 0x578   : > { %v20854_v0 = vpop.f32.mrb[136].mxu0  ;;  %21178 = vmatprep.subr.bf16.mxu1 %v23071_v9  ;;  %v23115_v9 = vld [vmem:[%s23561_s21 + $0x2af8] sm:$0xff]  }
 0x579   : > { %v20876_v2 = vpop.f32.mrb[136].mxu1  ;;  %v20855_v4 = vpop.f32.mrb[137].mxu0 }
 0x57a   : > { %v20877_v5 = vpop.f32.mrb[137].mxu1  ;;  %v20856_v7 = vadd.f32 %v20855_v4, %v20854_v0  ;;  %v20857_v10 = vpop.f32.mrb[138].mxu0  ;;  %21157 = vmatpush3.bf16.msra.mxu0 %v23072_v12  ;;  %v23110_v4 = vld [vmem:[%s23561_s21 + $0x2a70] sm:$0xff]   ;;  %v310_v12 = vld [vmem:[%s23579_s28 + $0x2a0] sm:$0x77] }
 0x57b   : > { %v20878_v8 = vadd.f32 %v20877_v5, %v20876_v2  ;;  %v20879_v11 = vpop.f32.mrb[138].mxu1  ;;  %v20858_v15 = vpop.f32.mrb[139].mxu0  ;;  %21179 = vmatpush3.bf16.msra.mxu1 %v23073_v14  ;;  %21158 = vmatprep.subr.bf16.mxu0 %v23074_v17  ;;  %v23111_v5 = vld [vmem:[%s23561_s21 + $0x2af0] sm:$0xff]   ;;  %v23116_v10 = vld [vmem:[%s23561_s21 + $0x2a38] sm:$0xff]   ;;  %v17743_v14 = vcombine.low %v310_v12, %v310_v12 }
 0x57c   : > { %v16309_v13 = vadd.f32 %v20856_v7, %v25067_v32  ;;  %v20880_v16 = vpop.f32.mrb[139].mxu1  ;;  %21180 = vmatprep.subr.bf16.mxu1 %v23075_v19  ;;  %v23086_v32 = vld [vmem:[%s23561_s21 + $0x2a40] sm:$0xff]   ;;  %v23113_v7 = vld [vmem:[%s23561_s21 + $0x2ab0] sm:$0xff]   ;;  %v23117_v11 = vld [vmem:[%s23561_s21 + $0x2ab8] sm:$0xff]   ;;  %v17744_v15 = vcombine.high %v310_v12, %v310_v12 }
 0x57d   : > { %v23123_v19 = vld [vmem:[%s23561_s21 + $0x2bc0] sm:$0xff]   ;;  %v23166_v12 = vld [vmem:[%s23561_s21 + $0x2c50] sm:$0xff]  }
 0x57e   : > { %v25104_v18 = vadd.f32 %v20878_v8, %v16309_v13  ;;  %21159 = vmatpush3.bf16.msra.mxu0 %v23076_v20  ;;  %v23114_v8 = vld [vmem:[%s23561_s21 + $0x2a78] sm:$0xff]   ;;  %v311_v13 = vld [vmem:[%s23579_s28 + $0x2a8] sm:$0x77]  ;;  %v23124_v20 = vld [vmem:[%s23561_s21 + $0x2b00] sm:$0xff]  }
 0x57f   : > { %21181 = vmatpush3.bf16.msra.mxu1 %v23077_v21  ;;  %21160 = vmatprep.subr.bf16.mxu0 %v23078_v22  ;;  %v17745_v16 = vcombine.low %v311_v13, %v311_v13  ;;  %v17746_v17 = vcombine.high %v311_v13, %v311_v13  ;;  %v23125_v21 = vld [vmem:[%s23561_s21 + $0x2b80] sm:$0xff]   ;;  %v23126_v22 = vld [vmem:[%s23561_s21 + $0x2b48] sm:$0xff]   ;;  %v23167_v13 = vld [vmem:[%s23561_s21 + $0x2cd0] sm:$0xff]  }
 0x580   : > { %21182 = vmatprep.subr.bf16.mxu1 %v23079_v23  ;;  %v23127_v23 = vld [vmem:[%s23561_s21 + $0x2bc8] sm:$0xff]  }
 0x582   : > { %21161 = vmatpush3.bf16.msra.mxu0 %v23080_v24  ;;  %v23128_v24 = vld [vmem:[%s23561_s21 + $0x2b08] sm:$0xff]  }
 0x583   : > { %21183 = vmatpush3.bf16.msra.mxu1 %v23081_v25  ;;  %21190 = vmatprep.subr.bf16.mxu0 %v23086_v32  ;;  %v23129_v25 = vld [vmem:[%s23561_s21 + $0x2b88] sm:$0xff]   ;;  %v23136_v32 = vld [vmem:[%s23561_s21 + $0x2b18] sm:$0xff]  }
 0x584   : > { %21212 = vmatprep.subr.bf16.mxu1 %v23087_v33  ;;  %v23137_v33 = vld [vmem:[%s23561_s21 + $0x2b98] sm:$0xff]  }
 0x585   : > { %16867 = vmatmul.mubr.bf16.vlgmr.msra.gmra.mrb[164].mxu0 %v17739_v28  ;;  %v23132_v28 = vld [vmem:[%s23561_s21 + $0x2b10] sm:$0xff]  }
 0x586   : > { %16907 = vmatmul.mubr.bf16.vlgmr.msra.gmra.mrb[164].mxu1 %v17741_v30  ;;  %21191 = vmatpush3.bf16.msra.mxu0 %v23088_v34  ;;  %v23134_v30 = vld [vmem:[%s23561_s21 + $0x2b58] sm:$0xff]   ;;  %v23138_v34 = vld [vmem:[%s23561_s21 + $0x2b60] sm:$0xff]  }
 0x587   : > { %21213 = vmatpush3.bf16.msra.mxu1 %v23089_v35  ;;  %21192 = vmatprep.subr.bf16.mxu0 %v23090_v36  ;;  %v23139_v35 = vld [vmem:[%s23561_s21 + $0x2be0] sm:$0xff]  }
 0x588   : > { %21214 = vmatprep.subr.bf16.mxu1 %v23091_v37  ;;  %16946 = vmatprep.mubr.bf16.mxu0 %v17744_v15  ;;  %v23140_v36 = vld [vmem:[%s23561_s21 + $0x2b20] sm:$0xff]   ;;  %v23169_v15 = vld [vmem:[%s23561_s21 + $0x2c90] sm:$0xff]  }
 0x589   : > { %16986 = vmatprep.mubr.bf16.mxu1 %v17746_v17  ;;  %v23171_v17 = vld [vmem:[%s23561_s21 + $0x2cd8] sm:$0xff]  }
 0x58a   : > { %21193 = vmatpush3.bf16.msra.mxu0 %v23092_v38  ;;  %v23141_v38 = vld [vmem:[%s23561_s21 + $0x2ba0] sm:$0xff]  }
 0x58b   : > { %21215 = vmatpush3.bf16.msra.mxu1 %v23093_v39  ;;  %21194 = vmatprep.subr.bf16.mxu0 %v23094_v40 }
 0x58c   : > { %21216 = vmatprep.subr.bf16.mxu1 %v23095_v41 }
 0x58e   : > { %21195 = vmatpush3.bf16.msra.mxu0 %v23096_v42 }
 0x58f   : > { %21217 = vmatpush3.bf16.msra.mxu1 %v23097_v43  ;;  %21196 = vmatprep.subr.bf16.mxu0 %v23098_v44  ;;  %v23142_v44 = vld [vmem:[%s23561_s21 + $0x2b68] sm:$0xff]  }
 0x590   : > { %21218 = vmatprep.subr.bf16.mxu1 %v23099_v45 }
 0x592   : > { %21197 = vmatpush3.bf16.msra.mxu0 %v23100_v46  ;;  %v23143_v46 = vld [vmem:[%s23561_s21 + $0x2be8] sm:$0xff]  }
 0x593   : > { %21219 = vmatpush3.bf16.msra.mxu1 %v23101_v47  ;;  %21198 = vmatprep.subr.bf16.mxu0 %v23102_v48 }
 0x594   : > { %21220 = vmatprep.subr.bf16.mxu1 %v23103_v49  ;;  %v23144_v49 = vld [vmem:[%s23561_s21 + $0x2b28] sm:$0xff]  }
 0x596   : > { %21199 = vmatpush3.bf16.msra.mxu0 %v23104_v50 }
 0x597   : > { %21221 = vmatpush3.bf16.msra.mxu1 %v23105_v52  ;;  %21200 = vmatprep.subr.bf16.mxu0 %v23106_v58  ;;  %v23150_v58 = vld [vmem:[%s23561_s21 + $0x2b78] sm:$0xff]  }
 0x598   : > { %v20898_v51 = vpop.f32.mrb[140].mxu0  ;;  %21222 = vmatprep.subr.bf16.mxu1 %v23107_v60  ;;  %v23152_v60 = vld [vmem:[%s23561_s21 + $0x2b38] sm:$0xff]  }
 0x599   : > { %v20920_v53 = vpop.f32.mrb[140].mxu1  ;;  %v20899_v54 = vpop.f32.mrb[141].mxu0 }
 0x59a   : > { %v20921_v55 = vpop.f32.mrb[141].mxu1  ;;  %v20900_v56 = vadd.f32 %v20899_v54, %v20898_v51  ;;  %v20901_v59 = vpop.f32.mrb[142].mxu0  ;;  %21201 = vmatpush3.bf16.msra.mxu0 %v23108_v63  ;;  %v23145_v51 = vld [vmem:[%s23561_s21 + $0x2ba8] sm:$0xff]   ;;  %v23146_v54 = vld [vmem:[%s23561_s21 + $0x2b70] sm:$0xff]   ;;  %v313_v63 = vld [vmem:[%s23579_s28 + $0x2b8] sm:$0x77] }
 0x59b   : > { %v20922_v57 = vadd.f32 %v20921_v55, %v20920_v53  ;;  %v20923_v61 = vpop.f32.mrb[142].mxu1  ;;  %v20902_v0 = vpop.f32.mrb[143].mxu0  ;;  %21223 = vmatpush3.bf16.msra.mxu1 %v23109_v1  ;;  %21202 = vmatprep.subr.bf16.mxu0 %v23110_v4  ;;  %v23147_v55 = vld [vmem:[%s23561_s21 + $0x2bf0] sm:$0xff]   ;;  %v23151_v59 = vld [vmem:[%s23561_s21 + $0x2bf8] sm:$0xff]   ;;  %v23158_v4 = vld [vmem:[%s23561_s21 + $0x2c40] sm:$0xff]  }
 0x59c   : > { %v16389_v62 = vadd.f32 %v20900_v56, %v25104_v18  ;;  %v20924_v2 = vpop.f32.mrb[143].mxu1  ;;  %21224 = vmatprep.subr.bf16.mxu1 %v23111_v5  ;;  %v23122_v18 = vld [vmem:[%s23561_s21 + $0x2b40] sm:$0xff]   ;;  %v23148_v56 = vld [vmem:[%s23561_s21 + $0x2b30] sm:$0xff]   ;;  %v23153_v61 = vld [vmem:[%s23561_s21 + $0x2bb8] sm:$0xff]  }
 0x59d   : > { %v17749_v2 = vcombine.low %v313_v63, %v313_v63  ;;  %v23159_v5 = vld [vmem:[%s23561_s21 + $0x2cc0] sm:$0xff]  }
 0x59e   : > { %v25140_v3 = vadd.f32 %v20922_v57, %v16389_v62  ;;  %21203 = vmatpush3.bf16.msra.mxu0 %v23112_v6  ;;  %v23149_v57 = vld [vmem:[%s23561_s21 + $0x2bb0] sm:$0xff]   ;;  %v23160_v6 = vld [vmem:[%s23561_s21 + $0x2c00] sm:$0xff]  }
 0x59f   : > { %21225 = vmatpush3.bf16.msra.mxu1 %v23113_v7  ;;  %21204 = vmatprep.subr.bf16.mxu0 %v23114_v8  ;;  %v312_v62 = vld [vmem:[%s23579_s28 + $0x2b0] sm:$0x77]  ;;  %v23161_v7 = vld [vmem:[%s23561_s21 + $0x2c80] sm:$0xff]   ;;  %v23162_v8 = vld [vmem:[%s23561_s21 + $0x2c48] sm:$0xff]  }
 0x5a0   : > { %21226 = vmatprep.subr.bf16.mxu1 %v23115_v9  ;;  %v17747_v0 = vcombine.low %v312_v62, %v312_v62  ;;  %v17748_v1 = vcombine.high %v312_v62, %v312_v62  ;;  %v23163_v9 = vld [vmem:[%s23561_s21 + $0x2cc8] sm:$0xff]   ;;  %v23202_v62 = vld [vmem:[%s23561_s21 + $0x2d50] sm:$0xff]  }
 0x5a2   : > { %21205 = vmatpush3.bf16.msra.mxu0 %v23116_v10  ;;  %v23164_v10 = vld [vmem:[%s23561_s21 + $0x2c08] sm:$0xff]  }
 0x5a3   : > { %21227 = vmatpush3.bf16.msra.mxu1 %v23117_v11  ;;  %21234 = vmatprep.subr.bf16.mxu0 %v23122_v18  ;;  %v23165_v11 = vld [vmem:[%s23561_s21 + $0x2c88] sm:$0xff]   ;;  %v23172_v18 = vld [vmem:[%s23561_s21 + $0x2c18] sm:$0xff]  }
 0x5a4   : > { %21256 = vmatprep.subr.bf16.mxu1 %v23123_v19  ;;  %v23173_v19 = vld [vmem:[%s23561_s21 + $0x2c98] sm:$0xff]  }
 0x5a5   : > { %16947 = vmatmul.mubr.bf16.vlgmr.msra.gmra.mrb[168].mxu0 %v17743_v14  ;;  %v23168_v14 = vld [vmem:[%s23561_s21 + $0x2c10] sm:$0xff]  }
 0x5a6   : > { %16987 = vmatmul.mubr.bf16.vlgmr.msra.gmra.mrb[168].mxu1 %v17745_v16  ;;  %21235 = vmatpush3.bf16.msra.mxu0 %v23124_v20  ;;  %v23170_v16 = vld [vmem:[%s23561_s21 + $0x2c58] sm:$0xff]   ;;  %v23174_v20 = vld [vmem:[%s23561_s21 + $0x2c60] sm:$0xff]  }
 0x5a7   : > { %21257 = vmatpush3.bf16.msra.mxu1 %v23125_v21  ;;  %21236 = vmatprep.subr.bf16.mxu0 %v23126_v22  ;;  %v23175_v21 = vld [vmem:[%s23561_s21 + $0x2ce0] sm:$0xff]  }
 0x5a8   : > { %21258 = vmatprep.subr.bf16.mxu1 %v23127_v23  ;;  %17026 = vmatprep.mubr.bf16.mxu0 %v17748_v1  ;;  %v23176_v23 = vld [vmem:[%s23561_s21 + $0x2c20] sm:$0xff]   ;;  %v23205_v1 = vld [vmem:[%s23561_s21 + $0x2d90] sm:$0xff]  }
 0x5aa   : > { %21237 = vmatpush3.bf16.msra.mxu0 %v23128_v24 }
 0x5ab   : > { %21259 = vmatpush3.bf16.msra.mxu1 %v23129_v25  ;;  %21238 = vmatprep.subr.bf16.mxu0 %v23130_v26  ;;  %v23177_v25 = vld [vmem:[%s23561_s21 + $0x2ca0] sm:$0xff]  }
 0x5ac   : > { %21260 = vmatprep.subr.bf16.mxu1 %v23131_v27 }
 0x5ae   : > { %21239 = vmatpush3.bf16.msra.mxu0 %v23132_v28 }
 0x5af   : > { %21261 = vmatpush3.bf16.msra.mxu1 %v23133_v29  ;;  %21240 = vmatprep.subr.bf16.mxu0 %v23134_v30  ;;  %v23178_v29 = vld [vmem:[%s23561_s21 + $0x2c68] sm:$0xff]  }
 0x5b0   : > { %21262 = vmatprep.subr.bf16.mxu1 %v23135_v31  ;;  %v23179_v31 = vld [vmem:[%s23561_s21 + $0x2ce8] sm:$0xff]  }
 0x5b2   : > { %21241 = vmatpush3.bf16.msra.mxu0 %v23136_v32 }
 0x5b3   : > { %21263 = vmatpush3.bf16.msra.mxu1 %v23137_v33  ;;  %21242 = vmatprep.subr.bf16.mxu0 %v23138_v34 }
 0x5b4   : > { %21264 = vmatprep.subr.bf16.mxu1 %v23139_v35  ;;  %v23180_v35 = vld [vmem:[%s23561_s21 + $0x2c28] sm:$0xff]  }
 0x5b6   : > { %21243 = vmatpush3.bf16.msra.mxu0 %v23140_v36  ;;  %v23181_v36 = vld [vmem:[%s23561_s21 + $0x2ca8] sm:$0xff]  }
 0x5b7   : > { %21265 = vmatpush3.bf16.msra.mxu1 %v23141_v38  ;;  %21244 = vmatprep.subr.bf16.mxu0 %v23142_v44  ;;  %v23186_v44 = vld [vmem:[%s23561_s21 + $0x2c78] sm:$0xff]  }
 0x5b8   : > { %v20942_v37 = vpop.f32.mrb[144].mxu0  ;;  %21266 = vmatprep.subr.bf16.mxu1 %v23143_v46  ;;  %v23188_v46 = vld [vmem:[%s23561_s21 + $0x2c38] sm:$0xff]  }
 0x5b9   : > { %v20964_v39 = vpop.f32.mrb[144].mxu1  ;;  %v20943_v40 = vpop.f32.mrb[145].mxu0 }
 0x5ba   : > { %v20965_v41 = vpop.f32.mrb[145].mxu1  ;;  %v20944_v42 = vadd.f32 %v20943_v40, %v20942_v37  ;;  %v20945_v45 = vpop.f32.mrb[146].mxu0  ;;  %21245 = vmatpush3.bf16.msra.mxu0 %v23144_v49  ;;  %v23182_v40 = vld [vmem:[%s23561_s21 + $0x2c70] sm:$0xff]   ;;  %v315_v49 = vld [vmem:[%s23579_s28 + $0x2c8] sm:$0x77] }
 0x5bb   : > { %v20966_v43 = vadd.f32 %v20965_v41, %v20964_v39  ;;  %v20967_v47 = vpop.f32.mrb[146].mxu1  ;;  %v20946_v50 = vpop.f32.mrb[147].mxu0  ;;  %21267 = vmatpush3.bf16.msra.mxu1 %v23145_v51  ;;  %21246 = vmatprep.subr.bf16.mxu0 %v23146_v54  ;;  %v23183_v41 = vld [vmem:[%s23561_s21 + $0x2cf0] sm:$0xff]   ;;  %v23187_v45 = vld [vmem:[%s23561_s21 + $0x2cf8] sm:$0xff]   ;;  %v17754_v54 = vcombine.high %v315_v49, %v315_v49 }
 0x5bc   : > { %v16469_v48 = vadd.f32 %v20944_v42, %v25140_v3  ;;  %v20968_v52 = vpop.f32.mrb[147].mxu1  ;;  %21268 = vmatprep.subr.bf16.mxu1 %v23147_v55  ;;  %v17750_v3 = vcombine.high %v313_v63, %v313_v63  ;;  %v23184_v42 = vld [vmem:[%s23561_s21 + $0x2c30] sm:$0xff]   ;;  %v23189_v47 = vld [vmem:[%s23561_s21 + $0x2cb8] sm:$0xff]   ;;  %v23195_v55 = vld [vmem:[%s23561_s21 + $0x2dc0] sm:$0xff]  }
 0x5bd   : > { %v17753_v52 = vcombine.low %v315_v49, %v315_v49  ;;  %v23203_v63 = vld [vmem:[%s23561_s21 + $0x2dd0] sm:$0xff]  }
 0x5be   : > { %v25177_v53 = vadd.f32 %v20966_v43, %v16469_v48  ;;  %21247 = vmatpush3.bf16.msra.mxu0 %v23148_v56  ;;  %17066 = vmatprep.mubr.bf16.mxu1 %v17750_v3  ;;  %v23185_v43 = vld [vmem:[%s23561_s21 + $0x2cb0] sm:$0xff]   ;;  %v314_v48 = vld [vmem:[%s23579_s28 + $0x2c0] sm:$0x77]  ;;  %v23207_v3 = vld [vmem:[%s23561_s21 + $0x2dd8] sm:$0xff]  }
 0x5bf   : > { %21269 = vmatpush3.bf16.msra.mxu1 %v23149_v57  ;;  %21248 = vmatprep.subr.bf16.mxu0 %v23150_v58  ;;  %v17751_v50 = vcombine.low %v314_v48, %v314_v48  ;;  %v17752_v51 = vcombine.high %v314_v48, %v314_v48  ;;  %v23196_v56 = vld [vmem:[%s23561_s21 + $0x2d00] sm:$0xff]   ;;  %v23198_v58 = vld [vmem:[%s23561_s21 + $0x2d48] sm:$0xff]   ;;  %v23238_v48 = vld [vmem:[%s23561_s21 + $0x2e50] sm:$0xff]  }
 0x5c0   : > { %21270 = vmatprep.subr.bf16.mxu1 %v23151_v59  ;;  %v23197_v57 = vld [vmem:[%s23561_s21 + $0x2d80] sm:$0xff]   ;;  %v23199_v59 = vld [vmem:[%s23561_s21 + $0x2dc8] sm:$0xff]   ;;  %v23239_v49 = vld [vmem:[%s23561_s21 + $0x2ed0] sm:$0xff]  }
 0x5c2   : > { %21249 = vmatpush3.bf16.msra.mxu0 %v23152_v60  ;;  %v23200_v60 = vld [vmem:[%s23561_s21 + $0x2d08] sm:$0xff]  }
 0x5c3   : > { %21271 = vmatpush3.bf16.msra.mxu1 %v23153_v61  ;;  %21278 = vmatprep.subr.bf16.mxu0 %v23158_v4  ;;  %v23201_v61 = vld [vmem:[%s23561_s21 + $0x2d88] sm:$0xff]   ;;  %v23208_v4 = vld [vmem:[%s23561_s21 + $0x2d18] sm:$0xff]  }
 0x5c4   : > { %21300 = vmatprep.subr.bf16.mxu1 %v23159_v5  ;;  %v23209_v5 = vld [vmem:[%s23561_s21 + $0x2d98] sm:$0xff]  }
 0x5c5   : > { %17027 = vmatmul.mubr.bf16.vlgmr.msra.gmra.mrb[172].mxu0 %v17747_v0  ;;  %v23204_v0 = vld [vmem:[%s23561_s21 + $0x2d10] sm:$0xff]  }
 0x5c6   : > { %17067 = vmatmul.mubr.bf16.vlgmr.msra.gmra.mrb[172].mxu1 %v17749_v2  ;;  %21279 = vmatpush3.bf16.msra.mxu0 %v23160_v6  ;;  %v23206_v2 = vld [vmem:[%s23561_s21 + $0x2d58] sm:$0xff]   ;;  %v23210_v6 = vld [vmem:[%s23561_s21 + $0x2d60] sm:$0xff]  }
 0x5c7   : > { %21301 = vmatpush3.bf16.msra.mxu1 %v23161_v7  ;;  %21280 = vmatprep.subr.bf16.mxu0 %v23162_v8  ;;  %v23211_v7 = vld [vmem:[%s23561_s21 + $0x2de0] sm:$0xff]  }
 0x5c8   : > { %21302 = vmatprep.subr.bf16.mxu1 %v23163_v9  ;;  %17106 = vmatprep.mubr.bf16.mxu0 %v17752_v51  ;;  %v23212_v9 = vld [vmem:[%s23561_s21 + $0x2d20] sm:$0xff]   ;;  %v23241_v51 = vld [vmem:[%s23561_s21 + $0x2e90] sm:$0xff]  }
 0x5c9   : > { %17146 = vmatprep.mubr.bf16.mxu1 %v17754_v54  ;;  %v23244_v54 = vld [vmem:[%s23561_s21 + $0x2e18] sm:$0xff]  }
 0x5ca   : > { %21281 = vmatpush3.bf16.msra.mxu0 %v23164_v10 }
 0x5cb   : > { %21303 = vmatpush3.bf16.msra.mxu1 %v23165_v11  ;;  %21282 = vmatprep.subr.bf16.mxu0 %v23166_v12  ;;  %v23213_v11 = vld [vmem:[%s23561_s21 + $0x2da0] sm:$0xff]  }
 0x5cc   : > { %21304 = vmatprep.subr.bf16.mxu1 %v23167_v13 }
 0x5ce   : > { %21283 = vmatpush3.bf16.msra.mxu0 %v23168_v14  ;;  %v23214_v14 = vld [vmem:[%s23561_s21 + $0x2d68] sm:$0xff]  }
 0x5cf   : > { %21305 = vmatpush3.bf16.msra.mxu1 %v23169_v15  ;;  %21284 = vmatprep.subr.bf16.mxu0 %v23170_v16 }
 0x5d0   : > { %21306 = vmatprep.subr.bf16.mxu1 %v23171_v17  ;;  %v23215_v17 = vld [vmem:[%s23561_s21 + $0x2de8] sm:$0xff]  }
 0x5d2   : > { %21285 = vmatpush3.bf16.msra.mxu0 %v23172_v18 }
 0x5d3   : > { %21307 = vmatpush3.bf16.msra.mxu1 %v23173_v19  ;;  %21286 = vmatprep.subr.bf16.mxu0 %v23174_v20  ;;  %v23216_v20 = vld [vmem:[%s23561_s21 + $0x2d28] sm:$0xff]  }
 0x5d4   : > { %21308 = vmatprep.subr.bf16.mxu1 %v23175_v21 }
 0x5d6   : > { %21287 = vmatpush3.bf16.msra.mxu0 %v23176_v23 }
 0x5d7   : > { %21309 = vmatpush3.bf16.msra.mxu1 %v23177_v25  ;;  %21288 = vmatprep.subr.bf16.mxu0 %v23178_v29  ;;  %v23218_v25 = vld [vmem:[%s23561_s21 + $0x2d70] sm:$0xff]  }
 0x5d8   : > { %v20986_v22 = vpop.f32.mrb[148].mxu0  ;;  %21310 = vmatprep.subr.bf16.mxu1 %v23179_v31  ;;  %v23221_v29 = vld [vmem:[%s23561_s21 + $0x2db0] sm:$0xff]   ;;  %v23223_v31 = vld [vmem:[%s23561_s21 + $0x2df8] sm:$0xff]  }
 0x5d9   : > { %v21008_v24 = vpop.f32.mrb[148].mxu1  ;;  %v20987_v26 = vpop.f32.mrb[149].mxu0 }
 0x5da   : > { %v20988_v27 = vadd.f32 %v20987_v26, %v20986_v22  ;;  %v21009_v28 = vpop.f32.mrb[149].mxu1  ;;  %v20989_v32 = vpop.f32.mrb[150].mxu0  ;;  %21289 = vmatpush3.bf16.msra.mxu0 %v23180_v35  ;;  %v23217_v22 = vld [vmem:[%s23561_s21 + $0x2da8] sm:$0xff]  }
 0x5db   : > { %v21010_v30 = vadd.f32 %v21009_v28, %v21008_v24  ;;  %v21011_v34 = vpop.f32.mrb[150].mxu1  ;;  %v20990_v37 = vpop.f32.mrb[151].mxu0  ;;  %21311 = vmatpush3.bf16.msra.mxu1 %v23181_v36  ;;  %21290 = vmatprep.subr.bf16.mxu0 %v23182_v40  ;;  %v23220_v28 = vld [vmem:[%s23561_s21 + $0x2d30] sm:$0xff]   ;;  %v23224_v32 = vld [vmem:[%s23561_s21 + $0x2d38] sm:$0xff]   ;;  %v23230_v40 = vld [vmem:[%s23561_s21 + $0x2e40] sm:$0xff]  }
 0x5dc   : > { %v16549_v33 = vadd.f32 %v20988_v27, %v25177_v53  ;;  %v21012_v39 = vpop.f32.mrb[151].mxu1  ;;  %21312 = vmatprep.subr.bf16.mxu1 %v23183_v41  ;;  %v23194_v53 = vld [vmem:[%s23561_s21 + $0x2d40] sm:$0xff]   ;;  %v23219_v27 = vld [vmem:[%s23561_s21 + $0x2df0] sm:$0xff]   ;;  %v317_v37 = vld [vmem:[%s23579_s28 + $0x2d8] sm:$0x77] }
 0x5dd   : > { %v316_v34 = vld [vmem:[%s23579_s28 + $0x2d0] sm:$0x77]  ;;  %v17758_v39 = vcombine.high %v317_v37, %v317_v37  ;;  %v23231_v41 = vld [vmem:[%s23561_s21 + $0x2ec0] sm:$0xff]  }
 0x5de   : > { %v25214_v38 = vadd.f32 %v21010_v30, %v16549_v33  ;;  %21291 = vmatpush3.bf16.msra.mxu0 %v23184_v42  ;;  %v23222_v30 = vld [vmem:[%s23561_s21 + $0x2d78] sm:$0xff]   ;;  %v17755_v35 = vcombine.low %v316_v34, %v316_v34  ;;  %v17756_v36 = vcombine.high %v316_v34, %v316_v34  ;;  %v23232_v42 = vld [vmem:[%s23561_s21 + $0x2e00] sm:$0xff]   ;;  %v23274_v34 = vld [vmem:[%s23561_s21 + $0x2f50] sm:$0xff]  }
 0x5df   : > { %21313 = vmatpush3.bf16.msra.mxu1 %v23185_v43  ;;  %21292 = vmatprep.subr.bf16.mxu0 %v23186_v44  ;;  %v23225_v33 = vld [vmem:[%s23561_s21 + $0x2db8] sm:$0xff]   ;;  %v23233_v43 = vld [vmem:[%s23561_s21 + $0x2e80] sm:$0xff]   ;;  %v23234_v44 = vld [vmem:[%s23561_s21 + $0x2e48] sm:$0xff]  }
 0x5e0   : > { %21314 = vmatprep.subr.bf16.mxu1 %v23187_v45  ;;  %v23235_v45 = vld [vmem:[%s23561_s21 + $0x2ec8] sm:$0xff]  }
 0x5e2   : > { %21293 = vmatpush3.bf16.msra.mxu0 %v23188_v46  ;;  %v23236_v46 = vld [vmem:[%s23561_s21 + $0x2e08] sm:$0xff]  }
 0x5e3   : > { %21315 = vmatpush3.bf16.msra.mxu1 %v23189_v47  ;;  %21322 = vmatprep.subr.bf16.mxu0 %v23194_v53  ;;  %v23237_v47 = vld [vmem:[%s23561_s21 + $0x2e88] sm:$0xff]   ;;  %v23243_v53 = vld [vmem:[%s23561_s21 + $0x2ed8] sm:$0xff]  }
 0x5e4   : > { %21344 = vmatprep.subr.bf16.mxu1 %v23195_v55  ;;  %v23245_v55 = vld [vmem:[%s23561_s21 + $0x2e98] sm:$0xff]  }
 0x5e5   : > { %17107 = vmatmul.mubr.bf16.vlgmr.msra.gmra.mrb[176].mxu0 %v17751_v50  ;;  %v23240_v50 = vld [vmem:[%s23561_s21 + $0x2e10] sm:$0xff]  }
 0x5e6   : > { %17147 = vmatmul.mubr.bf16.vlgmr.msra.gmra.mrb[176].mxu1 %v17753_v52  ;;  %21323 = vmatpush3.bf16.msra.mxu0 %v23196_v56  ;;  %v23242_v52 = vld [vmem:[%s23561_s21 + $0x2e58] sm:$0xff]   ;;  %v23246_v56 = vld [vmem:[%s23561_s21 + $0x2e60] sm:$0xff]  }
 0x5e7   : > { %21345 = vmatpush3.bf16.msra.mxu1 %v23197_v57  ;;  %21324 = vmatprep.subr.bf16.mxu0 %v23198_v58  ;;  %v23247_v57 = vld [vmem:[%s23561_s21 + $0x2ee0] sm:$0xff]  }
 0x5e8   : > { %21346 = vmatprep.subr.bf16.mxu1 %v23199_v59  ;;  %17186 = vmatprep.mubr.bf16.mxu0 %v17756_v36  ;;  %v23248_v59 = vld [vmem:[%s23561_s21 + $0x2e20] sm:$0xff]   ;;  %v23276_v36 = vld [vmem:[%s23561_s21 + $0x2f10] sm:$0xff]  }
 0x5e9   : > { %17226 = vmatprep.mubr.bf16.mxu1 %v17758_v39  ;;  %v23279_v39 = vld [vmem:[%s23561_s21 + $0x2fd8] sm:$0xff]  }
 0x5ea   : > { %21325 = vmatpush3.bf16.msra.mxu0 %v23200_v60 }
 0x5eb   : > { %21347 = vmatpush3.bf16.msra.mxu1 %v23201_v61  ;;  %21326 = vmatprep.subr.bf16.mxu0 %v23202_v62  ;;  %v23249_v61 = vld [vmem:[%s23561_s21 + $0x2ea0] sm:$0xff]  }
 0x5ec   : > { %21348 = vmatprep.subr.bf16.mxu1 %v23203_v63 }
 0x5ee   : > { %21327 = vmatpush3.bf16.msra.mxu0 %v23204_v0  ;;  %v23250_v0 = vld [vmem:[%s23561_s21 + $0x2e68] sm:$0xff]  }
 0x5ef   : > { %21349 = vmatpush3.bf16.msra.mxu1 %v23205_v1  ;;  %21328 = vmatprep.subr.bf16.mxu0 %v23206_v2 }
 0x5f0   : > { %21350 = vmatprep.subr.bf16.mxu1 %v23207_v3  ;;  %v23251_v3 = vld [vmem:[%s23561_s21 + $0x2ee8] sm:$0xff]  }
 0x5f2   : > { %21329 = vmatpush3.bf16.msra.mxu0 %v23208_v4 }
 0x5f3   : > { %21351 = vmatpush3.bf16.msra.mxu1 %v23209_v5  ;;  %21330 = vmatprep.subr.bf16.mxu0 %v23210_v6  ;;  %v23252_v6 = vld [vmem:[%s23561_s21 + $0x2e28] sm:$0xff]  }
 0x5f4   : > { %21352 = vmatprep.subr.bf16.mxu1 %v23211_v7 }
 0x5f6   : > { %21331 = vmatpush3.bf16.msra.mxu0 %v23212_v9 }
 0x5f7   : > { %21353 = vmatpush3.bf16.msra.mxu1 %v23213_v11  ;;  %21332 = vmatprep.subr.bf16.mxu0 %v23214_v14  ;;  %v23254_v11 = vld [vmem:[%s23561_s21 + $0x2e70] sm:$0xff]  }
 0x5f8   : > { %v21030_v8 = vpop.f32.mrb[152].mxu0  ;;  %21354 = vmatprep.subr.bf16.mxu1 %v23215_v17  ;;  %v23256_v14 = vld [vmem:[%s23561_s21 + $0x2e30] sm:$0xff]   ;;  %v23259_v17 = vld [vmem:[%s23561_s21 + $0x2ef8] sm:$0xff]  }
 0x5f9   : > { %v21052_v10 = vpop.f32.mrb[152].mxu1  ;;  %v21031_v12 = vpop.f32.mrb[153].mxu0 }
 0x5fa   : > { %v21053_v13 = vpop.f32.mrb[153].mxu1  ;;  %v21032_v15 = vadd.f32 %v21031_v12, %v21030_v8  ;;  %v21033_v18 = vpop.f32.mrb[154].mxu0  ;;  %21333 = vmatpush3.bf16.msra.mxu0 %v23216_v20  ;;  %v23253_v8 = vld [vmem:[%s23561_s21 + $0x2ea8] sm:$0xff]   ;;  %v318_v20 = vld [vmem:[%s23579_s28 + $0x2e0] sm:$0x77] }
 0x5fb   : > { %v21054_v16 = vadd.f32 %v21053_v13, %v21052_v10  ;;  %v21055_v19 = vpop.f32.mrb[154].mxu1  ;;  %v21034_v23 = vpop.f32.mrb[155].mxu0  ;;  %21355 = vmatpush3.bf16.msra.mxu1 %v23217_v22  ;;  %21334 = vmatprep.subr.bf16.mxu0 %v23218_v25  ;;  %v23255_v13 = vld [vmem:[%s23561_s21 + $0x2ef0] sm:$0xff]   ;;  %v23260_v18 = vld [vmem:[%s23561_s21 + $0x2e38] sm:$0xff]   ;;  %v17759_v22 = vcombine.low %v318_v20, %v318_v20 }
 0x5fc   : > { %v16629_v21 = vadd.f32 %v21032_v15, %v25214_v38  ;;  %v21056_v24 = vpop.f32.mrb[155].mxu1  ;;  %21356 = vmatprep.subr.bf16.mxu1 %v23219_v27  ;;  %v17757_v38 = vcombine.low %v317_v37, %v317_v37  ;;  %v23257_v15 = vld [vmem:[%s23561_s21 + $0x2eb0] sm:$0xff]   ;;  %v23261_v19 = vld [vmem:[%s23561_s21 + $0x2eb8] sm:$0xff]   ;;  %v17760_v23 = vcombine.high %v318_v20, %v318_v20  ;;  %v23267_v27 = vld [vmem:[%s23561_s21 + $0x2fc0] sm:$0xff]  }
 0x5fd   : > { %v23277_v37 = vld [vmem:[%s23561_s21 + $0x2f90] sm:$0xff]  }
 0x5fe   : > { %v25252_v26 = vadd.f32 %v21054_v16, %v16629_v21  ;;  %21335 = vmatpush3.bf16.msra.mxu0 %v23220_v28  ;;  %v23258_v16 = vld [vmem:[%s23561_s21 + $0x2e78] sm:$0xff]   ;;  %v319_v21 = vld [vmem:[%s23579_s28 + $0x2e8] sm:$0x77]  ;;  %v23268_v28 = vld [vmem:[%s23561_s21 + $0x2f00] sm:$0xff]  }
 0x5ff   : > { %21357 = vmatpush3.bf16.msra.mxu1 %v23221_v29  ;;  %21336 = vmatprep.subr.bf16.mxu0 %v23222_v30  ;;  %v17761_v24 = vcombine.low %v319_v21, %v319_v21  ;;  %v17762_v25 = vcombine.high %v319_v21, %v319_v21  ;;  %v23269_v29 = vld [vmem:[%s23561_s21 + $0x2f80] sm:$0xff]   ;;  %v23270_v30 = vld [vmem:[%s23561_s21 + $0x2f48] sm:$0xff]   ;;  %v23310_v20 = vld [vmem:[%s23561_s21 + $0x3050] sm:$0xff]  }
 0x600   : > { %21358 = vmatprep.subr.bf16.mxu1 %v23223_v31  ;;  %v23271_v31 = vld [vmem:[%s23561_s21 + $0x2fc8] sm:$0xff]   ;;  %v23311_v21 = vld [vmem:[%s23561_s21 + $0x30d0] sm:$0xff]  }
 0x602   : > { %21337 = vmatpush3.bf16.msra.mxu0 %v23224_v32  ;;  %v23272_v32 = vld [vmem:[%s23561_s21 + $0x2f08] sm:$0xff]  }
 0x603   : > { %21359 = vmatpush3.bf16.msra.mxu1 %v23225_v33  ;;  %21366 = vmatprep.subr.bf16.mxu0 %v23230_v40  ;;  %v23273_v33 = vld [vmem:[%s23561_s21 + $0x2f88] sm:$0xff]   ;;  %v23280_v40 = vld [vmem:[%s23561_s21 + $0x2f18] sm:$0xff]  }
 0x604   : > { %21388 = vmatprep.subr.bf16.mxu1 %v23231_v41  ;;  %v23281_v41 = vld [vmem:[%s23561_s21 + $0x2f98] sm:$0xff]  }
 0x605   : > { %17187 = vmatmul.mubr.bf16.vlgmr.msra.gmra.mrb[180].mxu0 %v17755_v35  ;;  %v23275_v35 = vld [vmem:[%s23561_s21 + $0x2fd0] sm:$0xff]  }
 0x606   : > { %17227 = vmatmul.mubr.bf16.vlgmr.msra.gmra.mrb[180].mxu1 %v17757_v38  ;;  %21367 = vmatpush3.bf16.msra.mxu0 %v23232_v42  ;;  %v23278_v38 = vld [vmem:[%s23561_s21 + $0x2f58] sm:$0xff]   ;;  %v23282_v42 = vld [vmem:[%s23561_s21 + $0x2f60] sm:$0xff]  }
 0x607   : > { %21389 = vmatpush3.bf16.msra.mxu1 %v23233_v43  ;;  %21368 = vmatprep.subr.bf16.mxu0 %v23234_v44  ;;  %v23283_v43 = vld [vmem:[%s23561_s21 + $0x2fe0] sm:$0xff]  }
 0x608   : > { %21390 = vmatprep.subr.bf16.mxu1 %v23235_v45  ;;  %17266 = vmatprep.mubr.bf16.mxu0 %v17760_v23  ;;  %v23284_v44 = vld [vmem:[%s23561_s21 + $0x2f20] sm:$0xff]   ;;  %v23313_v23 = vld [vmem:[%s23561_s21 + $0x3090] sm:$0xff]  }
 0x609   : > { %17306 = vmatprep.mubr.bf16.mxu1 %v17762_v25  ;;  %v23315_v25 = vld [vmem:[%s23561_s21 + $0x30d8] sm:$0xff]  }
 0x60a   : > { %21369 = vmatpush3.bf16.msra.mxu0 %v23236_v46  ;;  %v23285_v46 = vld [vmem:[%s23561_s21 + $0x2fa0] sm:$0xff]  }
 0x60b   : > { %21391 = vmatpush3.bf16.msra.mxu1 %v23237_v47  ;;  %21370 = vmatprep.subr.bf16.mxu0 %v23238_v48 }
 0x60c   : > { %21392 = vmatprep.subr.bf16.mxu1 %v23239_v49 }
 0x60e   : > { %21371 = vmatpush3.bf16.msra.mxu0 %v23240_v50 }
 0x60f   : > { %21393 = vmatpush3.bf16.msra.mxu1 %v23241_v51  ;;  %21372 = vmatprep.subr.bf16.mxu0 %v23242_v52  ;;  %v23286_v52 = vld [vmem:[%s23561_s21 + $0x2f68] sm:$0xff]  }
 0x610   : > { %21394 = vmatprep.subr.bf16.mxu1 %v23243_v53 }
 0x612   : > { %21373 = vmatpush3.bf16.msra.mxu0 %v23244_v54  ;;  %v23287_v54 = vld [vmem:[%s23561_s21 + $0x2fe8] sm:$0xff]  }
 0x613   : > { %21395 = vmatpush3.bf16.msra.mxu1 %v23245_v55  ;;  %21374 = vmatprep.subr.bf16.mxu0 %v23246_v56 }
 0x614   : > { %21396 = vmatprep.subr.bf16.mxu1 %v23247_v57  ;;  %v23288_v57 = vld [vmem:[%s23561_s21 + $0x2f28] sm:$0xff]  }
 0x616   : > { %21375 = vmatpush3.bf16.msra.mxu0 %v23248_v59  ;;  %v23289_v59 = vld [vmem:[%s23561_s21 + $0x2fa8] sm:$0xff]  }
 0x617   : > { %21397 = vmatpush3.bf16.msra.mxu1 %v23249_v61  ;;  %21376 = vmatprep.subr.bf16.mxu0 %v23250_v0  ;;  %v23292_v0 = vld [vmem:[%s23561_s21 + $0x2f30] sm:$0xff]  }
 0x618   : > { %v21074_v58 = vpop.f32.mrb[156].mxu0  ;;  %21398 = vmatprep.subr.bf16.mxu1 %v23251_v3  ;;  %v23295_v3 = vld [vmem:[%s23561_s21 + $0x2ff8] sm:$0xff]  }
 0x619   : > { %v21096_v60 = vpop.f32.mrb[156].mxu1  ;;  %v21075_v62 = vpop.f32.mrb[157].mxu0 }
 0x61a   : > { %v21097_v63 = vpop.f32.mrb[157].mxu1  ;;  %v21076_v1 = vadd.f32 %v21075_v62, %v21074_v58  ;;  %v21077_v4 = vpop.f32.mrb[158].mxu0  ;;  %21377 = vmatpush3.bf16.msra.mxu0 %v23252_v6  ;;  %v23290_v62 = vld [vmem:[%s23561_s21 + $0x2f70] sm:$0xff]  }
 0x61b   : > { %v21098_v2 = vadd.f32 %v21097_v63, %v21096_v60  ;;  %v21099_v5 = vpop.f32.mrb[158].mxu1  ;;  %v21078_v9 = vpop.f32.mrb[159].mxu0  ;;  %21399 = vmatpush3.bf16.msra.mxu1 %v23253_v8  ;;  %21378 = vmatprep.subr.bf16.mxu0 %v23254_v11  ;;  %v23291_v63 = vld [vmem:[%s23561_s21 + $0x2ff0] sm:$0xff]   ;;  %v23296_v4 = vld [vmem:[%s23561_s21 + $0x2f38] sm:$0xff]  }
 0x61c   : > { %v16709_v7 = vadd.f32 %v21076_v1, %v25252_v26  ;;  %v21100_v10 = vpop.f32.mrb[159].mxu1  ;;  %21400 = vmatprep.subr.bf16.mxu1 %v23255_v13  ;;  %v23266_v26 = vld [vmem:[%s23561_s21 + $0x2f40] sm:$0xff]   ;;  %v23293_v1 = vld [vmem:[%s23561_s21 + $0x2fb0] sm:$0xff]   ;;  %v23297_v5 = vld [vmem:[%s23561_s21 + $0x2fb8] sm:$0xff]  }
 0x61d   : > { %v320_v6 = vld [vmem:[%s23579_s28 + $0x2f0] sm:$0x77]  ;;  %v23303_v13 = vld [vmem:[%s23561_s21 + $0x30c0] sm:$0xff]  }
 0x61e   : > { %v25289_v12 = vadd.f32 %v21098_v2, %v16709_v7  ;;  %21379 = vmatpush3.bf16.msra.mxu0 %v23256_v14  ;;  %v23294_v2 = vld [vmem:[%s23561_s21 + $0x2f78] sm:$0xff]   ;;  %v17763_v8 = vcombine.low %v320_v6, %v320_v6  ;;  %v17764_v9 = vcombine.high %v320_v6, %v320_v6  ;;  %v23304_v14 = vld [vmem:[%s23561_s21 + $0x3000] sm:$0xff]  }
 0x61f   : > { %21401 = vmatpush3.bf16.msra.mxu1 %v23257_v15  ;;  %21380 = vmatprep.subr.bf16.mxu0 %v23258_v16  ;;  %v321_v7 = vld [vmem:[%s23579_s28 + $0x2f8] sm:$0x77]  ;;  %v23305_v15 = vld [vmem:[%s23561_s21 + $0x3080] sm:$0xff]   ;;  %v23306_v16 = vld [vmem:[%s23561_s21 + $0x3048] sm:$0xff]  }
 0x620   : > { %21402 = vmatprep.subr.bf16.mxu1 %v23259_v17  ;;  %v17765_v10 = vcombine.low %v321_v7, %v321_v7  ;;  %v17766_v11 = vcombine.high %v321_v7, %v321_v7  ;;  %v23307_v17 = vld [vmem:[%s23561_s21 + $0x30c8] sm:$0xff]  }
 0x622   : > { %21381 = vmatpush3.bf16.msra.mxu0 %v23260_v18  ;;  %v23308_v18 = vld [vmem:[%s23561_s21 + $0x3008] sm:$0xff]  }
 0x623   : > { %21403 = vmatpush3.bf16.msra.mxu1 %v23261_v19  ;;  %21410 = vmatprep.subr.bf16.mxu0 %v23266_v26  ;;  %v23309_v19 = vld [vmem:[%s23561_s21 + $0x3088] sm:$0xff]   ;;  %v23316_v26 = vld [vmem:[%s23561_s21 + $0x3018] sm:$0xff]  }
 0x624   : > { %21432 = vmatprep.subr.bf16.mxu1 %v23267_v27  ;;  %v23317_v27 = vld [vmem:[%s23561_s21 + $0x3098] sm:$0xff]  }
 0x625   : > { %17267 = vmatmul.mubr.bf16.vlgmr.msra.gmra.mrb[184].mxu0 %v17759_v22  ;;  %v23312_v22 = vld [vmem:[%s23561_s21 + $0x3010] sm:$0xff]  }
 0x626   : > { %17307 = vmatmul.mubr.bf16.vlgmr.msra.gmra.mrb[184].mxu1 %v17761_v24  ;;  %21411 = vmatpush3.bf16.msra.mxu0 %v23268_v28  ;;  %v23314_v24 = vld [vmem:[%s23561_s21 + $0x3058] sm:$0xff]   ;;  %v23318_v28 = vld [vmem:[%s23561_s21 + $0x3060] sm:$0xff]  }
 0x627   : > { %21433 = vmatpush3.bf16.msra.mxu1 %v23269_v29  ;;  %21412 = vmatprep.subr.bf16.mxu0 %v23270_v30  ;;  %v23319_v29 = vld [vmem:[%s23561_s21 + $0x30e0] sm:$0xff]  }
 0x628   : > { %21434 = vmatprep.subr.bf16.mxu1 %v23271_v31  ;;  %17346 = vmatprep.mubr.bf16.mxu0 %v17764_v9  ;;  %v23320_v31 = vld [vmem:[%s23561_s21 + $0x3020] sm:$0xff]  }
 0x629   : > { %17386 = vmatprep.mubr.bf16.mxu1 %v17766_v11 }
 0x62a   : > { %21413 = vmatpush3.bf16.msra.mxu0 %v23272_v32 }
 0x62b   : > { %21435 = vmatpush3.bf16.msra.mxu1 %v23273_v33  ;;  %21414 = vmatprep.subr.bf16.mxu0 %v23274_v34  ;;  %v23321_v33 = vld [vmem:[%s23561_s21 + $0x30a0] sm:$0xff]  }
 0x62c   : > { %21436 = vmatprep.subr.bf16.mxu1 %v23275_v35 }
 0x62e   : > { %21415 = vmatpush3.bf16.msra.mxu0 %v23276_v36 }
 0x62f   : > { %21437 = vmatpush3.bf16.msra.mxu1 %v23277_v37  ;;  %21416 = vmatprep.subr.bf16.mxu0 %v23278_v38  ;;  %v23322_v37 = vld [vmem:[%s23561_s21 + $0x3068] sm:$0xff]  }
 0x630   : > { %21438 = vmatprep.subr.bf16.mxu1 %v23279_v39  ;;  %v23323_v39 = vld [vmem:[%s23561_s21 + $0x30e8] sm:$0xff]  }
 0x632   : > { %21417 = vmatpush3.bf16.msra.mxu0 %v23280_v40 }
 0x633   : > { %21439 = vmatpush3.bf16.msra.mxu1 %v23281_v41  ;;  %21418 = vmatprep.subr.bf16.mxu0 %v23282_v42 }
 0x634   : > { %21440 = vmatprep.subr.bf16.mxu1 %v23283_v43  ;;  %v23324_v43 = vld [vmem:[%s23561_s21 + $0x3028] sm:$0xff]  }
 0x636   : > { %21419 = vmatpush3.bf16.msra.mxu0 %v23284_v44  ;;  %v23325_v44 = vld [vmem:[%s23561_s21 + $0x30a8] sm:$0xff]  }
 0x637   : > { %21441 = vmatpush3.bf16.msra.mxu1 %v23285_v46  ;;  %21420 = vmatprep.subr.bf16.mxu0 %v23286_v52  ;;  %v23330_v52 = vld [vmem:[%s23561_s21 + $0x3078] sm:$0xff]  }
 0x638   : > { %v21118_v45 = vpop.f32.mrb[160].mxu0  ;;  %21442 = vmatprep.subr.bf16.mxu1 %v23287_v54  ;;  %v23332_v54 = vld [vmem:[%s23561_s21 + $0x3038] sm:$0xff]  }
 0x639   : > { %v21140_v47 = vpop.f32.mrb[160].mxu1  ;;  %v21119_v48 = vpop.f32.mrb[161].mxu0 }
 0x63a   : > { %v21141_v49 = vpop.f32.mrb[161].mxu1  ;;  %v21120_v50 = vadd.f32 %v21119_v48, %v21118_v45  ;;  %v21121_v53 = vpop.f32.mrb[162].mxu0  ;;  %21421 = vmatpush3.bf16.msra.mxu0 %v23288_v57  ;;  %v23326_v48 = vld [vmem:[%s23561_s21 + $0x3070] sm:$0xff]   ;;  %v323_v57 = vld [vmem:[%s23579_s28 + $0x308] sm:$0x77] }
 0x63b   : > { %v21142_v51 = vadd.f32 %v21141_v49, %v21140_v47  ;;  %v21143_v55 = vpop.f32.mrb[162].mxu1  ;;  %v21122_v58 = vpop.f32.mrb[163].mxu0  ;;  %21443 = vmatpush3.bf16.msra.mxu1 %v23289_v59  ;;  %21422 = vmatprep.subr.bf16.mxu0 %v23290_v62  ;;  %v23327_v49 = vld [vmem:[%s23561_s21 + $0x30f0] sm:$0xff]   ;;  %v23331_v53 = vld [vmem:[%s23561_s21 + $0x30f8] sm:$0xff]  }
 0x63c   : > { %v16789_v56 = vadd.f32 %v21120_v50, %v25289_v12  ;;  %v21144_v60 = vpop.f32.mrb[163].mxu1  ;;  %21444 = vmatprep.subr.bf16.mxu1 %v23291_v63  ;;  %v23302_v12 = vld [vmem:[%s23561_s21 + $0x3040] sm:$0xff]   ;;  %v23328_v50 = vld [vmem:[%s23561_s21 + $0x3030] sm:$0xff]   ;;  %v23333_v55 = vld [vmem:[%s23561_s21 + $0x30b8] sm:$0xff]  }
 0x63d   : > { %v17769_v60 = vcombine.low %v323_v57, %v323_v57 }
 0x63e   : > { %v25325_v61 = vadd.f32 %v21142_v51, %v16789_v56  ;;  %21423 = vmatpush3.bf16.msra.mxu0 %v23292_v0  ;;  %v23329_v51 = vld [vmem:[%s23561_s21 + $0x30b0] sm:$0xff]   ;;  %v322_v56 = vld [vmem:[%s23579_s28 + $0x300] sm:$0x77] }
 0x63f   : > { %21445 = vmatpush3.bf16.msra.mxu1 %v23293_v1  ;;  %21424 = vmatprep.subr.bf16.mxu0 %v23294_v2  ;;  %v17767_v58 = vcombine.low %v322_v56, %v322_v56  ;;  %v17768_v59 = vcombine.high %v322_v56, %v322_v56 }
 0x640   : > { %21446 = vmatprep.subr.bf16.mxu1 %v23295_v3 }
 0x642   : > { %21425 = vmatpush3.bf16.msra.mxu0 %v23296_v4 }
 0x643   : > { %21447 = vmatpush3.bf16.msra.mxu1 %v23297_v5  ;;  %21454 = vmatprep.subr.bf16.mxu0 %v23302_v12 }
 0x644   : > { %21476 = vmatprep.subr.bf16.mxu1 %v23303_v13 }
 0x645   : > { %17347 = vmatmul.mubr.bf16.vlgmr.msra.gmra.mrb[188].mxu0 %v17763_v8 }
 0x646   : > { %17387 = vmatmul.mubr.bf16.vlgmr.msra.gmra.mrb[188].mxu1 %v17765_v10  ;;  %21455 = vmatpush3.bf16.msra.mxu0 %v23304_v14 }
 0x647   : > { %21477 = vmatpush3.bf16.msra.mxu1 %v23305_v15  ;;  %21456 = vmatprep.subr.bf16.mxu0 %v23306_v16 }
 0x648   : > { %21478 = vmatprep.subr.bf16.mxu1 %v23307_v17  ;;  %17426 = vmatprep.mubr.bf16.mxu0 %v17768_v59 }
 0x64a   : > { %21457 = vmatpush3.bf16.msra.mxu0 %v23308_v18 }
 0x64b   : > { %21479 = vmatpush3.bf16.msra.mxu1 %v23309_v19  ;;  %21458 = vmatprep.subr.bf16.mxu0 %v23310_v20 }
 0x64c   : > { %21480 = vmatprep.subr.bf16.mxu1 %v23311_v21 }
 0x64e   : > { %21459 = vmatpush3.bf16.msra.mxu0 %v23312_v22 }
 0x64f   : > { %21481 = vmatpush3.bf16.msra.mxu1 %v23313_v23  ;;  %21460 = vmatprep.subr.bf16.mxu0 %v23314_v24 }
 0x650   : > { %21482 = vmatprep.subr.bf16.mxu1 %v23315_v25 }
 0x652   : > { %21461 = vmatpush3.bf16.msra.mxu0 %v23316_v26 }
 0x653   : > { %21483 = vmatpush3.bf16.msra.mxu1 %v23317_v27  ;;  %21462 = vmatprep.subr.bf16.mxu0 %v23318_v28 }
 0x654   : > { %21484 = vmatprep.subr.bf16.mxu1 %v23319_v29 }
 0x656   : > { %21463 = vmatpush3.bf16.msra.mxu0 %v23320_v31 }
 0x657   : > { %21485 = vmatpush3.bf16.msra.mxu1 %v23321_v33  ;;  %21464 = vmatprep.subr.bf16.mxu0 %v23322_v37 }
 0x658   : > { %v21162_v30 = vpop.f32.mrb[164].mxu0  ;;  %21486 = vmatprep.subr.bf16.mxu1 %v23323_v39 }
 0x659   : > { %v21184_v32 = vpop.f32.mrb[164].mxu1  ;;  %v21163_v34 = vpop.f32.mrb[165].mxu0 }
 0x65a   : > { %v21164_v35 = vadd.f32 %v21163_v34, %v21162_v30  ;;  %v21185_v36 = vpop.f32.mrb[165].mxu1  ;;  %v21165_v40 = vpop.f32.mrb[166].mxu0  ;;  %21465 = vmatpush3.bf16.msra.mxu0 %v23324_v43 }
 0x65b   : > { %v21186_v38 = vadd.f32 %v21185_v36, %v21184_v32  ;;  %v21187_v42 = vpop.f32.mrb[166].mxu1  ;;  %v21166_v45 = vpop.f32.mrb[167].mxu0  ;;  %21487 = vmatpush3.bf16.msra.mxu1 %v23325_v44  ;;  %21466 = vmatprep.subr.bf16.mxu0 %v23326_v48 }
 0x65c   : > { %v16869_v41 = vadd.f32 %v21164_v35, %v25325_v61  ;;  %v21188_v47 = vpop.f32.mrb[167].mxu1  ;;  %21488 = vmatprep.subr.bf16.mxu1 %v23327_v49  ;;  %v17770_v61 = vcombine.high %v323_v57, %v323_v57 }
 0x65e   : > { %v16909_v46 = vadd.f32 %v21186_v38, %v16869_v41  ;;  %21467 = vmatpush3.bf16.msra.mxu0 %v23328_v50  ;;  %17466 = vmatprep.mubr.bf16.mxu1 %v17770_v61 }
 0x65f   : > { %21489 = vmatpush3.bf16.msra.mxu1 %v23329_v51  ;;  %21468 = vmatprep.subr.bf16.mxu0 %v23330_v52 }
 0x660   : > { %21490 = vmatprep.subr.bf16.mxu1 %v23331_v53 }
 0x662   : > { %21469 = vmatpush3.bf16.msra.mxu0 %v23332_v54 }
 0x663   : > { %21491 = vmatpush3.bf16.msra.mxu1 %v23333_v55 }
 0x665   : > { %17427 = vmatmul.mubr.bf16.vlgmr.msra.gmra.mrb[192].mxu0 %v17767_v58 }
 0x666   : > { %17467 = vmatmul.mubr.bf16.vlgmr.msra.gmra.mrb[192].mxu1 %v17769_v60 }
 0x678   : > { %v21206_v62 = vpop.f32.mrb[168].mxu0 }
 0x679   : > { %v21228_v63 = vpop.f32.mrb[168].mxu1  ;;  %v21207_v0 = vpop.f32.mrb[169].mxu0 }
 0x67a   : > { %v21208_v1 = vadd.f32 %v21207_v0, %v21206_v62  ;;  %v21229_v2 = vpop.f32.mrb[169].mxu1  ;;  %v21209_v3 = vpop.f32.mrb[170].mxu0 }
 0x67b   : > { %v21230_v4 = vadd.f32 %v21229_v2, %v21228_v63  ;;  %v21231_v5 = vpop.f32.mrb[170].mxu1  ;;  %v21210_v6 = vpop.f32.mrb[171].mxu0 }
 0x67c   : > { %v16949_v7 = vadd.f32 %v21208_v1, %v16909_v46  ;;  %v21232_v8 = vpop.f32.mrb[171].mxu1 }
 0x67e   : > { %v16989_v9 = vadd.f32 %v21230_v4, %v16949_v7 }
 0x698   : > { %v21250_v10 = vpop.f32.mrb[172].mxu0 }
 0x699   : > { %v21272_v11 = vpop.f32.mrb[172].mxu1  ;;  %v21251_v12 = vpop.f32.mrb[173].mxu0 }
 0x69a   : > { %v21252_v13 = vadd.f32 %v21251_v12, %v21250_v10  ;;  %v21273_v14 = vpop.f32.mrb[173].mxu1  ;;  %v21253_v15 = vpop.f32.mrb[174].mxu0 }
 0x69b   : > { %v21274_v16 = vadd.f32 %v21273_v14, %v21272_v11  ;;  %v21275_v17 = vpop.f32.mrb[174].mxu1  ;;  %v21254_v18 = vpop.f32.mrb[175].mxu0 }
 0x69c   : > { %v17029_v19 = vadd.f32 %v21252_v13, %v16989_v9  ;;  %v21276_v20 = vpop.f32.mrb[175].mxu1  ;;  %v225_v17 = vld [vmem:[%s23574_s26] sm:$0x3f] }
 0x69e   : > { %v17069_v21 = vadd.f32 %v21274_v16, %v17029_v19 }
 0x6b8   : > { %v21294_v22 = vpop.f32.mrb[176].mxu0 }
 0x6b9   : > { %v21316_v23 = vpop.f32.mrb[176].mxu1  ;;  %v21295_v24 = vpop.f32.mrb[177].mxu0 }
 0x6ba   : > { %v21296_v25 = vadd.f32 %v21295_v24, %v21294_v22  ;;  %v21317_v26 = vpop.f32.mrb[177].mxu1  ;;  %v21297_v27 = vpop.f32.mrb[178].mxu0 }
 0x6bb   : > { %v21318_v28 = vadd.f32 %v21317_v26, %v21316_v23  ;;  %v21319_v29 = vpop.f32.mrb[178].mxu1  ;;  %v21298_v30 = vpop.f32.mrb[179].mxu0 }
 0x6bc   : > { %v17109_v31 = vadd.f32 %v21296_v25, %v17069_v21  ;;  %v21320_v32 = vpop.f32.mrb[179].mxu1 }
 0x6be   : > { %v17149_v33 = vadd.f32 %v21318_v28, %v17109_v31 }
 0x6d8   : > { %v21338_v34 = vpop.f32.mrb[180].mxu0 }
 0x6d9   : > { %v21360_v35 = vpop.f32.mrb[180].mxu1  ;;  %v21339_v36 = vpop.f32.mrb[181].mxu0 }
 0x6da   : > { %v21361_v37 = vpop.f32.mrb[181].mxu1  ;;  %v21340_v38 = vadd.f32 %v21339_v36, %v21338_v34  ;;  %v21341_v40 = vpop.f32.mrb[182].mxu0 }
 0x6db   : > { %v21362_v39 = vadd.f32 %v21361_v37, %v21360_v35  ;;  %v21363_v41 = vpop.f32.mrb[182].mxu1  ;;  %v21342_v42 = vpop.f32.mrb[183].mxu0 }
 0x6dc   : > { %v21364_v43 = vpop.f32.mrb[183].mxu1  ;;  %v17189_v44 = vadd.f32 %v21340_v38, %v17149_v33 }
 0x6de   : > { %v17229_v45 = vadd.f32 %v21362_v39, %v17189_v44 }
 0x6f8   : > { %v21382_v46 = vpop.f32.mrb[184].mxu0 }
 0x6f9   : > { %v21404_v47 = vpop.f32.mrb[184].mxu1  ;;  %v21383_v48 = vpop.f32.mrb[185].mxu0 }
 0x6fa   : > { %v21384_v49 = vadd.f32 %v21383_v48, %v21382_v46  ;;  %v21405_v50 = vpop.f32.mrb[185].mxu1  ;;  %v21385_v51 = vpop.f32.mrb[186].mxu0 }
 0x6fb   : > { %v21406_v52 = vadd.f32 %v21405_v50, %v21404_v47  ;;  %v21407_v53 = vpop.f32.mrb[186].mxu1  ;;  %v21386_v54 = vpop.f32.mrb[187].mxu0 }
 0x6fc   : > { %v17269_v55 = vadd.f32 %v21384_v49, %v17229_v45  ;;  %v21408_v56 = vpop.f32.mrb[187].mxu1 }
 0x6fe   : > { %v17309_v57 = vadd.f32 %v21406_v52, %v17269_v55 }
 0x718   : > { %v21426_v58 = vpop.f32.mrb[188].mxu0 }
 0x719   : > { %v21448_v59 = vpop.f32.mrb[188].mxu1  ;;  %v21427_v60 = vpop.f32.mrb[189].mxu0 }
 0x71a   : > { %v21428_v61 = vadd.f32 %v21427_v60, %v21426_v58  ;;  %v21449_v62 = vpop.f32.mrb[189].mxu1  ;;  %v21429_v63 = vpop.f32.mrb[190].mxu0 }
 0x71b   : > { %v21450_v0 = vadd.f32 %v21449_v62, %v21448_v59  ;;  %v21451_v1 = vpop.f32.mrb[190].mxu1  ;;  %v21430_v2 = vpop.f32.mrb[191].mxu0 }
 0x71c   : > { %v17349_v3 = vadd.f32 %v21428_v61, %v17309_v57  ;;  %v21452_v4 = vpop.f32.mrb[191].mxu1 }
 0x71e   : > { %v17389_v5 = vadd.f32 %v21450_v0, %v17349_v3 }
 0x738   : > { %v21470_v6 = vpop.f32.mrb[192].mxu0 }
 0x739   : > { %v21492_v7 = vpop.f32.mrb[192].mxu1  ;;  %v21471_v8 = vpop.f32.mrb[193].mxu0 }
 0x73a   : > { %v21472_v9 = vadd.f32 %v21471_v8, %v21470_v6  ;;  %v21493_v10 = vpop.f32.mrb[193].mxu1  ;;  %v21473_v11 = vpop.f32.mrb[194].mxu0 }
 0x73b   : > { %v21494_v12 = vadd.f32 %v21493_v10, %v21492_v7  ;;  %v21495_v13 = vpop.f32.mrb[194].mxu1  ;;  %v21474_v14 = vpop.f32.mrb[195].mxu0 }
 0x73c   : > { %v17429_v15 = vadd.f32 %v21472_v9, %v17389_v5  ;;  %v21496_v16 = vpop.f32.mrb[195].mxu1 }
 0x73e   : > { %v17469_v18 = vadd.f32 %v21494_v12, %v17429_v15 }
 0x740   : > { %v17474_v19 = vadd.f32 %v17469_v18, %v225_v17 }
 0x742   : > { %17475 = vst [vmem:[%s23574_s26] sm:$0x3f] %v17474_v19 }
 0x743 PF: > { %s15_s16 = sadd.s32 1, %s23434_s16   ;;  %s25403_s9 = smov %s23410_s10 }
 0x744   : > { %p12_p6 = scmp.ge.s32.totalorder %s15_s16, 8   ;;  %s25404_s10 = smov %s23414_s11 }
 0x745   : > { %s25405_s11 = smov %s23521_s3  ;;  %s25406_s12 = smov %s23426_s14 }
 0x746   : > { %s25407_s13 = smov %s23430_s15  ;;  %s25408_s14 = smov %s25411_s18 }
 0x747   : > { %s25409_s15 = smov %s25415_s19  ;;  %14 = sbr.rel (!%p12_p6) target bundleno = 5 (0x5), region = 75 }
 0x74e   :  { %17495 = vsyncpa [#allocation3], 1 }
 0x74f   :  { %17497 = vsyncpa [#allocation3 + $0x1], 1 }

</bundles_post_ra>
